<compile_context>
chip_gen: v5e
topology: v5e:2x2
jax: 0.10.0
libtpu: 0.0.40
codegen_flags: <defaults>
</compile_context>

<pallas_src>
import functools

import jax
import jax.numpy as jnp
from jax.experimental import pallas as pl
from jax.experimental.pallas import tpu as pltpu

LEAKY_SLOPE = 0.2
BN_EPS = 1e-5


# ---------------------------------------------------------------------------
# Per-generation VMEM sizing
# ---------------------------------------------------------------------------
def _vmem_capacity_bytes():
    try:
        return int(pltpu.get_tpu_info().vmem_capacity_bytes)
    except Exception:
        return 64 * 1024 * 1024  # conservative (v7x per-TC size)


_VMEM_CAP = _vmem_capacity_bytes()
# v5e/v6e (128 MiB physical) -> 64 MiB scoped limit / 48 MiB working-set budget
# v7x     (64 MiB per TC)    -> 32 MiB scoped limit / 24 MiB working-set budget
_VMEM_LIMIT = min(_VMEM_CAP // 2, 64 * 1024 * 1024)
_VMEM_BUDGET = (3 * _VMEM_LIMIT) // 4

_MOSAIC_PARAMS = pltpu.CompilerParams(
    dimension_semantics=("parallel",),
    vmem_limit_bytes=_VMEM_LIMIT,
)

_SINGLE_BUFFER_MIN_BYTES = 1 << 20  # only bother single-buffering big weights


def _pad128(n):
    return ((n + 127) // 128) * 128


def _weight_spec(block_shape, index_map, nbytes):
    """Weight block has a constant index_map -> it never changes across grid
    steps, so it does not need double buffering.  Only request the newer
    pipeline_mode API when the block is large enough to matter for VMEM."""
    if nbytes >= _SINGLE_BUFFER_MIN_BYTES:
        try:
            return pl.BlockSpec(block_shape, index_map,
                                pipeline_mode=pl.Buffered(1)), 1
        except Exception:
            pass
    return pl.BlockSpec(block_shape, index_map), 2


# ---------------------------------------------------------------------------
# Pallas kernel: one image of a 4x4 / stride-2 / pad-1 conv
# ---------------------------------------------------------------------------
def _conv2x2_kernel(*refs, s, oh, ow, act, with_stats, in_bn):
    """Fused conv for one image over the flattened space-to-depth input.

    x_ref : (R*S, 4*Cin) bf16 with R = oh+1, S = ow+1 (flattened s2d image).
    w_ref : (2, 2, 4*Cin, Cout) bf16.
    The 2x2/stride-1 taps are contiguous row-slabs of x_ref shifted by
    {0, 1, S, S+1}.  Slab row k corresponds to output (k // S, k % S); rows
    with k % S == ow are wrap-around garbage that the wrapper slices off and
    that are masked out of the fused BN statistics.
    """
    if in_bn:
        x_ref, w_ref, scale_ref, shift_ref = refs[:4]
        out_refs = refs[4:]
    else:
        x_ref, w_ref = refs[:2]
        out_refs = refs[2:]
    y_ref = out_refs[0]

    L = oh * s - 1  # covers every valid output position (and OH-1 garbage rows)

    acc = None
    for di in range(2):
        for dj in range(2):
            start = di * s + dj
            tap = x_ref[start:start + L, :]                       # (L, 4*Cin) bf16
            if in_bn:
                # Previous layer's BatchNorm + LeakyReLU, fused at the consumer.
                t = tap.astype(jnp.float32) * scale_ref[...] + shift_ref[...]
                tap = jnp.where(t >= 0, t, LEAKY_SLOPE * t).astype(jnp.bfloat16)
            z = jnp.dot(tap, w_ref[di, dj], preferred_element_type=jnp.float32)
            acc = z if acc is None else acc + z                   # (L, Cout) f32

    if with_stats:
        psum_ref, psq_ref = out_refs[1], out_refs[2]
        k = jax.lax.broadcasted_iota(jnp.int32, (L, 1), 0)
        keep = (k % s) != ow                                      # drop garbage rows
        av = jnp.where(keep, acc, 0.0)
        psum_ref[...] = jnp.sum(av, axis=0, keepdims=True)
        psq_ref[...] = jnp.sum(av * av, axis=0, keepdims=True)

    if act == "leaky":
        acc = jnp.where(acc >= 0, acc, LEAKY_SLOPE * acc)

    y_ref[0:L, :] = acc.astype(y_ref.dtype)
    y_ref[L:L + 1, :] = jnp.zeros((1, y_ref.shape[1]), y_ref.dtype)


# ---------------------------------------------------------------------------
# Wrapper
# ---------------------------------------------------------------------------
def conv4x4_s2d(xs, w4, *, act="none", with_stats=False,
                bn_scale=None, bn_shift=None):
    """4x4 / stride-2 / pad-1 conv, one image per grid step.

    xs : (B, OH+1, OW+1, 4*Cin) bf16 -- padded + 2x2 space-to-depth input.
    w4 : (2, 2, 4*Cin, Cout) bf16 (see _w_s2d).
    bn_scale/bn_shift : (1, 4*Cin) f32 -- previous layer's BN+LeakyReLU applied
        to the input tile inside the kernel.
    Returns y : (B, OH*(OW+1), Cout) bf16 (column OW of each row is garbage,
    sliced off by the caller) and, when with_stats, per-image partial sums /
    sums of squares (B, 1, Cout) f32 over the valid positions only.
    """
    B, R, S, C4 = xs.shape
    OH, OW = R - 1, S - 1
    Cout = w4.shape[-1]
    in_bn = bn_scale is not None

    xs_flat = xs.reshape(B, R * S, C4)  # free, contiguous

    in_specs = [pl.BlockSpec((None, R * S, C4), lambda b: (b, 0, 0))]
    args = [xs_flat]
    w_spec, w_bufs = _weight_spec((2, 2, C4, Cout), lambda b: (0, 0, 0, 0),
                                  nbytes=4 * C4 * Cout * 2)
    in_specs.append(w_spec)
    args.append(w4)
    if in_bn:
        in_specs += [pl.BlockSpec((1, C4), lambda b: (0, 0)),
                     pl.BlockSpec((1, C4), lambda b: (0, 0))]
        args += [bn_scale, bn_shift]

    y_shape = jax.ShapeDtypeStruct((B, OH * S, Cout), jnp.bfloat16)
    y_spec = pl.BlockSpec((None, OH * S, Cout), lambda b: (b, 0, 0))
    if with_stats:
        stat_shape = jax.ShapeDtypeStruct((B, 1, Cout), jnp.float32)
        stat_spec = pl.BlockSpec((None, 1, Cout), lambda b: (b, 0, 0))
        out_shape = (y_shape, stat_shape, stat_shape)
        out_specs = (y_spec, stat_spec, stat_spec)
    else:
        out_shape = y_shape
        out_specs = y_spec

    # VMEM working-set estimate (lane-padded, incl. the f32 accumulator and the
    # double-buffered activation tiles).  Fail loudly instead of compiling a
    # tiling that blows the scoped limit.
    c4p, coutp = _pad128(C4), _pad128(Cout)
    est = (2 * R * S * c4p * 2 +                 # input tile x2 buffers (bf16)
           w_bufs * 4 * c4p * coutp * 2 +        # resident weight
           2 * OH * S * coutp * 2 +              # output tile x2 buffers (bf16)
           2 * OH * S * coutp * 4 +              # f32 accumulator (+ temp)
           (OH * S * c4p * 4 if in_bn else 0))   # f32 BN'd input tap
    assert est <= _VMEM_BUDGET, (
        f"conv4x4_s2d working set ~{est} B exceeds VMEM budget {_VMEM_BUDGET} B;"
        " add a K/Cout grid axis for this size")

    return pl.pallas_call(
        functools.partial(_conv2x2_kernel, s=S, oh=OH, ow=OW,
                          act=act, with_stats=with_stats, in_bn=in_bn),
        out_shape=out_shape,
        grid_spec=pltpu.PrefetchScalarGridSpec(
            num_scalar_prefetch=0,
            grid=(B,),                 # one image per step; parallel -> megacore
            in_specs=in_specs,
            out_specs=out_specs,
        ),
        compiler_params=_MOSAIC_PARAMS,
    )(*args)


# ---------------------------------------------------------------------------
# XLA-side glue (pure data movement, ~1x activation copies)
# ---------------------------------------------------------------------------
def space_to_depth_pad(x, pad_val=None):
    """NHWC pad-by-1 + 2x2 space-to-depth: (B,H,W,C) -> (B,H/2+1,W/2+1,4C).

    Result channel order is (sub_row, sub_col, c).  pad_val is the per-channel
    value (C,) the conv kernel should see in the 1-pixel border (None = zeros).
    For a consumer that applies BN+LeakyReLU in-kernel the border is
    -shift/scale so it maps back to exactly zero post-BN.
    """
    B, H, W, C = x.shape
    if pad_val is None:
        xp = jnp.pad(x, ((0, 0), (1, 1), (1, 1), (0, 0)))
    else:
        pv = jnp.broadcast_to(pad_val.astype(x.dtype), (B, H + 2, W + 2, C))
        xp = pv.at[:, 1:-1, 1:-1, :].set(x)
    Hp, Wp = H + 2, W + 2
    xs = xp.reshape(B, Hp // 2, 2, Wp // 2, 2, C)
    xs = xs.transpose(0, 1, 3, 2, 4, 5)
    return xs.reshape(B, Hp // 2, Wp // 2, 4 * C)


def _w_s2d(w):
    """HWIO (4,4,Cin,Cout) -> (2,2,4*Cin,Cout) bf16 matching the s2d channel order."""
    kh, kw, cin, cout = w.shape
    assert kh == 4 and kw == 4
    w4 = w.astype(jnp.bfloat16).reshape(2, 2, 2, 2, cin, cout)
    w4 = w4.transpose(0, 2, 1, 3, 4, 5)          # (di, dj, sub_r, sub_c, cin, cout)
    return w4.reshape(2, 2, 4 * cin, cout)


def _strip(y, b, oh, ow, c):
    """Drop the wrap-around garbage column and restore NHWC."""
    return y.reshape(b, oh, ow + 1, c)[:, :, :ow, :]


def _bn_affine(psum, psq, m, gamma, beta):
    """Training-mode BatchNorm affine (batch statistics, biased variance)."""
    sums = jnp.sum(psum, axis=0)[0]
    sqs = jnp.sum(psq, axis=0)[0]
    mean = sums / m
    var = jnp.maximum(sqs / m - mean * mean, 0.0)   # clamp f32 rounding
    scale = gamma * jax.lax.rsqrt(var + BN_EPS)
    shift = beta - mean * scale
    return scale, shift


# ---------------------------------------------------------------------------
# Discriminator forward
# ---------------------------------------------------------------------------
def discriminator_forward(x_nchw, params):
    """Replicates Discriminator.forward (training-mode BatchNorm, batch stats)."""
    x = jnp.transpose(x_nchw, (0, 2, 3, 1)).astype(jnp.bfloat16)  # NCHW -> NHWC
    B, H = x.shape[0], x.shape[1]
    ndf = params["w1"].shape[-1]

    # layer 1: conv(4,2,1) + LeakyReLU(0.2), fused in the kernel.
    y = conv4x4_s2d(space_to_depth_pad(x), _w_s2d(params["w1"]), act="leaky")
    H //= 2
    x = _strip(y, B, H, H, ndf)

    # layer 2: conv + fused per-image BN partial statistics.
    y, ps, pq = conv4x4_s2d(space_to_depth_pad(x), _w_s2d(params["w2"]),
                            with_stats=True)
    H //= 2
    scale, shift = _bn_affine(ps, pq, B * H * H, params["gamma2"], params["beta2"])
    y_prev, c_prev = y, 2 * ndf

    # layers 3-4: previous layer's BN + LeakyReLU is applied to the input tile
    # inside this conv's kernel (no standalone bn pass through HBM).  The conv's
    # zero padding is pre-filled with -shift/scale so that it becomes exactly
    # zero after the in-kernel BN+LeakyReLU (scale > 0 for any sane gamma).
    for idx in (3, 4):
        x = _strip(y_prev, B, H, H, c_prev)
        pad_val = -shift / jnp.where(scale == 0, 1.0, scale)
        xs = space_to_depth_pad(x, pad_val=pad_val)
        y, ps, pq = conv4x4_s2d(
            xs, _w_s2d(params[f"w{idx}"]), with_stats=True,
            bn_scale=jnp.tile(scale, 4)[None, :].astype(jnp.float32),
            bn_shift=jnp.tile(shift, 4)[None, :].astype(jnp.float32))
        H //= 2
        scale, shift = _bn_affine(ps, pq, B * H * H,
                                  params[f"gamma{idx}"], params[f"beta{idx}"])
        y_prev, c_prev = y, c_prev * 2

    # layer-4 BN + LeakyReLU, then the 4x4/stride-1/valid conv head + Sigmoid.
    # This is only B x (4*4*8*ndf): a Pallas call here is pure launch/DMA overhead.
    a = _strip(y_prev, B, H, H, c_prev).astype(jnp.float32) * scale + shift
    a = jnp.where(a >= 0, a, LEAKY_SLOPE * a)
    w5 = params["w5"].astype(jnp.bfloat16).reshape(-1, 1)         # (4*4*8ndf, 1)
    logits = jnp.dot(a.astype(jnp.bfloat16).reshape(B, -1), w5,
                     preferred_element_type=jnp.float32)
    return jax.nn.sigmoid(logits).reshape(-1)                     # .view(-1,1).squeeze(1)


def init_params(key, nc, ndf):
    # Weights stored HWIO (kh, kw, cin, cout); PyTorch OIHW would need a transpose.
    ks = jax.random.split(key, 5)
    p = {
        "w1": jax.random.normal(ks[0], (4, 4, nc, ndf), jnp.float32) * 0.02,
        "w2": jax.random.normal(ks[1], (4, 4, ndf, ndf * 2), jnp.float32) * 0.02,
        "w3": jax.random.normal(ks[2], (4, 4, ndf * 2, ndf * 4), jnp.float32) * 0.02,
        "w4": jax.random.normal(ks[3], (4, 4, ndf * 4, ndf * 8), jnp.float32) * 0.02,
        "w5": jax.random.normal(ks[4], (4, 4, ndf * 8, 1), jnp.float32) * 0.02,
    }
    for idx, c in ((2, ndf * 2), (3, ndf * 4), (4, ndf * 8)):
        p[f"gamma{idx}"] = jnp.ones((c,), jnp.float32)   # BatchNorm default weight
        p[f"beta{idx}"] = jnp.zeros((c,), jnp.float32)   # BatchNorm default bias
    return p


if __name__ == "__main__":
    nc, ndf = 3, 8            # small ndf; spatial must be 64 for the DCGAN head
    batch, spatial = 2, 64

    key = jax.random.PRNGKey(0)
    k_params, k_x = jax.random.split(key)
    params = init_params(k_params, nc, ndf)
    x = jax.random.normal(k_x, (batch, nc, spatial, spatial), jnp.float32)

    out = jax.jit(discriminator_forward)(x, params)
    out = jax.block_until_ready(out)

    assert out.shape == (batch,), out.shape
    assert bool(jnp.all(jnp.isfinite(out)))
    assert bool(jnp.all((out >= 0.0) & (out <= 1.0)))
    print("KERNEL_OK")
</pallas_src>

<mosaic_0001>
module attributes {stable_mosaic.version = 11 : i64} {
  func.func @_conv2x2_kernel(%arg0: i32, %arg1: memref<1x1089x12xbf16, #tpu.memory_space<vmem>>, %arg2: memref<2x2x12x8xbf16, #tpu.memory_space<vmem>>, %arg3: memref<1x1056x8xbf16, #tpu.memory_space<vmem>>) attributes {dimension_semantics = [#tpu.dimension_semantics<parallel>], iteration_bounds = array<i64: 2>, scalar_prefetch = 0 : i64, scratch_operands = 0 : i64, tpu.core_type = #tpu.core_type<tc>, window_params = [{transform_indices = @transform_0, window_bounds = array<i64: 1, 1089, 12>}, {pipeline_mode = #tpu.pipeline_mode<synchronous>, transform_indices = @transform_1, window_bounds = array<i64: 2, 2, 12, 8>}, {transform_indices = @transform_2, window_bounds = array<i64: 1, 1056, 8>}]} {
    %c0 = arith.constant 0 : index
    %c0_0 = arith.constant 0 : index
    %c0_1 = arith.constant 0 : index
    %0 = vector.load %arg1[%c0, %c0_0, %c0_1] : memref<1x1089x12xbf16, #tpu.memory_space<vmem>>, vector<1x1055x12xbf16>
    %1 = vector.shape_cast %0 : vector<1x1055x12xbf16> to vector<1055x12xbf16>
    %c0_2 = arith.constant 0 : index
    %c0_3 = arith.constant 0 : index
    %c0_4 = arith.constant 0 : index
    %c0_5 = arith.constant 0 : index
    %2 = vector.load %arg2[%c0_2, %c0_3, %c0_4, %c0_5] : memref<2x2x12x8xbf16, #tpu.memory_space<vmem>>, vector<1x1x12x8xbf16>
    %3 = vector.shape_cast %2 : vector<1x1x12x8xbf16> to vector<12x8xbf16>
    %cst = arith.constant dense<0.000000e+00> : vector<1055x8xf32>
    %4 = tpu.matmul %1, %3, %cst {dimension_numbers = #tpu.dot_dimension_numbers<[1], [0], [0], [1], [0, 0, 1, 1], [], []>} : vector<1055x12xbf16>, vector<12x8xbf16>, vector<1055x8xf32> -> vector<1055x8xf32>
    %c0_6 = arith.constant 0 : index
    %c1 = arith.constant 1 : index
    %c0_7 = arith.constant 0 : index
    %5 = vector.load %arg1[%c0_6, %c1, %c0_7] : memref<1x1089x12xbf16, #tpu.memory_space<vmem>>, vector<1x1055x12xbf16>
    %6 = vector.shape_cast %5 : vector<1x1055x12xbf16> to vector<1055x12xbf16>
    %c0_8 = arith.constant 0 : index
    %c1_9 = arith.constant 1 : index
    %c0_10 = arith.constant 0 : index
    %c0_11 = arith.constant 0 : index
    %7 = vector.load %arg2[%c0_8, %c1_9, %c0_10, %c0_11] : memref<2x2x12x8xbf16, #tpu.memory_space<vmem>>, vector<1x1x12x8xbf16>
    %8 = vector.shape_cast %7 : vector<1x1x12x8xbf16> to vector<12x8xbf16>
    %cst_12 = arith.constant dense<0.000000e+00> : vector<1055x8xf32>
    %9 = tpu.matmul %6, %8, %cst_12 {dimension_numbers = #tpu.dot_dimension_numbers<[1], [0], [0], [1], [0, 0, 1, 1], [], []>} : vector<1055x12xbf16>, vector<12x8xbf16>, vector<1055x8xf32> -> vector<1055x8xf32>
    %10 = arith.addf %4, %9 : vector<1055x8xf32>
    %c0_13 = arith.constant 0 : index
    %c33 = arith.constant 33 : index
    %c0_14 = arith.constant 0 : index
    %11 = vector.load %arg1[%c0_13, %c33, %c0_14] : memref<1x1089x12xbf16, #tpu.memory_space<vmem>>, vector<1x1055x12xbf16>
    %12 = vector.shape_cast %11 : vector<1x1055x12xbf16> to vector<1055x12xbf16>
    %c1_15 = arith.constant 1 : index
    %c0_16 = arith.constant 0 : index
    %c0_17 = arith.constant 0 : index
    %c0_18 = arith.constant 0 : index
    %13 = vector.load %arg2[%c1_15, %c0_16, %c0_17, %c0_18] : memref<2x2x12x8xbf16, #tpu.memory_space<vmem>>, vector<1x1x12x8xbf16>
    %14 = vector.shape_cast %13 : vector<1x1x12x8xbf16> to vector<12x8xbf16>
    %cst_19 = arith.constant dense<0.000000e+00> : vector<1055x8xf32>
    %15 = tpu.matmul %12, %14, %cst_19 {dimension_numbers = #tpu.dot_dimension_numbers<[1], [0], [0], [1], [0, 0, 1, 1], [], []>} : vector<1055x12xbf16>, vector<12x8xbf16>, vector<1055x8xf32> -> vector<1055x8xf32>
    %16 = arith.addf %10, %15 : vector<1055x8xf32>
    %c0_20 = arith.constant 0 : index
    %c34 = arith.constant 34 : index
    %c0_21 = arith.constant 0 : index
    %17 = vector.load %arg1[%c0_20, %c34, %c0_21] : memref<1x1089x12xbf16, #tpu.memory_space<vmem>>, vector<1x1055x12xbf16>
    %18 = vector.shape_cast %17 : vector<1x1055x12xbf16> to vector<1055x12xbf16>
    %c1_22 = arith.constant 1 : index
    %c1_23 = arith.constant 1 : index
    %c0_24 = arith.constant 0 : index
    %c0_25 = arith.constant 0 : index
    %19 = vector.load %arg2[%c1_22, %c1_23, %c0_24, %c0_25] : memref<2x2x12x8xbf16, #tpu.memory_space<vmem>>, vector<1x1x12x8xbf16>
    %20 = vector.shape_cast %19 : vector<1x1x12x8xbf16> to vector<12x8xbf16>
    %cst_26 = arith.constant dense<0.000000e+00> : vector<1055x8xf32>
    %21 = tpu.matmul %18, %20, %cst_26 {dimension_numbers = #tpu.dot_dimension_numbers<[1], [0], [0], [1], [0, 0, 1, 1], [], []>} : vector<1055x12xbf16>, vector<12x8xbf16>, vector<1055x8xf32> -> vector<1055x8xf32>
    %22 = arith.addf %16, %21 : vector<1055x8xf32>
    %cst_27 = arith.constant 0.000000e+00 : f32
    %23 = vector.broadcast %cst_27 : f32 to vector<1055x8xf32>
    %24 = arith.cmpf oge, %22, %23 : vector<1055x8xf32>
    %cst_28 = arith.constant 2.000000e-01 : f32
    %25 = vector.broadcast %cst_28 : f32 to vector<1055x8xf32>
    %26 = arith.mulf %25, %22 : vector<1055x8xf32>
    %27 = arith.select %24, %22, %26 : vector<1055x8xi1>, vector<1055x8xf32>
    %28 = arith.truncf %27 : vector<1055x8xf32> to vector<1055x8xbf16>
    %c0_29 = arith.constant 0 : index
    %c0_30 = arith.constant 0 : index
    %c0_31 = arith.constant 0 : index
    %29 = vector.load %arg3[%c0_29, %c0_30, %c0_31] : memref<1x1056x8xbf16, #tpu.memory_space<vmem>>, vector<1x1055x8xbf16>
    %30 = vector.shape_cast %29 : vector<1x1055x8xbf16> to vector<1055x8xbf16>
    %31 = vector.shape_cast %28 : vector<1055x8xbf16> to vector<1x1055x8xbf16>
    tpu.vector_store %arg3[%c0_29, %c0_30, %c0_31], %31 {strides = array<i32>} : memref<1x1056x8xbf16, #tpu.memory_space<vmem>>, vector<1x1055x8xbf16>,
    %cst_32 = arith.constant 0.000000e+00 : bf16
    %32 = vector.broadcast %cst_32 : bf16 to vector<1x8xbf16>
    %c0_33 = arith.constant 0 : index
    %c1055 = arith.constant 1055 : index
    %c0_34 = arith.constant 0 : index
    %33 = vector.load %arg3[%c0_33, %c1055, %c0_34] : memref<1x1056x8xbf16, #tpu.memory_space<vmem>>, vector<1x1x8xbf16>
    %34 = vector.shape_cast %33 : vector<1x1x8xbf16> to vector<1x8xbf16>
    %35 = vector.shape_cast %32 : vector<1x8xbf16> to vector<1x1x8xbf16>
    tpu.vector_store %arg3[%c0_33, %c1055, %c0_34], %35 {strides = array<i32>} : memref<1x1056x8xbf16, #tpu.memory_space<vmem>>, vector<1x1x8xbf16>,
    return
  }
  func.func @transform_0(%arg0: i32) -> (i32, i32, i32) {
    %c0_i32 = arith.constant 0 : i32
    %c0_i32_0 = arith.constant 0 : i32
    %c0_i32_1 = arith.constant 0 : i32
    return %arg0, %c0_i32, %c0_i32_0 : i32, i32, i32
  }
  func.func @transform_1(%arg0: i32) -> (i32, i32, i32, i32) {
    %c0_i32 = arith.constant 0 : i32
    %c0_i32_0 = arith.constant 0 : i32
    %c0_i32_1 = arith.constant 0 : i32
    %c0_i32_2 = arith.constant 0 : i32
    %c0_i32_3 = arith.constant 0 : i32
    return %c0_i32, %c0_i32_0, %c0_i32_1, %c0_i32_2 : i32, i32, i32, i32
  }
  func.func @transform_2(%arg0: i32) -> (i32, i32, i32) {
    %c0_i32 = arith.constant 0 : i32
    %c0_i32_0 = arith.constant 0 : i32
    %c0_i32_1 = arith.constant 0 : i32
    return %arg0, %c0_i32, %c0_i32_0 : i32, i32, i32
  }
}

module attributes {stable_mosaic.version = 11 : i64} {
  func.func @_conv2x2_kernel(%arg0: i32, %arg1: memref<1x289x32xbf16, #tpu.memory_space<vmem>>, %arg2: memref<2x2x32x16xbf16, #tpu.memory_space<vmem>>, %arg3: memref<1x272x16xbf16, #tpu.memory_space<vmem>>, %arg4: memref<1x1x16xf32, #tpu.memory_space<vmem>>, %arg5: memref<1x1x16xf32, #tpu.memory_space<vmem>>) attributes {dimension_semantics = [#tpu.dimension_semantics<parallel>], iteration_bounds = array<i64: 2>, scalar_prefetch = 0 : i64, scratch_operands = 0 : i64, tpu.core_type = #tpu.core_type<tc>, window_params = [{transform_indices = @transform_0, window_bounds = array<i64: 1, 289, 32>}, {pipeline_mode = #tpu.pipeline_mode<synchronous>, transform_indices = @transform_1, window_bounds = array<i64: 2, 2, 32, 16>}, {transform_indices = @transform_2, window_bounds = array<i64: 1, 272, 16>}, {transform_indices = @transform_3, window_bounds = array<i64: 1, 1, 16>}, {transform_indices = @transform_4, window_bounds = array<i64: 1, 1, 16>}]} {
    %c0 = arith.constant 0 : index
    %c0_0 = arith.constant 0 : index
    %c0_1 = arith.constant 0 : index
    %0 = vector.load %arg1[%c0, %c0_0, %c0_1] : memref<1x289x32xbf16, #tpu.memory_space<vmem>>, vector<1x271x32xbf16>
    %1 = vector.shape_cast %0 : vector<1x271x32xbf16> to vector<271x32xbf16>
    %c0_2 = arith.constant 0 : index
    %c0_3 = arith.constant 0 : index
    %c0_4 = arith.constant 0 : index
    %c0_5 = arith.constant 0 : index
    %2 = vector.load %arg2[%c0_2, %c0_3, %c0_4, %c0_5] : memref<2x2x32x16xbf16, #tpu.memory_space<vmem>>, vector<1x1x32x16xbf16>
    %3 = vector.shape_cast %2 : vector<1x1x32x16xbf16> to vector<32x16xbf16>
    %cst = arith.constant dense<0.000000e+00> : vector<271x16xf32>
    %4 = tpu.matmul %1, %3, %cst {dimension_numbers = #tpu.dot_dimension_numbers<[1], [0], [0], [1], [0, 0, 1, 1], [], []>} : vector<271x32xbf16>, vector<32x16xbf16>, vector<271x16xf32> -> vector<271x16xf32>
    %c0_6 = arith.constant 0 : index
    %c1 = arith.constant 1 : index
    %c0_7 = arith.constant 0 : index
    %5 = vector.load %arg1[%c0_6, %c1, %c0_7] : memref<1x289x32xbf16, #tpu.memory_space<vmem>>, vector<1x271x32xbf16>
    %6 = vector.shape_cast %5 : vector<1x271x32xbf16> to vector<271x32xbf16>
    %c0_8 = arith.constant 0 : index
    %c1_9 = arith.constant 1 : index
    %c0_10 = arith.constant 0 : index
    %c0_11 = arith.constant 0 : index
    %7 = vector.load %arg2[%c0_8, %c1_9, %c0_10, %c0_11] : memref<2x2x32x16xbf16, #tpu.memory_space<vmem>>, vector<1x1x32x16xbf16>
    %8 = vector.shape_cast %7 : vector<1x1x32x16xbf16> to vector<32x16xbf16>
    %cst_12 = arith.constant dense<0.000000e+00> : vector<271x16xf32>
    %9 = tpu.matmul %6, %8, %cst_12 {dimension_numbers = #tpu.dot_dimension_numbers<[1], [0], [0], [1], [0, 0, 1, 1], [], []>} : vector<271x32xbf16>, vector<32x16xbf16>, vector<271x16xf32> -> vector<271x16xf32>
    %10 = arith.addf %4, %9 : vector<271x16xf32>
    %c0_13 = arith.constant 0 : index
    %c17 = arith.constant 17 : index
    %c0_14 = arith.constant 0 : index
    %11 = vector.load %arg1[%c0_13, %c17, %c0_14] : memref<1x289x32xbf16, #tpu.memory_space<vmem>>, vector<1x271x32xbf16>
    %12 = vector.shape_cast %11 : vector<1x271x32xbf16> to vector<271x32xbf16>
    %c1_15 = arith.constant 1 : index
    %c0_16 = arith.constant 0 : index
    %c0_17 = arith.constant 0 : index
    %c0_18 = arith.constant 0 : index
    %13 = vector.load %arg2[%c1_15, %c0_16, %c0_17, %c0_18] : memref<2x2x32x16xbf16, #tpu.memory_space<vmem>>, vector<1x1x32x16xbf16>
    %14 = vector.shape_cast %13 : vector<1x1x32x16xbf16> to vector<32x16xbf16>
    %cst_19 = arith.constant dense<0.000000e+00> : vector<271x16xf32>
    %15 = tpu.matmul %12, %14, %cst_19 {dimension_numbers = #tpu.dot_dimension_numbers<[1], [0], [0], [1], [0, 0, 1, 1], [], []>} : vector<271x32xbf16>, vector<32x16xbf16>, vector<271x16xf32> -> vector<271x16xf32>
    %16 = arith.addf %10, %15 : vector<271x16xf32>
    %c0_20 = arith.constant 0 : index
    %c18 = arith.constant 18 : index
    %c0_21 = arith.constant 0 : index
    %17 = vector.load %arg1[%c0_20, %c18, %c0_21] : memref<1x289x32xbf16, #tpu.memory_space<vmem>>, vector<1x271x32xbf16>
    %18 = vector.shape_cast %17 : vector<1x271x32xbf16> to vector<271x32xbf16>
    %c1_22 = arith.constant 1 : index
    %c1_23 = arith.constant 1 : index
    %c0_24 = arith.constant 0 : index
    %c0_25 = arith.constant 0 : index
    %19 = vector.load %arg2[%c1_22, %c1_23, %c0_24, %c0_25] : memref<2x2x32x16xbf16, #tpu.memory_space<vmem>>, vector<1x1x32x16xbf16>
    %20 = vector.shape_cast %19 : vector<1x1x32x16xbf16> to vector<32x16xbf16>
    %cst_26 = arith.constant dense<0.000000e+00> : vector<271x16xf32>
    %21 = tpu.matmul %18, %20, %cst_26 {dimension_numbers = #tpu.dot_dimension_numbers<[1], [0], [0], [1], [0, 0, 1, 1], [], []>} : vector<271x32xbf16>, vector<32x16xbf16>, vector<271x16xf32> -> vector<271x16xf32>
    %22 = arith.addf %16, %21 : vector<271x16xf32>
    %23 = tpu.iota {dimensions = array<i32: 0>} : vector<271x1xi32>
    %c17_i32 = arith.constant 17 : i32
    %c0_i32 = arith.constant 0 : i32
    %24 = arith.cmpi eq, %c17_i32, %c0_i32 : i32
    %c1_i32 = arith.constant 1 : i32
    %25 = arith.select %24, %c1_i32, %c17_i32 : i32
    %26 = vector.broadcast %25 : i32 to vector<271x1xi32>
    %27 = arith.remsi %23, %26 : vector<271x1xi32>
    %c0_i32_27 = arith.constant 0 : i32
    %28 = vector.broadcast %c0_i32_27 : i32 to vector<271x1xi32>
    %29 = arith.cmpi ne, %27, %28 : vector<271x1xi32>
    %c0_i32_28 = arith.constant 0 : i32
    %30 = vector.broadcast %c0_i32_28 : i32 to vector<271x1xi32>
    %31 = arith.cmpi slt, %27, %30 : vector<271x1xi32>
    %c0_i32_29 = arith.constant 0 : i32
    %32 = arith.cmpi slt, %25, %c0_i32_29 : i32
    %33 = vector.broadcast %32 : i1 to vector<271x1xi1>
    %34 = vector.broadcast %33 : vector<271x1xi1> to vector<271x1xi1>
    %35 = arith.xori %31, %34 : vector<271x1xi1>
    %36 = arith.andi %35, %29 : vector<271x1xi1>
    %37 = vector.broadcast %25 : i32 to vector<271x1xi32>
    %38 = arith.addi %27, %37 : vector<271x1xi32>
    %39 = arith.select %36, %38, %27 : vector<271x1xi1>, vector<271x1xi32>
    %c16_i32 = arith.constant 16 : i32
    %40 = vector.broadcast %c16_i32 : i32 to vector<271x1xi32>
    %41 = arith.cmpi ne, %39, %40 : vector<271x1xi32>
    %cst_30 = arith.constant 0.000000e+00 : f32
    %42 = vector.shape_cast %41 : vector<271x1xi1> to vector<271x1xi1>
    %43 = vector.broadcast %42 : vector<271x1xi1> to vector<271x16xi1>
    %44 = vector.broadcast %cst_30 : f32 to vector<271x16xf32>
    %45 = arith.select %43, %22, %44 : vector<271x16xi1>, vector<271x16xf32>
    %cst_31 = arith.constant dense<0.000000e+00> : vector<16xf32>
    %46 = vector.multi_reduction <add>, %45, %cst_31 [0] : vector<271x16xf32> to vector<16xf32>
    %47 = vector.shape_cast %46 : vector<16xf32> to vector<1x16xf32>
    %c0_32 = arith.constant 0 : index
    %c0_33 = arith.constant 0 : index
    %c0_34 = arith.constant 0 : index
    %48 = vector.load %arg4[%c0_32, %c0_33, %c0_34] : memref<1x1x16xf32, #tpu.memory_space<vmem>>, vector<1x1x16xf32>
    %49 = vector.shape_cast %48 : vector<1x1x16xf32> to vector<1x16xf32>
    %50 = vector.shape_cast %47 : vector<1x16xf32> to vector<1x1x16xf32>
    tpu.vector_store %arg4[%c0_32, %c0_33, %c0_34], %50 {strides = array<i32>} : memref<1x1x16xf32, #tpu.memory_space<vmem>>, vector<1x1x16xf32>,
    %51 = arith.mulf %45, %45 : vector<271x16xf32>
    %cst_35 = arith.constant dense<0.000000e+00> : vector<16xf32>
    %52 = vector.multi_reduction <add>, %51, %cst_35 [0] : vector<271x16xf32> to vector<16xf32>
    %53 = vector.shape_cast %52 : vector<16xf32> to vector<1x16xf32>
    %c0_36 = arith.constant 0 : index
    %c0_37 = arith.constant 0 : index
    %c0_38 = arith.constant 0 : index
    %54 = vector.load %arg5[%c0_36, %c0_37, %c0_38] : memref<1x1x16xf32, #tpu.memory_space<vmem>>, vector<1x1x16xf32>
    %55 = vector.shape_cast %54 : vector<1x1x16xf32> to vector<1x16xf32>
    %56 = vector.shape_cast %53 : vector<1x16xf32> to vector<1x1x16xf32>
    tpu.vector_store %arg5[%c0_36, %c0_37, %c0_38], %56 {strides = array<i32>} : memref<1x1x16xf32, #tpu.memory_space<vmem>>, vector<1x1x16xf32>,
    %57 = arith.truncf %22 : vector<271x16xf32> to vector<271x16xbf16>
    %c0_39 = arith.constant 0 : index
    %c0_40 = arith.constant 0 : index
    %c0_41 = arith.constant 0 : index
    %58 = vector.load %arg3[%c0_39, %c0_40, %c0_41] : memref<1x272x16xbf16, #tpu.memory_space<vmem>>, vector<1x271x16xbf16>
    %59 = vector.shape_cast %58 : vector<1x271x16xbf16> to vector<271x16xbf16>
    %60 = vector.shape_cast %57 : vector<271x16xbf16> to vector<1x271x16xbf16>
    tpu.vector_store %arg3[%c0_39, %c0_40, %c0_41], %60 {strides = array<i32>} : memref<1x272x16xbf16, #tpu.memory_space<vmem>>, vector<1x271x16xbf16>,
    %cst_42 = arith.constant 0.000000e+00 : bf16
    %61 = vector.broadcast %cst_42 : bf16 to vector<1x16xbf16>
    %c0_43 = arith.constant 0 : index
    %c271 = arith.constant 271 : index
    %c0_44 = arith.constant 0 : index
    %62 = vector.load %arg3[%c0_43, %c271, %c0_44] : memref<1x272x16xbf16, #tpu.memory_space<vmem>>, vector<1x1x16xbf16>
    %63 = vector.shape_cast %62 : vector<1x1x16xbf16> to vector<1x16xbf16>
    %64 = vector.shape_cast %61 : vector<1x16xbf16> to vector<1x1x16xbf16>
    tpu.vector_store %arg3[%c0_43, %c271, %c0_44], %64 {strides = array<i32>} : memref<1x272x16xbf16, #tpu.memory_space<vmem>>, vector<1x1x16xbf16>,
    return
  }
  func.func @transform_0(%arg0: i32) -> (i32, i32, i32) {
    %c0_i32 = arith.constant 0 : i32
    %c0_i32_0 = arith.constant 0 : i32
    %c0_i32_1 = arith.constant 0 : i32
    return %arg0, %c0_i32, %c0_i32_0 : i32, i32, i32
  }
  func.func @transform_1(%arg0: i32) -> (i32, i32, i32, i32) {
    %c0_i32 = arith.constant 0 : i32
    %c0_i32_0 = arith.constant 0 : i32
    %c0_i32_1 = arith.constant 0 : i32
    %c0_i32_2 = arith.constant 0 : i32
    %c0_i32_3 = arith.constant 0 : i32
    return %c0_i32, %c0_i32_0, %c0_i32_1, %c0_i32_2 : i32, i32, i32, i32
  }
  func.func @transform_2(%arg0: i32) -> (i32, i32, i32) {
    %c0_i32 = arith.constant 0 : i32
    %c0_i32_0 = arith.constant 0 : i32
    %c0_i32_1 = arith.constant 0 : i32
    return %arg0, %c0_i32, %c0_i32_0 : i32, i32, i32
  }
  func.func @transform_3(%arg0: i32) -> (i32, i32, i32) {
    %c0_i32 = arith.constant 0 : i32
    %c0_i32_0 = arith.constant 0 : i32
    %c0_i32_1 = arith.constant 0 : i32
    return %arg0, %c0_i32, %c0_i32_0 : i32, i32, i32
  }
  func.func @transform_4(%arg0: i32) -> (i32, i32, i32) {
    %c0_i32 = arith.constant 0 : i32
    %c0_i32_0 = arith.constant 0 : i32
    %c0_i32_1 = arith.constant 0 : i32
    return %arg0, %c0_i32, %c0_i32_0 : i32, i32, i32
  }
}

module attributes {stable_mosaic.version = 11 : i64} {
  func.func @_conv2x2_kernel(%arg0: i32, %arg1: memref<1x81x64xbf16, #tpu.memory_space<vmem>>, %arg2: memref<2x2x64x32xbf16, #tpu.memory_space<vmem>>, %arg3: memref<1x64xf32, #tpu.memory_space<vmem>>, %arg4: memref<1x64xf32, #tpu.memory_space<vmem>>, %arg5: memref<1x72x32xbf16, #tpu.memory_space<vmem>>, %arg6: memref<1x1x32xf32, #tpu.memory_space<vmem>>, %arg7: memref<1x1x32xf32, #tpu.memory_space<vmem>>) attributes {dimension_semantics = [#tpu.dimension_semantics<parallel>], iteration_bounds = array<i64: 2>, scalar_prefetch = 0 : i64, scratch_operands = 0 : i64, tpu.core_type = #tpu.core_type<tc>, window_params = [{transform_indices = @transform_0, window_bounds = array<i64: 1, 81, 64>}, {pipeline_mode = #tpu.pipeline_mode<synchronous>, transform_indices = @transform_1, window_bounds = array<i64: 2, 2, 64, 32>}, {pipeline_mode = #tpu.pipeline_mode<synchronous>, transform_indices = @transform_2, window_bounds = array<i64: 1, 64>}, {pipeline_mode = #tpu.pipeline_mode<synchronous>, transform_indices = @transform_3, window_bounds = array<i64: 1, 64>}, {transform_indices = @transform_4, window_bounds = array<i64: 1, 72, 32>}, {transform_indices = @transform_5, window_bounds = array<i64: 1, 1, 32>}, {transform_indices = @transform_6, window_bounds = array<i64: 1, 1, 32>}]} {
    %c0 = arith.constant 0 : index
    %c0_0 = arith.constant 0 : index
    %c0_1 = arith.constant 0 : index
    %0 = vector.load %arg1[%c0, %c0_0, %c0_1] : memref<1x81x64xbf16, #tpu.memory_space<vmem>>, vector<1x71x64xbf16>
    %1 = vector.shape_cast %0 : vector<1x71x64xbf16> to vector<71x64xbf16>
    %2 = arith.extf %1 : vector<71x64xbf16> to vector<71x64xf32>
    %c0_2 = arith.constant 0 : index
    %c0_3 = arith.constant 0 : index
    %3 = vector.load %arg3[%c0_2, %c0_3] : memref<1x64xf32, #tpu.memory_space<vmem>>, vector<1x64xf32>
    %4 = vector.broadcast %3 : vector<1x64xf32> to vector<71x64xf32>
    %5 = arith.mulf %2, %4 : vector<71x64xf32>
    %c0_4 = arith.constant 0 : index
    %c0_5 = arith.constant 0 : index
    %6 = vector.load %arg4[%c0_4, %c0_5] : memref<1x64xf32, #tpu.memory_space<vmem>>, vector<1x64xf32>
    %7 = vector.broadcast %6 : vector<1x64xf32> to vector<71x64xf32>
    %8 = arith.addf %5, %7 : vector<71x64xf32>
    %cst = arith.constant 0.000000e+00 : f32
    %9 = vector.broadcast %cst : f32 to vector<71x64xf32>
    %10 = arith.cmpf oge, %8, %9 : vector<71x64xf32>
    %cst_6 = arith.constant 2.000000e-01 : f32
    %11 = vector.broadcast %cst_6 : f32 to vector<71x64xf32>
    %12 = arith.mulf %11, %8 : vector<71x64xf32>
    %13 = arith.select %10, %8, %12 : vector<71x64xi1>, vector<71x64xf32>
    %14 = arith.truncf %13 : vector<71x64xf32> to vector<71x64xbf16>
    %c0_7 = arith.constant 0 : index
    %c0_8 = arith.constant 0 : index
    %c0_9 = arith.constant 0 : index
    %c0_10 = arith.constant 0 : index
    %15 = vector.load %arg2[%c0_7, %c0_8, %c0_9, %c0_10] : memref<2x2x64x32xbf16, #tpu.memory_space<vmem>>, vector<1x1x64x32xbf16>
    %16 = vector.shape_cast %15 : vector<1x1x64x32xbf16> to vector<64x32xbf16>
    %cst_11 = arith.constant dense<0.000000e+00> : vector<71x32xf32>
    %17 = tpu.matmul %14, %16, %cst_11 {dimension_numbers = #tpu.dot_dimension_numbers<[1], [0], [0], [1], [0, 0, 1, 1], [], []>} : vector<71x64xbf16>, vector<64x32xbf16>, vector<71x32xf32> -> vector<71x32xf32>
    %c0_12 = arith.constant 0 : index
    %c1 = arith.constant 1 : index
    %c0_13 = arith.constant 0 : index
    %18 = vector.load %arg1[%c0_12, %c1, %c0_13] : memref<1x81x64xbf16, #tpu.memory_space<vmem>>, vector<1x71x64xbf16>
    %19 = vector.shape_cast %18 : vector<1x71x64xbf16> to vector<71x64xbf16>
    %20 = arith.extf %19 : vector<71x64xbf16> to vector<71x64xf32>
    %c0_14 = arith.constant 0 : index
    %c0_15 = arith.constant 0 : index
    %21 = vector.load %arg3[%c0_14, %c0_15] : memref<1x64xf32, #tpu.memory_space<vmem>>, vector<1x64xf32>
    %22 = vector.broadcast %21 : vector<1x64xf32> to vector<71x64xf32>
    %23 = arith.mulf %20, %22 : vector<71x64xf32>
    %c0_16 = arith.constant 0 : index
    %c0_17 = arith.constant 0 : index
    %24 = vector.load %arg4[%c0_16, %c0_17] : memref<1x64xf32, #tpu.memory_space<vmem>>, vector<1x64xf32>
    %25 = vector.broadcast %24 : vector<1x64xf32> to vector<71x64xf32>
    %26 = arith.addf %23, %25 : vector<71x64xf32>
    %cst_18 = arith.constant 0.000000e+00 : f32
    %27 = vector.broadcast %cst_18 : f32 to vector<71x64xf32>
    %28 = arith.cmpf oge, %26, %27 : vector<71x64xf32>
    %cst_19 = arith.constant 2.000000e-01 : f32
    %29 = vector.broadcast %cst_19 : f32 to vector<71x64xf32>
    %30 = arith.mulf %29, %26 : vector<71x64xf32>
    %31 = arith.select %28, %26, %30 : vector<71x64xi1>, vector<71x64xf32>
    %32 = arith.truncf %31 : vector<71x64xf32> to vector<71x64xbf16>
    %c0_20 = arith.constant 0 : index
    %c1_21 = arith.constant 1 : index
    %c0_22 = arith.constant 0 : index
    %c0_23 = arith.constant 0 : index
    %33 = vector.load %arg2[%c0_20, %c1_21, %c0_22, %c0_23] : memref<2x2x64x32xbf16, #tpu.memory_space<vmem>>, vector<1x1x64x32xbf16>
    %34 = vector.shape_cast %33 : vector<1x1x64x32xbf16> to vector<64x32xbf16>
    %cst_24 = arith.constant dense<0.000000e+00> : vector<71x32xf32>
    %35 = tpu.matmul %32, %34, %cst_24 {dimension_numbers = #tpu.dot_dimension_numbers<[1], [0], [0], [1], [0, 0, 1, 1], [], []>} : vector<71x64xbf16>, vector<64x32xbf16>, vector<71x32xf32> -> vector<71x32xf32>
    %36 = arith.addf %17, %35 : vector<71x32xf32>
    %c0_25 = arith.constant 0 : index
    %c9 = arith.constant 9 : index
    %c0_26 = arith.constant 0 : index
    %37 = vector.load %arg1[%c0_25, %c9, %c0_26] : memref<1x81x64xbf16, #tpu.memory_space<vmem>>, vector<1x71x64xbf16>
    %38 = vector.shape_cast %37 : vector<1x71x64xbf16> to vector<71x64xbf16>
    %39 = arith.extf %38 : vector<71x64xbf16> to vector<71x64xf32>
    %c0_27 = arith.constant 0 : index
    %c0_28 = arith.constant 0 : index
    %40 = vector.load %arg3[%c0_27, %c0_28] : memref<1x64xf32, #tpu.memory_space<vmem>>, vector<1x64xf32>
    %41 = vector.broadcast %40 : vector<1x64xf32> to vector<71x64xf32>
    %42 = arith.mulf %39, %41 : vector<71x64xf32>
    %c0_29 = arith.constant 0 : index
    %c0_30 = arith.constant 0 : index
    %43 = vector.load %arg4[%c0_29, %c0_30] : memref<1x64xf32, #tpu.memory_space<vmem>>, vector<1x64xf32>
    %44 = vector.broadcast %43 : vector<1x64xf32> to vector<71x64xf32>
    %45 = arith.addf %42, %44 : vector<71x64xf32>
    %cst_31 = arith.constant 0.000000e+00 : f32
    %46 = vector.broadcast %cst_31 : f32 to vector<71x64xf32>
    %47 = arith.cmpf oge, %45, %46 : vector<71x64xf32>
    %cst_32 = arith.constant 2.000000e-01 : f32
    %48 = vector.broadcast %cst_32 : f32 to vector<71x64xf32>
    %49 = arith.mulf %48, %45 : vector<71x64xf32>
    %50 = arith.select %47, %45, %49 : vector<71x64xi1>, vector<71x64xf32>
    %51 = arith.truncf %50 : vector<71x64xf32> to vector<71x64xbf16>
    %c1_33 = arith.constant 1 : index
    %c0_34 = arith.constant 0 : index
    %c0_35 = arith.constant 0 : index
    %c0_36 = arith.constant 0 : index
    %52 = vector.load %arg2[%c1_33, %c0_34, %c0_35, %c0_36] : memref<2x2x64x32xbf16, #tpu.memory_space<vmem>>, vector<1x1x64x32xbf16>
    %53 = vector.shape_cast %52 : vector<1x1x64x32xbf16> to vector<64x32xbf16>
    %cst_37 = arith.constant dense<0.000000e+00> : vector<71x32xf32>
    %54 = tpu.matmul %51, %53, %cst_37 {dimension_numbers = #tpu.dot_dimension_numbers<[1], [0], [0], [1], [0, 0, 1, 1], [], []>} : vector<71x64xbf16>, vector<64x32xbf16>, vector<71x32xf32> -> vector<71x32xf32>
    %55 = arith.addf %36, %54 : vector<71x32xf32>
    %c0_38 = arith.constant 0 : index
    %c10 = arith.constant 10 : index
    %c0_39 = arith.constant 0 : index
    %56 = vector.load %arg1[%c0_38, %c10, %c0_39] : memref<1x81x64xbf16, #tpu.memory_space<vmem>>, vector<1x71x64xbf16>
    %57 = vector.shape_cast %56 : vector<1x71x64xbf16> to vector<71x64xbf16>
    %58 = arith.extf %57 : vector<71x64xbf16> to vector<71x64xf32>
    %c0_40 = arith.constant 0 : index
    %c0_41 = arith.constant 0 : index
    %59 = vector.load %arg3[%c0_40, %c0_41] : memref<1x64xf32, #tpu.memory_space<vmem>>, vector<1x64xf32>
    %60 = vector.broadcast %59 : vector<1x64xf32> to vector<71x64xf32>
    %61 = arith.mulf %58, %60 : vector<71x64xf32>
    %c0_42 = arith.constant 0 : index
    %c0_43 = arith.constant 0 : index
    %62 = vector.load %arg4[%c0_42, %c0_43] : memref<1x64xf32, #tpu.memory_space<vmem>>, vector<1x64xf32>
    %63 = vector.broadcast %62 : vector<1x64xf32> to vector<71x64xf32>
    %64 = arith.addf %61, %63 : vector<71x64xf32>
    %cst_44 = arith.constant 0.000000e+00 : f32
    %65 = vector.broadcast %cst_44 : f32 to vector<71x64xf32>
    %66 = arith.cmpf oge, %64, %65 : vector<71x64xf32>
    %cst_45 = arith.constant 2.000000e-01 : f32
    %67 = vector.broadcast %cst_45 : f32 to vector<71x64xf32>
    %68 = arith.mulf %67, %64 : vector<71x64xf32>
    %69 = arith.select %66, %64, %68 : vector<71x64xi1>, vector<71x64xf32>
    %70 = arith.truncf %69 : vector<71x64xf32> to vector<71x64xbf16>
    %c1_46 = arith.constant 1 : index
    %c1_47 = arith.constant 1 : index
    %c0_48 = arith.constant 0 : index
    %c0_49 = arith.constant 0 : index
    %71 = vector.load %arg2[%c1_46, %c1_47, %c0_48, %c0_49] : memref<2x2x64x32xbf16, #tpu.memory_space<vmem>>, vector<1x1x64x32xbf16>
    %72 = vector.shape_cast %71 : vector<1x1x64x32xbf16> to vector<64x32xbf16>
    %cst_50 = arith.constant dense<0.000000e+00> : vector<71x32xf32>
    %73 = tpu.matmul %70, %72, %cst_50 {dimension_numbers = #tpu.dot_dimension_numbers<[1], [0], [0], [1], [0, 0, 1, 1], [], []>} : vector<71x64xbf16>, vector<64x32xbf16>, vector<71x32xf32> -> vector<71x32xf32>
    %74 = arith.addf %55, %73 : vector<71x32xf32>
    %75 = tpu.iota {dimensions = array<i32: 0>} : vector<71x1xi32>
    %c9_i32 = arith.constant 9 : i32
    %c0_i32 = arith.constant 0 : i32
    %76 = arith.cmpi eq, %c9_i32, %c0_i32 : i32
    %c1_i32 = arith.constant 1 : i32
    %77 = arith.select %76, %c1_i32, %c9_i32 : i32
    %78 = vector.broadcast %77 : i32 to vector<71x1xi32>
    %79 = arith.remsi %75, %78 : vector<71x1xi32>
    %c0_i32_51 = arith.constant 0 : i32
    %80 = vector.broadcast %c0_i32_51 : i32 to vector<71x1xi32>
    %81 = arith.cmpi ne, %79, %80 : vector<71x1xi32>
    %c0_i32_52 = arith.constant 0 : i32
    %82 = vector.broadcast %c0_i32_52 : i32 to vector<71x1xi32>
    %83 = arith.cmpi slt, %79, %82 : vector<71x1xi32>
    %c0_i32_53 = arith.constant 0 : i32
    %84 = arith.cmpi slt, %77, %c0_i32_53 : i32
    %85 = vector.broadcast %84 : i1 to vector<71x1xi1>
    %86 = vector.broadcast %85 : vector<71x1xi1> to vector<71x1xi1>
    %87 = arith.xori %83, %86 : vector<71x1xi1>
    %88 = arith.andi %87, %81 : vector<71x1xi1>
    %89 = vector.broadcast %77 : i32 to vector<71x1xi32>
    %90 = arith.addi %79, %89 : vector<71x1xi32>
    %91 = arith.select %88, %90, %79 : vector<71x1xi1>, vector<71x1xi32>
    %c8_i32 = arith.constant 8 : i32
    %92 = vector.broadcast %c8_i32 : i32 to vector<71x1xi32>
    %93 = arith.cmpi ne, %91, %92 : vector<71x1xi32>
    %cst_54 = arith.constant 0.000000e+00 : f32
    %94 = vector.shape_cast %93 : vector<71x1xi1> to vector<71x1xi1>
    %95 = vector.broadcast %94 : vector<71x1xi1> to vector<71x32xi1>
    %96 = vector.broadcast %cst_54 : f32 to vector<71x32xf32>
    %97 = arith.select %95, %74, %96 : vector<71x32xi1>, vector<71x32xf32>
    %cst_55 = arith.constant dense<0.000000e+00> : vector<32xf32>
    %98 = vector.multi_reduction <add>, %97, %cst_55 [0] : vector<71x32xf32> to vector<32xf32>
    %99 = vector.shape_cast %98 : vector<32xf32> to vector<1x32xf32>
    %c0_56 = arith.constant 0 : index
    %c0_57 = arith.constant 0 : index
    %c0_58 = arith.constant 0 : index
    %100 = vector.load %arg6[%c0_56, %c0_57, %c0_58] : memref<1x1x32xf32, #tpu.memory_space<vmem>>, vector<1x1x32xf32>
    %101 = vector.shape_cast %100 : vector<1x1x32xf32> to vector<1x32xf32>
    %102 = vector.shape_cast %99 : vector<1x32xf32> to vector<1x1x32xf32>
    tpu.vector_store %arg6[%c0_56, %c0_57, %c0_58], %102 {strides = array<i32>} : memref<1x1x32xf32, #tpu.memory_space<vmem>>, vector<1x1x32xf32>,
    %103 = arith.mulf %97, %97 : vector<71x32xf32>
    %cst_59 = arith.constant dense<0.000000e+00> : vector<32xf32>
    %104 = vector.multi_reduction <add>, %103, %cst_59 [0] : vector<71x32xf32> to vector<32xf32>
    %105 = vector.shape_cast %104 : vector<32xf32> to vector<1x32xf32>
    %c0_60 = arith.constant 0 : index
    %c0_61 = arith.constant 0 : index
    %c0_62 = arith.constant 0 : index
    %106 = vector.load %arg7[%c0_60, %c0_61, %c0_62] : memref<1x1x32xf32, #tpu.memory_space<vmem>>, vector<1x1x32xf32>
    %107 = vector.shape_cast %106 : vector<1x1x32xf32> to vector<1x32xf32>
    %108 = vector.shape_cast %105 : vector<1x32xf32> to vector<1x1x32xf32>
    tpu.vector_store %arg7[%c0_60, %c0_61, %c0_62], %108 {strides = array<i32>} : memref<1x1x32xf32, #tpu.memory_space<vmem>>, vector<1x1x32xf32>,
    %109 = arith.truncf %74 : vector<71x32xf32> to vector<71x32xbf16>
    %c0_63 = arith.constant 0 : index
    %c0_64 = arith.constant 0 : index
    %c0_65 = arith.constant 0 : index
    %110 = vector.load %arg5[%c0_63, %c0_64, %c0_65] : memref<1x72x32xbf16, #tpu.memory_space<vmem>>, vector<1x71x32xbf16>
    %111 = vector.shape_cast %110 : vector<1x71x32xbf16> to vector<71x32xbf16>
    %112 = vector.shape_cast %109 : vector<71x32xbf16> to vector<1x71x32xbf16>
    tpu.vector_store %arg5[%c0_63, %c0_64, %c0_65], %112 {strides = array<i32>} : memref<1x72x32xbf16, #tpu.memory_space<vmem>>, vector<1x71x32xbf16>,
    %cst_66 = arith.constant 0.000000e+00 : bf16
    %113 = vector.broadcast %cst_66 : bf16 to vector<1x32xbf16>
    %c0_67 = arith.constant 0 : index
    %c71 = arith.constant 71 : index
    %c0_68 = arith.constant 0 : index
    %114 = vector.load %arg5[%c0_67, %c71, %c0_68] : memref<1x72x32xbf16, #tpu.memory_space<vmem>>, vector<1x1x32xbf16>
    %115 = vector.shape_cast %114 : vector<1x1x32xbf16> to vector<1x32xbf16>
    %116 = vector.shape_cast %113 : vector<1x32xbf16> to vector<1x1x32xbf16>
    tpu.vector_store %arg5[%c0_67, %c71, %c0_68], %116 {strides = array<i32>} : memref<1x72x32xbf16, #tpu.memory_space<vmem>>, vector<1x1x32xbf16>,
    return
  }
  func.func @transform_0(%arg0: i32) -> (i32, i32, i32) {
    %c0_i32 = arith.constant 0 : i32
    %c0_i32_0 = arith.constant 0 : i32
    %c0_i32_1 = arith.constant 0 : i32
    return %arg0, %c0_i32, %c0_i32_0 : i32, i32, i32
  }
  func.func @transform_1(%arg0: i32) -> (i32, i32, i32, i32) {
    %c0_i32 = arith.constant 0 : i32
    %c0_i32_0 = arith.constant 0 : i32
    %c0_i32_1 = arith.constant 0 : i32
    %c0_i32_2 = arith.constant 0 : i32
    %c0_i32_3 = arith.constant 0 : i32
    return %c0_i32, %c0_i32_0, %c0_i32_1, %c0_i32_2 : i32, i32, i32, i32
  }
  func.func @transform_2(%arg0: i32) -> (i32, i32) {
    %c0_i32 = arith.constant 0 : i32
    %c0_i32_0 = arith.constant 0 : i32
    %c0_i32_1 = arith.constant 0 : i32
    return %c0_i32, %c0_i32_0 : i32, i32
  }
  func.func @transform_3(%arg0: i32) -> (i32, i32) {
    %c0_i32 = arith.constant 0 : i32
    %c0_i32_0 = arith.constant 0 : i32
    %c0_i32_1 = arith.constant 0 : i32
    return %c0_i32, %c0_i32_0 : i32, i32
  }
  func.func @transform_4(%arg0: i32) -> (i32, i32, i32) {
    %c0_i32 = arith.constant 0 : i32
    %c0_i32_0 = arith.constant 0 : i32
    %c0_i32_1 = arith.constant 0 : i32
    return %arg0, %c0_i32, %c0_i32_0 : i32, i32, i32
  }
  func.func @transform_5(%arg0: i32) -> (i32, i32, i32) {
    %c0_i32 = arith.constant 0 : i32
    %c0_i32_0 = arith.constant 0 : i32
    %c0_i32_1 = arith.constant 0 : i32
    return %arg0, %c0_i32, %c0_i32_0 : i32, i32, i32
  }
  func.func @transform_6(%arg0: i32) -> (i32, i32, i32) {
    %c0_i32 = arith.constant 0 : i32
    %c0_i32_0 = arith.constant 0 : i32
    %c0_i32_1 = arith.constant 0 : i32
    return %arg0, %c0_i32, %c0_i32_0 : i32, i32, i32
  }
}

module attributes {stable_mosaic.version = 11 : i64} {
  func.func @_conv2x2_kernel(%arg0: i32, %arg1: memref<1x25x128xbf16, #tpu.memory_space<vmem>>, %arg2: memref<2x2x128x64xbf16, #tpu.memory_space<vmem>>, %arg3: memref<1x128xf32, #tpu.memory_space<vmem>>, %arg4: memref<1x128xf32, #tpu.memory_space<vmem>>, %arg5: memref<1x20x64xbf16, #tpu.memory_space<vmem>>, %arg6: memref<1x1x64xf32, #tpu.memory_space<vmem>>, %arg7: memref<1x1x64xf32, #tpu.memory_space<vmem>>) attributes {dimension_semantics = [#tpu.dimension_semantics<parallel>], iteration_bounds = array<i64: 2>, scalar_prefetch = 0 : i64, scratch_operands = 0 : i64, tpu.core_type = #tpu.core_type<tc>, window_params = [{transform_indices = @transform_0, window_bounds = array<i64: 1, 25, 128>}, {pipeline_mode = #tpu.pipeline_mode<synchronous>, transform_indices = @transform_1, window_bounds = array<i64: 2, 2, 128, 64>}, {pipeline_mode = #tpu.pipeline_mode<synchronous>, transform_indices = @transform_2, window_bounds = array<i64: 1, 128>}, {pipeline_mode = #tpu.pipeline_mode<synchronous>, transform_indices = @transform_3, window_bounds = array<i64: 1, 128>}, {transform_indices = @transform_4, window_bounds = array<i64: 1, 20, 64>}, {transform_indices = @transform_5, window_bounds = array<i64: 1, 1, 64>}, {transform_indices = @transform_6, window_bounds = array<i64: 1, 1, 64>}]} {
    %c0 = arith.constant 0 : index
    %c0_0 = arith.constant 0 : index
    %c0_1 = arith.constant 0 : index
    %0 = vector.load %arg1[%c0, %c0_0, %c0_1] : memref<1x25x128xbf16, #tpu.memory_space<vmem>>, vector<1x19x128xbf16>
    %1 = vector.shape_cast %0 : vector<1x19x128xbf16> to vector<19x128xbf16>
    %2 = arith.extf %1 : vector<19x128xbf16> to vector<19x128xf32>
    %c0_2 = arith.constant 0 : index
    %c0_3 = arith.constant 0 : index
    %3 = vector.load %arg3[%c0_2, %c0_3] : memref<1x128xf32, #tpu.memory_space<vmem>>, vector<1x128xf32>
    %4 = vector.broadcast %3 : vector<1x128xf32> to vector<19x128xf32>
    %5 = arith.mulf %2, %4 : vector<19x128xf32>
    %c0_4 = arith.constant 0 : index
    %c0_5 = arith.constant 0 : index
    %6 = vector.load %arg4[%c0_4, %c0_5] : memref<1x128xf32, #tpu.memory_space<vmem>>, vector<1x128xf32>
    %7 = vector.broadcast %6 : vector<1x128xf32> to vector<19x128xf32>
    %8 = arith.addf %5, %7 : vector<19x128xf32>
    %cst = arith.constant 0.000000e+00 : f32
    %9 = vector.broadcast %cst : f32 to vector<19x128xf32>
    %10 = arith.cmpf oge, %8, %9 : vector<19x128xf32>
    %cst_6 = arith.constant 2.000000e-01 : f32
    %11 = vector.broadcast %cst_6 : f32 to vector<19x128xf32>
    %12 = arith.mulf %11, %8 : vector<19x128xf32>
    %13 = arith.select %10, %8, %12 : vector<19x128xi1>, vector<19x128xf32>
    %14 = arith.truncf %13 : vector<19x128xf32> to vector<19x128xbf16>
    %c0_7 = arith.constant 0 : index
    %c0_8 = arith.constant 0 : index
    %c0_9 = arith.constant 0 : index
    %c0_10 = arith.constant 0 : index
    %15 = vector.load %arg2[%c0_7, %c0_8, %c0_9, %c0_10] : memref<2x2x128x64xbf16, #tpu.memory_space<vmem>>, vector<1x1x128x64xbf16>
    %16 = vector.shape_cast %15 : vector<1x1x128x64xbf16> to vector<128x64xbf16>
    %cst_11 = arith.constant dense<0.000000e+00> : vector<19x64xf32>
    %17 = tpu.matmul %14, %16, %cst_11 {dimension_numbers = #tpu.dot_dimension_numbers<[1], [0], [0], [1], [0, 0, 1, 1], [], []>} : vector<19x128xbf16>, vector<128x64xbf16>, vector<19x64xf32> -> vector<19x64xf32>
    %c0_12 = arith.constant 0 : index
    %c1 = arith.constant 1 : index
    %c0_13 = arith.constant 0 : index
    %18 = vector.load %arg1[%c0_12, %c1, %c0_13] : memref<1x25x128xbf16, #tpu.memory_space<vmem>>, vector<1x19x128xbf16>
    %19 = vector.shape_cast %18 : vector<1x19x128xbf16> to vector<19x128xbf16>
    %20 = arith.extf %19 : vector<19x128xbf16> to vector<19x128xf32>
    %c0_14 = arith.constant 0 : index
    %c0_15 = arith.constant 0 : index
    %21 = vector.load %arg3[%c0_14, %c0_15] : memref<1x128xf32, #tpu.memory_space<vmem>>, vector<1x128xf32>
    %22 = vector.broadcast %21 : vector<1x128xf32> to vector<19x128xf32>
    %23 = arith.mulf %20, %22 : vector<19x128xf32>
    %c0_16 = arith.constant 0 : index
    %c0_17 = arith.constant 0 : index
    %24 = vector.load %arg4[%c0_16, %c0_17] : memref<1x128xf32, #tpu.memory_space<vmem>>, vector<1x128xf32>
    %25 = vector.broadcast %24 : vector<1x128xf32> to vector<19x128xf32>
    %26 = arith.addf %23, %25 : vector<19x128xf32>
    %cst_18 = arith.constant 0.000000e+00 : f32
    %27 = vector.broadcast %cst_18 : f32 to vector<19x128xf32>
    %28 = arith.cmpf oge, %26, %27 : vector<19x128xf32>
    %cst_19 = arith.constant 2.000000e-01 : f32
    %29 = vector.broadcast %cst_19 : f32 to vector<19x128xf32>
    %30 = arith.mulf %29, %26 : vector<19x128xf32>
    %31 = arith.select %28, %26, %30 : vector<19x128xi1>, vector<19x128xf32>
    %32 = arith.truncf %31 : vector<19x128xf32> to vector<19x128xbf16>
    %c0_20 = arith.constant 0 : index
    %c1_21 = arith.constant 1 : index
    %c0_22 = arith.constant 0 : index
    %c0_23 = arith.constant 0 : index
    %33 = vector.load %arg2[%c0_20, %c1_21, %c0_22, %c0_23] : memref<2x2x128x64xbf16, #tpu.memory_space<vmem>>, vector<1x1x128x64xbf16>
    %34 = vector.shape_cast %33 : vector<1x1x128x64xbf16> to vector<128x64xbf16>
    %cst_24 = arith.constant dense<0.000000e+00> : vector<19x64xf32>
    %35 = tpu.matmul %32, %34, %cst_24 {dimension_numbers = #tpu.dot_dimension_numbers<[1], [0], [0], [1], [0, 0, 1, 1], [], []>} : vector<19x128xbf16>, vector<128x64xbf16>, vector<19x64xf32> -> vector<19x64xf32>
    %36 = arith.addf %17, %35 : vector<19x64xf32>
    %c0_25 = arith.constant 0 : index
    %c5 = arith.constant 5 : index
    %c0_26 = arith.constant 0 : index
    %37 = vector.load %arg1[%c0_25, %c5, %c0_26] : memref<1x25x128xbf16, #tpu.memory_space<vmem>>, vector<1x19x128xbf16>
    %38 = vector.shape_cast %37 : vector<1x19x128xbf16> to vector<19x128xbf16>
    %39 = arith.extf %38 : vector<19x128xbf16> to vector<19x128xf32>
    %c0_27 = arith.constant 0 : index
    %c0_28 = arith.constant 0 : index
    %40 = vector.load %arg3[%c0_27, %c0_28] : memref<1x128xf32, #tpu.memory_space<vmem>>, vector<1x128xf32>
    %41 = vector.broadcast %40 : vector<1x128xf32> to vector<19x128xf32>
    %42 = arith.mulf %39, %41 : vector<19x128xf32>
    %c0_29 = arith.constant 0 : index
    %c0_30 = arith.constant 0 : index
    %43 = vector.load %arg4[%c0_29, %c0_30] : memref<1x128xf32, #tpu.memory_space<vmem>>, vector<1x128xf32>
    %44 = vector.broadcast %43 : vector<1x128xf32> to vector<19x128xf32>
    %45 = arith.addf %42, %44 : vector<19x128xf32>
    %cst_31 = arith.constant 0.000000e+00 : f32
    %46 = vector.broadcast %cst_31 : f32 to vector<19x128xf32>
    %47 = arith.cmpf oge, %45, %46 : vector<19x128xf32>
    %cst_32 = arith.constant 2.000000e-01 : f32
    %48 = vector.broadcast %cst_32 : f32 to vector<19x128xf32>
    %49 = arith.mulf %48, %45 : vector<19x128xf32>
    %50 = arith.select %47, %45, %49 : vector<19x128xi1>, vector<19x128xf32>
    %51 = arith.truncf %50 : vector<19x128xf32> to vector<19x128xbf16>
    %c1_33 = arith.constant 1 : index
    %c0_34 = arith.constant 0 : index
    %c0_35 = arith.constant 0 : index
    %c0_36 = arith.constant 0 : index
    %52 = vector.load %arg2[%c1_33, %c0_34, %c0_35, %c0_36] : memref<2x2x128x64xbf16, #tpu.memory_space<vmem>>, vector<1x1x128x64xbf16>
    %53 = vector.shape_cast %52 : vector<1x1x128x64xbf16> to vector<128x64xbf16>
    %cst_37 = arith.constant dense<0.000000e+00> : vector<19x64xf32>
    %54 = tpu.matmul %51, %53, %cst_37 {dimension_numbers = #tpu.dot_dimension_numbers<[1], [0], [0], [1], [0, 0, 1, 1], [], []>} : vector<19x128xbf16>, vector<128x64xbf16>, vector<19x64xf32> -> vector<19x64xf32>
    %55 = arith.addf %36, %54 : vector<19x64xf32>
    %c0_38 = arith.constant 0 : index
    %c6 = arith.constant 6 : index
    %c0_39 = arith.constant 0 : index
    %56 = vector.load %arg1[%c0_38, %c6, %c0_39] : memref<1x25x128xbf16, #tpu.memory_space<vmem>>, vector<1x19x128xbf16>
    %57 = vector.shape_cast %56 : vector<1x19x128xbf16> to vector<19x128xbf16>
    %58 = arith.extf %57 : vector<19x128xbf16> to vector<19x128xf32>
    %c0_40 = arith.constant 0 : index
    %c0_41 = arith.constant 0 : index
    %59 = vector.load %arg3[%c0_40, %c0_41] : memref<1x128xf32, #tpu.memory_space<vmem>>, vector<1x128xf32>
    %60 = vector.broadcast %59 : vector<1x128xf32> to vector<19x128xf32>
    %61 = arith.mulf %58, %60 : vector<19x128xf32>
    %c0_42 = arith.constant 0 : index
    %c0_43 = arith.constant 0 : index
    %62 = vector.load %arg4[%c0_42, %c0_43] : memref<1x128xf32, #tpu.memory_space<vmem>>, vector<1x128xf32>
    %63 = vector.broadcast %62 : vector<1x128xf32> to vector<19x128xf32>
    %64 = arith.addf %61, %63 : vector<19x128xf32>
    %cst_44 = arith.constant 0.000000e+00 : f32
    %65 = vector.broadcast %cst_44 : f32 to vector<19x128xf32>
    %66 = arith.cmpf oge, %64, %65 : vector<19x128xf32>
    %cst_45 = arith.constant 2.000000e-01 : f32
    %67 = vector.broadcast %cst_45 : f32 to vector<19x128xf32>
    %68 = arith.mulf %67, %64 : vector<19x128xf32>
    %69 = arith.select %66, %64, %68 : vector<19x128xi1>, vector<19x128xf32>
    %70 = arith.truncf %69 : vector<19x128xf32> to vector<19x128xbf16>
    %c1_46 = arith.constant 1 : index
    %c1_47 = arith.constant 1 : index
    %c0_48 = arith.constant 0 : index
    %c0_49 = arith.constant 0 : index
    %71 = vector.load %arg2[%c1_46, %c1_47, %c0_48, %c0_49] : memref<2x2x128x64xbf16, #tpu.memory_space<vmem>>, vector<1x1x128x64xbf16>
    %72 = vector.shape_cast %71 : vector<1x1x128x64xbf16> to vector<128x64xbf16>
    %cst_50 = arith.constant dense<0.000000e+00> : vector<19x64xf32>
    %73 = tpu.matmul %70, %72, %cst_50 {dimension_numbers = #tpu.dot_dimension_numbers<[1], [0], [0], [1], [0, 0, 1, 1], [], []>} : vector<19x128xbf16>, vector<128x64xbf16>, vector<19x64xf32> -> vector<19x64xf32>
    %74 = arith.addf %55, %73 : vector<19x64xf32>
    %75 = tpu.iota {dimensions = array<i32: 0>} : vector<19x1xi32>
    %c5_i32 = arith.constant 5 : i32
    %c0_i32 = arith.constant 0 : i32
    %76 = arith.cmpi eq, %c5_i32, %c0_i32 : i32
    %c1_i32 = arith.constant 1 : i32
    %77 = arith.select %76, %c1_i32, %c5_i32 : i32
    %78 = vector.broadcast %77 : i32 to vector<19x1xi32>
    %79 = arith.remsi %75, %78 : vector<19x1xi32>
    %c0_i32_51 = arith.constant 0 : i32
    %80 = vector.broadcast %c0_i32_51 : i32 to vector<19x1xi32>
    %81 = arith.cmpi ne, %79, %80 : vector<19x1xi32>
    %c0_i32_52 = arith.constant 0 : i32
    %82 = vector.broadcast %c0_i32_52 : i32 to vector<19x1xi32>
    %83 = arith.cmpi slt, %79, %82 : vector<19x1xi32>
    %c0_i32_53 = arith.constant 0 : i32
    %84 = arith.cmpi slt, %77, %c0_i32_53 : i32
    %85 = vector.broadcast %84 : i1 to vector<19x1xi1>
    %86 = vector.broadcast %85 : vector<19x1xi1> to vector<19x1xi1>
    %87 = arith.xori %83, %86 : vector<19x1xi1>
    %88 = arith.andi %87, %81 : vector<19x1xi1>
    %89 = vector.broadcast %77 : i32 to vector<19x1xi32>
    %90 = arith.addi %79, %89 : vector<19x1xi32>
    %91 = arith.select %88, %90, %79 : vector<19x1xi1>, vector<19x1xi32>
    %c4_i32 = arith.constant 4 : i32
    %92 = vector.broadcast %c4_i32 : i32 to vector<19x1xi32>
    %93 = arith.cmpi ne, %91, %92 : vector<19x1xi32>
    %cst_54 = arith.constant 0.000000e+00 : f32
    %94 = vector.shape_cast %93 : vector<19x1xi1> to vector<19x1xi1>
    %95 = vector.broadcast %94 : vector<19x1xi1> to vector<19x64xi1>
    %96 = vector.broadcast %cst_54 : f32 to vector<19x64xf32>
    %97 = arith.select %95, %74, %96 : vector<19x64xi1>, vector<19x64xf32>
    %cst_55 = arith.constant dense<0.000000e+00> : vector<64xf32>
    %98 = vector.multi_reduction <add>, %97, %cst_55 [0] : vector<19x64xf32> to vector<64xf32>
    %99 = vector.shape_cast %98 : vector<64xf32> to vector<1x64xf32>
    %c0_56 = arith.constant 0 : index
    %c0_57 = arith.constant 0 : index
    %c0_58 = arith.constant 0 : index
    %100 = vector.load %arg6[%c0_56, %c0_57, %c0_58] : memref<1x1x64xf32, #tpu.memory_space<vmem>>, vector<1x1x64xf32>
    %101 = vector.shape_cast %100 : vector<1x1x64xf32> to vector<1x64xf32>
    %102 = vector.shape_cast %99 : vector<1x64xf32> to vector<1x1x64xf32>
    tpu.vector_store %arg6[%c0_56, %c0_57, %c0_58], %102 {strides = array<i32>} : memref<1x1x64xf32, #tpu.memory_space<vmem>>, vector<1x1x64xf32>,
    %103 = arith.mulf %97, %97 : vector<19x64xf32>
    %cst_59 = arith.constant dense<0.000000e+00> : vector<64xf32>
    %104 = vector.multi_reduction <add>, %103, %cst_59 [0] : vector<19x64xf32> to vector<64xf32>
    %105 = vector.shape_cast %104 : vector<64xf32> to vector<1x64xf32>
    %c0_60 = arith.constant 0 : index
    %c0_61 = arith.constant 0 : index
    %c0_62 = arith.constant 0 : index
    %106 = vector.load %arg7[%c0_60, %c0_61, %c0_62] : memref<1x1x64xf32, #tpu.memory_space<vmem>>, vector<1x1x64xf32>
    %107 = vector.shape_cast %106 : vector<1x1x64xf32> to vector<1x64xf32>
    %108 = vector.shape_cast %105 : vector<1x64xf32> to vector<1x1x64xf32>
    tpu.vector_store %arg7[%c0_60, %c0_61, %c0_62], %108 {strides = array<i32>} : memref<1x1x64xf32, #tpu.memory_space<vmem>>, vector<1x1x64xf32>,
    %109 = arith.truncf %74 : vector<19x64xf32> to vector<19x64xbf16>
    %c0_63 = arith.constant 0 : index
    %c0_64 = arith.constant 0 : index
    %c0_65 = arith.constant 0 : index
    %110 = vector.load %arg5[%c0_63, %c0_64, %c0_65] : memref<1x20x64xbf16, #tpu.memory_space<vmem>>, vector<1x19x64xbf16>
    %111 = vector.shape_cast %110 : vector<1x19x64xbf16> to vector<19x64xbf16>
    %112 = vector.shape_cast %109 : vector<19x64xbf16> to vector<1x19x64xbf16>
    tpu.vector_store %arg5[%c0_63, %c0_64, %c0_65], %112 {strides = array<i32>} : memref<1x20x64xbf16, #tpu.memory_space<vmem>>, vector<1x19x64xbf16>,
    %cst_66 = arith.constant 0.000000e+00 : bf16
    %113 = vector.broadcast %cst_66 : bf16 to vector<1x64xbf16>
    %c0_67 = arith.constant 0 : index
    %c19 = arith.constant 19 : index
    %c0_68 = arith.constant 0 : index
    %114 = vector.load %arg5[%c0_67, %c19, %c0_68] : memref<1x20x64xbf16, #tpu.memory_space<vmem>>, vector<1x1x64xbf16>
    %115 = vector.shape_cast %114 : vector<1x1x64xbf16> to vector<1x64xbf16>
    %116 = vector.shape_cast %113 : vector<1x64xbf16> to vector<1x1x64xbf16>
    tpu.vector_store %arg5[%c0_67, %c19, %c0_68], %116 {strides = array<i32>} : memref<1x20x64xbf16, #tpu.memory_space<vmem>>, vector<1x1x64xbf16>,
    return
  }
  func.func @transform_0(%arg0: i32) -> (i32, i32, i32) {
    %c0_i32 = arith.constant 0 : i32
    %c0_i32_0 = arith.constant 0 : i32
    %c0_i32_1 = arith.constant 0 : i32
    return %arg0, %c0_i32, %c0_i32_0 : i32, i32, i32
  }
  func.func @transform_1(%arg0: i32) -> (i32, i32, i32, i32) {
    %c0_i32 = arith.constant 0 : i32
    %c0_i32_0 = arith.constant 0 : i32
    %c0_i32_1 = arith.constant 0 : i32
    %c0_i32_2 = arith.constant 0 : i32
    %c0_i32_3 = arith.constant 0 : i32
    return %c0_i32, %c0_i32_0, %c0_i32_1, %c0_i32_2 : i32, i32, i32, i32
  }
  func.func @transform_2(%arg0: i32) -> (i32, i32) {
    %c0_i32 = arith.constant 0 : i32
    %c0_i32_0 = arith.constant 0 : i32
    %c0_i32_1 = arith.constant 0 : i32
    return %c0_i32, %c0_i32_0 : i32, i32
  }
  func.func @transform_3(%arg0: i32) -> (i32, i32) {
    %c0_i32 = arith.constant 0 : i32
    %c0_i32_0 = arith.constant 0 : i32
    %c0_i32_1 = arith.constant 0 : i32
    return %c0_i32, %c0_i32_0 : i32, i32
  }
  func.func @transform_4(%arg0: i32) -> (i32, i32, i32) {
    %c0_i32 = arith.constant 0 : i32
    %c0_i32_0 = arith.constant 0 : i32
    %c0_i32_1 = arith.constant 0 : i32
    return %arg0, %c0_i32, %c0_i32_0 : i32, i32, i32
  }
  func.func @transform_5(%arg0: i32) -> (i32, i32, i32) {
    %c0_i32 = arith.constant 0 : i32
    %c0_i32_0 = arith.constant 0 : i32
    %c0_i32_1 = arith.constant 0 : i32
    return %arg0, %c0_i32, %c0_i32_0 : i32, i32, i32
  }
  func.func @transform_6(%arg0: i32) -> (i32, i32, i32) {
    %c0_i32 = arith.constant 0 : i32
    %c0_i32_0 = arith.constant 0 : i32
    %c0_i32_1 = arith.constant 0 : i32
    return %arg0, %c0_i32, %c0_i32_0 : i32, i32, i32
  }
}

</mosaic_0001>

<bundles_post_ra>
// kernel: discriminator_forward.4
= control target key start
LH: loop header
LB: loop body
LE: loop exit
PB: predicated region body
PF: predicated region fallthrough
CT: control target
= control target key end

     0   :  { %s7164_s9 = smov 0   ;;  %s8813_s0 = inlined_call_operand.vmem [shape: bf16[2,1089,12], index: 0, kind: input, shape index: {}]   ;;  %s8814_s1 = inlined_call_operand.vmem [shape: bf16[2,2,12,8], index: 1, kind: input, shape index: {}]   ;;  %s8815_s2 = inlined_call_operand.vmem [shape: bf16[2,1056,8], index: 2, kind: output, shape index: {}]  }
   0x1 LB: > { %s5842_s10 = sadd.s32 4294967295, %s7147_s9   ;;  %p5846_p0 = scmp.ge.s32.totalorder %s7147_s9, 1  ;;  %s7147_s9 = sphi %s7164_s9, %s12_s9  }
   0x2   : > { %p112_p1 = scmp.lt.s32.totalorder %s7147_s9, 3 }
   0x4   : > { %p113_p2 = pnand %p5846_p0, %p112_p1 }
   0x5   : > { %p134_p3 = scmp.lt.s32.totalorder (!%p113_p2), %s5842_s10, 1 }
   0x6   : > { %116 = sbr.rel (%p113_p2) target bundleno = 1226 (0x4ca), region = 28 }
   0xb   : > { %v6187_v0 = vld [vmem:[%s8814_s1] sm:$0xf]  ;;  %v6995_v1 = vld [vmem:[%s8814_s1] sm:$0x30]  ;;  %vm1344_vm0 = vcmask 1045504   ;;  %s8817_s10 = smov (!%p134_p3, %s5842_s10), 1 }
   0xc   : > { %v6188_v2 = vor.u32 %v6995_v1, %v6187_v0  ;;  %v6859_v3 = vld [vmem:[%s8814_s1 + $0x18] sm:$0xf]  ;;  %v7130_v4 = vld [vmem:[%s8814_s1 + $0x18] sm:$0x30]  ;;  %v6117_v6 = vld [vmem:[%s8814_s1 + $0x8] sm:$0xf] }
   0xd   : > { %v6860_v5 = vor.u32 %v7130_v4, %v6859_v3  ;;  %v6996_v7 = vld [vmem:[%s8814_s1 + $0x8] sm:$0x30]  ;;  %v6523_v10 = vld [vmem:[%s8814_s1 + $0x10] sm:$0xf]  ;;  %v7063_v11 = vld [vmem:[%s8814_s1 + $0x10] sm:$0x30] }
   0xe   : > { %v1825_v8 = vsel %vm1344_vm0, %v6188_v2, 0  ;;  %v6118_v9 = vor.u32 %v6996_v7, %v6117_v6  ;;  %s7131_s27 = smul.u32 548, %s8817_s10  ;;  %v6524_v13 = vor.u32 %v7063_v11, %v6523_v10  ;;  %vm1145_vm1 = vcmask 97280  }
   0xf   : > { %1834 = vmatpush.bf16.msra.mxu1 %v1825_v8  ;;  %v4642_v12 = vsel %vm1344_vm0, %v6860_v5, 0  ;;  %vm4304_vm2 = vcmask 1046528   ;;  %vm612_vm3 = vsmask.f32 7424  ;;  %s7132_s3 = smul.u32 528, %s8817_s10  ;;  %vm5643_vm5 = vcmask 60416  }
  0x10   : > { %4651 = vmatpush.bf16.msra.mxu3 %v4642_v12  ;;  %v1346_v14 = vsel %vm1344_vm0, %v6118_v9, 0  ;;  %s7205_s30 = scalar_lea.vmem %s8813_s0, %s7131_s27  ;;  %v3362_v15 = vsel %vm1344_vm0, %v6524_v13, 0 }
  0x11   : > { %1355 = vmatpush.bf16.msra.mxu0 %v1346_v14  ;;  %v6929_v16 = vld [vmem:[%s7205_s30] sm:$0xff]  ;;  %v6595_v17 = vld [vmem:[%s7205_s30 + $0x10] sm:$0xe]  ;;  %v7064_v18 = vld [vmem:[%s7205_s30 + $0x10] sm:$0xf0]  ;;  %3371 = vmatpush.bf16.msra.mxu2 %v3362_v15  ;;  %s7320_s6 = scalar_lea.vmem %s8815_s2, %s7132_s3 }
  0x12   : > { %v7065_v19 = vld [vmem:[%s7205_s30 + $0x18] sm:$0xff]  ;;  %v6596_v20 = vor.u32 %v7064_v18, %v6595_v17  ;;  %v6930_v21 = vld [vmem:[%s7205_s30 + $0x8] sm:$0xff]  ;;  %v6997_v22 = vld [vmem:[%s7205_s30 + $0x10] sm:$0xff]  ;;  %v616_v23 = vshll.u32 %v6929_v16, 16  ;;  %6189 = vmatmul.msk.bf16.vlgmr.msra.gmra.mxu1 %vm1145_vm1, %v6929_v16  ;;  %v614_v24 = vshrl.u32 %v6929_v16, 16 }
  0x13   : > { %v6998_v25 = vld [vmem:[%s7205_s30 + $0x18] sm:$0xff]  ;;  %v4306_v27 = vrot.slane %v7065_v19, 1  ;;  %v621_v28 = vshll.u32 %v6930_v21, 16  ;;  %v2632_v30 = vshrl.u32 %v6997_v22, 16  ;;  %v2634_v31 = vshll.u32 %v6997_v22, 16  ;;  %v6931_v41 = vld [vmem:[%s7205_s30 + $0x10] sm:$0xff] }
  0x14   : > { %v4305_v26 = vrot.slane %v6596_v20, 1  ;;  %v618_v29 = vrot.slane %v616_v23, 1  ;;  %v2639_v32 = vshll.u32 %v6998_v25, 16  ;;  %v7066_v42 = vld [vmem:[%s7205_s30 + $0x20] sm:$0xff]  ;;  %v625_v44 = vshrl.u32 %v6930_v21, 16  ;;  %v6932_v56 = vld [vmem:[%s7205_s30 + $0x18] sm:$0xff] }
  0x15   : > { %v623_v34 = vrot.slane %v621_v28, 1  ;;  %v2636_v36 = vrot.slane %v2634_v31, 1  ;;  %v6999_v43 = vld [vmem:[%s7205_s30 + $0x20] sm:$0xff]  ;;  %v629_v45 = vshll.u32 %v6931_v41, 16  ;;  %v4308_v46 = vrot.slane %v7066_v42, 1  ;;  %v7067_v57 = vld [vmem:[%s7205_s30 + $0x28] sm:$0xff] }
  0x16   : > { %v4307_v33 = vsel %vm4304_vm2, %v4305_v26, %v4306_v27  ;;  %v619_v35 = vor.u32 %v618_v29, %v614_v24  ;;  %v2641_v37 = vrot.slane %v2639_v32, 1  ;;  %v2643_v47 = vshrl.u32 %v6998_v25, 16  ;;  %v7000_v58 = vld [vmem:[%s7205_s30 + $0x28] sm:$0xff]  ;;  %v6933_v7 = vld [vmem:[%s7205_s30 + $0x20] sm:$0xff]  ;;  %v7068_v8 = vld [vmem:[%s7205_s30 + $0x30] sm:$0xff] }
  0x17   : > { %6861 = vmatmul.msk.bf16.vlgmr.msra.gmra.mxu3 %vm1145_vm1, %v4307_v33  ;;  %v2637_v39 = vor.u32 %v2636_v36, %v2632_v30  ;;  %v2647_v48 = vshll.u32 %v6999_v43, 16  ;;  %v627_v49 = vor.u32 %v625_v44, %v623_v34  ;;  %v631_v50 = vrot.slane %v629_v45, 1  ;;  %v7001_v9 = vld [vmem:[%s7205_s30 + $0x30] sm:$0xff]  ;;  %v6934_v22 = vld [vmem:[%s7205_s30 + $0x28] sm:$0xff]  ;;  %v7069_v23 = vld [vmem:[%s7205_s30 + $0x38] sm:$0xff] }
  0x18   : > { %v624_v38 = vsel %vm612_vm3, %v619_v35, %v623_v34  ;;  %v4309_v51 = vsel %vm4304_vm2, %v4306_v27, %v4308_v46  ;;  %v2645_v52 = vor.u32 %v2643_v47, %v2641_v37  ;;  %v633_v59 = vshrl.u32 %v6931_v41, 16  ;;  %v7002_v24 = vld [vmem:[%s7205_s30 + $0x38] sm:$0xff] }
  0x19   : > { %6119 = vmatmul.msk.bf16.vlgmr.msra.gmra.mxu0 %vm1145_vm1, %v624_v38  ;;  %v2642_v40 = vsel %vm612_vm3, %v2637_v39, %v2641_v37  ;;  %v2649_v53 = vrot.slane %v2647_v48, 1  ;;  %v632_v54 = vsel %vm612_vm3, %v627_v49, %v631_v50  ;;  %v637_v60 = vshll.u32 %v6932_v56, 16  ;;  %v6935_v37 = vld [vmem:[%s7205_s30 + $0x30] sm:$0xff]  ;;  %v7070_v38 = vld [vmem:[%s7205_s30 + $0x40] sm:$0xff] }
  0x1a   : > { %6525 = vmatmul.msk.bf16.vlgmr.msra.gmra.mxu2 %vm1145_vm1, %v2642_v40  ;;  %v4310_v61 = vrot.slane %v7067_v57, 1  ;;  %v2651_v62 = vshrl.u32 %v6999_v43, 16  ;;  %v2655_v63 = vshll.u32 %v7000_v58, 16  ;;  %v635_v0 = vor.u32 %v633_v59, %v631_v50  ;;  %v7003_v39 = vld [vmem:[%s7205_s30 + $0x40] sm:$0xff] }
  0x1b   : > { %v2650_v55 = vsel %vm612_vm3, %v2645_v52, %v2649_v53  ;;  %v639_v1 = vrot.slane %v637_v60, 1  ;;  %v641_v10 = vshrl.u32 %v6932_v56, 16  ;;  %v645_v11 = vshll.u32 %v6933_v7, 16  ;;  %v6936_v52 = vld [vmem:[%s7205_s30 + $0x38] sm:$0xff] }
  0x1c   : > { %v4311_v2 = vsel %vm4304_vm2, %v4308_v46, %v4310_v61  ;;  %v2653_v3 = vor.u32 %v2651_v62, %v2649_v53  ;;  %v2657_v4 = vrot.slane %v2655_v63, 1  ;;  %v4312_v12 = vrot.slane %v7068_v8, 1  ;;  %v7071_v53 = vld [vmem:[%s7205_s30 + $0x48] sm:$0xff] }
  0x1d   : > { %v640_v5 = vsel %vm612_vm3, %v635_v0, %v639_v1  ;;  %v2659_v13 = vshrl.u32 %v7000_v58, 16  ;;  %v2663_v14 = vshll.u32 %v7001_v9, 16  ;;  %v643_v15 = vor.u32 %v641_v10, %v639_v1 }
  0x1e   : > { %v2658_v6 = vsel %vm612_vm3, %v2653_v3, %v2657_v4  ;;  %v647_v16 = vrot.slane %v645_v11, 1  ;;  %v4313_v17 = vsel %vm4304_vm2, %v4310_v61, %v4312_v12  ;;  %v649_v25 = vshrl.u32 %v6933_v7, 16  ;;  %v6937_v3 = vld [vmem:[%s7205_s30 + $0x40] sm:$0xff] }
  0x1f   : > { %v2661_v18 = vor.u32 %v2659_v13, %v2657_v4  ;;  %v2665_v19 = vrot.slane %v2663_v14, 1  ;;  %v653_v26 = vshll.u32 %v6934_v22, 16  ;;  %v4314_v27 = vrot.slane %v7069_v23, 1  ;;  %v7072_v4 = vld [vmem:[%s7205_s30 + $0x50] sm:$0xff] }
  0x20   : > { %v648_v20 = vsel %vm612_vm3, %v643_v15, %v647_v16  ;;  %v2667_v28 = vshrl.u32 %v7001_v9, 16  ;;  %v2671_v29 = vshll.u32 %v7002_v24, 16  ;;  %v651_v30 = vor.u32 %v649_v25, %v647_v16 }
  0x21   : > { %v655_v31 = vrot.slane %v653_v26, 1  ;;  %v4315_v32 = vsel %vm4304_vm2, %v4312_v12, %v4314_v27  ;;  %v657_v40 = vshrl.u32 %v6934_v22, 16  ;;  %v4316_v42 = vrot.slane %v7070_v38, 1 }
  0x22   : > { %6190 = vmatmul.msk.bf16.gmra.mxu1 %vm1145_vm1, %v6930_v21  ;;  %v2666_v21 = vsel %vm612_vm3, %v2661_v18, %v2665_v19  ;;  %v2669_v33 = vor.u32 %v2667_v28, %v2665_v19  ;;  %v2673_v34 = vrot.slane %v2671_v29, 1  ;;  %v2675_v43 = vshrl.u32 %v7002_v24, 16  ;;  %v6938_v18 = vld [vmem:[%s7205_s30 + $0x48] sm:$0xff]  ;;  %v7073_v19 = vld [vmem:[%s7205_s30 + $0x58] sm:$0xff] }
  0x23   : > { %v656_v35 = vsel %vm612_vm3, %v651_v30, %v655_v31  ;;  %v2679_v44 = vshll.u32 %v7003_v39, 16  ;;  %v659_v45 = vor.u32 %v657_v40, %v655_v31  ;;  %v4317_v47 = vsel %vm4304_vm2, %v4314_v27, %v4316_v42  ;;  %v7309_v40 = vld [vmem:[%s7205_s30 + $0x60] sm:$0xff] }
  0x24   : > { %v2674_v36 = vsel %vm612_vm3, %v2669_v33, %v2673_v34  ;;  %v2677_v48 = vor.u32 %v2675_v43, %v2673_v34  ;;  %v4318_v57 = vrot.slane %v7071_v53, 1  ;;  %v2683_v58 = vshrl.u32 %v7003_v39, 16  ;;  %v7306_v39 = vld [vmem:[%s7205_s30 + $0x60] sm:$0xff] }
  0x25   : > { %v2681_v49 = vrot.slane %v2679_v44, 1  ;;  %v4320_v8 = vrot.slane %v7072_v4, 1  ;;  %v4322_v24 = vrot.slane %v7073_v19, 1  ;;  %v689_v43 = vshrl.u32 %v6938_v18, 16 }
  0x26   : > { %v4319_v62 = vsel %vm4304_vm2, %v4316_v42, %v4318_v57  ;;  %v2715_v19 = vshrl.u32 %v7309_v40, 16 }
  0x27   : > { %6862 = vmatmul.msk.bf16.gmra.mxu3 %vm1145_vm1, %v4309_v51  ;;  %v2682_v51 = vsel %vm612_vm3, %v2677_v48, %v2681_v49  ;;  %v2685_v63 = vor.u32 %v2683_v58, %v2681_v49  ;;  %v4321_v13 = vsel %vm4304_vm2, %v4318_v57, %v4320_v8  ;;  %v4323_v29 = vsel %vm4304_vm2, %v4320_v8, %v4322_v24  ;;  %v7333_v8 = vld [vmem:[%s7205_s30 + $0x68] sm:$0xff] }
  0x28   : > { %v2711_v49 = vshll.u32 %v7309_v40, 16  ;;  %v7355_v40 = vld [vmem:[%s7205_s30 + $0x60] sm:$0xff] }
  0x29   : > { %6120 = vmatmul.msk.bf16.gmra.mxu0 %vm1145_vm1, %v632_v54  ;;  %v7004_v54 = vld [vmem:[%s7205_s30 + $0x48] sm:$0xff] }
  0x2a   : > { %6526 = vmatmul.msk.bf16.gmra.mxu2 %vm1145_vm1, %v2650_v55  ;;  %v665_v55 = vshrl.u32 %v6935_v37, 16  ;;  %v2687_v59 = vshll.u32 %v7004_v54, 16  ;;  %v2691_v9 = vshrl.u32 %v7004_v54, 16  ;;  %v2713_v57 = vrot.slane %v2711_v49, 1 }
  0x2c   : > { %v2689_v0 = vrot.slane %v2687_v59, 1 }
  0x2e   : > { %v2693_v14 = vor.u32 %v2691_v9, %v2689_v0  ;;  %v7336_v9 = vld [vmem:[%s7205_s30 + $0x68] sm:$0xff] }
  0x32   : > { %6191 = vmatmul.msk.bf16.gmra.mxu1 %vm1145_vm1, %v6931_v41  ;;  %v661_v41 = vshll.u32 %v6935_v37, 16 }
  0x34   : > { %v663_v46 = vrot.slane %v661_v41, 1 }
  0x36   : > { %v664_v50 = vsel %vm612_vm3, %v659_v45, %v663_v46  ;;  %v667_v60 = vor.u32 %v665_v55, %v663_v46 }
  0x37   : > { %6863 = vmatmul.msk.bf16.gmra.mxu3 %vm1145_vm1, %v4311_v2  ;;  %v2690_v2 = vsel %vm612_vm3, %v2685_v63, %v2689_v0 }
  0x39   : > { %6121 = vmatmul.msk.bf16.gmra.mxu0 %vm1145_vm1, %v640_v5  ;;  %v7005_v5 = vld [vmem:[%s7205_s30 + $0x50] sm:$0xff] }
  0x3a   : > { %6527 = vmatmul.msk.bf16.gmra.mxu2 %vm1145_vm1, %v2658_v6  ;;  %v673_v6 = vshrl.u32 %v6936_v52, 16  ;;  %v2695_v10 = vshll.u32 %v7005_v5, 16  ;;  %v2699_v25 = vshrl.u32 %v7005_v5, 16  ;;  %v7329_v5 = vld [vmem:[%s7205_s30 + $0x58] sm:$0xff] }
  0x3b   : > { %v705_v49 = vshrl.u32 %v7329_v5, 16 }
  0x3c   : > { %v2697_v15 = vrot.slane %v2695_v10, 1 }
  0x3e   : > { %v2701_v30 = vor.u32 %v2699_v25, %v2697_v15 }
  0x42   : > { %6192 = vmatmul.msk.bf16.gmra.mxu1 %vm1145_vm1, %v6932_v56  ;;  %v669_v56 = vshll.u32 %v6936_v52, 16 }
  0x44   : > { %v671_v61 = vrot.slane %v669_v56, 1 }
  0x46   : > { %v672_v1 = vsel %vm612_vm3, %v667_v60, %v671_v61  ;;  %v675_v11 = vor.u32 %v673_v6, %v671_v61 }
  0x47   : > { %6864 = vmatmul.msk.bf16.gmra.mxu3 %vm1145_vm1, %v4313_v17  ;;  %v2698_v17 = vsel %vm612_vm3, %v2693_v14, %v2697_v15  ;;  %v701_v15 = vshll.u32 %v7329_v5, 16 }
  0x49   : > { %6122 = vmatmul.msk.bf16.gmra.mxu0 %vm1145_vm1, %v648_v20  ;;  %v7006_v20 = vld [vmem:[%s7205_s30 + $0x58] sm:$0xff] }
  0x4a   : > { %6528 = vmatmul.msk.bf16.gmra.mxu2 %vm1145_vm1, %v2666_v21  ;;  %v681_v21 = vshrl.u32 %v6937_v3, 16  ;;  %v2703_v26 = vshll.u32 %v7006_v20, 16  ;;  %v2707_v48 = vshrl.u32 %v7006_v20, 16  ;;  %v2719_v20 = vshll.u32 %v7336_v9, 16 }
  0x4c   : > { %v2705_v31 = vrot.slane %v2703_v26, 1 }
  0x4e   : > { %v2709_v56 = vor.u32 %v2707_v48, %v2705_v31 }
  0x52   : > { %6193 = vmatmul.msk.bf16.gmra.mxu1 %vm1145_vm1, %v6933_v7  ;;  %v677_v7 = vshll.u32 %v6937_v3, 16 }
  0x54   : > { %v679_v12 = vrot.slane %v677_v7, 1 }
  0x56   : > { %v680_v16 = vsel %vm612_vm3, %v675_v11, %v679_v12  ;;  %v683_v27 = vor.u32 %v681_v21, %v679_v12 }
  0x57   : > { %6865 = vmatmul.msk.bf16.gmra.mxu3 %vm1145_vm1, %v4315_v32 }
  0x59   : > { %6123 = vmatmul.msk.bf16.gmra.mxu0 %vm1145_vm1, %v656_v35  ;;  %v2706_v35 = vsel %vm612_vm3, %v2701_v30, %v2705_v31 }
  0x5a   : > { %6529 = vmatmul.msk.bf16.gmra.mxu2 %vm1145_vm1, %v2674_v36 }
  0x62   : > { %6194 = vmatmul.msk.bf16.gmra.mxu1 %vm1145_vm1, %v6934_v22  ;;  %v685_v22 = vshll.u32 %v6938_v18, 16 }
  0x64   : > { %v687_v28 = vrot.slane %v685_v22, 1 }
  0x66   : > { %v688_v33 = vsel %vm612_vm3, %v683_v27, %v687_v28  ;;  %v2717_v27 = vor.u32 %v2715_v19, %v2713_v57 }
  0x67   : > { %6866 = vmatmul.msk.bf16.gmra.mxu3 %vm1145_vm1, %v4317_v47  ;;  %v4324_v47 = vrot.slane %v7306_v39, 1 }
  0x69   : > { %6124 = vmatmul.msk.bf16.gmra.mxu0 %vm1145_vm1, %v664_v50  ;;  %v4325_v55 = vsel %vm4304_vm2, %v4322_v24, %v4324_v47  ;;  %v703_v24 = vrot.slane %v701_v15, 1  ;;  %v7388_v15 = vld [vmem:[%s7205_s30 + $0x78] sm:$0xff] }
  0x6a   : > { %6530 = vmatmul.msk.bf16.gmra.mxu2 %vm1145_vm1, %v2682_v51 }
  0x72   : > { %6195 = vmatmul.msk.bf16.gmra.mxu1 %vm1145_vm1, %v6935_v37  ;;  %v7302_v37 = vld [vmem:[%s7205_s30 + $0x50] sm:$0xff] }
  0x73   : > { %v693_v44 = vshll.u32 %v7302_v37, 16  ;;  %v697_v14 = vshrl.u32 %v7302_v37, 16 }
  0x75   : > { %v695_v53 = vrot.slane %v693_v44, 1  ;;  %v7362_v44 = vld [vmem:[%s7205_s30 + $0x70] sm:$0xff] }
  0x77   : > { %6867 = vmatmul.msk.bf16.gmra.mxu3 %vm1145_vm1, %v4319_v62 }
  0x79   : > { %6125 = vmatmul.msk.bf16.gmra.mxu0 %vm1145_vm1, %v672_v1 }
  0x7a   : > { %6531 = vmatmul.msk.bf16.gmra.mxu2 %vm1145_vm1, %v2690_v2  ;;  %v2714_v2 = vsel %vm612_vm3, %v2709_v56, %v2713_v57 }
  0x82   : > { %6196 = vmatmul.msk.bf16.gmra.mxu1 %vm1145_vm1, %v6936_v52  ;;  %v691_v52 = vor.u32 %v689_v43, %v687_v28  ;;  %v2721_v28 = vrot.slane %v2719_v20, 1  ;;  %v7359_v43 = vld [vmem:[%s7205_s30 + $0x70] sm:$0xff]  ;;  %v713_v20 = vshrl.u32 %v7355_v40, 16 }
  0x84   : > { %v696_v63 = vsel %vm612_vm3, %v691_v52, %v695_v53 }
  0x87   : > { %6868 = vmatmul.msk.bf16.gmra.mxu3 %vm1145_vm1, %v4321_v13 }
  0x89   : > { %6126 = vmatmul.msk.bf16.gmra.mxu0 %vm1145_vm1, %v680_v16 }
  0x8a   : > { %6532 = vmatmul.msk.bf16.gmra.mxu2 %vm1145_vm1, %v2698_v17 }
  0x8f   : > { %v1836_v23 = vpop.f32.mrf.mxu1 }
  0x92   : > { %6197 = vmatmul.msk.bf16.gmra.mxu1 %vm1145_vm1, %v6937_v3 }
  0x96   : > { %v1357_v32 = vpop.f32.mrf.mxu0 }
  0x97   : > { %6869 = vmatmul.msk.bf16.gmra.mxu3 %vm1145_vm1, %v4323_v29  ;;  %v1838_v34 = vpop.f32.mrf.mxu1  ;;  %v1837_v38 = vadd.f32 %v1836_v23, %v1357_v32  ;;  %v699_v23 = vor.u32 %v697_v14, %v695_v53  ;;  %v4328_v53 = vrot.slane %v7359_v43, 1  ;;  %v7385_v14 = vld [vmem:[%s7205_s30 + $0x78] sm:$0xff] }
  0x99   : > { %6127 = vmatmul.msk.bf16.gmra.mxu0 %vm1145_vm1, %v688_v33 }
  0x9a   : > { %v4653_v36 = vpop.f32.mrf.mxu3  ;;  %6533 = vmatmul.msk.bf16.gmra.mxu2 %vm1145_vm1, %v2706_v35 }
  0x9d   : > { %v3373_v41 = vpop.f32.mrf.mxu2 }
  0x9e   : > { %v1359_v42 = vpop.f32.mrf.mxu0  ;;  %v3703_v45 = vadd.f32 %v3373_v41, %v1837_v38 }
  0x9f   : > { %v1841_v46 = vpop.f32.mrf.mxu1  ;;  %v1839_v59 = vadd.f32 %v1838_v34, %v1359_v42  ;;  %v704_v34 = vsel %vm612_vm3, %v699_v23, %v703_v24 }
  0xa0   : > { %v4983_v50 = vadd.f32 %v4653_v36, %v3703_v45 }
  0xa2   : > { %v4655_v51 = vpop.f32.mrf.mxu3  ;;  %6198 = vmatmul.msk.bf16.gmra.mxu1 %vm1145_vm1, %v6938_v18  ;;  %vm5115_vm4 = vcmp.ge.f32.partialorder %v4983_v50, 0.0  ;;  %v5247_v54 = vmul.f32 0.2, %v4983_v50  ;;  %v4326_v18 = vrot.slane %v7333_v8, 1 }
  0xa4   : > { %v5379_v58 = vsel %vm5115_vm4, %v4983_v50, %v5247_v54  ;;  %v4327_v26 = vsel %vm4304_vm2, %v4324_v47, %v4326_v18  ;;  %v709_v50 = vshll.u32 %v7355_v40, 16  ;;  %v2723_v54 = vshrl.u32 %v7336_v9, 16 }
  0xa5   : > { %v5511_v60 = vpack.c.bf16 %v5379_v58, %v5379_v58  ;;  %v3375_v61 = vpop.f32.mrf.mxu2  ;;  %v707_v58 = vor.u32 %v705_v49, %v703_v24  ;;  %v4330_v24 = vrot.slane %v7385_v14, 1  ;;  %v7411_v49 = vld [vmem:[%s7205_s30 + $0x80] sm:$0xff] }
  0xa6   : > { %v1362_v62 = vpop.f32.mrf.mxu0  ;;  %v3704_v0 = vadd.f32 %v3375_v61, %v1839_v59  ;;  %v711_v59 = vrot.slane %v709_v50, 1  ;;  %v4329_v61 = vsel %vm4304_vm2, %v4326_v18, %v4328_v53  ;;  %v7414_v50 = vld [vmem:[%s7205_s30 + $0x80] sm:$0xff] }
  0xa7   : > { %6870 = vmatmul.msk.bf16.gmra.mxu3 %vm1145_vm1, %v4325_v55  ;;  %v1843_v1 = vpop.f32.mrf.mxu1  ;;  %5644 = vst.msk [vmem:[%s7320_s6] sm:$0xf] %vm5643_vm5, %v5511_v60  ;;  %v1842_v7 = vadd.f32 %v1841_v46, %v1362_v62  ;;  %v2727_v55 = vshll.u32 %v7362_v44, 16  ;;  %v2725_v62 = vor.u32 %v2723_v54, %v2721_v28 }
  0xa8   : > { %v4984_v3 = vadd.f32 %v4655_v51, %v3704_v0 }
  0xa9   : > { %6128 = vmatmul.msk.bf16.gmra.mxu0 %vm1145_vm1, %v696_v63  ;;  %v2729_v63 = vrot.slane %v2727_v55, 1 }
  0xaa   : > { %v4658_v4 = vpop.f32.mrf.mxu3  ;;  %vm5116_vm6 = vcmp.ge.f32.partialorder %v4984_v3, 0.0  ;;  %v5248_v6 = vmul.f32 0.2, %v4984_v3  ;;  %6534 = vmatmul.msk.bf16.gmra.mxu2 %vm1145_vm1, %v2714_v2 }
  0xab   : > { %v2730_v8 = vsel %vm612_vm3, %v2725_v62, %v2729_v63 }
  0xac   : > { %v5380_v10 = vsel %vm5116_vm6, %v4984_v3, %v5248_v6 }
  0xad   : > { %v5512_v11 = vpack.c.bf16 %v5380_v10, %v5380_v10  ;;  %v3378_v12 = vpop.f32.mrf.mxu2 }
  0xae   : > { %v1364_v13 = vpop.f32.mrf.mxu0  ;;  %v3705_v16 = vadd.f32 %v3378_v12, %v1842_v7 }
  0xaf   : > { %v1846_v17 = vpop.f32.mrf.mxu1  ;;  %5645 = vst.msk [vmem:[%s7320_s6 + $0x4] sm:$0xf] %vm5643_vm5, %v5512_v11  ;;  %v1844_v30 = vadd.f32 %v1843_v1, %v1364_v13  ;;  %v7381_v11 = vld [vmem:[%s7205_s30 + $0x68] sm:$0xff] }
  0xb0   : > { %v4985_v21 = vadd.f32 %v4658_v4, %v3705_v16  ;;  %v721_v55 = vshrl.u32 %v7381_v11, 16 }
  0xb2   : > { %v4660_v22 = vpop.f32.mrf.mxu3  ;;  %6199 = vmatmul.msk.bf16.gmra.mxu1 %vm1145_vm1, %v7302_v37  ;;  %vm5117_vm7 = vcmp.ge.f32.partialorder %v4985_v21, 0.0  ;;  %v5249_v25 = vmul.f32 0.2, %v4985_v21  ;;  %v2722_v37 = vsel %vm612_vm3, %v2717_v27, %v2721_v28 }
  0xb4   : > { %v5381_v29 = vsel %vm5117_vm7, %v4985_v21, %v5249_v25  ;;  %v717_v21 = vshll.u32 %v7381_v11, 16  ;;  %v2731_v25 = vshrl.u32 %v7362_v44, 16 }
  0xb5   : > { %v5513_v31 = vpack.c.bf16 %v5381_v29, %v5381_v29  ;;  %v3380_v32 = vpop.f32.mrf.mxu2  ;;  %v715_v29 = vor.u32 %v713_v20, %v711_v59  ;;  %v7437_v20 = vld [vmem:[%s7205_s30 + $0x88] sm:$0xff] }
  0xb6   : > { %v1367_v33 = vpop.f32.mrf.mxu0  ;;  %v3706_v35 = vadd.f32 %v3380_v32, %v1844_v30  ;;  %v719_v30 = vrot.slane %v717_v21, 1  ;;  %v4331_v32 = vsel %vm4304_vm2, %v4328_v53, %v4330_v24  ;;  %v7440_v21 = vld [vmem:[%s7205_s30 + $0x88] sm:$0xff] }
  0xb7   : > { %6871 = vmatmul.msk.bf16.gmra.mxu3 %vm1145_vm1, %v4327_v26  ;;  %v1848_v36 = vpop.f32.mrf.mxu1  ;;  %5646 = vst.msk [vmem:[%s7320_s6 + $0x8] sm:$0xf] %vm5643_vm5, %v5513_v31  ;;  %v1847_v42 = vadd.f32 %v1846_v17, %v1367_v33  ;;  %v2735_v26 = vshll.u32 %v7388_v15, 16  ;;  %v2733_v33 = vor.u32 %v2731_v25, %v2729_v63 }
  0xb8   : > { %v4986_v38 = vadd.f32 %v4660_v22, %v3706_v35 }
  0xb9   : > { %6129 = vmatmul.msk.bf16.gmra.mxu0 %vm1145_vm1, %v704_v34  ;;  %v2737_v34 = vrot.slane %v2735_v26, 1 }
  0xba   : > { %v4663_v39 = vpop.f32.mrf.mxu3  ;;  %vm5118_vm8 = vcmp.ge.f32.partialorder %v4986_v38, 0.0  ;;  %v5250_v41 = vmul.f32 0.2, %v4986_v38  ;;  %6535 = vmatmul.msk.bf16.gmra.mxu2 %vm1145_vm1, %v2722_v37 }
  0xbb   : > { %v2738_v43 = vsel %vm612_vm3, %v2733_v33, %v2737_v34 }
  0xbc   : > { %v5382_v45 = vsel %vm5118_vm8, %v4986_v38, %v5250_v41 }
  0xbd   : > { %v5514_v46 = vpack.c.bf16 %v5382_v45, %v5382_v45  ;;  %v3383_v47 = vpop.f32.mrf.mxu2 }
  0xbe   : > { %v1369_v48 = vpop.f32.mrf.mxu0  ;;  %v3707_v51 = vadd.f32 %v3383_v47, %v1847_v42 }
  0xbf   : > { %v1851_v52 = vpop.f32.mrf.mxu1  ;;  %5647 = vst.msk [vmem:[%s7320_s6 + $0xc] sm:$0xf] %vm5643_vm5, %v5514_v46  ;;  %v1849_v1 = vadd.f32 %v1848_v36, %v1369_v48  ;;  %v7407_v46 = vld [vmem:[%s7205_s30 + $0x70] sm:$0xff] }
  0xc0   : > { %v4987_v56 = vadd.f32 %v4663_v39, %v3707_v51  ;;  %v729_v26 = vshrl.u32 %v7407_v46, 16 }
  0xc2   : > { %v4665_v57 = vpop.f32.mrf.mxu3  ;;  %6200 = vmatmul.msk.bf16.gmra.mxu1 %vm1145_vm1, %v7329_v5  ;;  %vm5119_vm9 = vcmp.ge.f32.partialorder %v4987_v56, 0.0  ;;  %v5251_v60 = vmul.f32 0.2, %v4987_v56  ;;  %v712_v5 = vsel %vm612_vm3, %v707_v58, %v711_v59  ;;  %v4332_v59 = vrot.slane %v7411_v49, 1 }
  0xc4   : > { %v5383_v0 = vsel %vm5119_vm9, %v4987_v56, %v5251_v60  ;;  %v725_v56 = vshll.u32 %v7407_v46, 16  ;;  %v2739_v60 = vshrl.u32 %v7388_v15, 16 }
  0xc5   : > { %v5515_v2 = vpack.c.bf16 %v5383_v0, %v5383_v0  ;;  %v3385_v3 = vpop.f32.mrf.mxu2  ;;  %v723_v0 = vor.u32 %v721_v55, %v719_v30  ;;  %v7463_v55 = vld [vmem:[%s7205_s30 + $0x90] sm:$0xff] }
  0xc6   : > { %v1372_v4 = vpop.f32.mrf.mxu0  ;;  %v3708_v6 = vadd.f32 %v3385_v3, %v1849_v1  ;;  %v727_v1 = vrot.slane %v725_v56, 1  ;;  %v4333_v3 = vsel %vm4304_vm2, %v4330_v24, %v4332_v59  ;;  %v7466_v56 = vld [vmem:[%s7205_s30 + $0x90] sm:$0xff] }
  0xc7   : > { %6872 = vmatmul.msk.bf16.gmra.mxu3 %vm1145_vm1, %v4329_v61  ;;  %v1853_v7 = vpop.f32.mrf.mxu1  ;;  %5648 = vst.msk [vmem:[%s7320_s6 + $0x10] sm:$0xf] %vm5643_vm5, %v5515_v2  ;;  %v1852_v13 = vadd.f32 %v1851_v52, %v1372_v4  ;;  %v2743_v61 = vshll.u32 %v7414_v50, 16  ;;  %v2741_v4 = vor.u32 %v2739_v60, %v2737_v34 }
  0xc8   : > { %v4988_v9 = vadd.f32 %v4665_v57, %v3708_v6 }
  0xc9   : > { %6130 = vmatmul.msk.bf16.gmra.mxu0 %vm1145_vm1, %v712_v5  ;;  %v2745_v5 = vrot.slane %v2743_v61, 1 }
  0xca   : > { %v4668_v10 = vpop.f32.mrf.mxu3  ;;  %vm5120_vm10 = vcmp.ge.f32.partialorder %v4988_v9, 0.0  ;;  %v5252_v12 = vmul.f32 0.2, %v4988_v9  ;;  %6536 = vmatmul.msk.bf16.gmra.mxu2 %vm1145_vm1, %v2730_v8 }
  0xcb   : > { %v2746_v14 = vsel %vm612_vm3, %v2741_v4, %v2745_v5 }
  0xcc   : > { %v5384_v16 = vsel %vm5120_vm10, %v4988_v9, %v5252_v12 }
  0xcd   : > { %v5516_v17 = vpack.c.bf16 %v5384_v16, %v5384_v16  ;;  %v3388_v18 = vpop.f32.mrf.mxu2 }
  0xce   : > { %v1374_v19 = vpop.f32.mrf.mxu0  ;;  %v3709_v22 = vadd.f32 %v3388_v18, %v1852_v13 }
  0xcf   : > { %v1856_v23 = vpop.f32.mrf.mxu1  ;;  %5649 = vst.msk [vmem:[%s7320_s6 + $0x14] sm:$0xf] %vm5643_vm5, %v5516_v17  ;;  %v1854_v36 = vadd.f32 %v1853_v7, %v1374_v19  ;;  %v7433_v17 = vld [vmem:[%s7205_s30 + $0x78] sm:$0xff] }
  0xd0   : > { %v4989_v27 = vadd.f32 %v4668_v10, %v3709_v22  ;;  %v737_v61 = vshrl.u32 %v7433_v17, 16 }
  0xd2   : > { %v4670_v28 = vpop.f32.mrf.mxu3  ;;  %6201 = vmatmul.msk.bf16.gmra.mxu1 %vm1145_vm1, %v7355_v40  ;;  %vm5121_vm11 = vcmp.ge.f32.partialorder %v4989_v27, 0.0  ;;  %v5253_v31 = vmul.f32 0.2, %v4989_v27  ;;  %v720_v40 = vsel %vm612_vm3, %v715_v29, %v719_v30  ;;  %v4334_v30 = vrot.slane %v7437_v20, 1 }
  0xd4   : > { %v5385_v35 = vsel %vm5121_vm11, %v4989_v27, %v5253_v31  ;;  %v733_v27 = vshll.u32 %v7433_v17, 16  ;;  %v2747_v31 = vshrl.u32 %v7414_v50, 16 }
  0xd5   : > { %v5517_v37 = vpack.c.bf16 %v5385_v35, %v5385_v35  ;;  %v3390_v38 = vpop.f32.mrf.mxu2  ;;  %v731_v35 = vor.u32 %v729_v26, %v727_v1  ;;  %v7489_v26 = vld [vmem:[%s7205_s30 + $0x98] sm:$0xff] }
  0xd6   : > { %v1377_v39 = vpop.f32.mrf.mxu0  ;;  %v3710_v41 = vadd.f32 %v3390_v38, %v1854_v36  ;;  %v735_v36 = vrot.slane %v733_v27, 1  ;;  %v4335_v38 = vsel %vm4304_vm2, %v4332_v59, %v4334_v30  ;;  %v7492_v27 = vld [vmem:[%s7205_s30 + $0x98] sm:$0xff] }
  0xd7   : > { %6873 = vmatmul.msk.bf16.gmra.mxu3 %vm1145_vm1, %v4331_v32  ;;  %v1858_v42 = vpop.f32.mrf.mxu1  ;;  %5650 = vst.msk [vmem:[%s7320_s6 + $0x18] sm:$0xf] %vm5643_vm5, %v5517_v37  ;;  %v1857_v48 = vadd.f32 %v1856_v23, %v1377_v39  ;;  %v2751_v32 = vshll.u32 %v7440_v21, 16  ;;  %v2749_v39 = vor.u32 %v2747_v31, %v2745_v5 }
  0xd8   : > { %v4990_v44 = vadd.f32 %v4670_v28, %v3710_v41 }
  0xd9   : > { %6131 = vmatmul.msk.bf16.gmra.mxu0 %vm1145_vm1, %v720_v40  ;;  %v2753_v40 = vrot.slane %v2751_v32, 1 }
  0xda   : > { %v4673_v45 = vpop.f32.mrf.mxu3  ;;  %vm5122_vm12 = vcmp.ge.f32.partialorder %v4990_v44, 0.0  ;;  %v5254_v47 = vmul.f32 0.2, %v4990_v44  ;;  %6537 = vmatmul.msk.bf16.gmra.mxu2 %vm1145_vm1, %v2738_v43 }
  0xdb   : > { %v2754_v49 = vsel %vm612_vm3, %v2749_v39, %v2753_v40 }
  0xdc   : > { %v5386_v51 = vsel %vm5122_vm12, %v4990_v44, %v5254_v47 }
  0xdd   : > { %v5518_v52 = vpack.c.bf16 %v5386_v51, %v5386_v51  ;;  %v3393_v53 = vpop.f32.mrf.mxu2 }
  0xde   : > { %v1379_v54 = vpop.f32.mrf.mxu0  ;;  %v3711_v57 = vadd.f32 %v3393_v53, %v1857_v48 }
  0xdf   : > { %v1861_v58 = vpop.f32.mrf.mxu1  ;;  %5651 = vst.msk [vmem:[%s7320_s6 + $0x1c] sm:$0xf] %vm5643_vm5, %v5518_v52  ;;  %v1859_v7 = vadd.f32 %v1858_v42, %v1379_v54  ;;  %v7459_v52 = vld [vmem:[%s7205_s30 + $0x80] sm:$0xff] }
  0xe0   : > { %v4991_v62 = vadd.f32 %v4673_v45, %v3711_v57  ;;  %v745_v32 = vshrl.u32 %v7459_v52, 16 }
  0xe2   : > { %v4675_v63 = vpop.f32.mrf.mxu3  ;;  %6202 = vmatmul.msk.bf16.gmra.mxu1 %vm1145_vm1, %v7381_v11  ;;  %vm5123_vm13 = vcmp.ge.f32.partialorder %v4991_v62, 0.0  ;;  %v5255_v2 = vmul.f32 0.2, %v4991_v62  ;;  %v728_v11 = vsel %vm612_vm3, %v723_v0, %v727_v1  ;;  %v4336_v1 = vrot.slane %v7463_v55, 1 }
  0xe4   : > { %v5387_v6 = vsel %vm5123_vm13, %v4991_v62, %v5255_v2  ;;  %v741_v62 = vshll.u32 %v7459_v52, 16  ;;  %v2755_v2 = vshrl.u32 %v7440_v21, 16 }
  0xe5   : > { %v5519_v8 = vpack.c.bf16 %v5387_v6, %v5387_v6  ;;  %v3395_v9 = vpop.f32.mrf.mxu2  ;;  %v739_v6 = vor.u32 %v737_v61, %v735_v36  ;;  %v7515_v61 = vld [vmem:[%s7205_s30 + $0xa0] sm:$0xff] }
  0xe6   : > { %v1382_v10 = vpop.f32.mrf.mxu0  ;;  %v3712_v12 = vadd.f32 %v3395_v9, %v1859_v7  ;;  %v743_v7 = vrot.slane %v741_v62, 1  ;;  %v4337_v9 = vsel %vm4304_vm2, %v4334_v30, %v4336_v1  ;;  %v7518_v62 = vld [vmem:[%s7205_s30 + $0xa0] sm:$0xff] }
  0xe7   : > { %6874 = vmatmul.msk.bf16.gmra.mxu3 %vm1145_vm1, %v4333_v3  ;;  %v1863_v13 = vpop.f32.mrf.mxu1  ;;  %5652 = vst.msk [vmem:[%s7320_s6 + $0x20] sm:$0xf] %vm5643_vm5, %v5519_v8  ;;  %v1862_v19 = vadd.f32 %v1861_v58, %v1382_v10  ;;  %v2759_v3 = vshll.u32 %v7466_v56, 16  ;;  %v2757_v10 = vor.u32 %v2755_v2, %v2753_v40 }
  0xe8   : > { %v4992_v15 = vadd.f32 %v4675_v63, %v3712_v12 }
  0xe9   : > { %6132 = vmatmul.msk.bf16.gmra.mxu0 %vm1145_vm1, %v728_v11  ;;  %v2761_v11 = vrot.slane %v2759_v3, 1 }
  0xea   : > { %v4678_v16 = vpop.f32.mrf.mxu3  ;;  %vm5124_vm14 = vcmp.ge.f32.partialorder %v4992_v15, 0.0  ;;  %v5256_v18 = vmul.f32 0.2, %v4992_v15  ;;  %6538 = vmatmul.msk.bf16.gmra.mxu2 %vm1145_vm1, %v2746_v14 }
  0xeb   : > { %v2762_v20 = vsel %vm612_vm3, %v2757_v10, %v2761_v11 }
  0xec   : > { %v5388_v22 = vsel %vm5124_vm14, %v4992_v15, %v5256_v18 }
  0xed   : > { %v5520_v23 = vpack.c.bf16 %v5388_v22, %v5388_v22  ;;  %v3398_v24 = vpop.f32.mrf.mxu2 }
  0xee   : > { %v1384_v25 = vpop.f32.mrf.mxu0  ;;  %v3713_v28 = vadd.f32 %v3398_v24, %v1862_v19 }
  0xef   : > { %v1866_v29 = vpop.f32.mrf.mxu1  ;;  %5653 = vst.msk [vmem:[%s7320_s6 + $0x24] sm:$0xf] %vm5643_vm5, %v5520_v23  ;;  %v1864_v42 = vadd.f32 %v1863_v13, %v1384_v25  ;;  %v7485_v23 = vld [vmem:[%s7205_s30 + $0x88] sm:$0xff] }
  0xf0   : > { %v4993_v33 = vadd.f32 %v4678_v16, %v3713_v28  ;;  %v753_v3 = vshrl.u32 %v7485_v23, 16 }
  0xf2   : > { %v4680_v34 = vpop.f32.mrf.mxu3  ;;  %6203 = vmatmul.msk.bf16.gmra.mxu1 %vm1145_vm1, %v7407_v46  ;;  %vm5125_vm15 = vcmp.ge.f32.partialorder %v4993_v33, 0.0  ;;  %v5257_v37 = vmul.f32 0.2, %v4993_v33  ;;  %v736_v46 = vsel %vm612_vm3, %v731_v35, %v735_v36  ;;  %v4338_v36 = vrot.slane %v7489_v26, 1 }
  0xf4   : > { %v5389_v41 = vsel %vm5125_vm15, %v4993_v33, %v5257_v37  ;;  %v749_v33 = vshll.u32 %v7485_v23, 16  ;;  %v2763_v37 = vshrl.u32 %v7466_v56, 16 }
  0xf5   : > { %v5521_v43 = vpack.c.bf16 %v5389_v41, %v5389_v41  ;;  %v3400_v44 = vpop.f32.mrf.mxu2  ;;  %v747_v41 = vor.u32 %v745_v32, %v743_v7  ;;  %v7541_v32 = vld [vmem:[%s7205_s30 + $0xa8] sm:$0xff] }
  0xf6   : > { %v1387_v45 = vpop.f32.mrf.mxu0  ;;  %v3714_v47 = vadd.f32 %v3400_v44, %v1864_v42  ;;  %v751_v42 = vrot.slane %v749_v33, 1  ;;  %v4339_v44 = vsel %vm4304_vm2, %v4336_v1, %v4338_v36  ;;  %v7544_v33 = vld [vmem:[%s7205_s30 + $0xa8] sm:$0xff] }
  0xf7   : > { %6875 = vmatmul.msk.bf16.gmra.mxu3 %vm1145_vm1, %v4335_v38  ;;  %v1868_v48 = vpop.f32.mrf.mxu1  ;;  %5654 = vst.msk [vmem:[%s7320_s6 + $0x28] sm:$0xf] %vm5643_vm5, %v5521_v43  ;;  %v1867_v54 = vadd.f32 %v1866_v29, %v1387_v45  ;;  %v2767_v38 = vshll.u32 %v7492_v27, 16  ;;  %v2765_v45 = vor.u32 %v2763_v37, %v2761_v11 }
  0xf8   : > { %v4994_v50 = vadd.f32 %v4680_v34, %v3714_v47 }
  0xf9   : > { %6133 = vmatmul.msk.bf16.gmra.mxu0 %vm1145_vm1, %v736_v46  ;;  %v2769_v46 = vrot.slane %v2767_v38, 1 }
  0xfa   : > { %v4683_v51 = vpop.f32.mrf.mxu3  ;;  %vm5126_vm0 = vcmp.ge.f32.partialorder %v4994_v50, 0.0  ;;  %v5258_v53 = vmul.f32 0.2, %v4994_v50  ;;  %6539 = vmatmul.msk.bf16.gmra.mxu2 %vm1145_vm1, %v2754_v49 }
  0xfb   : > { %v2770_v55 = vsel %vm612_vm3, %v2765_v45, %v2769_v46 }
  0xfc   : > { %v5390_v57 = vsel %vm5126_vm0, %v4994_v50, %v5258_v53 }
  0xfd   : > { %v5522_v58 = vpack.c.bf16 %v5390_v57, %v5390_v57  ;;  %v3403_v59 = vpop.f32.mrf.mxu2 }
  0xfe   : > { %v1389_v60 = vpop.f32.mrf.mxu0  ;;  %v3715_v63 = vadd.f32 %v3403_v59, %v1867_v54 }
  0xff   : > { %v1871_v0 = vpop.f32.mrf.mxu1  ;;  %5655 = vst.msk [vmem:[%s7320_s6 + $0x2c] sm:$0xf] %vm5643_vm5, %v5522_v58  ;;  %v1869_v13 = vadd.f32 %v1868_v48, %v1389_v60  ;;  %v7511_v58 = vld [vmem:[%s7205_s30 + $0x90] sm:$0xff] }
 0x100   : > { %v4995_v4 = vadd.f32 %v4683_v51, %v3715_v63  ;;  %v761_v38 = vshrl.u32 %v7511_v58, 16 }
 0x102   : > { %v4685_v5 = vpop.f32.mrf.mxu3  ;;  %6204 = vmatmul.msk.bf16.gmra.mxu1 %vm1145_vm1, %v7433_v17  ;;  %vm5127_vm4 = vcmp.ge.f32.partialorder %v4995_v4, 0.0  ;;  %v5259_v8 = vmul.f32 0.2, %v4995_v4  ;;  %v744_v17 = vsel %vm612_vm3, %v739_v6, %v743_v7  ;;  %v4340_v7 = vrot.slane %v7515_v61, 1 }
 0x104   : > { %v5391_v12 = vsel %vm5127_vm4, %v4995_v4, %v5259_v8  ;;  %v757_v4 = vshll.u32 %v7511_v58, 16  ;;  %v2771_v8 = vshrl.u32 %v7492_v27, 16 }
 0x105   : > { %v5523_v14 = vpack.c.bf16 %v5391_v12, %v5391_v12  ;;  %v3405_v15 = vpop.f32.mrf.mxu2  ;;  %v755_v12 = vor.u32 %v753_v3, %v751_v42  ;;  %v7567_v3 = vld [vmem:[%s7205_s30 + $0xb0] sm:$0xff] }
 0x106   : > { %v1392_v16 = vpop.f32.mrf.mxu0  ;;  %v3716_v18 = vadd.f32 %v3405_v15, %v1869_v13  ;;  %v759_v13 = vrot.slane %v757_v4, 1  ;;  %v4341_v15 = vsel %vm4304_vm2, %v4338_v36, %v4340_v7  ;;  %v7570_v4 = vld [vmem:[%s7205_s30 + $0xb0] sm:$0xff] }
 0x107   : > { %6876 = vmatmul.msk.bf16.gmra.mxu3 %vm1145_vm1, %v4337_v9  ;;  %v1873_v19 = vpop.f32.mrf.mxu1  ;;  %5656 = vst.msk [vmem:[%s7320_s6 + $0x30] sm:$0xf] %vm5643_vm5, %v5523_v14  ;;  %v1872_v25 = vadd.f32 %v1871_v0, %v1392_v16  ;;  %v2775_v9 = vshll.u32 %v7518_v62, 16  ;;  %v2773_v16 = vor.u32 %v2771_v8, %v2769_v46 }
 0x108   : > { %v4996_v21 = vadd.f32 %v4685_v5, %v3716_v18 }
 0x109   : > { %6134 = vmatmul.msk.bf16.gmra.mxu0 %vm1145_vm1, %v744_v17  ;;  %v2777_v17 = vrot.slane %v2775_v9, 1 }
 0x10a   : > { %v4688_v22 = vpop.f32.mrf.mxu3  ;;  %vm5128_vm6 = vcmp.ge.f32.partialorder %v4996_v21, 0.0  ;;  %v5260_v24 = vmul.f32 0.2, %v4996_v21  ;;  %6540 = vmatmul.msk.bf16.gmra.mxu2 %vm1145_vm1, %v2762_v20 }
 0x10b   : > { %v2778_v26 = vsel %vm612_vm3, %v2773_v16, %v2777_v17 }
 0x10c   : > { %v5392_v28 = vsel %vm5128_vm6, %v4996_v21, %v5260_v24 }
 0x10d   : > { %v5524_v29 = vpack.c.bf16 %v5392_v28, %v5392_v28  ;;  %v3408_v30 = vpop.f32.mrf.mxu2 }
 0x10e   : > { %v1394_v31 = vpop.f32.mrf.mxu0  ;;  %v3717_v34 = vadd.f32 %v3408_v30, %v1872_v25 }
 0x10f   : > { %v1876_v35 = vpop.f32.mrf.mxu1  ;;  %5657 = vst.msk [vmem:[%s7320_s6 + $0x34] sm:$0xf] %vm5643_vm5, %v5524_v29  ;;  %v1874_v48 = vadd.f32 %v1873_v19, %v1394_v31  ;;  %v7537_v29 = vld [vmem:[%s7205_s30 + $0x98] sm:$0xff] }
 0x110   : > { %v4997_v39 = vadd.f32 %v4688_v22, %v3717_v34  ;;  %v769_v9 = vshrl.u32 %v7537_v29, 16 }
 0x112   : > { %v4690_v40 = vpop.f32.mrf.mxu3  ;;  %6205 = vmatmul.msk.bf16.gmra.mxu1 %vm1145_vm1, %v7459_v52  ;;  %vm5129_vm7 = vcmp.ge.f32.partialorder %v4997_v39, 0.0  ;;  %v5261_v43 = vmul.f32 0.2, %v4997_v39  ;;  %v752_v52 = vsel %vm612_vm3, %v747_v41, %v751_v42  ;;  %v4342_v42 = vrot.slane %v7541_v32, 1 }
 0x114   : > { %v5393_v47 = vsel %vm5129_vm7, %v4997_v39, %v5261_v43  ;;  %v765_v39 = vshll.u32 %v7537_v29, 16  ;;  %v2779_v43 = vshrl.u32 %v7518_v62, 16 }
 0x115   : > { %v5525_v49 = vpack.c.bf16 %v5393_v47, %v5393_v47  ;;  %v3410_v50 = vpop.f32.mrf.mxu2  ;;  %v763_v47 = vor.u32 %v761_v38, %v759_v13  ;;  %v7593_v38 = vld [vmem:[%s7205_s30 + $0xb8] sm:$0xff] }
 0x116   : > { %v1397_v51 = vpop.f32.mrf.mxu0  ;;  %v3718_v53 = vadd.f32 %v3410_v50, %v1874_v48  ;;  %v767_v48 = vrot.slane %v765_v39, 1  ;;  %v4343_v50 = vsel %vm4304_vm2, %v4340_v7, %v4342_v42  ;;  %v7596_v39 = vld [vmem:[%s7205_s30 + $0xb8] sm:$0xff] }
 0x117   : > { %6877 = vmatmul.msk.bf16.gmra.mxu3 %vm1145_vm1, %v4339_v44  ;;  %v1878_v54 = vpop.f32.mrf.mxu1  ;;  %5658 = vst.msk [vmem:[%s7320_s6 + $0x38] sm:$0xf] %vm5643_vm5, %v5525_v49  ;;  %v1877_v60 = vadd.f32 %v1876_v35, %v1397_v51  ;;  %v2783_v44 = vshll.u32 %v7544_v33, 16  ;;  %v2781_v51 = vor.u32 %v2779_v43, %v2777_v17 }
 0x118   : > { %v4998_v56 = vadd.f32 %v4690_v40, %v3718_v53 }
 0x119   : > { %6135 = vmatmul.msk.bf16.gmra.mxu0 %vm1145_vm1, %v752_v52  ;;  %v2785_v52 = vrot.slane %v2783_v44, 1 }
 0x11a   : > { %v4693_v57 = vpop.f32.mrf.mxu3  ;;  %vm5130_vm8 = vcmp.ge.f32.partialorder %v4998_v56, 0.0  ;;  %v5262_v59 = vmul.f32 0.2, %v4998_v56  ;;  %6541 = vmatmul.msk.bf16.gmra.mxu2 %vm1145_vm1, %v2770_v55 }
 0x11b   : > { %v2786_v61 = vsel %vm612_vm3, %v2781_v51, %v2785_v52 }
 0x11c   : > { %v5394_v63 = vsel %vm5130_vm8, %v4998_v56, %v5262_v59 }
 0x11d   : > { %v5526_v0 = vpack.c.bf16 %v5394_v63, %v5394_v63  ;;  %v3413_v1 = vpop.f32.mrf.mxu2 }
 0x11e   : > { %v1399_v2 = vpop.f32.mrf.mxu0  ;;  %v3719_v5 = vadd.f32 %v3413_v1, %v1877_v60 }
 0x11f   : > { %v1881_v6 = vpop.f32.mrf.mxu1  ;;  %5659 = vst.msk [vmem:[%s7320_s6 + $0x3c] sm:$0xf] %vm5643_vm5, %v5526_v0  ;;  %v1879_v19 = vadd.f32 %v1878_v54, %v1399_v2  ;;  %v7563_v0 = vld [vmem:[%s7205_s30 + $0xa0] sm:$0xff] }
 0x120   : > { %v4999_v10 = vadd.f32 %v4693_v57, %v3719_v5  ;;  %v777_v44 = vshrl.u32 %v7563_v0, 16 }
 0x122   : > { %v4695_v11 = vpop.f32.mrf.mxu3  ;;  %6206 = vmatmul.msk.bf16.gmra.mxu1 %vm1145_vm1, %v7485_v23  ;;  %vm5131_vm9 = vcmp.ge.f32.partialorder %v4999_v10, 0.0  ;;  %v5263_v14 = vmul.f32 0.2, %v4999_v10  ;;  %v760_v23 = vsel %vm612_vm3, %v755_v12, %v759_v13  ;;  %v4344_v13 = vrot.slane %v7567_v3, 1 }
 0x124   : > { %v5395_v18 = vsel %vm5131_vm9, %v4999_v10, %v5263_v14  ;;  %v773_v10 = vshll.u32 %v7563_v0, 16  ;;  %v2787_v14 = vshrl.u32 %v7544_v33, 16 }
 0x125   : > { %v5527_v20 = vpack.c.bf16 %v5395_v18, %v5395_v18  ;;  %v3415_v21 = vpop.f32.mrf.mxu2  ;;  %v771_v18 = vor.u32 %v769_v9, %v767_v48  ;;  %v7619_v9 = vld [vmem:[%s7205_s30 + $0xc0] sm:$0xff] }
 0x126   : > { %v1402_v22 = vpop.f32.mrf.mxu0  ;;  %v3720_v24 = vadd.f32 %v3415_v21, %v1879_v19  ;;  %v775_v19 = vrot.slane %v773_v10, 1  ;;  %v4345_v21 = vsel %vm4304_vm2, %v4342_v42, %v4344_v13  ;;  %v7622_v10 = vld [vmem:[%s7205_s30 + $0xc0] sm:$0xff] }
 0x127   : > { %6878 = vmatmul.msk.bf16.gmra.mxu3 %vm1145_vm1, %v4341_v15  ;;  %v1883_v25 = vpop.f32.mrf.mxu1  ;;  %5660 = vst.msk [vmem:[%s7320_s6 + $0x40] sm:$0xf] %vm5643_vm5, %v5527_v20  ;;  %v1882_v31 = vadd.f32 %v1881_v6, %v1402_v22  ;;  %v2791_v15 = vshll.u32 %v7570_v4, 16  ;;  %v2789_v22 = vor.u32 %v2787_v14, %v2785_v52 }
 0x128   : > { %v5000_v27 = vadd.f32 %v4695_v11, %v3720_v24 }
 0x129   : > { %6136 = vmatmul.msk.bf16.gmra.mxu0 %vm1145_vm1, %v760_v23  ;;  %v2793_v23 = vrot.slane %v2791_v15, 1 }
 0x12a   : > { %v4698_v28 = vpop.f32.mrf.mxu3  ;;  %vm5132_vm10 = vcmp.ge.f32.partialorder %v5000_v27, 0.0  ;;  %v5264_v30 = vmul.f32 0.2, %v5000_v27  ;;  %6542 = vmatmul.msk.bf16.gmra.mxu2 %vm1145_vm1, %v2778_v26 }
 0x12b   : > { %v2794_v32 = vsel %vm612_vm3, %v2789_v22, %v2793_v23 }
 0x12c   : > { %v5396_v34 = vsel %vm5132_vm10, %v5000_v27, %v5264_v30 }
 0x12d   : > { %v5528_v35 = vpack.c.bf16 %v5396_v34, %v5396_v34  ;;  %v3418_v36 = vpop.f32.mrf.mxu2 }
 0x12e   : > { %v1404_v37 = vpop.f32.mrf.mxu0  ;;  %v3721_v40 = vadd.f32 %v3418_v36, %v1882_v31 }
 0x12f   : > { %v1886_v41 = vpop.f32.mrf.mxu1  ;;  %5661 = vst.msk [vmem:[%s7320_s6 + $0x44] sm:$0xf] %vm5643_vm5, %v5528_v35  ;;  %v1884_v54 = vadd.f32 %v1883_v25, %v1404_v37  ;;  %v7589_v35 = vld [vmem:[%s7205_s30 + $0xa8] sm:$0xff] }
 0x130   : > { %v5001_v45 = vadd.f32 %v4698_v28, %v3721_v40  ;;  %v785_v15 = vshrl.u32 %v7589_v35, 16 }
 0x132   : > { %v4700_v46 = vpop.f32.mrf.mxu3  ;;  %6207 = vmatmul.msk.bf16.gmra.mxu1 %vm1145_vm1, %v7511_v58  ;;  %vm5133_vm11 = vcmp.ge.f32.partialorder %v5001_v45, 0.0  ;;  %v5265_v49 = vmul.f32 0.2, %v5001_v45  ;;  %v768_v58 = vsel %vm612_vm3, %v763_v47, %v767_v48  ;;  %v4346_v48 = vrot.slane %v7593_v38, 1 }
 0x134   : > { %v5397_v53 = vsel %vm5133_vm11, %v5001_v45, %v5265_v49  ;;  %v781_v45 = vshll.u32 %v7589_v35, 16  ;;  %v2795_v49 = vshrl.u32 %v7570_v4, 16 }
 0x135   : > { %v5529_v55 = vpack.c.bf16 %v5397_v53, %v5397_v53  ;;  %v3420_v56 = vpop.f32.mrf.mxu2  ;;  %v779_v53 = vor.u32 %v777_v44, %v775_v19  ;;  %v7645_v44 = vld [vmem:[%s7205_s30 + $0xc8] sm:$0xff] }
 0x136   : > { %v1407_v57 = vpop.f32.mrf.mxu0  ;;  %v3722_v59 = vadd.f32 %v3420_v56, %v1884_v54  ;;  %v783_v54 = vrot.slane %v781_v45, 1  ;;  %v4347_v56 = vsel %vm4304_vm2, %v4344_v13, %v4346_v48  ;;  %v7648_v45 = vld [vmem:[%s7205_s30 + $0xc8] sm:$0xff] }
 0x137   : > { %6879 = vmatmul.msk.bf16.gmra.mxu3 %vm1145_vm1, %v4343_v50  ;;  %v1888_v60 = vpop.f32.mrf.mxu1  ;;  %5662 = vst.msk [vmem:[%s7320_s6 + $0x48] sm:$0xf] %vm5643_vm5, %v5529_v55  ;;  %v1887_v2 = vadd.f32 %v1886_v41, %v1407_v57  ;;  %v2799_v50 = vshll.u32 %v7596_v39, 16  ;;  %v2797_v57 = vor.u32 %v2795_v49, %v2793_v23 }
 0x138   : > { %v5002_v62 = vadd.f32 %v4700_v46, %v3722_v59 }
 0x139   : > { %6137 = vmatmul.msk.bf16.gmra.mxu0 %vm1145_vm1, %v768_v58  ;;  %v2801_v58 = vrot.slane %v2799_v50, 1 }
 0x13a   : > { %v4703_v63 = vpop.f32.mrf.mxu3  ;;  %vm5134_vm12 = vcmp.ge.f32.partialorder %v5002_v62, 0.0  ;;  %v5266_v1 = vmul.f32 0.2, %v5002_v62  ;;  %6543 = vmatmul.msk.bf16.gmra.mxu2 %vm1145_vm1, %v2786_v61 }
 0x13b   : > { %v2802_v3 = vsel %vm612_vm3, %v2797_v57, %v2801_v58 }
 0x13c   : > { %v5398_v5 = vsel %vm5134_vm12, %v5002_v62, %v5266_v1 }
 0x13d   : > { %v5530_v6 = vpack.c.bf16 %v5398_v5, %v5398_v5  ;;  %v3423_v7 = vpop.f32.mrf.mxu2 }
 0x13e   : > { %v1409_v8 = vpop.f32.mrf.mxu0  ;;  %v3723_v11 = vadd.f32 %v3423_v7, %v1887_v2 }
 0x13f   : > { %v1891_v12 = vpop.f32.mrf.mxu1  ;;  %5663 = vst.msk [vmem:[%s7320_s6 + $0x4c] sm:$0xf] %vm5643_vm5, %v5530_v6  ;;  %v1889_v25 = vadd.f32 %v1888_v60, %v1409_v8  ;;  %v7615_v6 = vld [vmem:[%s7205_s30 + $0xb0] sm:$0xff] }
 0x140   : > { %v5003_v16 = vadd.f32 %v4703_v63, %v3723_v11  ;;  %v793_v50 = vshrl.u32 %v7615_v6, 16 }
 0x142   : > { %v4705_v17 = vpop.f32.mrf.mxu3  ;;  %6208 = vmatmul.msk.bf16.gmra.mxu1 %vm1145_vm1, %v7537_v29  ;;  %vm5135_vm13 = vcmp.ge.f32.partialorder %v5003_v16, 0.0  ;;  %v5267_v20 = vmul.f32 0.2, %v5003_v16  ;;  %v776_v29 = vsel %vm612_vm3, %v771_v18, %v775_v19  ;;  %v4348_v19 = vrot.slane %v7619_v9, 1 }
 0x144   : > { %v5399_v24 = vsel %vm5135_vm13, %v5003_v16, %v5267_v20  ;;  %v789_v16 = vshll.u32 %v7615_v6, 16  ;;  %v2803_v20 = vshrl.u32 %v7596_v39, 16 }
 0x145   : > { %v5531_v26 = vpack.c.bf16 %v5399_v24, %v5399_v24  ;;  %v3425_v27 = vpop.f32.mrf.mxu2  ;;  %v787_v24 = vor.u32 %v785_v15, %v783_v54  ;;  %v7671_v15 = vld [vmem:[%s7205_s30 + $0xd0] sm:$0xff] }
 0x146   : > { %v1412_v28 = vpop.f32.mrf.mxu0  ;;  %v3724_v30 = vadd.f32 %v3425_v27, %v1889_v25  ;;  %v791_v25 = vrot.slane %v789_v16, 1  ;;  %v4349_v27 = vsel %vm4304_vm2, %v4346_v48, %v4348_v19  ;;  %v7674_v16 = vld [vmem:[%s7205_s30 + $0xd0] sm:$0xff] }
 0x147   : > { %6880 = vmatmul.msk.bf16.gmra.mxu3 %vm1145_vm1, %v4345_v21  ;;  %v1893_v31 = vpop.f32.mrf.mxu1  ;;  %5664 = vst.msk [vmem:[%s7320_s6 + $0x50] sm:$0xf] %vm5643_vm5, %v5531_v26  ;;  %v1892_v37 = vadd.f32 %v1891_v12, %v1412_v28  ;;  %v2807_v21 = vshll.u32 %v7622_v10, 16  ;;  %v2805_v28 = vor.u32 %v2803_v20, %v2801_v58 }
 0x148   : > { %v5004_v33 = vadd.f32 %v4705_v17, %v3724_v30 }
 0x149   : > { %6138 = vmatmul.msk.bf16.gmra.mxu0 %vm1145_vm1, %v776_v29  ;;  %v2809_v29 = vrot.slane %v2807_v21, 1 }
 0x14a   : > { %v4708_v34 = vpop.f32.mrf.mxu3  ;;  %vm5136_vm14 = vcmp.ge.f32.partialorder %v5004_v33, 0.0  ;;  %v5268_v36 = vmul.f32 0.2, %v5004_v33  ;;  %6544 = vmatmul.msk.bf16.gmra.mxu2 %vm1145_vm1, %v2794_v32 }
 0x14b   : > { %v2810_v38 = vsel %vm612_vm3, %v2805_v28, %v2809_v29 }
 0x14c   : > { %v5400_v40 = vsel %vm5136_vm14, %v5004_v33, %v5268_v36 }
 0x14d   : > { %v5532_v41 = vpack.c.bf16 %v5400_v40, %v5400_v40  ;;  %v3428_v42 = vpop.f32.mrf.mxu2 }
 0x14e   : > { %v1414_v43 = vpop.f32.mrf.mxu0  ;;  %v3725_v46 = vadd.f32 %v3428_v42, %v1892_v37 }
 0x14f   : > { %v1896_v47 = vpop.f32.mrf.mxu1  ;;  %5665 = vst.msk [vmem:[%s7320_s6 + $0x54] sm:$0xf] %vm5643_vm5, %v5532_v41  ;;  %v1894_v60 = vadd.f32 %v1893_v31, %v1414_v43  ;;  %v7641_v41 = vld [vmem:[%s7205_s30 + $0xb8] sm:$0xff] }
 0x150   : > { %v5005_v51 = vadd.f32 %v4708_v34, %v3725_v46  ;;  %v801_v21 = vshrl.u32 %v7641_v41, 16 }
 0x152   : > { %v4710_v52 = vpop.f32.mrf.mxu3  ;;  %6209 = vmatmul.msk.bf16.gmra.mxu1 %vm1145_vm1, %v7563_v0  ;;  %vm5137_vm15 = vcmp.ge.f32.partialorder %v5005_v51, 0.0  ;;  %v5269_v55 = vmul.f32 0.2, %v5005_v51  ;;  %v784_v0 = vsel %vm612_vm3, %v779_v53, %v783_v54  ;;  %v4350_v54 = vrot.slane %v7645_v44, 1 }
 0x154   : > { %v5401_v59 = vsel %vm5137_vm15, %v5005_v51, %v5269_v55  ;;  %v797_v51 = vshll.u32 %v7641_v41, 16  ;;  %v2811_v55 = vshrl.u32 %v7622_v10, 16 }
 0x155   : > { %v5533_v61 = vpack.c.bf16 %v5401_v59, %v5401_v59  ;;  %v3430_v62 = vpop.f32.mrf.mxu2  ;;  %v795_v59 = vor.u32 %v793_v50, %v791_v25  ;;  %v7697_v50 = vld [vmem:[%s7205_s30 + $0xd8] sm:$0xff] }
 0x156   : > { %v1417_v63 = vpop.f32.mrf.mxu0  ;;  %v3726_v1 = vadd.f32 %v3430_v62, %v1894_v60  ;;  %v799_v60 = vrot.slane %v797_v51, 1  ;;  %v4351_v62 = vsel %vm4304_vm2, %v4348_v19, %v4350_v54  ;;  %v7700_v51 = vld [vmem:[%s7205_s30 + $0xd8] sm:$0xff] }
 0x157   : > { %6881 = vmatmul.msk.bf16.gmra.mxu3 %vm1145_vm1, %v4347_v56  ;;  %v1898_v2 = vpop.f32.mrf.mxu1  ;;  %5666 = vst.msk [vmem:[%s7320_s6 + $0x58] sm:$0xf] %vm5643_vm5, %v5533_v61  ;;  %v1897_v8 = vadd.f32 %v1896_v47, %v1417_v63  ;;  %v2815_v56 = vshll.u32 %v7648_v45, 16  ;;  %v2813_v63 = vor.u32 %v2811_v55, %v2809_v29 }
 0x158   : > { %v5006_v4 = vadd.f32 %v4710_v52, %v3726_v1 }
 0x159   : > { %6139 = vmatmul.msk.bf16.gmra.mxu0 %vm1145_vm1, %v784_v0  ;;  %v2817_v0 = vrot.slane %v2815_v56, 1 }
 0x15a   : > { %v4713_v5 = vpop.f32.mrf.mxu3  ;;  %vm5138_vm0 = vcmp.ge.f32.partialorder %v5006_v4, 0.0  ;;  %v5270_v7 = vmul.f32 0.2, %v5006_v4  ;;  %6545 = vmatmul.msk.bf16.gmra.mxu2 %vm1145_vm1, %v2802_v3 }
 0x15b   : > { %v2818_v9 = vsel %vm612_vm3, %v2813_v63, %v2817_v0 }
 0x15c   : > { %v5402_v11 = vsel %vm5138_vm0, %v5006_v4, %v5270_v7 }
 0x15d   : > { %v5534_v12 = vpack.c.bf16 %v5402_v11, %v5402_v11  ;;  %v3433_v13 = vpop.f32.mrf.mxu2 }
 0x15e   : > { %v1419_v14 = vpop.f32.mrf.mxu0  ;;  %v3727_v17 = vadd.f32 %v3433_v13, %v1897_v8 }
 0x15f   : > { %v1901_v18 = vpop.f32.mrf.mxu1  ;;  %5667 = vst.msk [vmem:[%s7320_s6 + $0x5c] sm:$0xf] %vm5643_vm5, %v5534_v12  ;;  %v1899_v31 = vadd.f32 %v1898_v2, %v1419_v14  ;;  %v7667_v12 = vld [vmem:[%s7205_s30 + $0xc0] sm:$0xff] }
 0x160   : > { %v5007_v22 = vadd.f32 %v4713_v5, %v3727_v17  ;;  %v809_v56 = vshrl.u32 %v7667_v12, 16 }
 0x162   : > { %v4715_v23 = vpop.f32.mrf.mxu3  ;;  %6210 = vmatmul.msk.bf16.gmra.mxu1 %vm1145_vm1, %v7589_v35  ;;  %vm5139_vm4 = vcmp.ge.f32.partialorder %v5007_v22, 0.0  ;;  %v5271_v26 = vmul.f32 0.2, %v5007_v22  ;;  %v792_v35 = vsel %vm612_vm3, %v787_v24, %v791_v25  ;;  %v4352_v25 = vrot.slane %v7671_v15, 1 }
 0x164   : > { %v5403_v30 = vsel %vm5139_vm4, %v5007_v22, %v5271_v26  ;;  %v805_v22 = vshll.u32 %v7667_v12, 16  ;;  %v2819_v26 = vshrl.u32 %v7648_v45, 16 }
 0x165   : > { %v5535_v32 = vpack.c.bf16 %v5403_v30, %v5403_v30  ;;  %v3435_v33 = vpop.f32.mrf.mxu2  ;;  %v803_v30 = vor.u32 %v801_v21, %v799_v60  ;;  %v7723_v21 = vld [vmem:[%s7205_s30 + $0xe0] sm:$0xff] }
 0x166   : > { %v1422_v34 = vpop.f32.mrf.mxu0  ;;  %v3728_v36 = vadd.f32 %v3435_v33, %v1899_v31  ;;  %v807_v31 = vrot.slane %v805_v22, 1  ;;  %v4353_v33 = vsel %vm4304_vm2, %v4350_v54, %v4352_v25  ;;  %v7726_v22 = vld [vmem:[%s7205_s30 + $0xe0] sm:$0xff] }
 0x167   : > { %6882 = vmatmul.msk.bf16.gmra.mxu3 %vm1145_vm1, %v4349_v27  ;;  %v1903_v37 = vpop.f32.mrf.mxu1  ;;  %5668 = vst.msk [vmem:[%s7320_s6 + $0x60] sm:$0xf] %vm5643_vm5, %v5535_v32  ;;  %v1902_v43 = vadd.f32 %v1901_v18, %v1422_v34  ;;  %v2823_v27 = vshll.u32 %v7674_v16, 16  ;;  %v2821_v34 = vor.u32 %v2819_v26, %v2817_v0 }
 0x168   : > { %v5008_v39 = vadd.f32 %v4715_v23, %v3728_v36 }
 0x169   : > { %6140 = vmatmul.msk.bf16.gmra.mxu0 %vm1145_vm1, %v792_v35  ;;  %v2825_v35 = vrot.slane %v2823_v27, 1 }
 0x16a   : > { %v4718_v40 = vpop.f32.mrf.mxu3  ;;  %vm5140_vm6 = vcmp.ge.f32.partialorder %v5008_v39, 0.0  ;;  %v5272_v42 = vmul.f32 0.2, %v5008_v39  ;;  %6546 = vmatmul.msk.bf16.gmra.mxu2 %vm1145_vm1, %v2810_v38 }
 0x16b   : > { %v2826_v44 = vsel %vm612_vm3, %v2821_v34, %v2825_v35 }
 0x16c   : > { %v5404_v46 = vsel %vm5140_vm6, %v5008_v39, %v5272_v42 }
 0x16d   : > { %v5536_v47 = vpack.c.bf16 %v5404_v46, %v5404_v46  ;;  %v3438_v48 = vpop.f32.mrf.mxu2 }
 0x16e   : > { %v1424_v49 = vpop.f32.mrf.mxu0  ;;  %v3729_v52 = vadd.f32 %v3438_v48, %v1902_v43 }
 0x16f   : > { %v1906_v53 = vpop.f32.mrf.mxu1  ;;  %5669 = vst.msk [vmem:[%s7320_s6 + $0x64] sm:$0xf] %vm5643_vm5, %v5536_v47  ;;  %v1904_v2 = vadd.f32 %v1903_v37, %v1424_v49  ;;  %v7693_v47 = vld [vmem:[%s7205_s30 + $0xc8] sm:$0xff] }
 0x170   : > { %v5009_v57 = vadd.f32 %v4718_v40, %v3729_v52  ;;  %v817_v27 = vshrl.u32 %v7693_v47, 16 }
 0x172   : > { %v4720_v58 = vpop.f32.mrf.mxu3  ;;  %6211 = vmatmul.msk.bf16.gmra.mxu1 %vm1145_vm1, %v7615_v6  ;;  %vm5141_vm7 = vcmp.ge.f32.partialorder %v5009_v57, 0.0  ;;  %v5273_v61 = vmul.f32 0.2, %v5009_v57  ;;  %v800_v6 = vsel %vm612_vm3, %v795_v59, %v799_v60  ;;  %v4354_v60 = vrot.slane %v7697_v50, 1 }
 0x174   : > { %v5405_v1 = vsel %vm5141_vm7, %v5009_v57, %v5273_v61  ;;  %v813_v57 = vshll.u32 %v7693_v47, 16  ;;  %v2827_v61 = vshrl.u32 %v7674_v16, 16 }
 0x175   : > { %v5537_v3 = vpack.c.bf16 %v5405_v1, %v5405_v1  ;;  %v3440_v4 = vpop.f32.mrf.mxu2  ;;  %v811_v1 = vor.u32 %v809_v56, %v807_v31  ;;  %v7749_v56 = vld [vmem:[%s7205_s30 + $0xe8] sm:$0xff] }
 0x176   : > { %v1427_v5 = vpop.f32.mrf.mxu0  ;;  %v3730_v7 = vadd.f32 %v3440_v4, %v1904_v2  ;;  %v815_v2 = vrot.slane %v813_v57, 1  ;;  %v4355_v4 = vsel %vm4304_vm2, %v4352_v25, %v4354_v60  ;;  %v7752_v57 = vld [vmem:[%s7205_s30 + $0xe8] sm:$0xff] }
 0x177   : > { %6883 = vmatmul.msk.bf16.gmra.mxu3 %vm1145_vm1, %v4351_v62  ;;  %v1908_v8 = vpop.f32.mrf.mxu1  ;;  %5670 = vst.msk [vmem:[%s7320_s6 + $0x68] sm:$0xf] %vm5643_vm5, %v5537_v3  ;;  %v1907_v14 = vadd.f32 %v1906_v53, %v1427_v5  ;;  %v2831_v62 = vshll.u32 %v7700_v51, 16  ;;  %v2829_v5 = vor.u32 %v2827_v61, %v2825_v35 }
 0x178   : > { %v5010_v10 = vadd.f32 %v4720_v58, %v3730_v7 }
 0x179   : > { %6141 = vmatmul.msk.bf16.gmra.mxu0 %vm1145_vm1, %v800_v6  ;;  %v2833_v6 = vrot.slane %v2831_v62, 1 }
 0x17a   : > { %v4723_v11 = vpop.f32.mrf.mxu3  ;;  %vm5142_vm8 = vcmp.ge.f32.partialorder %v5010_v10, 0.0  ;;  %v5274_v13 = vmul.f32 0.2, %v5010_v10  ;;  %6547 = vmatmul.msk.bf16.gmra.mxu2 %vm1145_vm1, %v2818_v9 }
 0x17b   : > { %v2834_v15 = vsel %vm612_vm3, %v2829_v5, %v2833_v6 }
 0x17c   : > { %v5406_v17 = vsel %vm5142_vm8, %v5010_v10, %v5274_v13 }
 0x17d   : > { %v5538_v18 = vpack.c.bf16 %v5406_v17, %v5406_v17  ;;  %v3443_v19 = vpop.f32.mrf.mxu2 }
 0x17e   : > { %v1429_v20 = vpop.f32.mrf.mxu0  ;;  %v3731_v23 = vadd.f32 %v3443_v19, %v1907_v14 }
 0x17f   : > { %v1911_v24 = vpop.f32.mrf.mxu1  ;;  %5671 = vst.msk [vmem:[%s7320_s6 + $0x6c] sm:$0xf] %vm5643_vm5, %v5538_v18  ;;  %v1909_v37 = vadd.f32 %v1908_v8, %v1429_v20  ;;  %v7719_v18 = vld [vmem:[%s7205_s30 + $0xd0] sm:$0xff] }
 0x180   : > { %v5011_v28 = vadd.f32 %v4723_v11, %v3731_v23  ;;  %v825_v62 = vshrl.u32 %v7719_v18, 16 }
 0x182   : > { %v4725_v29 = vpop.f32.mrf.mxu3  ;;  %6212 = vmatmul.msk.bf16.gmra.mxu1 %vm1145_vm1, %v7641_v41  ;;  %vm5143_vm9 = vcmp.ge.f32.partialorder %v5011_v28, 0.0  ;;  %v5275_v32 = vmul.f32 0.2, %v5011_v28  ;;  %v808_v41 = vsel %vm612_vm3, %v803_v30, %v807_v31  ;;  %v4356_v31 = vrot.slane %v7723_v21, 1 }
 0x184   : > { %v5407_v36 = vsel %vm5143_vm9, %v5011_v28, %v5275_v32  ;;  %v821_v28 = vshll.u32 %v7719_v18, 16  ;;  %v2835_v32 = vshrl.u32 %v7700_v51, 16 }
 0x185   : > { %v5539_v38 = vpack.c.bf16 %v5407_v36, %v5407_v36  ;;  %v3445_v39 = vpop.f32.mrf.mxu2  ;;  %v819_v36 = vor.u32 %v817_v27, %v815_v2  ;;  %v7775_v27 = vld [vmem:[%s7205_s30 + $0xf0] sm:$0xff] }
 0x186   : > { %v1432_v40 = vpop.f32.mrf.mxu0  ;;  %v3732_v42 = vadd.f32 %v3445_v39, %v1909_v37  ;;  %v823_v37 = vrot.slane %v821_v28, 1  ;;  %v4357_v39 = vsel %vm4304_vm2, %v4354_v60, %v4356_v31  ;;  %v7778_v28 = vld [vmem:[%s7205_s30 + $0xf0] sm:$0xff] }
 0x187   : > { %6884 = vmatmul.msk.bf16.gmra.mxu3 %vm1145_vm1, %v4353_v33  ;;  %v1913_v43 = vpop.f32.mrf.mxu1  ;;  %5672 = vst.msk [vmem:[%s7320_s6 + $0x70] sm:$0xf] %vm5643_vm5, %v5539_v38  ;;  %v1912_v49 = vadd.f32 %v1911_v24, %v1432_v40  ;;  %v2839_v33 = vshll.u32 %v7726_v22, 16  ;;  %v2837_v40 = vor.u32 %v2835_v32, %v2833_v6 }
 0x188   : > { %v5012_v45 = vadd.f32 %v4725_v29, %v3732_v42 }
 0x189   : > { %6142 = vmatmul.msk.bf16.gmra.mxu0 %vm1145_vm1, %v808_v41  ;;  %v2841_v41 = vrot.slane %v2839_v33, 1 }
 0x18a   : > { %v4728_v46 = vpop.f32.mrf.mxu3  ;;  %vm5144_vm10 = vcmp.ge.f32.partialorder %v5012_v45, 0.0  ;;  %v5276_v48 = vmul.f32 0.2, %v5012_v45  ;;  %6548 = vmatmul.msk.bf16.gmra.mxu2 %vm1145_vm1, %v2826_v44 }
 0x18b   : > { %v2842_v50 = vsel %vm612_vm3, %v2837_v40, %v2841_v41 }
 0x18c   : > { %v5408_v52 = vsel %vm5144_vm10, %v5012_v45, %v5276_v48 }
 0x18d   : > { %v5540_v53 = vpack.c.bf16 %v5408_v52, %v5408_v52  ;;  %v3448_v54 = vpop.f32.mrf.mxu2 }
 0x18e   : > { %v1434_v55 = vpop.f32.mrf.mxu0  ;;  %v3733_v58 = vadd.f32 %v3448_v54, %v1912_v49 }
 0x18f   : > { %v1916_v59 = vpop.f32.mrf.mxu1  ;;  %5673 = vst.msk [vmem:[%s7320_s6 + $0x74] sm:$0xf] %vm5643_vm5, %v5540_v53  ;;  %v1914_v8 = vadd.f32 %v1913_v43, %v1434_v55  ;;  %v7745_v53 = vld [vmem:[%s7205_s30 + $0xd8] sm:$0xff] }
 0x190   : > { %v5013_v63 = vadd.f32 %v4728_v46, %v3733_v58  ;;  %v833_v33 = vshrl.u32 %v7745_v53, 16 }
 0x192   : > { %v4730_v0 = vpop.f32.mrf.mxu3  ;;  %6213 = vmatmul.msk.bf16.gmra.mxu1 %vm1145_vm1, %v7667_v12  ;;  %vm5145_vm11 = vcmp.ge.f32.partialorder %v5013_v63, 0.0  ;;  %v5277_v3 = vmul.f32 0.2, %v5013_v63  ;;  %v816_v12 = vsel %vm612_vm3, %v811_v1, %v815_v2  ;;  %v4358_v2 = vrot.slane %v7749_v56, 1 }
 0x194   : > { %v5409_v7 = vsel %vm5145_vm11, %v5013_v63, %v5277_v3  ;;  %v829_v63 = vshll.u32 %v7745_v53, 16  ;;  %v2843_v3 = vshrl.u32 %v7726_v22, 16 }
 0x195   : > { %v5541_v9 = vpack.c.bf16 %v5409_v7, %v5409_v7  ;;  %v3450_v10 = vpop.f32.mrf.mxu2  ;;  %v827_v7 = vor.u32 %v825_v62, %v823_v37  ;;  %v7801_v62 = vld [vmem:[%s7205_s30 + $0xf8] sm:$0xff] }
 0x196   : > { %v1437_v11 = vpop.f32.mrf.mxu0  ;;  %v3734_v13 = vadd.f32 %v3450_v10, %v1914_v8  ;;  %v831_v8 = vrot.slane %v829_v63, 1  ;;  %v4359_v10 = vsel %vm4304_vm2, %v4356_v31, %v4358_v2  ;;  %v7804_v63 = vld [vmem:[%s7205_s30 + $0xf8] sm:$0xff] }
 0x197   : > { %6885 = vmatmul.msk.bf16.gmra.mxu3 %vm1145_vm1, %v4355_v4  ;;  %v1918_v14 = vpop.f32.mrf.mxu1  ;;  %5674 = vst.msk [vmem:[%s7320_s6 + $0x78] sm:$0xf] %vm5643_vm5, %v5541_v9  ;;  %v1917_v20 = vadd.f32 %v1916_v59, %v1437_v11  ;;  %v2847_v4 = vshll.u32 %v7752_v57, 16  ;;  %v2845_v11 = vor.u32 %v2843_v3, %v2841_v41 }
 0x198   : > { %v5014_v16 = vadd.f32 %v4730_v0, %v3734_v13 }
 0x199   : > { %6143 = vmatmul.msk.bf16.gmra.mxu0 %vm1145_vm1, %v816_v12  ;;  %v2849_v12 = vrot.slane %v2847_v4, 1 }
 0x19a   : > { %v4733_v17 = vpop.f32.mrf.mxu3  ;;  %vm5146_vm12 = vcmp.ge.f32.partialorder %v5014_v16, 0.0  ;;  %v5278_v19 = vmul.f32 0.2, %v5014_v16  ;;  %6549 = vmatmul.msk.bf16.gmra.mxu2 %vm1145_vm1, %v2834_v15 }
 0x19b   : > { %v2850_v21 = vsel %vm612_vm3, %v2845_v11, %v2849_v12 }
 0x19c   : > { %v5410_v23 = vsel %vm5146_vm12, %v5014_v16, %v5278_v19 }
 0x19d   : > { %v5542_v24 = vpack.c.bf16 %v5410_v23, %v5410_v23  ;;  %v3453_v25 = vpop.f32.mrf.mxu2 }
 0x19e   : > { %v1439_v26 = vpop.f32.mrf.mxu0  ;;  %v3735_v29 = vadd.f32 %v3453_v25, %v1917_v20 }
 0x19f   : > { %v1921_v30 = vpop.f32.mrf.mxu1  ;;  %5675 = vst.msk [vmem:[%s7320_s6 + $0x7c] sm:$0xf] %vm5643_vm5, %v5542_v24  ;;  %v1919_v43 = vadd.f32 %v1918_v14, %v1439_v26  ;;  %v7771_v24 = vld [vmem:[%s7205_s30 + $0xe0] sm:$0xff] }
 0x1a0   : > { %v5015_v34 = vadd.f32 %v4733_v17, %v3735_v29  ;;  %v841_v4 = vshrl.u32 %v7771_v24, 16 }
 0x1a2   : > { %v4735_v35 = vpop.f32.mrf.mxu3  ;;  %6214 = vmatmul.msk.bf16.gmra.mxu1 %vm1145_vm1, %v7693_v47  ;;  %vm5147_vm13 = vcmp.ge.f32.partialorder %v5015_v34, 0.0  ;;  %v5279_v38 = vmul.f32 0.2, %v5015_v34  ;;  %v824_v47 = vsel %vm612_vm3, %v819_v36, %v823_v37  ;;  %v4360_v37 = vrot.slane %v7775_v27, 1 }
 0x1a4   : > { %v5411_v42 = vsel %vm5147_vm13, %v5015_v34, %v5279_v38  ;;  %v837_v34 = vshll.u32 %v7771_v24, 16  ;;  %v2851_v38 = vshrl.u32 %v7752_v57, 16 }
 0x1a5   : > { %v5543_v44 = vpack.c.bf16 %v5411_v42, %v5411_v42  ;;  %v3455_v45 = vpop.f32.mrf.mxu2  ;;  %v835_v42 = vor.u32 %v833_v33, %v831_v8  ;;  %v7827_v33 = vld [vmem:[%s7205_s30 + $0x100] sm:$0xff] }
 0x1a6   : > { %v1442_v46 = vpop.f32.mrf.mxu0  ;;  %v3736_v48 = vadd.f32 %v3455_v45, %v1919_v43  ;;  %v839_v43 = vrot.slane %v837_v34, 1  ;;  %v4361_v45 = vsel %vm4304_vm2, %v4358_v2, %v4360_v37  ;;  %v7830_v34 = vld [vmem:[%s7205_s30 + $0x100] sm:$0xff] }
 0x1a7   : > { %6886 = vmatmul.msk.bf16.gmra.mxu3 %vm1145_vm1, %v4357_v39  ;;  %v1923_v49 = vpop.f32.mrf.mxu1  ;;  %5676 = vst.msk [vmem:[%s7320_s6 + $0x80] sm:$0xf] %vm5643_vm5, %v5543_v44  ;;  %v1922_v55 = vadd.f32 %v1921_v30, %v1442_v46  ;;  %v2855_v39 = vshll.u32 %v7778_v28, 16  ;;  %v2853_v46 = vor.u32 %v2851_v38, %v2849_v12 }
 0x1a8   : > { %v5016_v51 = vadd.f32 %v4735_v35, %v3736_v48 }
 0x1a9   : > { %6144 = vmatmul.msk.bf16.gmra.mxu0 %vm1145_vm1, %v824_v47  ;;  %v2857_v47 = vrot.slane %v2855_v39, 1 }
 0x1aa   : > { %v4738_v52 = vpop.f32.mrf.mxu3  ;;  %vm5148_vm14 = vcmp.ge.f32.partialorder %v5016_v51, 0.0  ;;  %v5280_v54 = vmul.f32 0.2, %v5016_v51  ;;  %6550 = vmatmul.msk.bf16.gmra.mxu2 %vm1145_vm1, %v2842_v50 }
 0x1ab   : > { %v2858_v56 = vsel %vm612_vm3, %v2853_v46, %v2857_v47 }
 0x1ac   : > { %v5412_v58 = vsel %vm5148_vm14, %v5016_v51, %v5280_v54 }
 0x1ad   : > { %v5544_v59 = vpack.c.bf16 %v5412_v58, %v5412_v58  ;;  %v3458_v60 = vpop.f32.mrf.mxu2 }
 0x1ae   : > { %v1444_v61 = vpop.f32.mrf.mxu0  ;;  %v3737_v0 = vadd.f32 %v3458_v60, %v1922_v55 }
 0x1af   : > { %v1926_v1 = vpop.f32.mrf.mxu1  ;;  %5677 = vst.msk [vmem:[%s7320_s6 + $0x84] sm:$0xf] %vm5643_vm5, %v5544_v59  ;;  %v1924_v14 = vadd.f32 %v1923_v49, %v1444_v61  ;;  %v7797_v59 = vld [vmem:[%s7205_s30 + $0xe8] sm:$0xff] }
 0x1b0   : > { %v5017_v5 = vadd.f32 %v4738_v52, %v3737_v0  ;;  %v849_v39 = vshrl.u32 %v7797_v59, 16 }
 0x1b2   : > { %v4740_v6 = vpop.f32.mrf.mxu3  ;;  %6215 = vmatmul.msk.bf16.gmra.mxu1 %vm1145_vm1, %v7719_v18  ;;  %vm5149_vm15 = vcmp.ge.f32.partialorder %v5017_v5, 0.0  ;;  %v5281_v9 = vmul.f32 0.2, %v5017_v5  ;;  %v832_v18 = vsel %vm612_vm3, %v827_v7, %v831_v8  ;;  %v4362_v8 = vrot.slane %v7801_v62, 1 }
 0x1b4   : > { %v5413_v13 = vsel %vm5149_vm15, %v5017_v5, %v5281_v9  ;;  %v845_v5 = vshll.u32 %v7797_v59, 16  ;;  %v2859_v9 = vshrl.u32 %v7778_v28, 16 }
 0x1b5   : > { %v5545_v15 = vpack.c.bf16 %v5413_v13, %v5413_v13  ;;  %v3460_v16 = vpop.f32.mrf.mxu2  ;;  %v843_v13 = vor.u32 %v841_v4, %v839_v43  ;;  %v7853_v4 = vld [vmem:[%s7205_s30 + $0x108] sm:$0xff] }
 0x1b6   : > { %v1447_v17 = vpop.f32.mrf.mxu0  ;;  %v3738_v19 = vadd.f32 %v3460_v16, %v1924_v14  ;;  %v847_v14 = vrot.slane %v845_v5, 1  ;;  %v4363_v16 = vsel %vm4304_vm2, %v4360_v37, %v4362_v8  ;;  %v7856_v5 = vld [vmem:[%s7205_s30 + $0x108] sm:$0xff] }
 0x1b7   : > { %6887 = vmatmul.msk.bf16.gmra.mxu3 %vm1145_vm1, %v4359_v10  ;;  %v1928_v20 = vpop.f32.mrf.mxu1  ;;  %5678 = vst.msk [vmem:[%s7320_s6 + $0x88] sm:$0xf] %vm5643_vm5, %v5545_v15  ;;  %v1927_v26 = vadd.f32 %v1926_v1, %v1447_v17  ;;  %v2863_v10 = vshll.u32 %v7804_v63, 16  ;;  %v2861_v17 = vor.u32 %v2859_v9, %v2857_v47 }
 0x1b8   : > { %v5018_v22 = vadd.f32 %v4740_v6, %v3738_v19 }
 0x1b9   : > { %6145 = vmatmul.msk.bf16.gmra.mxu0 %vm1145_vm1, %v832_v18  ;;  %v2865_v18 = vrot.slane %v2863_v10, 1 }
 0x1ba   : > { %v4743_v23 = vpop.f32.mrf.mxu3  ;;  %vm5150_vm0 = vcmp.ge.f32.partialorder %v5018_v22, 0.0  ;;  %v5282_v25 = vmul.f32 0.2, %v5018_v22  ;;  %6551 = vmatmul.msk.bf16.gmra.mxu2 %vm1145_vm1, %v2850_v21 }
 0x1bb   : > { %v2866_v27 = vsel %vm612_vm3, %v2861_v17, %v2865_v18 }
 0x1bc   : > { %v5414_v29 = vsel %vm5150_vm0, %v5018_v22, %v5282_v25 }
 0x1bd   : > { %v5546_v30 = vpack.c.bf16 %v5414_v29, %v5414_v29  ;;  %v3463_v31 = vpop.f32.mrf.mxu2 }
 0x1be   : > { %v1449_v32 = vpop.f32.mrf.mxu0  ;;  %v3739_v35 = vadd.f32 %v3463_v31, %v1927_v26 }
 0x1bf   : > { %v1931_v36 = vpop.f32.mrf.mxu1  ;;  %5679 = vst.msk [vmem:[%s7320_s6 + $0x8c] sm:$0xf] %vm5643_vm5, %v5546_v30  ;;  %v1929_v49 = vadd.f32 %v1928_v20, %v1449_v32  ;;  %v7823_v30 = vld [vmem:[%s7205_s30 + $0xf0] sm:$0xff] }
 0x1c0   : > { %v5019_v40 = vadd.f32 %v4743_v23, %v3739_v35  ;;  %v857_v10 = vshrl.u32 %v7823_v30, 16 }
 0x1c2   : > { %v4745_v41 = vpop.f32.mrf.mxu3  ;;  %6216 = vmatmul.msk.bf16.gmra.mxu1 %vm1145_vm1, %v7745_v53  ;;  %vm5151_vm4 = vcmp.ge.f32.partialorder %v5019_v40, 0.0  ;;  %v5283_v44 = vmul.f32 0.2, %v5019_v40  ;;  %v840_v53 = vsel %vm612_vm3, %v835_v42, %v839_v43  ;;  %v4364_v43 = vrot.slane %v7827_v33, 1 }
 0x1c4   : > { %v5415_v48 = vsel %vm5151_vm4, %v5019_v40, %v5283_v44  ;;  %v853_v40 = vshll.u32 %v7823_v30, 16  ;;  %v2867_v44 = vshrl.u32 %v7804_v63, 16 }
 0x1c5   : > { %v5547_v50 = vpack.c.bf16 %v5415_v48, %v5415_v48  ;;  %v3465_v51 = vpop.f32.mrf.mxu2  ;;  %v851_v48 = vor.u32 %v849_v39, %v847_v14  ;;  %v7879_v39 = vld [vmem:[%s7205_s30 + $0x110] sm:$0xff] }
 0x1c6   : > { %v1452_v52 = vpop.f32.mrf.mxu0  ;;  %v3740_v54 = vadd.f32 %v3465_v51, %v1929_v49  ;;  %v855_v49 = vrot.slane %v853_v40, 1  ;;  %v4365_v51 = vsel %vm4304_vm2, %v4362_v8, %v4364_v43  ;;  %v7882_v40 = vld [vmem:[%s7205_s30 + $0x110] sm:$0xff] }
 0x1c7   : > { %6888 = vmatmul.msk.bf16.gmra.mxu3 %vm1145_vm1, %v4361_v45  ;;  %v1933_v55 = vpop.f32.mrf.mxu1  ;;  %5680 = vst.msk [vmem:[%s7320_s6 + $0x90] sm:$0xf] %vm5643_vm5, %v5547_v50  ;;  %v1932_v61 = vadd.f32 %v1931_v36, %v1452_v52  ;;  %v2871_v45 = vshll.u32 %v7830_v34, 16  ;;  %v2869_v52 = vor.u32 %v2867_v44, %v2865_v18 }
 0x1c8   : > { %v5020_v57 = vadd.f32 %v4745_v41, %v3740_v54 }
 0x1c9   : > { %6146 = vmatmul.msk.bf16.gmra.mxu0 %vm1145_vm1, %v840_v53  ;;  %v2873_v53 = vrot.slane %v2871_v45, 1 }
 0x1ca   : > { %v4748_v58 = vpop.f32.mrf.mxu3  ;;  %vm5152_vm6 = vcmp.ge.f32.partialorder %v5020_v57, 0.0  ;;  %v5284_v60 = vmul.f32 0.2, %v5020_v57  ;;  %6552 = vmatmul.msk.bf16.gmra.mxu2 %vm1145_vm1, %v2858_v56 }
 0x1cb   : > { %v2874_v62 = vsel %vm612_vm3, %v2869_v52, %v2873_v53 }
 0x1cc   : > { %v5416_v0 = vsel %vm5152_vm6, %v5020_v57, %v5284_v60 }
 0x1cd   : > { %v5548_v1 = vpack.c.bf16 %v5416_v0, %v5416_v0  ;;  %v3468_v2 = vpop.f32.mrf.mxu2 }
 0x1ce   : > { %v1454_v3 = vpop.f32.mrf.mxu0  ;;  %v3741_v6 = vadd.f32 %v3468_v2, %v1932_v61 }
 0x1cf   : > { %v1936_v7 = vpop.f32.mrf.mxu1  ;;  %5681 = vst.msk [vmem:[%s7320_s6 + $0x94] sm:$0xf] %vm5643_vm5, %v5548_v1  ;;  %v1934_v20 = vadd.f32 %v1933_v55, %v1454_v3  ;;  %v7849_v1 = vld [vmem:[%s7205_s30 + $0xf8] sm:$0xff] }
 0x1d0   : > { %v5021_v11 = vadd.f32 %v4748_v58, %v3741_v6  ;;  %v865_v45 = vshrl.u32 %v7849_v1, 16 }
 0x1d2   : > { %v4750_v12 = vpop.f32.mrf.mxu3  ;;  %6217 = vmatmul.msk.bf16.gmra.mxu1 %vm1145_vm1, %v7771_v24  ;;  %vm5153_vm7 = vcmp.ge.f32.partialorder %v5021_v11, 0.0  ;;  %v5285_v15 = vmul.f32 0.2, %v5021_v11  ;;  %v848_v24 = vsel %vm612_vm3, %v843_v13, %v847_v14  ;;  %v4366_v14 = vrot.slane %v7853_v4, 1 }
 0x1d4   : > { %v5417_v19 = vsel %vm5153_vm7, %v5021_v11, %v5285_v15  ;;  %v861_v11 = vshll.u32 %v7849_v1, 16  ;;  %v2875_v15 = vshrl.u32 %v7830_v34, 16 }
 0x1d5   : > { %v5549_v21 = vpack.c.bf16 %v5417_v19, %v5417_v19  ;;  %v3470_v22 = vpop.f32.mrf.mxu2  ;;  %v859_v19 = vor.u32 %v857_v10, %v855_v49  ;;  %v7905_v10 = vld [vmem:[%s7205_s30 + $0x118] sm:$0xff] }
 0x1d6   : > { %v1457_v23 = vpop.f32.mrf.mxu0  ;;  %v3742_v25 = vadd.f32 %v3470_v22, %v1934_v20  ;;  %v863_v20 = vrot.slane %v861_v11, 1  ;;  %v4367_v22 = vsel %vm4304_vm2, %v4364_v43, %v4366_v14  ;;  %v7908_v11 = vld [vmem:[%s7205_s30 + $0x118] sm:$0xff] }
 0x1d7   : > { %6889 = vmatmul.msk.bf16.gmra.mxu3 %vm1145_vm1, %v4363_v16  ;;  %v1938_v26 = vpop.f32.mrf.mxu1  ;;  %5682 = vst.msk [vmem:[%s7320_s6 + $0x98] sm:$0xf] %vm5643_vm5, %v5549_v21  ;;  %v1937_v32 = vadd.f32 %v1936_v7, %v1457_v23  ;;  %v2879_v16 = vshll.u32 %v7856_v5, 16  ;;  %v2877_v23 = vor.u32 %v2875_v15, %v2873_v53 }
 0x1d8   : > { %v5022_v28 = vadd.f32 %v4750_v12, %v3742_v25 }
 0x1d9   : > { %6147 = vmatmul.msk.bf16.gmra.mxu0 %vm1145_vm1, %v848_v24  ;;  %v2881_v24 = vrot.slane %v2879_v16, 1 }
 0x1da   : > { %v4753_v29 = vpop.f32.mrf.mxu3  ;;  %vm5154_vm8 = vcmp.ge.f32.partialorder %v5022_v28, 0.0  ;;  %v5286_v31 = vmul.f32 0.2, %v5022_v28  ;;  %6553 = vmatmul.msk.bf16.gmra.mxu2 %vm1145_vm1, %v2866_v27 }
 0x1db   : > { %v2882_v33 = vsel %vm612_vm3, %v2877_v23, %v2881_v24 }
 0x1dc   : > { %v5418_v35 = vsel %vm5154_vm8, %v5022_v28, %v5286_v31 }
 0x1dd   : > { %v5550_v36 = vpack.c.bf16 %v5418_v35, %v5418_v35  ;;  %v3473_v37 = vpop.f32.mrf.mxu2 }
 0x1de   : > { %v1459_v38 = vpop.f32.mrf.mxu0  ;;  %v3743_v41 = vadd.f32 %v3473_v37, %v1937_v32 }
 0x1df   : > { %v1941_v42 = vpop.f32.mrf.mxu1  ;;  %5683 = vst.msk [vmem:[%s7320_s6 + $0x9c] sm:$0xf] %vm5643_vm5, %v5550_v36  ;;  %v1939_v55 = vadd.f32 %v1938_v26, %v1459_v38  ;;  %v7875_v36 = vld [vmem:[%s7205_s30 + $0x100] sm:$0xff] }
 0x1e0   : > { %v5023_v46 = vadd.f32 %v4753_v29, %v3743_v41  ;;  %v873_v16 = vshrl.u32 %v7875_v36, 16 }
 0x1e2   : > { %v4755_v47 = vpop.f32.mrf.mxu3  ;;  %6218 = vmatmul.msk.bf16.gmra.mxu1 %vm1145_vm1, %v7797_v59  ;;  %vm5155_vm9 = vcmp.ge.f32.partialorder %v5023_v46, 0.0  ;;  %v5287_v50 = vmul.f32 0.2, %v5023_v46  ;;  %v856_v59 = vsel %vm612_vm3, %v851_v48, %v855_v49  ;;  %v4368_v49 = vrot.slane %v7879_v39, 1 }
 0x1e4   : > { %v5419_v54 = vsel %vm5155_vm9, %v5023_v46, %v5287_v50  ;;  %v869_v46 = vshll.u32 %v7875_v36, 16  ;;  %v2883_v50 = vshrl.u32 %v7856_v5, 16 }
 0x1e5   : > { %v5551_v56 = vpack.c.bf16 %v5419_v54, %v5419_v54  ;;  %v3475_v57 = vpop.f32.mrf.mxu2  ;;  %v867_v54 = vor.u32 %v865_v45, %v863_v20  ;;  %v7931_v45 = vld [vmem:[%s7205_s30 + $0x120] sm:$0xff] }
 0x1e6   : > { %v1462_v58 = vpop.f32.mrf.mxu0  ;;  %v3744_v60 = vadd.f32 %v3475_v57, %v1939_v55  ;;  %v871_v55 = vrot.slane %v869_v46, 1  ;;  %v4369_v57 = vsel %vm4304_vm2, %v4366_v14, %v4368_v49  ;;  %v7934_v46 = vld [vmem:[%s7205_s30 + $0x120] sm:$0xff] }
 0x1e7   : > { %6890 = vmatmul.msk.bf16.gmra.mxu3 %vm1145_vm1, %v4365_v51  ;;  %v1943_v61 = vpop.f32.mrf.mxu1  ;;  %5684 = vst.msk [vmem:[%s7320_s6 + $0xa0] sm:$0xf] %vm5643_vm5, %v5551_v56  ;;  %v1942_v3 = vadd.f32 %v1941_v42, %v1462_v58  ;;  %v2887_v51 = vshll.u32 %v7882_v40, 16  ;;  %v2885_v58 = vor.u32 %v2883_v50, %v2881_v24 }
 0x1e8   : > { %v5024_v63 = vadd.f32 %v4755_v47, %v3744_v60 }
 0x1e9   : > { %6148 = vmatmul.msk.bf16.gmra.mxu0 %vm1145_vm1, %v856_v59  ;;  %v2889_v59 = vrot.slane %v2887_v51, 1 }
 0x1ea   : > { %v4758_v0 = vpop.f32.mrf.mxu3  ;;  %vm5156_vm10 = vcmp.ge.f32.partialorder %v5024_v63, 0.0  ;;  %v5288_v2 = vmul.f32 0.2, %v5024_v63  ;;  %6554 = vmatmul.msk.bf16.gmra.mxu2 %vm1145_vm1, %v2874_v62 }
 0x1eb   : > { %v2890_v4 = vsel %vm612_vm3, %v2885_v58, %v2889_v59 }
 0x1ec   : > { %v5420_v6 = vsel %vm5156_vm10, %v5024_v63, %v5288_v2 }
 0x1ed   : > { %v5552_v7 = vpack.c.bf16 %v5420_v6, %v5420_v6  ;;  %v3478_v8 = vpop.f32.mrf.mxu2 }
 0x1ee   : > { %v1464_v9 = vpop.f32.mrf.mxu0  ;;  %v3745_v12 = vadd.f32 %v3478_v8, %v1942_v3 }
 0x1ef   : > { %v1946_v13 = vpop.f32.mrf.mxu1  ;;  %5685 = vst.msk [vmem:[%s7320_s6 + $0xa4] sm:$0xf] %vm5643_vm5, %v5552_v7  ;;  %v1944_v26 = vadd.f32 %v1943_v61, %v1464_v9  ;;  %v7901_v7 = vld [vmem:[%s7205_s30 + $0x108] sm:$0xff] }
 0x1f0   : > { %v5025_v17 = vadd.f32 %v4758_v0, %v3745_v12  ;;  %v881_v51 = vshrl.u32 %v7901_v7, 16 }
 0x1f2   : > { %v4760_v18 = vpop.f32.mrf.mxu3  ;;  %6219 = vmatmul.msk.bf16.gmra.mxu1 %vm1145_vm1, %v7823_v30  ;;  %vm5157_vm11 = vcmp.ge.f32.partialorder %v5025_v17, 0.0  ;;  %v5289_v21 = vmul.f32 0.2, %v5025_v17  ;;  %v864_v30 = vsel %vm612_vm3, %v859_v19, %v863_v20  ;;  %v4370_v20 = vrot.slane %v7905_v10, 1 }
 0x1f4   : > { %v5421_v25 = vsel %vm5157_vm11, %v5025_v17, %v5289_v21  ;;  %v877_v17 = vshll.u32 %v7901_v7, 16  ;;  %v2891_v21 = vshrl.u32 %v7882_v40, 16 }
 0x1f5   : > { %v5553_v27 = vpack.c.bf16 %v5421_v25, %v5421_v25  ;;  %v3480_v28 = vpop.f32.mrf.mxu2  ;;  %v875_v25 = vor.u32 %v873_v16, %v871_v55  ;;  %v7957_v16 = vld [vmem:[%s7205_s30 + $0x128] sm:$0xff] }
 0x1f6   : > { %v1467_v29 = vpop.f32.mrf.mxu0  ;;  %v3746_v31 = vadd.f32 %v3480_v28, %v1944_v26  ;;  %v879_v26 = vrot.slane %v877_v17, 1  ;;  %v4371_v28 = vsel %vm4304_vm2, %v4368_v49, %v4370_v20  ;;  %v7960_v17 = vld [vmem:[%s7205_s30 + $0x128] sm:$0xff] }
 0x1f7   : > { %6891 = vmatmul.msk.bf16.gmra.mxu3 %vm1145_vm1, %v4367_v22  ;;  %v1948_v32 = vpop.f32.mrf.mxu1  ;;  %5686 = vst.msk [vmem:[%s7320_s6 + $0xa8] sm:$0xf] %vm5643_vm5, %v5553_v27  ;;  %v1947_v38 = vadd.f32 %v1946_v13, %v1467_v29  ;;  %v2895_v22 = vshll.u32 %v7908_v11, 16  ;;  %v2893_v29 = vor.u32 %v2891_v21, %v2889_v59 }
 0x1f8   : > { %v5026_v34 = vadd.f32 %v4760_v18, %v3746_v31 }
 0x1f9   : > { %6149 = vmatmul.msk.bf16.gmra.mxu0 %vm1145_vm1, %v864_v30  ;;  %v2897_v30 = vrot.slane %v2895_v22, 1 }
 0x1fa   : > { %v4763_v35 = vpop.f32.mrf.mxu3  ;;  %vm5158_vm12 = vcmp.ge.f32.partialorder %v5026_v34, 0.0  ;;  %v5290_v37 = vmul.f32 0.2, %v5026_v34  ;;  %6555 = vmatmul.msk.bf16.gmra.mxu2 %vm1145_vm1, %v2882_v33 }
 0x1fb   : > { %v2898_v39 = vsel %vm612_vm3, %v2893_v29, %v2897_v30 }
 0x1fc   : > { %v5422_v41 = vsel %vm5158_vm12, %v5026_v34, %v5290_v37 }
 0x1fd   : > { %v5554_v42 = vpack.c.bf16 %v5422_v41, %v5422_v41  ;;  %v3483_v43 = vpop.f32.mrf.mxu2 }
 0x1fe   : > { %v1469_v44 = vpop.f32.mrf.mxu0  ;;  %v3747_v47 = vadd.f32 %v3483_v43, %v1947_v38 }
 0x1ff   : > { %v1951_v48 = vpop.f32.mrf.mxu1  ;;  %5687 = vst.msk [vmem:[%s7320_s6 + $0xac] sm:$0xf] %vm5643_vm5, %v5554_v42  ;;  %v1949_v61 = vadd.f32 %v1948_v32, %v1469_v44  ;;  %v7927_v42 = vld [vmem:[%s7205_s30 + $0x110] sm:$0xff] }
 0x200   : > { %v5027_v52 = vadd.f32 %v4763_v35, %v3747_v47  ;;  %v889_v22 = vshrl.u32 %v7927_v42, 16 }
 0x202   : > { %v4765_v53 = vpop.f32.mrf.mxu3  ;;  %6220 = vmatmul.msk.bf16.gmra.mxu1 %vm1145_vm1, %v7849_v1  ;;  %vm5159_vm13 = vcmp.ge.f32.partialorder %v5027_v52, 0.0  ;;  %v5291_v56 = vmul.f32 0.2, %v5027_v52  ;;  %v872_v1 = vsel %vm612_vm3, %v867_v54, %v871_v55  ;;  %v4372_v55 = vrot.slane %v7931_v45, 1 }
 0x204   : > { %v5423_v60 = vsel %vm5159_vm13, %v5027_v52, %v5291_v56  ;;  %v885_v52 = vshll.u32 %v7927_v42, 16  ;;  %v2899_v56 = vshrl.u32 %v7908_v11, 16 }
 0x205   : > { %v5555_v62 = vpack.c.bf16 %v5423_v60, %v5423_v60  ;;  %v3485_v63 = vpop.f32.mrf.mxu2  ;;  %v883_v60 = vor.u32 %v881_v51, %v879_v26  ;;  %v7983_v51 = vld [vmem:[%s7205_s30 + $0x130] sm:$0xff] }
 0x206   : > { %v1472_v0 = vpop.f32.mrf.mxu0  ;;  %v3748_v2 = vadd.f32 %v3485_v63, %v1949_v61  ;;  %v887_v61 = vrot.slane %v885_v52, 1  ;;  %v4373_v63 = vsel %vm4304_vm2, %v4370_v20, %v4372_v55  ;;  %v7986_v52 = vld [vmem:[%s7205_s30 + $0x130] sm:$0xff] }
 0x207   : > { %6892 = vmatmul.msk.bf16.gmra.mxu3 %vm1145_vm1, %v4369_v57  ;;  %v1953_v3 = vpop.f32.mrf.mxu1  ;;  %5688 = vst.msk [vmem:[%s7320_s6 + $0xb0] sm:$0xf] %vm5643_vm5, %v5555_v62  ;;  %v1952_v9 = vadd.f32 %v1951_v48, %v1472_v0  ;;  %v2903_v57 = vshll.u32 %v7934_v46, 16  ;;  %v2901_v0 = vor.u32 %v2899_v56, %v2897_v30 }
 0x208   : > { %v5028_v5 = vadd.f32 %v4765_v53, %v3748_v2 }
 0x209   : > { %6150 = vmatmul.msk.bf16.gmra.mxu0 %vm1145_vm1, %v872_v1  ;;  %v2905_v1 = vrot.slane %v2903_v57, 1 }
 0x20a   : > { %v4768_v6 = vpop.f32.mrf.mxu3  ;;  %vm5160_vm14 = vcmp.ge.f32.partialorder %v5028_v5, 0.0  ;;  %v5292_v8 = vmul.f32 0.2, %v5028_v5  ;;  %6556 = vmatmul.msk.bf16.gmra.mxu2 %vm1145_vm1, %v2890_v4 }
 0x20b   : > { %v2906_v10 = vsel %vm612_vm3, %v2901_v0, %v2905_v1 }
 0x20c   : > { %v5424_v12 = vsel %vm5160_vm14, %v5028_v5, %v5292_v8 }
 0x20d   : > { %v5556_v13 = vpack.c.bf16 %v5424_v12, %v5424_v12  ;;  %v3488_v14 = vpop.f32.mrf.mxu2 }
 0x20e   : > { %v1474_v15 = vpop.f32.mrf.mxu0  ;;  %v3749_v18 = vadd.f32 %v3488_v14, %v1952_v9 }
 0x20f   : > { %v1956_v19 = vpop.f32.mrf.mxu1  ;;  %5689 = vst.msk [vmem:[%s7320_s6 + $0xb4] sm:$0xf] %vm5643_vm5, %v5556_v13  ;;  %v1954_v32 = vadd.f32 %v1953_v3, %v1474_v15  ;;  %v7953_v13 = vld [vmem:[%s7205_s30 + $0x118] sm:$0xff] }
 0x210   : > { %v5029_v23 = vadd.f32 %v4768_v6, %v3749_v18  ;;  %v897_v57 = vshrl.u32 %v7953_v13, 16 }
 0x212   : > { %v4770_v24 = vpop.f32.mrf.mxu3  ;;  %6221 = vmatmul.msk.bf16.gmra.mxu1 %vm1145_vm1, %v7875_v36  ;;  %vm5161_vm15 = vcmp.ge.f32.partialorder %v5029_v23, 0.0  ;;  %v5293_v27 = vmul.f32 0.2, %v5029_v23  ;;  %v880_v36 = vsel %vm612_vm3, %v875_v25, %v879_v26  ;;  %v4374_v26 = vrot.slane %v7957_v16, 1 }
 0x214   : > { %v5425_v31 = vsel %vm5161_vm15, %v5029_v23, %v5293_v27  ;;  %v893_v23 = vshll.u32 %v7953_v13, 16  ;;  %v2907_v27 = vshrl.u32 %v7934_v46, 16 }
 0x215   : > { %v5557_v33 = vpack.c.bf16 %v5425_v31, %v5425_v31  ;;  %v3490_v34 = vpop.f32.mrf.mxu2  ;;  %v891_v31 = vor.u32 %v889_v22, %v887_v61  ;;  %v8009_v22 = vld [vmem:[%s7205_s30 + $0x138] sm:$0xff] }
 0x216   : > { %v1477_v35 = vpop.f32.mrf.mxu0  ;;  %v3750_v37 = vadd.f32 %v3490_v34, %v1954_v32  ;;  %v895_v32 = vrot.slane %v893_v23, 1  ;;  %v4375_v34 = vsel %vm4304_vm2, %v4372_v55, %v4374_v26  ;;  %v8012_v23 = vld [vmem:[%s7205_s30 + $0x138] sm:$0xff] }
 0x217   : > { %6893 = vmatmul.msk.bf16.gmra.mxu3 %vm1145_vm1, %v4371_v28  ;;  %v1958_v38 = vpop.f32.mrf.mxu1  ;;  %5690 = vst.msk [vmem:[%s7320_s6 + $0xb8] sm:$0xf] %vm5643_vm5, %v5557_v33  ;;  %v1957_v44 = vadd.f32 %v1956_v19, %v1477_v35  ;;  %v2911_v28 = vshll.u32 %v7960_v17, 16  ;;  %v2909_v35 = vor.u32 %v2907_v27, %v2905_v1 }
 0x218   : > { %v5030_v40 = vadd.f32 %v4770_v24, %v3750_v37 }
 0x219   : > { %6151 = vmatmul.msk.bf16.gmra.mxu0 %vm1145_vm1, %v880_v36  ;;  %v2913_v36 = vrot.slane %v2911_v28, 1 }
 0x21a   : > { %v4773_v41 = vpop.f32.mrf.mxu3  ;;  %vm5162_vm0 = vcmp.ge.f32.partialorder %v5030_v40, 0.0  ;;  %v5294_v43 = vmul.f32 0.2, %v5030_v40  ;;  %6557 = vmatmul.msk.bf16.gmra.mxu2 %vm1145_vm1, %v2898_v39 }
 0x21b   : > { %v2914_v45 = vsel %vm612_vm3, %v2909_v35, %v2913_v36 }
 0x21c   : > { %v5426_v47 = vsel %vm5162_vm0, %v5030_v40, %v5294_v43 }
 0x21d   : > { %v5558_v48 = vpack.c.bf16 %v5426_v47, %v5426_v47  ;;  %v3493_v49 = vpop.f32.mrf.mxu2 }
 0x21e   : > { %v1479_v50 = vpop.f32.mrf.mxu0  ;;  %v3751_v53 = vadd.f32 %v3493_v49, %v1957_v44 }
 0x21f   : > { %v1961_v54 = vpop.f32.mrf.mxu1  ;;  %5691 = vst.msk [vmem:[%s7320_s6 + $0xbc] sm:$0xf] %vm5643_vm5, %v5558_v48  ;;  %v1959_v3 = vadd.f32 %v1958_v38, %v1479_v50  ;;  %v7979_v48 = vld [vmem:[%s7205_s30 + $0x120] sm:$0xff] }
 0x220   : > { %v5031_v58 = vadd.f32 %v4773_v41, %v3751_v53  ;;  %v905_v28 = vshrl.u32 %v7979_v48, 16 }
 0x222   : > { %v4775_v59 = vpop.f32.mrf.mxu3  ;;  %6222 = vmatmul.msk.bf16.gmra.mxu1 %vm1145_vm1, %v7901_v7  ;;  %vm5163_vm4 = vcmp.ge.f32.partialorder %v5031_v58, 0.0  ;;  %v5295_v62 = vmul.f32 0.2, %v5031_v58  ;;  %v888_v7 = vsel %vm612_vm3, %v883_v60, %v887_v61  ;;  %v4376_v61 = vrot.slane %v7983_v51, 1 }
 0x224   : > { %v5427_v2 = vsel %vm5163_vm4, %v5031_v58, %v5295_v62  ;;  %v901_v58 = vshll.u32 %v7979_v48, 16  ;;  %v2915_v62 = vshrl.u32 %v7960_v17, 16 }
 0x225   : > { %v5559_v4 = vpack.c.bf16 %v5427_v2, %v5427_v2  ;;  %v3495_v5 = vpop.f32.mrf.mxu2  ;;  %v899_v2 = vor.u32 %v897_v57, %v895_v32  ;;  %v8035_v57 = vld [vmem:[%s7205_s30 + $0x140] sm:$0xff] }
 0x226   : > { %v1482_v6 = vpop.f32.mrf.mxu0  ;;  %v3752_v8 = vadd.f32 %v3495_v5, %v1959_v3  ;;  %v903_v3 = vrot.slane %v901_v58, 1  ;;  %v4377_v5 = vsel %vm4304_vm2, %v4374_v26, %v4376_v61  ;;  %v8038_v58 = vld [vmem:[%s7205_s30 + $0x140] sm:$0xff] }
 0x227   : > { %6894 = vmatmul.msk.bf16.gmra.mxu3 %vm1145_vm1, %v4373_v63  ;;  %v1963_v9 = vpop.f32.mrf.mxu1  ;;  %5692 = vst.msk [vmem:[%s7320_s6 + $0xc0] sm:$0xf] %vm5643_vm5, %v5559_v4  ;;  %v1962_v15 = vadd.f32 %v1961_v54, %v1482_v6  ;;  %v2919_v63 = vshll.u32 %v7986_v52, 16  ;;  %v2917_v6 = vor.u32 %v2915_v62, %v2913_v36 }
 0x228   : > { %v5032_v11 = vadd.f32 %v4775_v59, %v3752_v8 }
 0x229   : > { %6152 = vmatmul.msk.bf16.gmra.mxu0 %vm1145_vm1, %v888_v7  ;;  %v2921_v7 = vrot.slane %v2919_v63, 1 }
 0x22a   : > { %v4778_v12 = vpop.f32.mrf.mxu3  ;;  %vm5164_vm6 = vcmp.ge.f32.partialorder %v5032_v11, 0.0  ;;  %v5296_v14 = vmul.f32 0.2, %v5032_v11  ;;  %6558 = vmatmul.msk.bf16.gmra.mxu2 %vm1145_vm1, %v2906_v10 }
 0x22b   : > { %v2922_v16 = vsel %vm612_vm3, %v2917_v6, %v2921_v7 }
 0x22c   : > { %v5428_v18 = vsel %vm5164_vm6, %v5032_v11, %v5296_v14 }
 0x22d   : > { %v5560_v19 = vpack.c.bf16 %v5428_v18, %v5428_v18  ;;  %v3498_v20 = vpop.f32.mrf.mxu2 }
 0x22e   : > { %v1484_v21 = vpop.f32.mrf.mxu0  ;;  %v3753_v24 = vadd.f32 %v3498_v20, %v1962_v15 }
 0x22f   : > { %v1966_v25 = vpop.f32.mrf.mxu1  ;;  %5693 = vst.msk [vmem:[%s7320_s6 + $0xc4] sm:$0xf] %vm5643_vm5, %v5560_v19  ;;  %v1964_v38 = vadd.f32 %v1963_v9, %v1484_v21  ;;  %v8005_v19 = vld [vmem:[%s7205_s30 + $0x128] sm:$0xff] }
 0x230   : > { %v5033_v29 = vadd.f32 %v4778_v12, %v3753_v24  ;;  %v913_v63 = vshrl.u32 %v8005_v19, 16 }
 0x232   : > { %v4780_v30 = vpop.f32.mrf.mxu3  ;;  %6223 = vmatmul.msk.bf16.gmra.mxu1 %vm1145_vm1, %v7927_v42  ;;  %vm5165_vm7 = vcmp.ge.f32.partialorder %v5033_v29, 0.0  ;;  %v5297_v33 = vmul.f32 0.2, %v5033_v29  ;;  %v896_v42 = vsel %vm612_vm3, %v891_v31, %v895_v32  ;;  %v4378_v32 = vrot.slane %v8009_v22, 1 }
 0x234   : > { %v5429_v37 = vsel %vm5165_vm7, %v5033_v29, %v5297_v33  ;;  %v909_v29 = vshll.u32 %v8005_v19, 16  ;;  %v2923_v33 = vshrl.u32 %v7986_v52, 16 }
 0x235   : > { %v5561_v39 = vpack.c.bf16 %v5429_v37, %v5429_v37  ;;  %v3500_v40 = vpop.f32.mrf.mxu2  ;;  %v907_v37 = vor.u32 %v905_v28, %v903_v3  ;;  %v8061_v28 = vld [vmem:[%s7205_s30 + $0x148] sm:$0xff] }
 0x236   : > { %v1487_v41 = vpop.f32.mrf.mxu0  ;;  %v3754_v43 = vadd.f32 %v3500_v40, %v1964_v38  ;;  %v911_v38 = vrot.slane %v909_v29, 1  ;;  %v4379_v40 = vsel %vm4304_vm2, %v4376_v61, %v4378_v32  ;;  %v8064_v29 = vld [vmem:[%s7205_s30 + $0x148] sm:$0xff] }
 0x237   : > { %6895 = vmatmul.msk.bf16.gmra.mxu3 %vm1145_vm1, %v4375_v34  ;;  %v1968_v44 = vpop.f32.mrf.mxu1  ;;  %5694 = vst.msk [vmem:[%s7320_s6 + $0xc8] sm:$0xf] %vm5643_vm5, %v5561_v39  ;;  %v1967_v50 = vadd.f32 %v1966_v25, %v1487_v41  ;;  %v2927_v34 = vshll.u32 %v8012_v23, 16  ;;  %v2925_v41 = vor.u32 %v2923_v33, %v2921_v7 }
 0x238   : > { %v5034_v46 = vadd.f32 %v4780_v30, %v3754_v43 }
 0x239   : > { %6153 = vmatmul.msk.bf16.gmra.mxu0 %vm1145_vm1, %v896_v42  ;;  %v2929_v42 = vrot.slane %v2927_v34, 1 }
 0x23a   : > { %v4783_v47 = vpop.f32.mrf.mxu3  ;;  %vm5166_vm8 = vcmp.ge.f32.partialorder %v5034_v46, 0.0  ;;  %v5298_v49 = vmul.f32 0.2, %v5034_v46  ;;  %6559 = vmatmul.msk.bf16.gmra.mxu2 %vm1145_vm1, %v2914_v45 }
 0x23b   : > { %v2930_v51 = vsel %vm612_vm3, %v2925_v41, %v2929_v42 }
 0x23c   : > { %v5430_v53 = vsel %vm5166_vm8, %v5034_v46, %v5298_v49 }
 0x23d   : > { %v5562_v54 = vpack.c.bf16 %v5430_v53, %v5430_v53  ;;  %v3503_v55 = vpop.f32.mrf.mxu2 }
 0x23e   : > { %v1489_v56 = vpop.f32.mrf.mxu0  ;;  %v3755_v59 = vadd.f32 %v3503_v55, %v1967_v50 }
 0x23f   : > { %v1971_v60 = vpop.f32.mrf.mxu1  ;;  %5695 = vst.msk [vmem:[%s7320_s6 + $0xcc] sm:$0xf] %vm5643_vm5, %v5562_v54  ;;  %v1969_v9 = vadd.f32 %v1968_v44, %v1489_v56  ;;  %v8031_v54 = vld [vmem:[%s7205_s30 + $0x130] sm:$0xff] }
 0x240   : > { %v5035_v0 = vadd.f32 %v4783_v47, %v3755_v59  ;;  %v921_v34 = vshrl.u32 %v8031_v54, 16 }
 0x242   : > { %v4785_v1 = vpop.f32.mrf.mxu3  ;;  %6224 = vmatmul.msk.bf16.gmra.mxu1 %vm1145_vm1, %v7953_v13  ;;  %vm5167_vm9 = vcmp.ge.f32.partialorder %v5035_v0, 0.0  ;;  %v5299_v4 = vmul.f32 0.2, %v5035_v0  ;;  %v904_v13 = vsel %vm612_vm3, %v899_v2, %v903_v3  ;;  %v4380_v3 = vrot.slane %v8035_v57, 1 }
 0x244   : > { %v5431_v8 = vsel %vm5167_vm9, %v5035_v0, %v5299_v4  ;;  %v917_v0 = vshll.u32 %v8031_v54, 16  ;;  %v2931_v4 = vshrl.u32 %v8012_v23, 16 }
 0x245   : > { %v5563_v10 = vpack.c.bf16 %v5431_v8, %v5431_v8  ;;  %v3505_v11 = vpop.f32.mrf.mxu2  ;;  %v915_v8 = vor.u32 %v913_v63, %v911_v38  ;;  %v8087_v63 = vld [vmem:[%s7205_s30 + $0x150] sm:$0xff] }
 0x246   : > { %v1492_v12 = vpop.f32.mrf.mxu0  ;;  %v3756_v14 = vadd.f32 %v3505_v11, %v1969_v9  ;;  %v919_v9 = vrot.slane %v917_v0, 1  ;;  %v4381_v11 = vsel %vm4304_vm2, %v4378_v32, %v4380_v3  ;;  %v8090_v0 = vld [vmem:[%s7205_s30 + $0x150] sm:$0xff] }
 0x247   : > { %6896 = vmatmul.msk.bf16.gmra.mxu3 %vm1145_vm1, %v4377_v5  ;;  %v1973_v15 = vpop.f32.mrf.mxu1  ;;  %5696 = vst.msk [vmem:[%s7320_s6 + $0xd0] sm:$0xf] %vm5643_vm5, %v5563_v10  ;;  %v1972_v21 = vadd.f32 %v1971_v60, %v1492_v12  ;;  %v2935_v5 = vshll.u32 %v8038_v58, 16  ;;  %v2933_v12 = vor.u32 %v2931_v4, %v2929_v42 }
 0x248   : > { %v5036_v17 = vadd.f32 %v4785_v1, %v3756_v14 }
 0x249   : > { %6154 = vmatmul.msk.bf16.gmra.mxu0 %vm1145_vm1, %v904_v13  ;;  %v2937_v13 = vrot.slane %v2935_v5, 1 }
 0x24a   : > { %v4788_v18 = vpop.f32.mrf.mxu3  ;;  %vm5168_vm10 = vcmp.ge.f32.partialorder %v5036_v17, 0.0  ;;  %v5300_v20 = vmul.f32 0.2, %v5036_v17  ;;  %6560 = vmatmul.msk.bf16.gmra.mxu2 %vm1145_vm1, %v2922_v16 }
 0x24b   : > { %v2938_v22 = vsel %vm612_vm3, %v2933_v12, %v2937_v13 }
 0x24c   : > { %v5432_v24 = vsel %vm5168_vm10, %v5036_v17, %v5300_v20 }
 0x24d   : > { %v5564_v25 = vpack.c.bf16 %v5432_v24, %v5432_v24  ;;  %v3508_v26 = vpop.f32.mrf.mxu2 }
 0x24e   : > { %v1494_v27 = vpop.f32.mrf.mxu0  ;;  %v3757_v30 = vadd.f32 %v3508_v26, %v1972_v21 }
 0x24f   : > { %v1976_v31 = vpop.f32.mrf.mxu1  ;;  %5697 = vst.msk [vmem:[%s7320_s6 + $0xd4] sm:$0xf] %vm5643_vm5, %v5564_v25  ;;  %v1974_v44 = vadd.f32 %v1973_v15, %v1494_v27  ;;  %v8057_v25 = vld [vmem:[%s7205_s30 + $0x138] sm:$0xff] }
 0x250   : > { %v5037_v35 = vadd.f32 %v4788_v18, %v3757_v30  ;;  %v929_v5 = vshrl.u32 %v8057_v25, 16 }
 0x252   : > { %v4790_v36 = vpop.f32.mrf.mxu3  ;;  %6225 = vmatmul.msk.bf16.gmra.mxu1 %vm1145_vm1, %v7979_v48  ;;  %vm5169_vm11 = vcmp.ge.f32.partialorder %v5037_v35, 0.0  ;;  %v5301_v39 = vmul.f32 0.2, %v5037_v35  ;;  %v912_v48 = vsel %vm612_vm3, %v907_v37, %v911_v38  ;;  %v4382_v38 = vrot.slane %v8061_v28, 1 }
 0x254   : > { %v5433_v43 = vsel %vm5169_vm11, %v5037_v35, %v5301_v39  ;;  %v925_v35 = vshll.u32 %v8057_v25, 16  ;;  %v2939_v39 = vshrl.u32 %v8038_v58, 16 }
 0x255   : > { %v5565_v45 = vpack.c.bf16 %v5433_v43, %v5433_v43  ;;  %v3510_v46 = vpop.f32.mrf.mxu2  ;;  %v923_v43 = vor.u32 %v921_v34, %v919_v9  ;;  %v8113_v34 = vld [vmem:[%s7205_s30 + $0x158] sm:$0xff] }
 0x256   : > { %v1497_v47 = vpop.f32.mrf.mxu0  ;;  %v3758_v49 = vadd.f32 %v3510_v46, %v1974_v44  ;;  %v927_v44 = vrot.slane %v925_v35, 1  ;;  %v4383_v46 = vsel %vm4304_vm2, %v4380_v3, %v4382_v38  ;;  %v8116_v35 = vld [vmem:[%s7205_s30 + $0x158] sm:$0xff] }
 0x257   : > { %6897 = vmatmul.msk.bf16.gmra.mxu3 %vm1145_vm1, %v4379_v40  ;;  %v1978_v50 = vpop.f32.mrf.mxu1  ;;  %5698 = vst.msk [vmem:[%s7320_s6 + $0xd8] sm:$0xf] %vm5643_vm5, %v5565_v45  ;;  %v1977_v56 = vadd.f32 %v1976_v31, %v1497_v47  ;;  %v2943_v40 = vshll.u32 %v8064_v29, 16  ;;  %v2941_v47 = vor.u32 %v2939_v39, %v2937_v13 }
 0x258   : > { %v5038_v52 = vadd.f32 %v4790_v36, %v3758_v49 }
 0x259   : > { %6155 = vmatmul.msk.bf16.gmra.mxu0 %vm1145_vm1, %v912_v48  ;;  %v2945_v48 = vrot.slane %v2943_v40, 1 }
 0x25a   : > { %v4793_v53 = vpop.f32.mrf.mxu3  ;;  %vm5170_vm12 = vcmp.ge.f32.partialorder %v5038_v52, 0.0  ;;  %v5302_v55 = vmul.f32 0.2, %v5038_v52  ;;  %6561 = vmatmul.msk.bf16.gmra.mxu2 %vm1145_vm1, %v2930_v51 }
 0x25b   : > { %v2946_v57 = vsel %vm612_vm3, %v2941_v47, %v2945_v48 }
 0x25c   : > { %v5434_v59 = vsel %vm5170_vm12, %v5038_v52, %v5302_v55 }
 0x25d   : > { %v5566_v60 = vpack.c.bf16 %v5434_v59, %v5434_v59  ;;  %v3513_v61 = vpop.f32.mrf.mxu2 }
 0x25e   : > { %v1499_v62 = vpop.f32.mrf.mxu0  ;;  %v3759_v1 = vadd.f32 %v3513_v61, %v1977_v56 }
 0x25f   : > { %v1981_v2 = vpop.f32.mrf.mxu1  ;;  %5699 = vst.msk [vmem:[%s7320_s6 + $0xdc] sm:$0xf] %vm5643_vm5, %v5566_v60  ;;  %v1979_v15 = vadd.f32 %v1978_v50, %v1499_v62  ;;  %v8083_v60 = vld [vmem:[%s7205_s30 + $0x140] sm:$0xff] }
 0x260   : > { %v5039_v6 = vadd.f32 %v4793_v53, %v3759_v1  ;;  %v937_v40 = vshrl.u32 %v8083_v60, 16 }
 0x262   : > { %v4795_v7 = vpop.f32.mrf.mxu3  ;;  %6226 = vmatmul.msk.bf16.gmra.mxu1 %vm1145_vm1, %v8005_v19  ;;  %vm5171_vm13 = vcmp.ge.f32.partialorder %v5039_v6, 0.0  ;;  %v5303_v10 = vmul.f32 0.2, %v5039_v6  ;;  %v920_v19 = vsel %vm612_vm3, %v915_v8, %v919_v9  ;;  %v4384_v9 = vrot.slane %v8087_v63, 1 }
 0x264   : > { %v5435_v14 = vsel %vm5171_vm13, %v5039_v6, %v5303_v10  ;;  %v933_v6 = vshll.u32 %v8083_v60, 16  ;;  %v2947_v10 = vshrl.u32 %v8064_v29, 16 }
 0x265   : > { %v5567_v16 = vpack.c.bf16 %v5435_v14, %v5435_v14  ;;  %v3515_v17 = vpop.f32.mrf.mxu2  ;;  %v931_v14 = vor.u32 %v929_v5, %v927_v44  ;;  %v8139_v5 = vld [vmem:[%s7205_s30 + $0x160] sm:$0xff] }
 0x266   : > { %v1502_v18 = vpop.f32.mrf.mxu0  ;;  %v3760_v20 = vadd.f32 %v3515_v17, %v1979_v15  ;;  %v935_v15 = vrot.slane %v933_v6, 1  ;;  %v4385_v17 = vsel %vm4304_vm2, %v4382_v38, %v4384_v9  ;;  %v8142_v6 = vld [vmem:[%s7205_s30 + $0x160] sm:$0xff] }
 0x267   : > { %6898 = vmatmul.msk.bf16.gmra.mxu3 %vm1145_vm1, %v4381_v11  ;;  %v1983_v21 = vpop.f32.mrf.mxu1  ;;  %5700 = vst.msk [vmem:[%s7320_s6 + $0xe0] sm:$0xf] %vm5643_vm5, %v5567_v16  ;;  %v1982_v27 = vadd.f32 %v1981_v2, %v1502_v18  ;;  %v2951_v11 = vshll.u32 %v8090_v0, 16  ;;  %v2949_v18 = vor.u32 %v2947_v10, %v2945_v48 }
 0x268   : > { %v5040_v23 = vadd.f32 %v4795_v7, %v3760_v20 }
 0x269   : > { %6156 = vmatmul.msk.bf16.gmra.mxu0 %vm1145_vm1, %v920_v19  ;;  %v2953_v19 = vrot.slane %v2951_v11, 1 }
 0x26a   : > { %v4798_v24 = vpop.f32.mrf.mxu3  ;;  %vm5172_vm14 = vcmp.ge.f32.partialorder %v5040_v23, 0.0  ;;  %v5304_v26 = vmul.f32 0.2, %v5040_v23  ;;  %6562 = vmatmul.msk.bf16.gmra.mxu2 %vm1145_vm1, %v2938_v22 }
 0x26b   : > { %v2954_v28 = vsel %vm612_vm3, %v2949_v18, %v2953_v19 }
 0x26c   : > { %v5436_v30 = vsel %vm5172_vm14, %v5040_v23, %v5304_v26 }
 0x26d   : > { %v5568_v31 = vpack.c.bf16 %v5436_v30, %v5436_v30  ;;  %v3518_v32 = vpop.f32.mrf.mxu2 }
 0x26e   : > { %v1504_v33 = vpop.f32.mrf.mxu0  ;;  %v3761_v36 = vadd.f32 %v3518_v32, %v1982_v27 }
 0x26f   : > { %v1986_v37 = vpop.f32.mrf.mxu1  ;;  %5701 = vst.msk [vmem:[%s7320_s6 + $0xe4] sm:$0xf] %vm5643_vm5, %v5568_v31  ;;  %v1984_v50 = vadd.f32 %v1983_v21, %v1504_v33  ;;  %v8109_v31 = vld [vmem:[%s7205_s30 + $0x148] sm:$0xff] }
 0x270   : > { %v5041_v41 = vadd.f32 %v4798_v24, %v3761_v36  ;;  %v945_v11 = vshrl.u32 %v8109_v31, 16 }
 0x272   : > { %v4800_v42 = vpop.f32.mrf.mxu3  ;;  %6227 = vmatmul.msk.bf16.gmra.mxu1 %vm1145_vm1, %v8031_v54  ;;  %vm5173_vm15 = vcmp.ge.f32.partialorder %v5041_v41, 0.0  ;;  %v5305_v45 = vmul.f32 0.2, %v5041_v41  ;;  %v928_v54 = vsel %vm612_vm3, %v923_v43, %v927_v44  ;;  %v4386_v44 = vrot.slane %v8113_v34, 1 }
 0x274   : > { %v5437_v49 = vsel %vm5173_vm15, %v5041_v41, %v5305_v45  ;;  %v941_v41 = vshll.u32 %v8109_v31, 16  ;;  %v2955_v45 = vshrl.u32 %v8090_v0, 16 }
 0x275   : > { %v5569_v51 = vpack.c.bf16 %v5437_v49, %v5437_v49  ;;  %v3520_v52 = vpop.f32.mrf.mxu2  ;;  %v939_v49 = vor.u32 %v937_v40, %v935_v15  ;;  %v8165_v40 = vld [vmem:[%s7205_s30 + $0x168] sm:$0xff] }
 0x276   : > { %v1507_v53 = vpop.f32.mrf.mxu0  ;;  %v3762_v55 = vadd.f32 %v3520_v52, %v1984_v50  ;;  %v943_v50 = vrot.slane %v941_v41, 1  ;;  %v4387_v52 = vsel %vm4304_vm2, %v4384_v9, %v4386_v44  ;;  %v8168_v41 = vld [vmem:[%s7205_s30 + $0x168] sm:$0xff] }
 0x277   : > { %6899 = vmatmul.msk.bf16.gmra.mxu3 %vm1145_vm1, %v4383_v46  ;;  %v1988_v56 = vpop.f32.mrf.mxu1  ;;  %5702 = vst.msk [vmem:[%s7320_s6 + $0xe8] sm:$0xf] %vm5643_vm5, %v5569_v51  ;;  %v1987_v62 = vadd.f32 %v1986_v37, %v1507_v53  ;;  %v2959_v46 = vshll.u32 %v8116_v35, 16  ;;  %v2957_v53 = vor.u32 %v2955_v45, %v2953_v19 }
 0x278   : > { %v5042_v58 = vadd.f32 %v4800_v42, %v3762_v55 }
 0x279   : > { %6157 = vmatmul.msk.bf16.gmra.mxu0 %vm1145_vm1, %v928_v54  ;;  %v2961_v54 = vrot.slane %v2959_v46, 1 }
 0x27a   : > { %v4803_v59 = vpop.f32.mrf.mxu3  ;;  %vm5174_vm0 = vcmp.ge.f32.partialorder %v5042_v58, 0.0  ;;  %v5306_v61 = vmul.f32 0.2, %v5042_v58  ;;  %6563 = vmatmul.msk.bf16.gmra.mxu2 %vm1145_vm1, %v2946_v57 }
 0x27b   : > { %v2962_v63 = vsel %vm612_vm3, %v2957_v53, %v2961_v54 }
 0x27c   : > { %v5438_v1 = vsel %vm5174_vm0, %v5042_v58, %v5306_v61 }
 0x27d   : > { %v5570_v2 = vpack.c.bf16 %v5438_v1, %v5438_v1  ;;  %v3523_v3 = vpop.f32.mrf.mxu2 }
 0x27e   : > { %v1509_v4 = vpop.f32.mrf.mxu0  ;;  %v3763_v7 = vadd.f32 %v3523_v3, %v1987_v62 }
 0x27f   : > { %v1991_v8 = vpop.f32.mrf.mxu1  ;;  %5703 = vst.msk [vmem:[%s7320_s6 + $0xec] sm:$0xf] %vm5643_vm5, %v5570_v2  ;;  %v1989_v21 = vadd.f32 %v1988_v56, %v1509_v4  ;;  %v8135_v2 = vld [vmem:[%s7205_s30 + $0x150] sm:$0xff] }
 0x280   : > { %v5043_v12 = vadd.f32 %v4803_v59, %v3763_v7  ;;  %v953_v46 = vshrl.u32 %v8135_v2, 16 }
 0x282   : > { %v4805_v13 = vpop.f32.mrf.mxu3  ;;  %6228 = vmatmul.msk.bf16.gmra.mxu1 %vm1145_vm1, %v8057_v25  ;;  %vm5175_vm4 = vcmp.ge.f32.partialorder %v5043_v12, 0.0  ;;  %v5307_v16 = vmul.f32 0.2, %v5043_v12  ;;  %v936_v25 = vsel %vm612_vm3, %v931_v14, %v935_v15  ;;  %v4388_v15 = vrot.slane %v8139_v5, 1 }
 0x284   : > { %v5439_v20 = vsel %vm5175_vm4, %v5043_v12, %v5307_v16  ;;  %v949_v12 = vshll.u32 %v8135_v2, 16  ;;  %v2963_v16 = vshrl.u32 %v8116_v35, 16 }
 0x285   : > { %v5571_v22 = vpack.c.bf16 %v5439_v20, %v5439_v20  ;;  %v3525_v23 = vpop.f32.mrf.mxu2  ;;  %v947_v20 = vor.u32 %v945_v11, %v943_v50  ;;  %v8191_v11 = vld [vmem:[%s7205_s30 + $0x170] sm:$0xff] }
 0x286   : > { %v1512_v24 = vpop.f32.mrf.mxu0  ;;  %v3764_v26 = vadd.f32 %v3525_v23, %v1989_v21  ;;  %v951_v21 = vrot.slane %v949_v12, 1  ;;  %v4389_v23 = vsel %vm4304_vm2, %v4386_v44, %v4388_v15  ;;  %v8194_v12 = vld [vmem:[%s7205_s30 + $0x170] sm:$0xff] }
 0x287   : > { %6900 = vmatmul.msk.bf16.gmra.mxu3 %vm1145_vm1, %v4385_v17  ;;  %v1993_v27 = vpop.f32.mrf.mxu1  ;;  %5704 = vst.msk [vmem:[%s7320_s6 + $0xf0] sm:$0xf] %vm5643_vm5, %v5571_v22  ;;  %v1992_v33 = vadd.f32 %v1991_v8, %v1512_v24  ;;  %v2967_v17 = vshll.u32 %v8142_v6, 16  ;;  %v2965_v24 = vor.u32 %v2963_v16, %v2961_v54 }
 0x288   : > { %v5044_v29 = vadd.f32 %v4805_v13, %v3764_v26 }
 0x289   : > { %6158 = vmatmul.msk.bf16.gmra.mxu0 %vm1145_vm1, %v936_v25  ;;  %v2969_v25 = vrot.slane %v2967_v17, 1 }
 0x28a   : > { %v4808_v30 = vpop.f32.mrf.mxu3  ;;  %vm5176_vm6 = vcmp.ge.f32.partialorder %v5044_v29, 0.0  ;;  %v5308_v32 = vmul.f32 0.2, %v5044_v29  ;;  %6564 = vmatmul.msk.bf16.gmra.mxu2 %vm1145_vm1, %v2954_v28 }
 0x28b   : > { %v2970_v34 = vsel %vm612_vm3, %v2965_v24, %v2969_v25 }
 0x28c   : > { %v5440_v36 = vsel %vm5176_vm6, %v5044_v29, %v5308_v32 }
 0x28d   : > { %v5572_v37 = vpack.c.bf16 %v5440_v36, %v5440_v36  ;;  %v3528_v38 = vpop.f32.mrf.mxu2 }
 0x28e   : > { %v1514_v39 = vpop.f32.mrf.mxu0  ;;  %v3765_v42 = vadd.f32 %v3528_v38, %v1992_v33 }
 0x28f   : > { %v1996_v43 = vpop.f32.mrf.mxu1  ;;  %5705 = vst.msk [vmem:[%s7320_s6 + $0xf4] sm:$0xf] %vm5643_vm5, %v5572_v37  ;;  %v1994_v56 = vadd.f32 %v1993_v27, %v1514_v39  ;;  %v8161_v37 = vld [vmem:[%s7205_s30 + $0x158] sm:$0xff] }
 0x290   : > { %v5045_v47 = vadd.f32 %v4808_v30, %v3765_v42  ;;  %v961_v17 = vshrl.u32 %v8161_v37, 16 }
 0x292   : > { %v4810_v48 = vpop.f32.mrf.mxu3  ;;  %6229 = vmatmul.msk.bf16.gmra.mxu1 %vm1145_vm1, %v8083_v60  ;;  %vm5177_vm7 = vcmp.ge.f32.partialorder %v5045_v47, 0.0  ;;  %v5309_v51 = vmul.f32 0.2, %v5045_v47  ;;  %v944_v60 = vsel %vm612_vm3, %v939_v49, %v943_v50  ;;  %v4390_v50 = vrot.slane %v8165_v40, 1 }
 0x294   : > { %v5441_v55 = vsel %vm5177_vm7, %v5045_v47, %v5309_v51  ;;  %v957_v47 = vshll.u32 %v8161_v37, 16  ;;  %v2971_v51 = vshrl.u32 %v8142_v6, 16 }
 0x295   : > { %v5573_v57 = vpack.c.bf16 %v5441_v55, %v5441_v55  ;;  %v3530_v58 = vpop.f32.mrf.mxu2  ;;  %v955_v55 = vor.u32 %v953_v46, %v951_v21  ;;  %v8217_v46 = vld [vmem:[%s7205_s30 + $0x178] sm:$0xff] }
 0x296   : > { %v1517_v59 = vpop.f32.mrf.mxu0  ;;  %v3766_v61 = vadd.f32 %v3530_v58, %v1994_v56  ;;  %v959_v56 = vrot.slane %v957_v47, 1  ;;  %v4391_v58 = vsel %vm4304_vm2, %v4388_v15, %v4390_v50  ;;  %v8220_v47 = vld [vmem:[%s7205_s30 + $0x178] sm:$0xff] }
 0x297   : > { %6901 = vmatmul.msk.bf16.gmra.mxu3 %vm1145_vm1, %v4387_v52  ;;  %v1998_v62 = vpop.f32.mrf.mxu1  ;;  %5706 = vst.msk [vmem:[%s7320_s6 + $0xf8] sm:$0xf] %vm5643_vm5, %v5573_v57  ;;  %v1997_v4 = vadd.f32 %v1996_v43, %v1517_v59  ;;  %v2975_v52 = vshll.u32 %v8168_v41, 16  ;;  %v2973_v59 = vor.u32 %v2971_v51, %v2969_v25 }
 0x298   : > { %v5046_v0 = vadd.f32 %v4810_v48, %v3766_v61 }
 0x299   : > { %6159 = vmatmul.msk.bf16.gmra.mxu0 %vm1145_vm1, %v944_v60  ;;  %v2977_v60 = vrot.slane %v2975_v52, 1 }
 0x29a   : > { %v4813_v1 = vpop.f32.mrf.mxu3  ;;  %vm5178_vm8 = vcmp.ge.f32.partialorder %v5046_v0, 0.0  ;;  %v5310_v3 = vmul.f32 0.2, %v5046_v0  ;;  %6565 = vmatmul.msk.bf16.gmra.mxu2 %vm1145_vm1, %v2962_v63 }
 0x29b   : > { %v2978_v5 = vsel %vm612_vm3, %v2973_v59, %v2977_v60 }
 0x29c   : > { %v5442_v7 = vsel %vm5178_vm8, %v5046_v0, %v5310_v3 }
 0x29d   : > { %v5574_v8 = vpack.c.bf16 %v5442_v7, %v5442_v7  ;;  %v3533_v9 = vpop.f32.mrf.mxu2 }
 0x29e   : > { %v1519_v10 = vpop.f32.mrf.mxu0  ;;  %v3767_v13 = vadd.f32 %v3533_v9, %v1997_v4 }
 0x29f   : > { %v2001_v14 = vpop.f32.mrf.mxu1  ;;  %5707 = vst.msk [vmem:[%s7320_s6 + $0xfc] sm:$0xf] %vm5643_vm5, %v5574_v8  ;;  %v1999_v27 = vadd.f32 %v1998_v62, %v1519_v10  ;;  %v8187_v8 = vld [vmem:[%s7205_s30 + $0x160] sm:$0xff] }
 0x2a0   : > { %v5047_v18 = vadd.f32 %v4813_v1, %v3767_v13  ;;  %v969_v52 = vshrl.u32 %v8187_v8, 16 }
 0x2a2   : > { %v4815_v19 = vpop.f32.mrf.mxu3  ;;  %6230 = vmatmul.msk.bf16.gmra.mxu1 %vm1145_vm1, %v8109_v31  ;;  %vm5179_vm9 = vcmp.ge.f32.partialorder %v5047_v18, 0.0  ;;  %v5311_v22 = vmul.f32 0.2, %v5047_v18  ;;  %v952_v31 = vsel %vm612_vm3, %v947_v20, %v951_v21  ;;  %v4392_v21 = vrot.slane %v8191_v11, 1 }
 0x2a4   : > { %v5443_v26 = vsel %vm5179_vm9, %v5047_v18, %v5311_v22  ;;  %v965_v18 = vshll.u32 %v8187_v8, 16  ;;  %v2979_v22 = vshrl.u32 %v8168_v41, 16 }
 0x2a5   : > { %v5575_v28 = vpack.c.bf16 %v5443_v26, %v5443_v26  ;;  %v3535_v29 = vpop.f32.mrf.mxu2  ;;  %v963_v26 = vor.u32 %v961_v17, %v959_v56  ;;  %v8243_v17 = vld [vmem:[%s7205_s30 + $0x180] sm:$0xff] }
 0x2a6   : > { %v1522_v30 = vpop.f32.mrf.mxu0  ;;  %v3768_v32 = vadd.f32 %v3535_v29, %v1999_v27  ;;  %v967_v27 = vrot.slane %v965_v18, 1  ;;  %v4393_v29 = vsel %vm4304_vm2, %v4390_v50, %v4392_v21  ;;  %v8246_v18 = vld [vmem:[%s7205_s30 + $0x180] sm:$0xff] }
 0x2a7   : > { %6902 = vmatmul.msk.bf16.gmra.mxu3 %vm1145_vm1, %v4389_v23  ;;  %v2003_v33 = vpop.f32.mrf.mxu1  ;;  %5708 = vst.msk [vmem:[%s7320_s6 + $0x100] sm:$0xf] %vm5643_vm5, %v5575_v28  ;;  %v2002_v39 = vadd.f32 %v2001_v14, %v1522_v30  ;;  %v2983_v23 = vshll.u32 %v8194_v12, 16  ;;  %v2981_v30 = vor.u32 %v2979_v22, %v2977_v60 }
 0x2a8   : > { %v5048_v35 = vadd.f32 %v4815_v19, %v3768_v32 }
 0x2a9   : > { %6160 = vmatmul.msk.bf16.gmra.mxu0 %vm1145_vm1, %v952_v31  ;;  %v2985_v31 = vrot.slane %v2983_v23, 1 }
 0x2aa   : > { %v4818_v36 = vpop.f32.mrf.mxu3  ;;  %vm5180_vm10 = vcmp.ge.f32.partialorder %v5048_v35, 0.0  ;;  %v5312_v38 = vmul.f32 0.2, %v5048_v35  ;;  %6566 = vmatmul.msk.bf16.gmra.mxu2 %vm1145_vm1, %v2970_v34 }
 0x2ab   : > { %v2986_v40 = vsel %vm612_vm3, %v2981_v30, %v2985_v31 }
 0x2ac   : > { %v5444_v42 = vsel %vm5180_vm10, %v5048_v35, %v5312_v38 }
 0x2ad   : > { %v5576_v43 = vpack.c.bf16 %v5444_v42, %v5444_v42  ;;  %v3538_v44 = vpop.f32.mrf.mxu2 }
 0x2ae   : > { %v1524_v45 = vpop.f32.mrf.mxu0  ;;  %v3769_v48 = vadd.f32 %v3538_v44, %v2002_v39 }
 0x2af   : > { %v2006_v49 = vpop.f32.mrf.mxu1  ;;  %5709 = vst.msk [vmem:[%s7320_s6 + $0x104] sm:$0xf] %vm5643_vm5, %v5576_v43  ;;  %v2004_v62 = vadd.f32 %v2003_v33, %v1524_v45  ;;  %v8213_v43 = vld [vmem:[%s7205_s30 + $0x168] sm:$0xff] }
 0x2b0   : > { %v5049_v53 = vadd.f32 %v4818_v36, %v3769_v48  ;;  %v977_v23 = vshrl.u32 %v8213_v43, 16 }
 0x2b2   : > { %v4820_v54 = vpop.f32.mrf.mxu3  ;;  %6231 = vmatmul.msk.bf16.gmra.mxu1 %vm1145_vm1, %v8135_v2  ;;  %vm5181_vm11 = vcmp.ge.f32.partialorder %v5049_v53, 0.0  ;;  %v5313_v57 = vmul.f32 0.2, %v5049_v53  ;;  %v960_v2 = vsel %vm612_vm3, %v955_v55, %v959_v56  ;;  %v4394_v56 = vrot.slane %v8217_v46, 1 }
 0x2b4   : > { %v5445_v61 = vsel %vm5181_vm11, %v5049_v53, %v5313_v57  ;;  %v973_v53 = vshll.u32 %v8213_v43, 16  ;;  %v2987_v57 = vshrl.u32 %v8194_v12, 16 }
 0x2b5   : > { %v5577_v63 = vpack.c.bf16 %v5445_v61, %v5445_v61  ;;  %v3540_v0 = vpop.f32.mrf.mxu2  ;;  %v971_v61 = vor.u32 %v969_v52, %v967_v27  ;;  %v8269_v52 = vld [vmem:[%s7205_s30 + $0x188] sm:$0xff] }
 0x2b6   : > { %v1527_v1 = vpop.f32.mrf.mxu0  ;;  %v3770_v3 = vadd.f32 %v3540_v0, %v2004_v62  ;;  %v975_v62 = vrot.slane %v973_v53, 1  ;;  %v4395_v0 = vsel %vm4304_vm2, %v4392_v21, %v4394_v56  ;;  %v8272_v53 = vld [vmem:[%s7205_s30 + $0x188] sm:$0xff] }
 0x2b7   : > { %6903 = vmatmul.msk.bf16.gmra.mxu3 %vm1145_vm1, %v4391_v58  ;;  %v2008_v4 = vpop.f32.mrf.mxu1  ;;  %5710 = vst.msk [vmem:[%s7320_s6 + $0x108] sm:$0xf] %vm5643_vm5, %v5577_v63  ;;  %v2007_v10 = vadd.f32 %v2006_v49, %v1527_v1  ;;  %v2991_v58 = vshll.u32 %v8220_v47, 16  ;;  %v2989_v1 = vor.u32 %v2987_v57, %v2985_v31 }
 0x2b8   : > { %v5050_v6 = vadd.f32 %v4820_v54, %v3770_v3 }
 0x2b9   : > { %6161 = vmatmul.msk.bf16.gmra.mxu0 %vm1145_vm1, %v960_v2  ;;  %v2993_v2 = vrot.slane %v2991_v58, 1 }
 0x2ba   : > { %v4823_v7 = vpop.f32.mrf.mxu3  ;;  %vm5182_vm12 = vcmp.ge.f32.partialorder %v5050_v6, 0.0  ;;  %v5314_v9 = vmul.f32 0.2, %v5050_v6  ;;  %6567 = vmatmul.msk.bf16.gmra.mxu2 %vm1145_vm1, %v2978_v5 }
 0x2bb   : > { %v2994_v11 = vsel %vm612_vm3, %v2989_v1, %v2993_v2 }
 0x2bc   : > { %v5446_v13 = vsel %vm5182_vm12, %v5050_v6, %v5314_v9 }
 0x2bd   : > { %v5578_v14 = vpack.c.bf16 %v5446_v13, %v5446_v13  ;;  %v3543_v15 = vpop.f32.mrf.mxu2 }
 0x2be   : > { %v1529_v16 = vpop.f32.mrf.mxu0  ;;  %v3771_v19 = vadd.f32 %v3543_v15, %v2007_v10 }
 0x2bf   : > { %v2011_v20 = vpop.f32.mrf.mxu1  ;;  %5711 = vst.msk [vmem:[%s7320_s6 + $0x10c] sm:$0xf] %vm5643_vm5, %v5578_v14  ;;  %v2009_v33 = vadd.f32 %v2008_v4, %v1529_v16  ;;  %v8239_v14 = vld [vmem:[%s7205_s30 + $0x170] sm:$0xff] }
 0x2c0   : > { %v5051_v24 = vadd.f32 %v4823_v7, %v3771_v19  ;;  %v985_v58 = vshrl.u32 %v8239_v14, 16 }
 0x2c2   : > { %v4825_v25 = vpop.f32.mrf.mxu3  ;;  %6232 = vmatmul.msk.bf16.gmra.mxu1 %vm1145_vm1, %v8161_v37  ;;  %vm5183_vm13 = vcmp.ge.f32.partialorder %v5051_v24, 0.0  ;;  %v5315_v28 = vmul.f32 0.2, %v5051_v24  ;;  %v968_v37 = vsel %vm612_vm3, %v963_v26, %v967_v27  ;;  %v4396_v27 = vrot.slane %v8243_v17, 1 }
 0x2c4   : > { %v5447_v32 = vsel %vm5183_vm13, %v5051_v24, %v5315_v28  ;;  %v981_v24 = vshll.u32 %v8239_v14, 16  ;;  %v2995_v28 = vshrl.u32 %v8220_v47, 16 }
 0x2c5   : > { %v5579_v34 = vpack.c.bf16 %v5447_v32, %v5447_v32  ;;  %v3545_v35 = vpop.f32.mrf.mxu2  ;;  %v979_v32 = vor.u32 %v977_v23, %v975_v62  ;;  %v8295_v23 = vld [vmem:[%s7205_s30 + $0x190] sm:$0xff] }
 0x2c6   : > { %v1532_v36 = vpop.f32.mrf.mxu0  ;;  %v3772_v38 = vadd.f32 %v3545_v35, %v2009_v33  ;;  %v983_v33 = vrot.slane %v981_v24, 1  ;;  %v4397_v35 = vsel %vm4304_vm2, %v4394_v56, %v4396_v27  ;;  %v8298_v24 = vld [vmem:[%s7205_s30 + $0x190] sm:$0xff] }
 0x2c7   : > { %6904 = vmatmul.msk.bf16.gmra.mxu3 %vm1145_vm1, %v4393_v29  ;;  %v2013_v39 = vpop.f32.mrf.mxu1  ;;  %5712 = vst.msk [vmem:[%s7320_s6 + $0x110] sm:$0xf] %vm5643_vm5, %v5579_v34  ;;  %v2012_v45 = vadd.f32 %v2011_v20, %v1532_v36  ;;  %v2999_v29 = vshll.u32 %v8246_v18, 16  ;;  %v2997_v36 = vor.u32 %v2995_v28, %v2993_v2 }
 0x2c8   : > { %v5052_v41 = vadd.f32 %v4825_v25, %v3772_v38 }
 0x2c9   : > { %6162 = vmatmul.msk.bf16.gmra.mxu0 %vm1145_vm1, %v968_v37  ;;  %v3001_v37 = vrot.slane %v2999_v29, 1 }
 0x2ca   : > { %v4828_v42 = vpop.f32.mrf.mxu3  ;;  %vm5184_vm14 = vcmp.ge.f32.partialorder %v5052_v41, 0.0  ;;  %v5316_v44 = vmul.f32 0.2, %v5052_v41  ;;  %6568 = vmatmul.msk.bf16.gmra.mxu2 %vm1145_vm1, %v2986_v40 }
 0x2cb   : > { %v3002_v46 = vsel %vm612_vm3, %v2997_v36, %v3001_v37 }
 0x2cc   : > { %v5448_v48 = vsel %vm5184_vm14, %v5052_v41, %v5316_v44 }
 0x2cd   : > { %v5580_v49 = vpack.c.bf16 %v5448_v48, %v5448_v48  ;;  %v3548_v50 = vpop.f32.mrf.mxu2 }
 0x2ce   : > { %v1534_v51 = vpop.f32.mrf.mxu0  ;;  %v3773_v54 = vadd.f32 %v3548_v50, %v2012_v45 }
 0x2cf   : > { %v2016_v55 = vpop.f32.mrf.mxu1  ;;  %5713 = vst.msk [vmem:[%s7320_s6 + $0x114] sm:$0xf] %vm5643_vm5, %v5580_v49  ;;  %v2014_v4 = vadd.f32 %v2013_v39, %v1534_v51  ;;  %v8265_v49 = vld [vmem:[%s7205_s30 + $0x178] sm:$0xff] }
 0x2d0   : > { %v5053_v59 = vadd.f32 %v4828_v42, %v3773_v54  ;;  %v993_v29 = vshrl.u32 %v8265_v49, 16 }
 0x2d2   : > { %v4830_v60 = vpop.f32.mrf.mxu3  ;;  %6233 = vmatmul.msk.bf16.gmra.mxu1 %vm1145_vm1, %v8187_v8  ;;  %vm5185_vm15 = vcmp.ge.f32.partialorder %v5053_v59, 0.0  ;;  %v5317_v63 = vmul.f32 0.2, %v5053_v59  ;;  %v976_v8 = vsel %vm612_vm3, %v971_v61, %v975_v62  ;;  %v4398_v62 = vrot.slane %v8269_v52, 1 }
 0x2d4   : > { %v5449_v3 = vsel %vm5185_vm15, %v5053_v59, %v5317_v63  ;;  %v989_v59 = vshll.u32 %v8265_v49, 16  ;;  %v3003_v63 = vshrl.u32 %v8246_v18, 16 }
 0x2d5   : > { %v5581_v5 = vpack.c.bf16 %v5449_v3, %v5449_v3  ;;  %v3550_v6 = vpop.f32.mrf.mxu2  ;;  %v987_v3 = vor.u32 %v985_v58, %v983_v33  ;;  %v8321_v58 = vld [vmem:[%s7205_s30 + $0x198] sm:$0xff] }
 0x2d6   : > { %v1537_v7 = vpop.f32.mrf.mxu0  ;;  %v3774_v9 = vadd.f32 %v3550_v6, %v2014_v4  ;;  %v991_v4 = vrot.slane %v989_v59, 1  ;;  %v4399_v6 = vsel %vm4304_vm2, %v4396_v27, %v4398_v62  ;;  %v8324_v59 = vld [vmem:[%s7205_s30 + $0x198] sm:$0xff] }
 0x2d7   : > { %6905 = vmatmul.msk.bf16.gmra.mxu3 %vm1145_vm1, %v4395_v0  ;;  %v2018_v10 = vpop.f32.mrf.mxu1  ;;  %5714 = vst.msk [vmem:[%s7320_s6 + $0x118] sm:$0xf] %vm5643_vm5, %v5581_v5  ;;  %v2017_v16 = vadd.f32 %v2016_v55, %v1537_v7  ;;  %v3007_v0 = vshll.u32 %v8272_v53, 16  ;;  %v3005_v7 = vor.u32 %v3003_v63, %v3001_v37 }
 0x2d8   : > { %v5054_v12 = vadd.f32 %v4830_v60, %v3774_v9 }
 0x2d9   : > { %6163 = vmatmul.msk.bf16.gmra.mxu0 %vm1145_vm1, %v976_v8  ;;  %v3009_v8 = vrot.slane %v3007_v0, 1 }
 0x2da   : > { %v4833_v13 = vpop.f32.mrf.mxu3  ;;  %vm5186_vm0 = vcmp.ge.f32.partialorder %v5054_v12, 0.0  ;;  %v5318_v15 = vmul.f32 0.2, %v5054_v12  ;;  %6569 = vmatmul.msk.bf16.gmra.mxu2 %vm1145_vm1, %v2994_v11 }
 0x2db   : > { %v3010_v17 = vsel %vm612_vm3, %v3005_v7, %v3009_v8 }
 0x2dc   : > { %v5450_v19 = vsel %vm5186_vm0, %v5054_v12, %v5318_v15 }
 0x2dd   : > { %v5582_v20 = vpack.c.bf16 %v5450_v19, %v5450_v19  ;;  %v3553_v21 = vpop.f32.mrf.mxu2 }
 0x2de   : > { %v1539_v22 = vpop.f32.mrf.mxu0  ;;  %v3775_v25 = vadd.f32 %v3553_v21, %v2017_v16 }
 0x2df   : > { %v2021_v26 = vpop.f32.mrf.mxu1  ;;  %5715 = vst.msk [vmem:[%s7320_s6 + $0x11c] sm:$0xf] %vm5643_vm5, %v5582_v20  ;;  %v2019_v39 = vadd.f32 %v2018_v10, %v1539_v22  ;;  %v8291_v20 = vld [vmem:[%s7205_s30 + $0x180] sm:$0xff] }
 0x2e0   : > { %v5055_v30 = vadd.f32 %v4833_v13, %v3775_v25  ;;  %v1001_v0 = vshrl.u32 %v8291_v20, 16 }
 0x2e2   : > { %v4835_v31 = vpop.f32.mrf.mxu3  ;;  %6234 = vmatmul.msk.bf16.gmra.mxu1 %vm1145_vm1, %v8213_v43  ;;  %vm5187_vm4 = vcmp.ge.f32.partialorder %v5055_v30, 0.0  ;;  %v5319_v34 = vmul.f32 0.2, %v5055_v30  ;;  %v984_v43 = vsel %vm612_vm3, %v979_v32, %v983_v33  ;;  %v4400_v33 = vrot.slane %v8295_v23, 1 }
 0x2e4   : > { %v5451_v38 = vsel %vm5187_vm4, %v5055_v30, %v5319_v34  ;;  %v997_v30 = vshll.u32 %v8291_v20, 16  ;;  %v3011_v34 = vshrl.u32 %v8272_v53, 16 }
 0x2e5   : > { %v5583_v40 = vpack.c.bf16 %v5451_v38, %v5451_v38  ;;  %v3555_v41 = vpop.f32.mrf.mxu2  ;;  %v995_v38 = vor.u32 %v993_v29, %v991_v4  ;;  %v8347_v29 = vld [vmem:[%s7205_s30 + $0x1a0] sm:$0xff] }
 0x2e6   : > { %v1542_v42 = vpop.f32.mrf.mxu0  ;;  %v3776_v44 = vadd.f32 %v3555_v41, %v2019_v39  ;;  %v999_v39 = vrot.slane %v997_v30, 1  ;;  %v4401_v41 = vsel %vm4304_vm2, %v4398_v62, %v4400_v33  ;;  %v8350_v30 = vld [vmem:[%s7205_s30 + $0x1a0] sm:$0xff] }
 0x2e7   : > { %6906 = vmatmul.msk.bf16.gmra.mxu3 %vm1145_vm1, %v4397_v35  ;;  %v2023_v45 = vpop.f32.mrf.mxu1  ;;  %5716 = vst.msk [vmem:[%s7320_s6 + $0x120] sm:$0xf] %vm5643_vm5, %v5583_v40  ;;  %v2022_v51 = vadd.f32 %v2021_v26, %v1542_v42  ;;  %v3015_v35 = vshll.u32 %v8298_v24, 16  ;;  %v3013_v42 = vor.u32 %v3011_v34, %v3009_v8 }
 0x2e8   : > { %v5056_v47 = vadd.f32 %v4835_v31, %v3776_v44 }
 0x2e9   : > { %6164 = vmatmul.msk.bf16.gmra.mxu0 %vm1145_vm1, %v984_v43  ;;  %v3017_v43 = vrot.slane %v3015_v35, 1 }
 0x2ea   : > { %v4838_v48 = vpop.f32.mrf.mxu3  ;;  %vm5188_vm6 = vcmp.ge.f32.partialorder %v5056_v47, 0.0  ;;  %v5320_v50 = vmul.f32 0.2, %v5056_v47  ;;  %6570 = vmatmul.msk.bf16.gmra.mxu2 %vm1145_vm1, %v3002_v46 }
 0x2eb   : > { %v3018_v52 = vsel %vm612_vm3, %v3013_v42, %v3017_v43 }
 0x2ec   : > { %v5452_v54 = vsel %vm5188_vm6, %v5056_v47, %v5320_v50 }
 0x2ed   : > { %v5584_v55 = vpack.c.bf16 %v5452_v54, %v5452_v54  ;;  %v3558_v56 = vpop.f32.mrf.mxu2 }
 0x2ee   : > { %v1544_v57 = vpop.f32.mrf.mxu0  ;;  %v3777_v60 = vadd.f32 %v3558_v56, %v2022_v51 }
 0x2ef   : > { %v2026_v61 = vpop.f32.mrf.mxu1  ;;  %5717 = vst.msk [vmem:[%s7320_s6 + $0x124] sm:$0xf] %vm5643_vm5, %v5584_v55  ;;  %v2024_v10 = vadd.f32 %v2023_v45, %v1544_v57  ;;  %v8317_v55 = vld [vmem:[%s7205_s30 + $0x188] sm:$0xff] }
 0x2f0   : > { %v5057_v1 = vadd.f32 %v4838_v48, %v3777_v60  ;;  %v1009_v35 = vshrl.u32 %v8317_v55, 16 }
 0x2f2   : > { %v4840_v2 = vpop.f32.mrf.mxu3  ;;  %6235 = vmatmul.msk.bf16.gmra.mxu1 %vm1145_vm1, %v8239_v14  ;;  %vm5189_vm7 = vcmp.ge.f32.partialorder %v5057_v1, 0.0  ;;  %v5321_v5 = vmul.f32 0.2, %v5057_v1  ;;  %v992_v14 = vsel %vm612_vm3, %v987_v3, %v991_v4  ;;  %v4402_v4 = vrot.slane %v8321_v58, 1 }
 0x2f4   : > { %v5453_v9 = vsel %vm5189_vm7, %v5057_v1, %v5321_v5  ;;  %v1005_v1 = vshll.u32 %v8317_v55, 16  ;;  %v3019_v5 = vshrl.u32 %v8298_v24, 16 }
 0x2f5   : > { %v5585_v11 = vpack.c.bf16 %v5453_v9, %v5453_v9  ;;  %v3560_v12 = vpop.f32.mrf.mxu2  ;;  %v1003_v9 = vor.u32 %v1001_v0, %v999_v39  ;;  %v8373_v0 = vld [vmem:[%s7205_s30 + $0x1a8] sm:$0xff] }
 0x2f6   : > { %v1547_v13 = vpop.f32.mrf.mxu0  ;;  %v3778_v15 = vadd.f32 %v3560_v12, %v2024_v10  ;;  %v1007_v10 = vrot.slane %v1005_v1, 1  ;;  %v4403_v12 = vsel %vm4304_vm2, %v4400_v33, %v4402_v4  ;;  %v8376_v1 = vld [vmem:[%s7205_s30 + $0x1a8] sm:$0xff] }
 0x2f7   : > { %6907 = vmatmul.msk.bf16.gmra.mxu3 %vm1145_vm1, %v4399_v6  ;;  %v2028_v16 = vpop.f32.mrf.mxu1  ;;  %5718 = vst.msk [vmem:[%s7320_s6 + $0x128] sm:$0xf] %vm5643_vm5, %v5585_v11  ;;  %v2027_v22 = vadd.f32 %v2026_v61, %v1547_v13  ;;  %v3023_v6 = vshll.u32 %v8324_v59, 16  ;;  %v3021_v13 = vor.u32 %v3019_v5, %v3017_v43 }
 0x2f8   : > { %v5058_v18 = vadd.f32 %v4840_v2, %v3778_v15 }
 0x2f9   : > { %6165 = vmatmul.msk.bf16.gmra.mxu0 %vm1145_vm1, %v992_v14  ;;  %v3025_v14 = vrot.slane %v3023_v6, 1 }
 0x2fa   : > { %v4843_v19 = vpop.f32.mrf.mxu3  ;;  %vm5190_vm8 = vcmp.ge.f32.partialorder %v5058_v18, 0.0  ;;  %v5322_v21 = vmul.f32 0.2, %v5058_v18  ;;  %6571 = vmatmul.msk.bf16.gmra.mxu2 %vm1145_vm1, %v3010_v17 }
 0x2fb   : > { %v3026_v23 = vsel %vm612_vm3, %v3021_v13, %v3025_v14 }
 0x2fc   : > { %v5454_v25 = vsel %vm5190_vm8, %v5058_v18, %v5322_v21 }
 0x2fd   : > { %v5586_v26 = vpack.c.bf16 %v5454_v25, %v5454_v25  ;;  %v3563_v27 = vpop.f32.mrf.mxu2 }
 0x2fe   : > { %v1549_v28 = vpop.f32.mrf.mxu0  ;;  %v3779_v31 = vadd.f32 %v3563_v27, %v2027_v22 }
 0x2ff   : > { %v2031_v32 = vpop.f32.mrf.mxu1  ;;  %5719 = vst.msk [vmem:[%s7320_s6 + $0x12c] sm:$0xf] %vm5643_vm5, %v5586_v26  ;;  %v2029_v45 = vadd.f32 %v2028_v16, %v1549_v28  ;;  %v8343_v26 = vld [vmem:[%s7205_s30 + $0x190] sm:$0xff] }
 0x300   : > { %v5059_v36 = vadd.f32 %v4843_v19, %v3779_v31  ;;  %v1017_v6 = vshrl.u32 %v8343_v26, 16 }
 0x302   : > { %v4845_v37 = vpop.f32.mrf.mxu3  ;;  %6236 = vmatmul.msk.bf16.gmra.mxu1 %vm1145_vm1, %v8265_v49  ;;  %vm5191_vm9 = vcmp.ge.f32.partialorder %v5059_v36, 0.0  ;;  %v5323_v40 = vmul.f32 0.2, %v5059_v36  ;;  %v1000_v49 = vsel %vm612_vm3, %v995_v38, %v999_v39  ;;  %v4404_v39 = vrot.slane %v8347_v29, 1 }
 0x304   : > { %v5455_v44 = vsel %vm5191_vm9, %v5059_v36, %v5323_v40  ;;  %v1013_v36 = vshll.u32 %v8343_v26, 16  ;;  %v3027_v40 = vshrl.u32 %v8324_v59, 16 }
 0x305   : > { %v5587_v46 = vpack.c.bf16 %v5455_v44, %v5455_v44  ;;  %v3565_v47 = vpop.f32.mrf.mxu2  ;;  %v1011_v44 = vor.u32 %v1009_v35, %v1007_v10  ;;  %v8399_v35 = vld [vmem:[%s7205_s30 + $0x1b0] sm:$0xff] }
 0x306   : > { %v1552_v48 = vpop.f32.mrf.mxu0  ;;  %v3780_v50 = vadd.f32 %v3565_v47, %v2029_v45  ;;  %v1015_v45 = vrot.slane %v1013_v36, 1  ;;  %v4405_v47 = vsel %vm4304_vm2, %v4402_v4, %v4404_v39  ;;  %v8402_v36 = vld [vmem:[%s7205_s30 + $0x1b0] sm:$0xff] }
 0x307   : > { %6908 = vmatmul.msk.bf16.gmra.mxu3 %vm1145_vm1, %v4401_v41  ;;  %v2033_v51 = vpop.f32.mrf.mxu1  ;;  %5720 = vst.msk [vmem:[%s7320_s6 + $0x130] sm:$0xf] %vm5643_vm5, %v5587_v46  ;;  %v2032_v57 = vadd.f32 %v2031_v32, %v1552_v48  ;;  %v3031_v41 = vshll.u32 %v8350_v30, 16  ;;  %v3029_v48 = vor.u32 %v3027_v40, %v3025_v14 }
 0x308   : > { %v5060_v53 = vadd.f32 %v4845_v37, %v3780_v50 }
 0x309   : > { %6166 = vmatmul.msk.bf16.gmra.mxu0 %vm1145_vm1, %v1000_v49  ;;  %v3033_v49 = vrot.slane %v3031_v41, 1 }
 0x30a   : > { %v4848_v54 = vpop.f32.mrf.mxu3  ;;  %vm5192_vm10 = vcmp.ge.f32.partialorder %v5060_v53, 0.0  ;;  %v5324_v56 = vmul.f32 0.2, %v5060_v53  ;;  %6572 = vmatmul.msk.bf16.gmra.mxu2 %vm1145_vm1, %v3018_v52 }
 0x30b   : > { %v3034_v58 = vsel %vm612_vm3, %v3029_v48, %v3033_v49 }
 0x30c   : > { %v5456_v60 = vsel %vm5192_vm10, %v5060_v53, %v5324_v56 }
 0x30d   : > { %v5588_v61 = vpack.c.bf16 %v5456_v60, %v5456_v60  ;;  %v3568_v62 = vpop.f32.mrf.mxu2 }
 0x30e   : > { %v1554_v63 = vpop.f32.mrf.mxu0  ;;  %v3781_v2 = vadd.f32 %v3568_v62, %v2032_v57 }
 0x30f   : > { %v2036_v3 = vpop.f32.mrf.mxu1  ;;  %5721 = vst.msk [vmem:[%s7320_s6 + $0x134] sm:$0xf] %vm5643_vm5, %v5588_v61  ;;  %v2034_v16 = vadd.f32 %v2033_v51, %v1554_v63  ;;  %v8369_v61 = vld [vmem:[%s7205_s30 + $0x198] sm:$0xff] }
 0x310   : > { %v5061_v7 = vadd.f32 %v4848_v54, %v3781_v2  ;;  %v1025_v41 = vshrl.u32 %v8369_v61, 16 }
 0x312   : > { %v4850_v8 = vpop.f32.mrf.mxu3  ;;  %6237 = vmatmul.msk.bf16.gmra.mxu1 %vm1145_vm1, %v8291_v20  ;;  %vm5193_vm11 = vcmp.ge.f32.partialorder %v5061_v7, 0.0  ;;  %v5325_v11 = vmul.f32 0.2, %v5061_v7  ;;  %v1008_v20 = vsel %vm612_vm3, %v1003_v9, %v1007_v10  ;;  %v4406_v10 = vrot.slane %v8373_v0, 1 }
 0x314   : > { %v5457_v15 = vsel %vm5193_vm11, %v5061_v7, %v5325_v11  ;;  %v1021_v7 = vshll.u32 %v8369_v61, 16  ;;  %v3035_v11 = vshrl.u32 %v8350_v30, 16 }
 0x315   : > { %v5589_v17 = vpack.c.bf16 %v5457_v15, %v5457_v15  ;;  %v3570_v18 = vpop.f32.mrf.mxu2  ;;  %v1019_v15 = vor.u32 %v1017_v6, %v1015_v45  ;;  %v8425_v6 = vld [vmem:[%s7205_s30 + $0x1b8] sm:$0xff] }
 0x316   : > { %v1557_v19 = vpop.f32.mrf.mxu0  ;;  %v3782_v21 = vadd.f32 %v3570_v18, %v2034_v16  ;;  %v1023_v16 = vrot.slane %v1021_v7, 1  ;;  %v4407_v18 = vsel %vm4304_vm2, %v4404_v39, %v4406_v10  ;;  %v8428_v7 = vld [vmem:[%s7205_s30 + $0x1b8] sm:$0xff] }
 0x317   : > { %6909 = vmatmul.msk.bf16.gmra.mxu3 %vm1145_vm1, %v4403_v12  ;;  %v2038_v22 = vpop.f32.mrf.mxu1  ;;  %5722 = vst.msk [vmem:[%s7320_s6 + $0x138] sm:$0xf] %vm5643_vm5, %v5589_v17  ;;  %v2037_v28 = vadd.f32 %v2036_v3, %v1557_v19  ;;  %v3039_v12 = vshll.u32 %v8376_v1, 16  ;;  %v3037_v19 = vor.u32 %v3035_v11, %v3033_v49 }
 0x318   : > { %v5062_v24 = vadd.f32 %v4850_v8, %v3782_v21 }
 0x319   : > { %6167 = vmatmul.msk.bf16.gmra.mxu0 %vm1145_vm1, %v1008_v20  ;;  %v3041_v20 = vrot.slane %v3039_v12, 1 }
 0x31a   : > { %v4853_v25 = vpop.f32.mrf.mxu3  ;;  %vm5194_vm12 = vcmp.ge.f32.partialorder %v5062_v24, 0.0  ;;  %v5326_v27 = vmul.f32 0.2, %v5062_v24  ;;  %6573 = vmatmul.msk.bf16.gmra.mxu2 %vm1145_vm1, %v3026_v23 }
 0x31b   : > { %v3042_v29 = vsel %vm612_vm3, %v3037_v19, %v3041_v20 }
 0x31c   : > { %v5458_v31 = vsel %vm5194_vm12, %v5062_v24, %v5326_v27 }
 0x31d   : > { %v5590_v32 = vpack.c.bf16 %v5458_v31, %v5458_v31  ;;  %v3573_v33 = vpop.f32.mrf.mxu2 }
 0x31e   : > { %v1559_v34 = vpop.f32.mrf.mxu0  ;;  %v3783_v37 = vadd.f32 %v3573_v33, %v2037_v28 }
 0x31f   : > { %v2041_v38 = vpop.f32.mrf.mxu1  ;;  %5723 = vst.msk [vmem:[%s7320_s6 + $0x13c] sm:$0xf] %vm5643_vm5, %v5590_v32  ;;  %v2039_v51 = vadd.f32 %v2038_v22, %v1559_v34  ;;  %v8395_v32 = vld [vmem:[%s7205_s30 + $0x1a0] sm:$0xff] }
 0x320   : > { %v5063_v42 = vadd.f32 %v4853_v25, %v3783_v37  ;;  %v1033_v12 = vshrl.u32 %v8395_v32, 16 }
 0x322   : > { %v4855_v43 = vpop.f32.mrf.mxu3  ;;  %6238 = vmatmul.msk.bf16.gmra.mxu1 %vm1145_vm1, %v8317_v55  ;;  %vm5195_vm13 = vcmp.ge.f32.partialorder %v5063_v42, 0.0  ;;  %v5327_v46 = vmul.f32 0.2, %v5063_v42  ;;  %v1016_v55 = vsel %vm612_vm3, %v1011_v44, %v1015_v45  ;;  %v4408_v45 = vrot.slane %v8399_v35, 1 }
 0x324   : > { %v5459_v50 = vsel %vm5195_vm13, %v5063_v42, %v5327_v46  ;;  %v1029_v42 = vshll.u32 %v8395_v32, 16  ;;  %v3043_v46 = vshrl.u32 %v8376_v1, 16 }
 0x325   : > { %v5591_v52 = vpack.c.bf16 %v5459_v50, %v5459_v50  ;;  %v3575_v53 = vpop.f32.mrf.mxu2  ;;  %v1027_v50 = vor.u32 %v1025_v41, %v1023_v16  ;;  %v8451_v41 = vld [vmem:[%s7205_s30 + $0x1c0] sm:$0xff] }
 0x326   : > { %v1562_v54 = vpop.f32.mrf.mxu0  ;;  %v3784_v56 = vadd.f32 %v3575_v53, %v2039_v51  ;;  %v1031_v51 = vrot.slane %v1029_v42, 1  ;;  %v4409_v53 = vsel %vm4304_vm2, %v4406_v10, %v4408_v45  ;;  %v8454_v42 = vld [vmem:[%s7205_s30 + $0x1c0] sm:$0xff] }
 0x327   : > { %6910 = vmatmul.msk.bf16.gmra.mxu3 %vm1145_vm1, %v4405_v47  ;;  %v2043_v57 = vpop.f32.mrf.mxu1  ;;  %5724 = vst.msk [vmem:[%s7320_s6 + $0x140] sm:$0xf] %vm5643_vm5, %v5591_v52  ;;  %v2042_v63 = vadd.f32 %v2041_v38, %v1562_v54  ;;  %v3047_v47 = vshll.u32 %v8402_v36, 16  ;;  %v3045_v54 = vor.u32 %v3043_v46, %v3041_v20 }
 0x328   : > { %v5064_v59 = vadd.f32 %v4855_v43, %v3784_v56 }
 0x329   : > { %6168 = vmatmul.msk.bf16.gmra.mxu0 %vm1145_vm1, %v1016_v55  ;;  %v3049_v55 = vrot.slane %v3047_v47, 1 }
 0x32a   : > { %v4858_v60 = vpop.f32.mrf.mxu3  ;;  %vm5196_vm14 = vcmp.ge.f32.partialorder %v5064_v59, 0.0  ;;  %v5328_v62 = vmul.f32 0.2, %v5064_v59  ;;  %6574 = vmatmul.msk.bf16.gmra.mxu2 %vm1145_vm1, %v3034_v58 }
 0x32b   : > { %v3050_v0 = vsel %vm612_vm3, %v3045_v54, %v3049_v55 }
 0x32c   : > { %v5460_v2 = vsel %vm5196_vm14, %v5064_v59, %v5328_v62 }
 0x32d   : > { %v5592_v3 = vpack.c.bf16 %v5460_v2, %v5460_v2  ;;  %v3578_v4 = vpop.f32.mrf.mxu2 }
 0x32e   : > { %v1564_v5 = vpop.f32.mrf.mxu0  ;;  %v3785_v8 = vadd.f32 %v3578_v4, %v2042_v63 }
 0x32f   : > { %v2046_v9 = vpop.f32.mrf.mxu1  ;;  %5725 = vst.msk [vmem:[%s7320_s6 + $0x144] sm:$0xf] %vm5643_vm5, %v5592_v3  ;;  %v2044_v22 = vadd.f32 %v2043_v57, %v1564_v5  ;;  %v8421_v3 = vld [vmem:[%s7205_s30 + $0x1a8] sm:$0xff] }
 0x330   : > { %v5065_v13 = vadd.f32 %v4858_v60, %v3785_v8  ;;  %v1041_v47 = vshrl.u32 %v8421_v3, 16 }
 0x332   : > { %v4860_v14 = vpop.f32.mrf.mxu3  ;;  %6239 = vmatmul.msk.bf16.gmra.mxu1 %vm1145_vm1, %v8343_v26  ;;  %vm5197_vm15 = vcmp.ge.f32.partialorder %v5065_v13, 0.0  ;;  %v5329_v17 = vmul.f32 0.2, %v5065_v13  ;;  %v1024_v26 = vsel %vm612_vm3, %v1019_v15, %v1023_v16  ;;  %v4410_v16 = vrot.slane %v8425_v6, 1 }
 0x334   : > { %v5461_v21 = vsel %vm5197_vm15, %v5065_v13, %v5329_v17  ;;  %v1037_v13 = vshll.u32 %v8421_v3, 16  ;;  %v3051_v17 = vshrl.u32 %v8402_v36, 16 }
 0x335   : > { %v5593_v23 = vpack.c.bf16 %v5461_v21, %v5461_v21  ;;  %v3580_v24 = vpop.f32.mrf.mxu2  ;;  %v1035_v21 = vor.u32 %v1033_v12, %v1031_v51  ;;  %v8477_v12 = vld [vmem:[%s7205_s30 + $0x1c8] sm:$0xff] }
 0x336   : > { %v1567_v25 = vpop.f32.mrf.mxu0  ;;  %v3786_v27 = vadd.f32 %v3580_v24, %v2044_v22  ;;  %v1039_v22 = vrot.slane %v1037_v13, 1  ;;  %v4411_v24 = vsel %vm4304_vm2, %v4408_v45, %v4410_v16  ;;  %v8480_v13 = vld [vmem:[%s7205_s30 + $0x1c8] sm:$0xff] }
 0x337   : > { %6911 = vmatmul.msk.bf16.gmra.mxu3 %vm1145_vm1, %v4407_v18  ;;  %v2048_v28 = vpop.f32.mrf.mxu1  ;;  %5726 = vst.msk [vmem:[%s7320_s6 + $0x148] sm:$0xf] %vm5643_vm5, %v5593_v23  ;;  %v2047_v34 = vadd.f32 %v2046_v9, %v1567_v25  ;;  %v3055_v18 = vshll.u32 %v8428_v7, 16  ;;  %v3053_v25 = vor.u32 %v3051_v17, %v3049_v55 }
 0x338   : > { %v5066_v30 = vadd.f32 %v4860_v14, %v3786_v27 }
 0x339   : > { %6169 = vmatmul.msk.bf16.gmra.mxu0 %vm1145_vm1, %v1024_v26  ;;  %v3057_v26 = vrot.slane %v3055_v18, 1 }
 0x33a   : > { %v4863_v31 = vpop.f32.mrf.mxu3  ;;  %vm5198_vm0 = vcmp.ge.f32.partialorder %v5066_v30, 0.0  ;;  %v5330_v33 = vmul.f32 0.2, %v5066_v30  ;;  %6575 = vmatmul.msk.bf16.gmra.mxu2 %vm1145_vm1, %v3042_v29 }
 0x33b   : > { %v3058_v35 = vsel %vm612_vm3, %v3053_v25, %v3057_v26 }
 0x33c   : > { %v5462_v37 = vsel %vm5198_vm0, %v5066_v30, %v5330_v33 }
 0x33d   : > { %v5594_v38 = vpack.c.bf16 %v5462_v37, %v5462_v37  ;;  %v3583_v39 = vpop.f32.mrf.mxu2 }
 0x33e   : > { %v1569_v40 = vpop.f32.mrf.mxu0  ;;  %v3787_v43 = vadd.f32 %v3583_v39, %v2047_v34 }
 0x33f   : > { %v2051_v44 = vpop.f32.mrf.mxu1  ;;  %5727 = vst.msk [vmem:[%s7320_s6 + $0x14c] sm:$0xf] %vm5643_vm5, %v5594_v38  ;;  %v2049_v57 = vadd.f32 %v2048_v28, %v1569_v40  ;;  %v8447_v38 = vld [vmem:[%s7205_s30 + $0x1b0] sm:$0xff] }
 0x340   : > { %v5067_v48 = vadd.f32 %v4863_v31, %v3787_v43  ;;  %v1049_v18 = vshrl.u32 %v8447_v38, 16 }
 0x342   : > { %v4865_v49 = vpop.f32.mrf.mxu3  ;;  %6240 = vmatmul.msk.bf16.gmra.mxu1 %vm1145_vm1, %v8369_v61  ;;  %vm5199_vm4 = vcmp.ge.f32.partialorder %v5067_v48, 0.0  ;;  %v5331_v52 = vmul.f32 0.2, %v5067_v48  ;;  %v1032_v61 = vsel %vm612_vm3, %v1027_v50, %v1031_v51  ;;  %v4412_v51 = vrot.slane %v8451_v41, 1 }
 0x344   : > { %v5463_v56 = vsel %vm5199_vm4, %v5067_v48, %v5331_v52  ;;  %v1045_v48 = vshll.u32 %v8447_v38, 16  ;;  %v3059_v52 = vshrl.u32 %v8428_v7, 16 }
 0x345   : > { %v5595_v58 = vpack.c.bf16 %v5463_v56, %v5463_v56  ;;  %v3585_v59 = vpop.f32.mrf.mxu2  ;;  %v1043_v56 = vor.u32 %v1041_v47, %v1039_v22  ;;  %v8503_v47 = vld [vmem:[%s7205_s30 + $0x1d0] sm:$0xff] }
 0x346   : > { %v1572_v60 = vpop.f32.mrf.mxu0  ;;  %v3788_v62 = vadd.f32 %v3585_v59, %v2049_v57  ;;  %v1047_v57 = vrot.slane %v1045_v48, 1  ;;  %v4413_v59 = vsel %vm4304_vm2, %v4410_v16, %v4412_v51  ;;  %v8506_v48 = vld [vmem:[%s7205_s30 + $0x1d0] sm:$0xff] }
 0x347   : > { %6912 = vmatmul.msk.bf16.gmra.mxu3 %vm1145_vm1, %v4409_v53  ;;  %v2053_v63 = vpop.f32.mrf.mxu1  ;;  %5728 = vst.msk [vmem:[%s7320_s6 + $0x150] sm:$0xf] %vm5643_vm5, %v5595_v58  ;;  %v2052_v5 = vadd.f32 %v2051_v44, %v1572_v60  ;;  %v3063_v53 = vshll.u32 %v8454_v42, 16  ;;  %v3061_v60 = vor.u32 %v3059_v52, %v3057_v26 }
 0x348   : > { %v5068_v1 = vadd.f32 %v4865_v49, %v3788_v62 }
 0x349   : > { %6170 = vmatmul.msk.bf16.gmra.mxu0 %vm1145_vm1, %v1032_v61  ;;  %v3065_v61 = vrot.slane %v3063_v53, 1 }
 0x34a   : > { %v4868_v2 = vpop.f32.mrf.mxu3  ;;  %vm5200_vm6 = vcmp.ge.f32.partialorder %v5068_v1, 0.0  ;;  %v5332_v4 = vmul.f32 0.2, %v5068_v1  ;;  %6576 = vmatmul.msk.bf16.gmra.mxu2 %vm1145_vm1, %v3050_v0 }
 0x34b   : > { %v3066_v6 = vsel %vm612_vm3, %v3061_v60, %v3065_v61 }
 0x34c   : > { %v5464_v8 = vsel %vm5200_vm6, %v5068_v1, %v5332_v4 }
 0x34d   : > { %v5596_v9 = vpack.c.bf16 %v5464_v8, %v5464_v8  ;;  %v3588_v10 = vpop.f32.mrf.mxu2 }
 0x34e   : > { %v1574_v11 = vpop.f32.mrf.mxu0  ;;  %v3789_v14 = vadd.f32 %v3588_v10, %v2052_v5 }
 0x34f   : > { %v2056_v15 = vpop.f32.mrf.mxu1  ;;  %5729 = vst.msk [vmem:[%s7320_s6 + $0x154] sm:$0xf] %vm5643_vm5, %v5596_v9  ;;  %v2054_v28 = vadd.f32 %v2053_v63, %v1574_v11  ;;  %v8473_v9 = vld [vmem:[%s7205_s30 + $0x1b8] sm:$0xff] }
 0x350   : > { %v5069_v19 = vadd.f32 %v4868_v2, %v3789_v14  ;;  %v1057_v53 = vshrl.u32 %v8473_v9, 16 }
 0x352   : > { %v4870_v20 = vpop.f32.mrf.mxu3  ;;  %6241 = vmatmul.msk.bf16.gmra.mxu1 %vm1145_vm1, %v8395_v32  ;;  %vm5201_vm7 = vcmp.ge.f32.partialorder %v5069_v19, 0.0  ;;  %v5333_v23 = vmul.f32 0.2, %v5069_v19  ;;  %v1040_v32 = vsel %vm612_vm3, %v1035_v21, %v1039_v22  ;;  %v4414_v22 = vrot.slane %v8477_v12, 1 }
 0x354   : > { %v5465_v27 = vsel %vm5201_vm7, %v5069_v19, %v5333_v23  ;;  %v1053_v19 = vshll.u32 %v8473_v9, 16  ;;  %v3067_v23 = vshrl.u32 %v8454_v42, 16 }
 0x355   : > { %v5597_v29 = vpack.c.bf16 %v5465_v27, %v5465_v27  ;;  %v3590_v30 = vpop.f32.mrf.mxu2  ;;  %v1051_v27 = vor.u32 %v1049_v18, %v1047_v57  ;;  %v8529_v18 = vld [vmem:[%s7205_s30 + $0x1d8] sm:$0xff] }
 0x356   : > { %v1577_v31 = vpop.f32.mrf.mxu0  ;;  %v3790_v33 = vadd.f32 %v3590_v30, %v2054_v28  ;;  %v1055_v28 = vrot.slane %v1053_v19, 1  ;;  %v4415_v30 = vsel %vm4304_vm2, %v4412_v51, %v4414_v22  ;;  %v8532_v19 = vld [vmem:[%s7205_s30 + $0x1d8] sm:$0xff] }
 0x357   : > { %6913 = vmatmul.msk.bf16.gmra.mxu3 %vm1145_vm1, %v4411_v24  ;;  %v2058_v34 = vpop.f32.mrf.mxu1  ;;  %5730 = vst.msk [vmem:[%s7320_s6 + $0x158] sm:$0xf] %vm5643_vm5, %v5597_v29  ;;  %v2057_v40 = vadd.f32 %v2056_v15, %v1577_v31  ;;  %v3071_v24 = vshll.u32 %v8480_v13, 16  ;;  %v3069_v31 = vor.u32 %v3067_v23, %v3065_v61 }
 0x358   : > { %v5070_v36 = vadd.f32 %v4870_v20, %v3790_v33 }
 0x359   : > { %6171 = vmatmul.msk.bf16.gmra.mxu0 %vm1145_vm1, %v1040_v32  ;;  %v3073_v32 = vrot.slane %v3071_v24, 1 }
 0x35a   : > { %v4873_v37 = vpop.f32.mrf.mxu3  ;;  %vm5202_vm8 = vcmp.ge.f32.partialorder %v5070_v36, 0.0  ;;  %v5334_v39 = vmul.f32 0.2, %v5070_v36  ;;  %6577 = vmatmul.msk.bf16.gmra.mxu2 %vm1145_vm1, %v3058_v35 }
 0x35b   : > { %v3074_v41 = vsel %vm612_vm3, %v3069_v31, %v3073_v32 }
 0x35c   : > { %v5466_v43 = vsel %vm5202_vm8, %v5070_v36, %v5334_v39 }
 0x35d   : > { %v5598_v44 = vpack.c.bf16 %v5466_v43, %v5466_v43  ;;  %v3593_v45 = vpop.f32.mrf.mxu2 }
 0x35e   : > { %v1579_v46 = vpop.f32.mrf.mxu0  ;;  %v3791_v49 = vadd.f32 %v3593_v45, %v2057_v40 }
 0x35f   : > { %v2061_v50 = vpop.f32.mrf.mxu1  ;;  %5731 = vst.msk [vmem:[%s7320_s6 + $0x15c] sm:$0xf] %vm5643_vm5, %v5598_v44  ;;  %v2059_v63 = vadd.f32 %v2058_v34, %v1579_v46  ;;  %v8499_v44 = vld [vmem:[%s7205_s30 + $0x1c0] sm:$0xff] }
 0x360   : > { %v5071_v54 = vadd.f32 %v4873_v37, %v3791_v49  ;;  %v1065_v24 = vshrl.u32 %v8499_v44, 16 }
 0x362   : > { %v4875_v55 = vpop.f32.mrf.mxu3  ;;  %6242 = vmatmul.msk.bf16.gmra.mxu1 %vm1145_vm1, %v8421_v3  ;;  %vm5203_vm9 = vcmp.ge.f32.partialorder %v5071_v54, 0.0  ;;  %v5335_v58 = vmul.f32 0.2, %v5071_v54  ;;  %v1048_v3 = vsel %vm612_vm3, %v1043_v56, %v1047_v57  ;;  %v4416_v57 = vrot.slane %v8503_v47, 1 }
 0x364   : > { %v5467_v62 = vsel %vm5203_vm9, %v5071_v54, %v5335_v58  ;;  %v1061_v54 = vshll.u32 %v8499_v44, 16  ;;  %v3075_v58 = vshrl.u32 %v8480_v13, 16 }
 0x365   : > { %v5599_v0 = vpack.c.bf16 %v5467_v62, %v5467_v62  ;;  %v3595_v1 = vpop.f32.mrf.mxu2  ;;  %v1059_v62 = vor.u32 %v1057_v53, %v1055_v28  ;;  %v8555_v53 = vld [vmem:[%s7205_s30 + $0x1e0] sm:$0xff] }
 0x366   : > { %v1582_v2 = vpop.f32.mrf.mxu0  ;;  %v3792_v4 = vadd.f32 %v3595_v1, %v2059_v63  ;;  %v1063_v63 = vrot.slane %v1061_v54, 1  ;;  %v4417_v1 = vsel %vm4304_vm2, %v4414_v22, %v4416_v57  ;;  %v8558_v54 = vld [vmem:[%s7205_s30 + $0x1e0] sm:$0xff] }
 0x367   : > { %6914 = vmatmul.msk.bf16.gmra.mxu3 %vm1145_vm1, %v4413_v59  ;;  %v2063_v5 = vpop.f32.mrf.mxu1  ;;  %5732 = vst.msk [vmem:[%s7320_s6 + $0x160] sm:$0xf] %vm5643_vm5, %v5599_v0  ;;  %v2062_v11 = vadd.f32 %v2061_v50, %v1582_v2  ;;  %v3079_v59 = vshll.u32 %v8506_v48, 16  ;;  %v3077_v2 = vor.u32 %v3075_v58, %v3073_v32 }
 0x368   : > { %v5072_v7 = vadd.f32 %v4875_v55, %v3792_v4 }
 0x369   : > { %6172 = vmatmul.msk.bf16.gmra.mxu0 %vm1145_vm1, %v1048_v3  ;;  %v3081_v3 = vrot.slane %v3079_v59, 1 }
 0x36a   : > { %v4878_v8 = vpop.f32.mrf.mxu3  ;;  %vm5204_vm10 = vcmp.ge.f32.partialorder %v5072_v7, 0.0  ;;  %v5336_v10 = vmul.f32 0.2, %v5072_v7  ;;  %6578 = vmatmul.msk.bf16.gmra.mxu2 %vm1145_vm1, %v3066_v6 }
 0x36b   : > { %v3082_v12 = vsel %vm612_vm3, %v3077_v2, %v3081_v3 }
 0x36c   : > { %v5468_v14 = vsel %vm5204_vm10, %v5072_v7, %v5336_v10 }
 0x36d   : > { %v5600_v15 = vpack.c.bf16 %v5468_v14, %v5468_v14  ;;  %v3598_v16 = vpop.f32.mrf.mxu2 }
 0x36e   : > { %v1584_v17 = vpop.f32.mrf.mxu0  ;;  %v3793_v20 = vadd.f32 %v3598_v16, %v2062_v11 }
 0x36f   : > { %v2066_v21 = vpop.f32.mrf.mxu1  ;;  %5733 = vst.msk [vmem:[%s7320_s6 + $0x164] sm:$0xf] %vm5643_vm5, %v5600_v15  ;;  %v2064_v34 = vadd.f32 %v2063_v5, %v1584_v17  ;;  %v8525_v15 = vld [vmem:[%s7205_s30 + $0x1c8] sm:$0xff] }
 0x370   : > { %v5073_v25 = vadd.f32 %v4878_v8, %v3793_v20  ;;  %v1073_v59 = vshrl.u32 %v8525_v15, 16 }
 0x372   : > { %v4880_v26 = vpop.f32.mrf.mxu3  ;;  %6243 = vmatmul.msk.bf16.gmra.mxu1 %vm1145_vm1, %v8447_v38  ;;  %vm5205_vm11 = vcmp.ge.f32.partialorder %v5073_v25, 0.0  ;;  %v5337_v29 = vmul.f32 0.2, %v5073_v25  ;;  %v1056_v38 = vsel %vm612_vm3, %v1051_v27, %v1055_v28  ;;  %v4418_v28 = vrot.slane %v8529_v18, 1 }
 0x374   : > { %v5469_v33 = vsel %vm5205_vm11, %v5073_v25, %v5337_v29  ;;  %v1069_v25 = vshll.u32 %v8525_v15, 16  ;;  %v3083_v29 = vshrl.u32 %v8506_v48, 16 }
 0x375   : > { %v5601_v35 = vpack.c.bf16 %v5469_v33, %v5469_v33  ;;  %v3600_v36 = vpop.f32.mrf.mxu2  ;;  %v1067_v33 = vor.u32 %v1065_v24, %v1063_v63  ;;  %v8581_v24 = vld [vmem:[%s7205_s30 + $0x1e8] sm:$0xff] }
 0x376   : > { %v1587_v37 = vpop.f32.mrf.mxu0  ;;  %v3794_v39 = vadd.f32 %v3600_v36, %v2064_v34  ;;  %v1071_v34 = vrot.slane %v1069_v25, 1  ;;  %v4419_v36 = vsel %vm4304_vm2, %v4416_v57, %v4418_v28  ;;  %v8584_v25 = vld [vmem:[%s7205_s30 + $0x1e8] sm:$0xff] }
 0x377   : > { %6915 = vmatmul.msk.bf16.gmra.mxu3 %vm1145_vm1, %v4415_v30  ;;  %v2068_v40 = vpop.f32.mrf.mxu1  ;;  %5734 = vst.msk [vmem:[%s7320_s6 + $0x168] sm:$0xf] %vm5643_vm5, %v5601_v35  ;;  %v2067_v46 = vadd.f32 %v2066_v21, %v1587_v37  ;;  %v3087_v30 = vshll.u32 %v8532_v19, 16  ;;  %v3085_v37 = vor.u32 %v3083_v29, %v3081_v3 }
 0x378   : > { %v5074_v42 = vadd.f32 %v4880_v26, %v3794_v39 }
 0x379   : > { %6173 = vmatmul.msk.bf16.gmra.mxu0 %vm1145_vm1, %v1056_v38  ;;  %v3089_v38 = vrot.slane %v3087_v30, 1 }
 0x37a   : > { %v4883_v43 = vpop.f32.mrf.mxu3  ;;  %vm5206_vm12 = vcmp.ge.f32.partialorder %v5074_v42, 0.0  ;;  %v5338_v45 = vmul.f32 0.2, %v5074_v42  ;;  %6579 = vmatmul.msk.bf16.gmra.mxu2 %vm1145_vm1, %v3074_v41 }
 0x37b   : > { %v3090_v47 = vsel %vm612_vm3, %v3085_v37, %v3089_v38 }
 0x37c   : > { %v5470_v49 = vsel %vm5206_vm12, %v5074_v42, %v5338_v45 }
 0x37d   : > { %v5602_v50 = vpack.c.bf16 %v5470_v49, %v5470_v49  ;;  %v3603_v51 = vpop.f32.mrf.mxu2 }
 0x37e   : > { %v1589_v52 = vpop.f32.mrf.mxu0  ;;  %v3795_v55 = vadd.f32 %v3603_v51, %v2067_v46 }
 0x37f   : > { %v2071_v56 = vpop.f32.mrf.mxu1  ;;  %5735 = vst.msk [vmem:[%s7320_s6 + $0x16c] sm:$0xf] %vm5643_vm5, %v5602_v50  ;;  %v2069_v5 = vadd.f32 %v2068_v40, %v1589_v52  ;;  %v8551_v50 = vld [vmem:[%s7205_s30 + $0x1d0] sm:$0xff] }
 0x380   : > { %v5075_v60 = vadd.f32 %v4883_v43, %v3795_v55  ;;  %v1081_v30 = vshrl.u32 %v8551_v50, 16 }
 0x382   : > { %v4885_v61 = vpop.f32.mrf.mxu3  ;;  %6244 = vmatmul.msk.bf16.gmra.mxu1 %vm1145_vm1, %v8473_v9  ;;  %vm5207_vm13 = vcmp.ge.f32.partialorder %v5075_v60, 0.0  ;;  %v5339_v0 = vmul.f32 0.2, %v5075_v60  ;;  %v1064_v9 = vsel %vm612_vm3, %v1059_v62, %v1063_v63  ;;  %v4420_v63 = vrot.slane %v8555_v53, 1 }
 0x384   : > { %v5471_v4 = vsel %vm5207_vm13, %v5075_v60, %v5339_v0  ;;  %v1077_v60 = vshll.u32 %v8551_v50, 16  ;;  %v3091_v0 = vshrl.u32 %v8532_v19, 16 }
 0x385   : > { %v5603_v6 = vpack.c.bf16 %v5471_v4, %v5471_v4  ;;  %v3605_v7 = vpop.f32.mrf.mxu2  ;;  %v1075_v4 = vor.u32 %v1073_v59, %v1071_v34  ;;  %v8607_v59 = vld [vmem:[%s7205_s30 + $0x1f0] sm:$0xff] }
 0x386   : > { %v1592_v8 = vpop.f32.mrf.mxu0  ;;  %v3796_v10 = vadd.f32 %v3605_v7, %v2069_v5  ;;  %v1079_v5 = vrot.slane %v1077_v60, 1  ;;  %v4421_v7 = vsel %vm4304_vm2, %v4418_v28, %v4420_v63  ;;  %v8610_v60 = vld [vmem:[%s7205_s30 + $0x1f0] sm:$0xff] }
 0x387   : > { %6916 = vmatmul.msk.bf16.gmra.mxu3 %vm1145_vm1, %v4417_v1  ;;  %v2073_v11 = vpop.f32.mrf.mxu1  ;;  %5736 = vst.msk [vmem:[%s7320_s6 + $0x170] sm:$0xf] %vm5643_vm5, %v5603_v6  ;;  %v2072_v17 = vadd.f32 %v2071_v56, %v1592_v8  ;;  %v3095_v1 = vshll.u32 %v8558_v54, 16  ;;  %v3093_v8 = vor.u32 %v3091_v0, %v3089_v38 }
 0x388   : > { %v5076_v13 = vadd.f32 %v4885_v61, %v3796_v10 }
 0x389   : > { %6174 = vmatmul.msk.bf16.gmra.mxu0 %vm1145_vm1, %v1064_v9  ;;  %v3097_v9 = vrot.slane %v3095_v1, 1 }
 0x38a   : > { %v4888_v14 = vpop.f32.mrf.mxu3  ;;  %vm5208_vm14 = vcmp.ge.f32.partialorder %v5076_v13, 0.0  ;;  %v5340_v16 = vmul.f32 0.2, %v5076_v13  ;;  %6580 = vmatmul.msk.bf16.gmra.mxu2 %vm1145_vm1, %v3082_v12 }
 0x38b   : > { %v3098_v18 = vsel %vm612_vm3, %v3093_v8, %v3097_v9 }
 0x38c   : > { %v5472_v20 = vsel %vm5208_vm14, %v5076_v13, %v5340_v16 }
 0x38d   : > { %v5604_v21 = vpack.c.bf16 %v5472_v20, %v5472_v20  ;;  %v3608_v22 = vpop.f32.mrf.mxu2 }
 0x38e   : > { %v1594_v23 = vpop.f32.mrf.mxu0  ;;  %v3797_v26 = vadd.f32 %v3608_v22, %v2072_v17 }
 0x38f   : > { %v2076_v27 = vpop.f32.mrf.mxu1  ;;  %5737 = vst.msk [vmem:[%s7320_s6 + $0x174] sm:$0xf] %vm5643_vm5, %v5604_v21  ;;  %v2074_v40 = vadd.f32 %v2073_v11, %v1594_v23  ;;  %v8577_v21 = vld [vmem:[%s7205_s30 + $0x1d8] sm:$0xff] }
 0x390   : > { %v5077_v31 = vadd.f32 %v4888_v14, %v3797_v26  ;;  %v1089_v1 = vshrl.u32 %v8577_v21, 16 }
 0x392   : > { %v4890_v32 = vpop.f32.mrf.mxu3  ;;  %6245 = vmatmul.msk.bf16.gmra.mxu1 %vm1145_vm1, %v8499_v44  ;;  %vm5209_vm15 = vcmp.ge.f32.partialorder %v5077_v31, 0.0  ;;  %v5341_v35 = vmul.f32 0.2, %v5077_v31  ;;  %v1072_v44 = vsel %vm612_vm3, %v1067_v33, %v1071_v34  ;;  %v4422_v34 = vrot.slane %v8581_v24, 1 }
 0x394   : > { %v5473_v39 = vsel %vm5209_vm15, %v5077_v31, %v5341_v35  ;;  %v1085_v31 = vshll.u32 %v8577_v21, 16  ;;  %v3099_v35 = vshrl.u32 %v8558_v54, 16 }
 0x395   : > { %v5605_v41 = vpack.c.bf16 %v5473_v39, %v5473_v39  ;;  %v3610_v42 = vpop.f32.mrf.mxu2  ;;  %v1083_v39 = vor.u32 %v1081_v30, %v1079_v5  ;;  %v8633_v30 = vld [vmem:[%s7205_s30 + $0x1f8] sm:$0xff] }
 0x396   : > { %v1597_v43 = vpop.f32.mrf.mxu0  ;;  %v3798_v45 = vadd.f32 %v3610_v42, %v2074_v40  ;;  %v1087_v40 = vrot.slane %v1085_v31, 1  ;;  %v4423_v42 = vsel %vm4304_vm2, %v4420_v63, %v4422_v34  ;;  %v8636_v31 = vld [vmem:[%s7205_s30 + $0x1f8] sm:$0xff] }
 0x397   : > { %6917 = vmatmul.msk.bf16.gmra.mxu3 %vm1145_vm1, %v4419_v36  ;;  %v2078_v46 = vpop.f32.mrf.mxu1  ;;  %5738 = vst.msk [vmem:[%s7320_s6 + $0x178] sm:$0xf] %vm5643_vm5, %v5605_v41  ;;  %v2077_v52 = vadd.f32 %v2076_v27, %v1597_v43  ;;  %v3103_v36 = vshll.u32 %v8584_v25, 16  ;;  %v3101_v43 = vor.u32 %v3099_v35, %v3097_v9 }
 0x398   : > { %v5078_v48 = vadd.f32 %v4890_v32, %v3798_v45 }
 0x399   : > { %6175 = vmatmul.msk.bf16.gmra.mxu0 %vm1145_vm1, %v1072_v44  ;;  %v3105_v44 = vrot.slane %v3103_v36, 1 }
 0x39a   : > { %v4893_v49 = vpop.f32.mrf.mxu3  ;;  %vm5210_vm0 = vcmp.ge.f32.partialorder %v5078_v48, 0.0  ;;  %v5342_v51 = vmul.f32 0.2, %v5078_v48  ;;  %6581 = vmatmul.msk.bf16.gmra.mxu2 %vm1145_vm1, %v3090_v47 }
 0x39b   : > { %v3106_v53 = vsel %vm612_vm3, %v3101_v43, %v3105_v44 }
 0x39c   : > { %v5474_v55 = vsel %vm5210_vm0, %v5078_v48, %v5342_v51 }
 0x39d   : > { %v5606_v56 = vpack.c.bf16 %v5474_v55, %v5474_v55  ;;  %v3613_v57 = vpop.f32.mrf.mxu2 }
 0x39e   : > { %v1599_v58 = vpop.f32.mrf.mxu0  ;;  %v3799_v61 = vadd.f32 %v3613_v57, %v2077_v52 }
 0x39f   : > { %v2081_v62 = vpop.f32.mrf.mxu1  ;;  %5739 = vst.msk [vmem:[%s7320_s6 + $0x17c] sm:$0xf] %vm5643_vm5, %v5606_v56  ;;  %v2079_v11 = vadd.f32 %v2078_v46, %v1599_v58  ;;  %v8603_v56 = vld [vmem:[%s7205_s30 + $0x1e0] sm:$0xff] }
 0x3a0   : > { %v5079_v2 = vadd.f32 %v4893_v49, %v3799_v61  ;;  %v1097_v36 = vshrl.u32 %v8603_v56, 16 }
 0x3a2   : > { %v4895_v3 = vpop.f32.mrf.mxu3  ;;  %6246 = vmatmul.msk.bf16.gmra.mxu1 %vm1145_vm1, %v8525_v15  ;;  %vm5211_vm4 = vcmp.ge.f32.partialorder %v5079_v2, 0.0  ;;  %v5343_v6 = vmul.f32 0.2, %v5079_v2  ;;  %v1080_v15 = vsel %vm612_vm3, %v1075_v4, %v1079_v5  ;;  %v4424_v5 = vrot.slane %v8607_v59, 1 }
 0x3a4   : > { %v5475_v10 = vsel %vm5211_vm4, %v5079_v2, %v5343_v6  ;;  %v1093_v2 = vshll.u32 %v8603_v56, 16  ;;  %v3107_v6 = vshrl.u32 %v8584_v25, 16 }
 0x3a5   : > { %v5607_v12 = vpack.c.bf16 %v5475_v10, %v5475_v10  ;;  %v3615_v13 = vpop.f32.mrf.mxu2  ;;  %v1091_v10 = vor.u32 %v1089_v1, %v1087_v40  ;;  %v8659_v1 = vld [vmem:[%s7205_s30 + $0x200] sm:$0xff] }
 0x3a6   : > { %v1602_v14 = vpop.f32.mrf.mxu0  ;;  %v3800_v16 = vadd.f32 %v3615_v13, %v2079_v11  ;;  %v1095_v11 = vrot.slane %v1093_v2, 1  ;;  %v4425_v13 = vsel %vm4304_vm2, %v4422_v34, %v4424_v5  ;;  %v8662_v2 = vld [vmem:[%s7205_s30 + $0x200] sm:$0xff] }
 0x3a7   : > { %6918 = vmatmul.msk.bf16.gmra.mxu3 %vm1145_vm1, %v4421_v7  ;;  %v2083_v17 = vpop.f32.mrf.mxu1  ;;  %5740 = vst.msk [vmem:[%s7320_s6 + $0x180] sm:$0xf] %vm5643_vm5, %v5607_v12  ;;  %v2082_v23 = vadd.f32 %v2081_v62, %v1602_v14  ;;  %v3111_v7 = vshll.u32 %v8610_v60, 16  ;;  %v3109_v14 = vor.u32 %v3107_v6, %v3105_v44 }
 0x3a8   : > { %v5080_v19 = vadd.f32 %v4895_v3, %v3800_v16 }
 0x3a9   : > { %6176 = vmatmul.msk.bf16.gmra.mxu0 %vm1145_vm1, %v1080_v15  ;;  %v3113_v15 = vrot.slane %v3111_v7, 1 }
 0x3aa   : > { %v4898_v20 = vpop.f32.mrf.mxu3  ;;  %vm5212_vm6 = vcmp.ge.f32.partialorder %v5080_v19, 0.0  ;;  %v5344_v22 = vmul.f32 0.2, %v5080_v19  ;;  %6582 = vmatmul.msk.bf16.gmra.mxu2 %vm1145_vm1, %v3098_v18 }
 0x3ab   : > { %v3114_v24 = vsel %vm612_vm3, %v3109_v14, %v3113_v15 }
 0x3ac   : > { %v5476_v26 = vsel %vm5212_vm6, %v5080_v19, %v5344_v22 }
 0x3ad   : > { %v5608_v27 = vpack.c.bf16 %v5476_v26, %v5476_v26  ;;  %v3618_v28 = vpop.f32.mrf.mxu2 }
 0x3ae   : > { %v1604_v29 = vpop.f32.mrf.mxu0  ;;  %v3801_v32 = vadd.f32 %v3618_v28, %v2082_v23 }
 0x3af   : > { %v2086_v33 = vpop.f32.mrf.mxu1  ;;  %5741 = vst.msk [vmem:[%s7320_s6 + $0x184] sm:$0xf] %vm5643_vm5, %v5608_v27  ;;  %v2084_v46 = vadd.f32 %v2083_v17, %v1604_v29  ;;  %v8629_v27 = vld [vmem:[%s7205_s30 + $0x1e8] sm:$0xff] }
 0x3b0   : > { %v5081_v37 = vadd.f32 %v4898_v20, %v3801_v32  ;;  %v1105_v7 = vshrl.u32 %v8629_v27, 16 }
 0x3b2   : > { %v4900_v38 = vpop.f32.mrf.mxu3  ;;  %6247 = vmatmul.msk.bf16.gmra.mxu1 %vm1145_vm1, %v8551_v50  ;;  %vm5213_vm7 = vcmp.ge.f32.partialorder %v5081_v37, 0.0  ;;  %v5345_v41 = vmul.f32 0.2, %v5081_v37  ;;  %v1088_v50 = vsel %vm612_vm3, %v1083_v39, %v1087_v40  ;;  %v4426_v40 = vrot.slane %v8633_v30, 1 }
 0x3b4   : > { %v5477_v45 = vsel %vm5213_vm7, %v5081_v37, %v5345_v41  ;;  %v1101_v37 = vshll.u32 %v8629_v27, 16  ;;  %v3115_v41 = vshrl.u32 %v8610_v60, 16 }
 0x3b5   : > { %v5609_v47 = vpack.c.bf16 %v5477_v45, %v5477_v45  ;;  %v3620_v48 = vpop.f32.mrf.mxu2  ;;  %v1099_v45 = vor.u32 %v1097_v36, %v1095_v11  ;;  %v8685_v36 = vld [vmem:[%s7205_s30 + $0x208] sm:$0xff] }
 0x3b6   : > { %v1607_v49 = vpop.f32.mrf.mxu0  ;;  %v3802_v51 = vadd.f32 %v3620_v48, %v2084_v46  ;;  %v1103_v46 = vrot.slane %v1101_v37, 1  ;;  %v4427_v48 = vsel %vm4304_vm2, %v4424_v5, %v4426_v40  ;;  %v8688_v37 = vld [vmem:[%s7205_s30 + $0x208] sm:$0xff] }
 0x3b7   : > { %6919 = vmatmul.msk.bf16.gmra.mxu3 %vm1145_vm1, %v4423_v42  ;;  %v2088_v52 = vpop.f32.mrf.mxu1  ;;  %5742 = vst.msk [vmem:[%s7320_s6 + $0x188] sm:$0xf] %vm5643_vm5, %v5609_v47  ;;  %v2087_v58 = vadd.f32 %v2086_v33, %v1607_v49  ;;  %v3119_v42 = vshll.u32 %v8636_v31, 16  ;;  %v3117_v49 = vor.u32 %v3115_v41, %v3113_v15 }
 0x3b8   : > { %v5082_v54 = vadd.f32 %v4900_v38, %v3802_v51 }
 0x3b9   : > { %6177 = vmatmul.msk.bf16.gmra.mxu0 %vm1145_vm1, %v1088_v50  ;;  %v3121_v50 = vrot.slane %v3119_v42, 1 }
 0x3ba   : > { %v4903_v55 = vpop.f32.mrf.mxu3  ;;  %vm5214_vm8 = vcmp.ge.f32.partialorder %v5082_v54, 0.0  ;;  %v5346_v57 = vmul.f32 0.2, %v5082_v54  ;;  %6583 = vmatmul.msk.bf16.gmra.mxu2 %vm1145_vm1, %v3106_v53 }
 0x3bb   : > { %v3122_v59 = vsel %vm612_vm3, %v3117_v49, %v3121_v50 }
 0x3bc   : > { %v5478_v61 = vsel %vm5214_vm8, %v5082_v54, %v5346_v57 }
 0x3bd   : > { %v5610_v62 = vpack.c.bf16 %v5478_v61, %v5478_v61  ;;  %v3623_v63 = vpop.f32.mrf.mxu2 }
 0x3be   : > { %v1609_v0 = vpop.f32.mrf.mxu0  ;;  %v3803_v3 = vadd.f32 %v3623_v63, %v2087_v58 }
 0x3bf   : > { %v2091_v4 = vpop.f32.mrf.mxu1  ;;  %5743 = vst.msk [vmem:[%s7320_s6 + $0x18c] sm:$0xf] %vm5643_vm5, %v5610_v62  ;;  %v2089_v17 = vadd.f32 %v2088_v52, %v1609_v0  ;;  %v8655_v62 = vld [vmem:[%s7205_s30 + $0x1f0] sm:$0xff] }
 0x3c0   : > { %v5083_v8 = vadd.f32 %v4903_v55, %v3803_v3  ;;  %v1113_v42 = vshrl.u32 %v8655_v62, 16 }
 0x3c2   : > { %v4905_v9 = vpop.f32.mrf.mxu3  ;;  %6248 = vmatmul.msk.bf16.gmra.mxu1 %vm1145_vm1, %v8577_v21  ;;  %vm5215_vm9 = vcmp.ge.f32.partialorder %v5083_v8, 0.0  ;;  %v5347_v12 = vmul.f32 0.2, %v5083_v8  ;;  %v1096_v21 = vsel %vm612_vm3, %v1091_v10, %v1095_v11  ;;  %v4428_v11 = vrot.slane %v8659_v1, 1 }
 0x3c4   : > { %v5479_v16 = vsel %vm5215_vm9, %v5083_v8, %v5347_v12  ;;  %v1109_v8 = vshll.u32 %v8655_v62, 16  ;;  %v3123_v12 = vshrl.u32 %v8636_v31, 16 }
 0x3c5   : > { %v5611_v18 = vpack.c.bf16 %v5479_v16, %v5479_v16  ;;  %v3625_v19 = vpop.f32.mrf.mxu2  ;;  %v1107_v16 = vor.u32 %v1105_v7, %v1103_v46  ;;  %v8711_v7 = vld [vmem:[%s7205_s30 + $0x210] sm:$0xff] }
 0x3c6   : > { %v1612_v20 = vpop.f32.mrf.mxu0  ;;  %v3804_v22 = vadd.f32 %v3625_v19, %v2089_v17  ;;  %v1111_v17 = vrot.slane %v1109_v8, 1  ;;  %v4429_v19 = vsel %vm4304_vm2, %v4426_v40, %v4428_v11  ;;  %v8714_v8 = vld [vmem:[%s7205_s30 + $0x210] sm:$0xff] }
 0x3c7   : > { %6920 = vmatmul.msk.bf16.gmra.mxu3 %vm1145_vm1, %v4425_v13  ;;  %v2093_v23 = vpop.f32.mrf.mxu1  ;;  %5744 = vst.msk [vmem:[%s7320_s6 + $0x190] sm:$0xf] %vm5643_vm5, %v5611_v18  ;;  %v2092_v29 = vadd.f32 %v2091_v4, %v1612_v20  ;;  %v3127_v13 = vshll.u32 %v8662_v2, 16  ;;  %v3125_v20 = vor.u32 %v3123_v12, %v3121_v50 }
 0x3c8   : > { %v5084_v25 = vadd.f32 %v4905_v9, %v3804_v22 }
 0x3c9   : > { %6178 = vmatmul.msk.bf16.gmra.mxu0 %vm1145_vm1, %v1096_v21  ;;  %v3129_v21 = vrot.slane %v3127_v13, 1 }
 0x3ca   : > { %v4908_v26 = vpop.f32.mrf.mxu3  ;;  %vm5216_vm10 = vcmp.ge.f32.partialorder %v5084_v25, 0.0  ;;  %v5348_v28 = vmul.f32 0.2, %v5084_v25  ;;  %6584 = vmatmul.msk.bf16.gmra.mxu2 %vm1145_vm1, %v3114_v24 }
 0x3cb   : > { %v3130_v30 = vsel %vm612_vm3, %v3125_v20, %v3129_v21 }
 0x3cc   : > { %v5480_v32 = vsel %vm5216_vm10, %v5084_v25, %v5348_v28 }
 0x3cd   : > { %v5612_v33 = vpack.c.bf16 %v5480_v32, %v5480_v32  ;;  %v3628_v34 = vpop.f32.mrf.mxu2 }
 0x3ce   : > { %v1614_v35 = vpop.f32.mrf.mxu0  ;;  %v3805_v38 = vadd.f32 %v3628_v34, %v2092_v29 }
 0x3cf   : > { %v2096_v39 = vpop.f32.mrf.mxu1  ;;  %5745 = vst.msk [vmem:[%s7320_s6 + $0x194] sm:$0xf] %vm5643_vm5, %v5612_v33  ;;  %v2094_v52 = vadd.f32 %v2093_v23, %v1614_v35  ;;  %v8681_v33 = vld [vmem:[%s7205_s30 + $0x1f8] sm:$0xff] }
 0x3d0   : > { %v5085_v43 = vadd.f32 %v4908_v26, %v3805_v38  ;;  %v1121_v13 = vshrl.u32 %v8681_v33, 16 }
 0x3d2   : > { %v4910_v44 = vpop.f32.mrf.mxu3  ;;  %6249 = vmatmul.msk.bf16.gmra.mxu1 %vm1145_vm1, %v8603_v56  ;;  %vm5217_vm11 = vcmp.ge.f32.partialorder %v5085_v43, 0.0  ;;  %v5349_v47 = vmul.f32 0.2, %v5085_v43  ;;  %v1104_v56 = vsel %vm612_vm3, %v1099_v45, %v1103_v46  ;;  %v4430_v46 = vrot.slane %v8685_v36, 1 }
 0x3d4   : > { %v5481_v51 = vsel %vm5217_vm11, %v5085_v43, %v5349_v47  ;;  %v1117_v43 = vshll.u32 %v8681_v33, 16  ;;  %v3131_v47 = vshrl.u32 %v8662_v2, 16 }
 0x3d5   : > { %v5613_v53 = vpack.c.bf16 %v5481_v51, %v5481_v51  ;;  %v3630_v54 = vpop.f32.mrf.mxu2  ;;  %v1115_v51 = vor.u32 %v1113_v42, %v1111_v17  ;;  %v7129_v42 = vld [vmem:[%s7205_s30 + $0x218] sm:$0xff] }
 0x3d6   : > { %v1617_v55 = vpop.f32.mrf.mxu0  ;;  %v3806_v57 = vadd.f32 %v3630_v54, %v2094_v52  ;;  %v1119_v52 = vrot.slane %v1117_v43, 1  ;;  %v4431_v54 = vsel %vm4304_vm2, %v4428_v11, %v4430_v46  ;;  %v8738_v43 = vld [vmem:[%s7205_s30 + $0x218] sm:$0xff] }
 0x3d7   : > { %6921 = vmatmul.msk.bf16.gmra.mxu3 %vm1145_vm1, %v4427_v48  ;;  %v2098_v58 = vpop.f32.mrf.mxu1  ;;  %5746 = vst.msk [vmem:[%s7320_s6 + $0x198] sm:$0xf] %vm5643_vm5, %v5613_v53  ;;  %v2097_v0 = vadd.f32 %v2096_v39, %v1617_v55  ;;  %v3135_v48 = vshll.u32 %v8688_v37, 16  ;;  %v3133_v55 = vor.u32 %v3131_v47, %v3129_v21 }
 0x3d8   : > { %v5086_v60 = vadd.f32 %v4910_v44, %v3806_v57 }
 0x3d9   : > { %6179 = vmatmul.msk.bf16.gmra.mxu0 %vm1145_vm1, %v1104_v56  ;;  %v3137_v56 = vrot.slane %v3135_v48, 1 }
 0x3da   : > { %v4913_v61 = vpop.f32.mrf.mxu3  ;;  %vm5218_vm12 = vcmp.ge.f32.partialorder %v5086_v60, 0.0  ;;  %v5350_v63 = vmul.f32 0.2, %v5086_v60  ;;  %6585 = vmatmul.msk.bf16.gmra.mxu2 %vm1145_vm1, %v3122_v59 }
 0x3db   : > { %v3138_v1 = vsel %vm612_vm3, %v3133_v55, %v3137_v56 }
 0x3dc   : > { %v5482_v3 = vsel %vm5218_vm12, %v5086_v60, %v5350_v63 }
 0x3dd   : > { %v5614_v4 = vpack.c.bf16 %v5482_v3, %v5482_v3  ;;  %v3633_v5 = vpop.f32.mrf.mxu2 }
 0x3de   : > { %v1619_v6 = vpop.f32.mrf.mxu0  ;;  %v3807_v9 = vadd.f32 %v3633_v5, %v2097_v0 }
 0x3df   : > { %v2101_v10 = vpop.f32.mrf.mxu1  ;;  %5747 = vst.msk [vmem:[%s7320_s6 + $0x19c] sm:$0xf] %vm5643_vm5, %v5614_v4  ;;  %v2099_v23 = vadd.f32 %v2098_v58, %v1619_v6  ;;  %v8707_v4 = vld [vmem:[%s7205_s30 + $0x200] sm:$0xff] }
 0x3e0   : > { %v5087_v14 = vadd.f32 %v4913_v61, %v3807_v9  ;;  %v1129_v48 = vshrl.u32 %v8707_v4, 16 }
 0x3e2   : > { %v4915_v15 = vpop.f32.mrf.mxu3  ;;  %6250 = vmatmul.msk.bf16.gmra.mxu1 %vm1145_vm1, %v8629_v27  ;;  %vm5219_vm13 = vcmp.ge.f32.partialorder %v5087_v14, 0.0  ;;  %v5351_v18 = vmul.f32 0.2, %v5087_v14  ;;  %v1112_v27 = vsel %vm612_vm3, %v1107_v16, %v1111_v17  ;;  %v4432_v17 = vrot.slane %v8711_v7, 1 }
 0x3e4   : > { %v5483_v22 = vsel %vm5219_vm13, %v5087_v14, %v5351_v18  ;;  %v1125_v14 = vshll.u32 %v8707_v4, 16  ;;  %v3139_v18 = vshrl.u32 %v8688_v37, 16 }
 0x3e5   : > { %v5615_v24 = vpack.c.bf16 %v5483_v22, %v5483_v22  ;;  %v3635_v25 = vpop.f32.mrf.mxu2  ;;  %v1123_v22 = vor.u32 %v1121_v13, %v1119_v52 }
 0x3e6   : > { %v1622_v26 = vpop.f32.mrf.mxu0  ;;  %v3808_v28 = vadd.f32 %v3635_v25, %v2099_v23  ;;  %v1127_v23 = vrot.slane %v1125_v14, 1  ;;  %v4433_v25 = vsel %vm4304_vm2, %v4430_v46, %v4432_v17 }
 0x3e7   : > { %6922 = vmatmul.msk.bf16.gmra.mxu3 %vm1145_vm1, %v4429_v19  ;;  %v2103_v29 = vpop.f32.mrf.mxu1  ;;  %5748 = vst.msk [vmem:[%s7320_s6 + $0x1a0] sm:$0xf] %vm5643_vm5, %v5615_v24  ;;  %v2102_v35 = vadd.f32 %v2101_v10, %v1622_v26  ;;  %v3143_v19 = vshll.u32 %v8714_v8, 16  ;;  %v3141_v26 = vor.u32 %v3139_v18, %v3137_v56 }
 0x3e8   : > { %v5088_v31 = vadd.f32 %v4915_v15, %v3808_v28 }
 0x3e9   : > { %6180 = vmatmul.msk.bf16.gmra.mxu0 %vm1145_vm1, %v1112_v27  ;;  %v3145_v27 = vrot.slane %v3143_v19, 1 }
 0x3ea   : > { %v4918_v32 = vpop.f32.mrf.mxu3  ;;  %vm5220_vm14 = vcmp.ge.f32.partialorder %v5088_v31, 0.0  ;;  %v5352_v34 = vmul.f32 0.2, %v5088_v31  ;;  %6586 = vmatmul.msk.bf16.gmra.mxu2 %vm1145_vm1, %v3130_v30 }
 0x3eb   : > { %v3146_v36 = vsel %vm612_vm3, %v3141_v26, %v3145_v27 }
 0x3ec   : > { %v5484_v38 = vsel %vm5220_vm14, %v5088_v31, %v5352_v34 }
 0x3ed   : > { %v5616_v39 = vpack.c.bf16 %v5484_v38, %v5484_v38  ;;  %v3638_v40 = vpop.f32.mrf.mxu2 }
 0x3ee   : > { %v1624_v41 = vpop.f32.mrf.mxu0  ;;  %v3809_v44 = vadd.f32 %v3638_v40, %v2102_v35 }
 0x3ef   : > { %v2106_v45 = vpop.f32.mrf.mxu1  ;;  %5749 = vst.msk [vmem:[%s7320_s6 + $0x1a4] sm:$0xf] %vm5643_vm5, %v5616_v39  ;;  %v2104_v58 = vadd.f32 %v2103_v29, %v1624_v41  ;;  %v8733_v39 = vld [vmem:[%s7205_s30 + $0x208] sm:$0xff] }
 0x3f0   : > { %v5089_v49 = vadd.f32 %v4918_v32, %v3809_v44 }
 0x3f2   : > { %v4920_v50 = vpop.f32.mrf.mxu3  ;;  %6251 = vmatmul.msk.bf16.gmra.mxu1 %vm1145_vm1, %v8655_v62  ;;  %vm5221_vm15 = vcmp.ge.f32.partialorder %v5089_v49, 0.0  ;;  %v5353_v53 = vmul.f32 0.2, %v5089_v49  ;;  %v1120_v62 = vsel %vm612_vm3, %v1115_v51, %v1119_v52  ;;  %v4434_v52 = vrot.slane %v7129_v42, 1 }
 0x3f4   : > { %v5485_v57 = vsel %vm5221_vm15, %v5089_v49, %v5353_v53  ;;  %v1133_v49 = vshll.u32 %v8733_v39, 16  ;;  %v3147_v53 = vshrl.u32 %v8714_v8, 16 }
 0x3f5   : > { %v5617_v59 = vpack.c.bf16 %v5485_v57, %v5485_v57  ;;  %v3640_v60 = vpop.f32.mrf.mxu2  ;;  %v1131_v57 = vor.u32 %v1129_v48, %v1127_v23 }
 0x3f6   : > { %v1627_v61 = vpop.f32.mrf.mxu0  ;;  %v3810_v63 = vadd.f32 %v3640_v60, %v2104_v58  ;;  %v1135_v58 = vrot.slane %v1133_v49, 1  ;;  %v4435_v60 = vsel %vm4304_vm2, %v4432_v17, %v4434_v52 }
 0x3f7   : > { %6923 = vmatmul.msk.bf16.gmra.mxu3 %vm1145_vm1, %v4431_v54  ;;  %v2108_v0 = vpop.f32.mrf.mxu1  ;;  %5750 = vst.msk [vmem:[%s7320_s6 + $0x1a8] sm:$0xf] %vm5643_vm5, %v5617_v59  ;;  %v2107_v6 = vadd.f32 %v2106_v45, %v1627_v61  ;;  %v3151_v54 = vshll.u32 %v8738_v43, 16  ;;  %v3149_v61 = vor.u32 %v3147_v53, %v3145_v27  ;;  %v3155_v27 = vshrl.u32 %v8738_v43, 16 }
 0x3f8   : > { %v5090_v2 = vadd.f32 %v4920_v50, %v3810_v63  ;;  %v3967_v63 = vld [vmem:[%s7205_s30 + $0x220] sm:$0x1] }
 0x3f9   : > { %6181 = vmatmul.msk.bf16.gmra.mxu0 %vm1145_vm1, %v1120_v62  ;;  %v3153_v62 = vrot.slane %v3151_v54, 1  ;;  %v4236_v8 = vunpack.c.l.b16 %v3967_v63 }
 0x3fa   : > { %v4923_v3 = vpop.f32.mrf.mxu3  ;;  %vm5222_vm0 = vcmp.ge.f32.partialorder %v5090_v2, 0.0  ;;  %v5354_v5 = vmul.f32 0.2, %v5090_v2  ;;  %6587 = vmatmul.msk.bf16.gmra.mxu2 %vm1145_vm1, %v3138_v1 }
 0x3fb   : > { %v4303_v14 = vpack.c.b16 %v4236_v8, %v4236_v8 }
 0x3fc   : > { %v5486_v9 = vsel %vm5222_vm0, %v5090_v2, %v5354_v5 }
 0x3fd   : > { %v5618_v10 = vpack.c.bf16 %v5486_v9, %v5486_v9  ;;  %v3643_v11 = vpop.f32.mrf.mxu2  ;;  %v3154_v9 = vsel %vm612_vm3, %v3149_v61, %v3153_v62 }
 0x3fe   : > { %v1629_v12 = vpop.f32.mrf.mxu0  ;;  %v3811_v15 = vadd.f32 %v3643_v11, %v2107_v6  ;;  %v1136_v6 = vsel %vm612_vm3, %v1131_v57, %v1135_v58 }
 0x3ff   : > { %v2111_v16 = vpop.f32.mrf.mxu1  ;;  %5751 = vst.msk [vmem:[%s7320_s6 + $0x1ac] sm:$0xf] %vm5643_vm5, %v5618_v10  ;;  %v2109_v29 = vadd.f32 %v2108_v0, %v1629_v12 }
 0x400   : > { %v5091_v20 = vadd.f32 %v4923_v3, %v3811_v15 }
 0x402   : > { %v4925_v21 = vpop.f32.mrf.mxu3  ;;  %6252 = vmatmul.msk.bf16.gmra.mxu1 %vm1145_vm1, %v8681_v33  ;;  %vm5223_vm4 = vcmp.ge.f32.partialorder %v5091_v20, 0.0  ;;  %v5355_v24 = vmul.f32 0.2, %v5091_v20  ;;  %v1128_v33 = vsel %vm612_vm3, %v1123_v22, %v1127_v23 }
 0x404   : > { %v5487_v28 = vsel %vm5223_vm4, %v5091_v20, %v5355_v24  ;;  %v1137_v24 = vshrl.u32 %v8733_v39, 16 }
 0x405   : > { %v5619_v30 = vpack.c.bf16 %v5487_v28, %v5487_v28  ;;  %v3645_v31 = vpop.f32.mrf.mxu2 }
 0x406   : > { %v1632_v32 = vpop.f32.mrf.mxu0  ;;  %v3812_v34 = vadd.f32 %v3645_v31, %v2109_v29 }
 0x407   : > { %6924 = vmatmul.msk.bf16.gmra.mxu3 %vm1145_vm1, %v4433_v25  ;;  %v2113_v35 = vpop.f32.mrf.mxu1  ;;  %5752 = vst.msk [vmem:[%s7320_s6 + $0x1b0] sm:$0xf] %vm5643_vm5, %v5619_v30  ;;  %v2112_v41 = vadd.f32 %v2111_v16, %v1632_v32  ;;  %v1139_v30 = vor.u32 %v1137_v24, %v1135_v58 }
 0x408   : > { %v5092_v37 = vadd.f32 %v4925_v21, %v3812_v34  ;;  %v4436_v21 = vrot.slane %v4303_v14, 1 }
 0x409   : > { %6182 = vmatmul.msk.bf16.gmra.mxu0 %vm1145_vm1, %v1128_v33 }
 0x40a   : > { %v4928_v38 = vpop.f32.mrf.mxu3  ;;  %vm5224_vm6 = vcmp.ge.f32.partialorder %v5092_v37, 0.0  ;;  %v5356_v40 = vmul.f32 0.2, %v5092_v37  ;;  %6588 = vmatmul.msk.bf16.gmra.mxu2 %vm1145_vm1, %v3146_v36  ;;  %v4437_v26 = vsel %vm4304_vm2, %v4434_v52, %v4436_v21 }
 0x40c   : > { %v5488_v44 = vsel %vm5224_vm6, %v5092_v37, %v5356_v40 }
 0x40d   : > { %v5620_v45 = vpack.c.bf16 %v5488_v44, %v5488_v44  ;;  %v3648_v46 = vpop.f32.mrf.mxu2 }
 0x40e   : > { %v1634_v47 = vpop.f32.mrf.mxu0  ;;  %v3813_v50 = vadd.f32 %v3648_v46, %v2112_v41 }
 0x40f   : > { %v2116_v51 = vpop.f32.mrf.mxu1  ;;  %5753 = vst.msk [vmem:[%s7320_s6 + $0x1b4] sm:$0xf] %vm5643_vm5, %v5620_v45  ;;  %v2114_v1 = vadd.f32 %v2113_v35, %v1634_v47  ;;  %v3157_v35 = vor.u32 %v3155_v27, %v3153_v62 }
 0x410   : > { %v5093_v55 = vadd.f32 %v4928_v38, %v3813_v50 }
 0x412   : > { %v4930_v56 = vpop.f32.mrf.mxu3  ;;  %6253 = vmatmul.msk.bf16.gmra.mxu1 %vm1145_vm1, %v8707_v4  ;;  %vm5225_vm7 = vcmp.ge.f32.partialorder %v5093_v55, 0.0  ;;  %v5357_v59 = vmul.f32 0.2, %v5093_v55 }
 0x414   : > { %v5489_v0 = vsel %vm5225_vm7, %v5093_v55, %v5357_v59 }
 0x415   : > { %v5621_v2 = vpack.c.bf16 %v5489_v0, %v5489_v0  ;;  %v3650_v3 = vpop.f32.mrf.mxu2 }
 0x416   : > { %v1637_v5 = vpop.f32.mrf.mxu0  ;;  %v3814_v4 = vadd.f32 %v3650_v3, %v2114_v1 }
 0x417   : > { %6925 = vmatmul.msk.bf16.gmra.mxu3 %vm1145_vm1, %v4435_v60  ;;  %v2118_v7 = vpop.f32.mrf.mxu1  ;;  %5754 = vst.msk [vmem:[%s7320_s6 + $0x1b8] sm:$0xf] %vm5643_vm5, %v5621_v2  ;;  %v2117_v13 = vadd.f32 %v2116_v51, %v1637_v5 }
 0x418   : > { %v5094_v10 = vadd.f32 %v4930_v56, %v3814_v4 }
 0x419   : > { %6183 = vmatmul.msk.bf16.gmra.mxu0 %vm1145_vm1, %v1136_v6 }
 0x41a   : > { %v4933_v11 = vpop.f32.mrf.mxu3  ;;  %vm5226_vm8 = vcmp.ge.f32.partialorder %v5094_v10, 0.0  ;;  %v5358_v12 = vmul.f32 0.2, %v5094_v10  ;;  %6589 = vmatmul.msk.bf16.gmra.mxu2 %vm1145_vm1, %v3154_v9 }
 0x41c   : > { %v5490_v15 = vsel %vm5226_vm8, %v5094_v10, %v5358_v12 }
 0x41d   : > { %v5622_v16 = vpack.c.bf16 %v5490_v15, %v5490_v15  ;;  %v3653_v17 = vpop.f32.mrf.mxu2 }
 0x41e   : > { %v1639_v18 = vpop.f32.mrf.mxu0  ;;  %v3815_v19 = vadd.f32 %v3653_v17, %v2117_v13 }
 0x41f   : > { %v2121_v20 = vpop.f32.mrf.mxu1  ;;  %5755 = vst.msk [vmem:[%s7320_s6 + $0x1bc] sm:$0xf] %vm5643_vm5, %v5622_v16  ;;  %v2119_v29 = vadd.f32 %v2118_v7, %v1639_v18 }
 0x420   : > { %v5095_v22 = vadd.f32 %v4933_v11, %v3815_v19 }
 0x422   : > { %v4935_v23 = vpop.f32.mrf.mxu3  ;;  %6254 = vmatmul.msk.bf16.gmra.mxu1 %vm1145_vm1, %v8733_v39  ;;  %vm5227_vm3 = vcmp.ge.f32.partialorder %v5095_v22, 0.0  ;;  %v5359_v25 = vmul.f32 0.2, %v5095_v22 }
 0x424   : > { %v5491_v28 = vsel %vm5227_vm3, %v5095_v22, %v5359_v25 }
 0x425   : > { %v5623_v31 = vpack.c.bf16 %v5491_v28, %v5491_v28  ;;  %v3655_v32 = vpop.f32.mrf.mxu2 }
 0x426   : > { %v1642_v33 = vpop.f32.mrf.mxu0  ;;  %v3816_v34 = vadd.f32 %v3655_v32, %v2119_v29 }
 0x427   : > { %6926 = vmatmul.msk.bf16.gmra.mxu3 %vm1145_vm1, %v4437_v26  ;;  %v2123_v36 = vpop.f32.mrf.mxu1  ;;  %5756 = vst.msk [vmem:[%s7320_s6 + $0x1c0] sm:$0xf] %vm5643_vm5, %v5623_v31  ;;  %v2122_v40 = vadd.f32 %v2121_v20, %v1642_v33 }
 0x428   : > { %v5096_v37 = vadd.f32 %v4935_v23, %v3816_v34 }
 0x429   : > { %6184 = vmatmul.msk.bf16.gmra.mxu0 %vm1145_vm1, %v1139_v30 }
 0x42a   : > { %v4938_v38 = vpop.f32.mrf.mxu3  ;;  %vm5228_vm2 = vcmp.ge.f32.partialorder %v5096_v37, 0.0  ;;  %v5360_v39 = vmul.f32 0.2, %v5096_v37  ;;  %6590 = vmatmul.msk.bf16.gmra.mxu2 %vm1145_vm1, %v3157_v35 }
 0x42c   : > { %v5492_v41 = vsel %vm5228_vm2, %v5096_v37, %v5360_v39 }
 0x42d   : > { %v5624_v42 = vpack.c.bf16 %v5492_v41, %v5492_v41  ;;  %v3658_v43 = vpop.f32.mrf.mxu2 }
 0x42e   : > { %v1644_v44 = vpop.f32.mrf.mxu0  ;;  %v3817_v45 = vadd.f32 %v3658_v43, %v2122_v40 }
 0x42f   : > { %v2126_v46 = vpop.f32.mrf.mxu1  ;;  %5757 = vst.msk [vmem:[%s7320_s6 + $0x1c4] sm:$0xf] %vm5643_vm5, %v5624_v42  ;;  %v2124_v51 = vadd.f32 %v2123_v36, %v1644_v44 }
 0x430   : > { %v5097_v47 = vadd.f32 %v4938_v38, %v3817_v45 }
 0x432   : > { %v4940_v48 = vpop.f32.mrf.mxu3  ;;  %vm5229_vm9 = vcmp.ge.f32.partialorder %v5097_v47, 0.0  ;;  %v5361_v49 = vmul.f32 0.2, %v5097_v47 }
 0x434   : > { %v5493_v50 = vsel %vm5229_vm9, %v5097_v47, %v5361_v49 }
 0x435   : > { %v5625_v52 = vpack.c.bf16 %v5493_v50, %v5493_v50  ;;  %v3660_v53 = vpop.f32.mrf.mxu2 }
 0x436   : > { %v1647_v54 = vpop.f32.mrf.mxu0  ;;  %v3818_v55 = vadd.f32 %v3660_v53, %v2124_v51 }
 0x437   : > { %v2128_v56 = vpop.f32.mrf.mxu1  ;;  %5758 = vst.msk [vmem:[%s7320_s6 + $0x1c8] sm:$0xf] %vm5643_vm5, %v5625_v52  ;;  %v2127_v60 = vadd.f32 %v2126_v46, %v1647_v54 }
 0x438   : > { %v5098_v57 = vadd.f32 %v4940_v48, %v3818_v55 }
 0x43a   : > { %v4943_v58 = vpop.f32.mrf.mxu3  ;;  %vm5230_vm1 = vcmp.ge.f32.partialorder %v5098_v57, 0.0  ;;  %v5362_v59 = vmul.f32 0.2, %v5098_v57 }
 0x43c   : > { %v5494_v61 = vsel %vm5230_vm1, %v5098_v57, %v5362_v59 }
 0x43d   : > { %v5626_v62 = vpack.c.bf16 %v5494_v61, %v5494_v61  ;;  %v3663_v63 = vpop.f32.mrf.mxu2 }
 0x43e   : > { %v1649_v0 = vpop.f32.mrf.mxu0  ;;  %v3819_v1 = vadd.f32 %v3663_v63, %v2127_v60 }
 0x43f   : > { %v2131_v2 = vpop.f32.mrf.mxu1  ;;  %5759 = vst.msk [vmem:[%s7320_s6 + $0x1cc] sm:$0xf] %vm5643_vm5, %v5626_v62  ;;  %v2129_v7 = vadd.f32 %v2128_v56, %v1649_v0 }
 0x440   : > { %v5099_v3 = vadd.f32 %v4943_v58, %v3819_v1 }
 0x442   : > { %v4945_v5 = vpop.f32.mrf.mxu3  ;;  %vm5231_vm10 = vcmp.ge.f32.partialorder %v5099_v3, 0.0  ;;  %v5363_v6 = vmul.f32 0.2, %v5099_v3 }
 0x444   : > { %v5495_v4 = vsel %vm5231_vm10, %v5099_v3, %v5363_v6  ;;  %vm5776_vm10 = vsmask.f32 3328 }
 0x445   : > { %v5627_v8 = vpack.c.bf16 %v5495_v4, %v5495_v4  ;;  %v3665_v9 = vpop.f32.mrf.mxu2 }
 0x446   : > { %v1652_v10 = vpop.f32.mrf.mxu0  ;;  %v3820_v11 = vadd.f32 %v3665_v9, %v2129_v7 }
 0x447   : > { %v2133_v12 = vpop.f32.mrf.mxu1  ;;  %5760 = vst.msk [vmem:[%s7320_s6 + $0x1d0] sm:$0xf] %vm5643_vm5, %v5627_v8  ;;  %v2132_v16 = vadd.f32 %v2131_v2, %v1652_v10 }
 0x448   : > { %v5100_v13 = vadd.f32 %v4945_v5, %v3820_v11 }
 0x44a   : > { %v4948_v14 = vpop.f32.mrf.mxu3  ;;  %vm5232_vm11 = vcmp.ge.f32.partialorder %v5100_v13, 0.0  ;;  %v5364_v15 = vmul.f32 0.2, %v5100_v13 }
 0x44c   : > { %v5496_v17 = vsel %vm5232_vm11, %v5100_v13, %v5364_v15 }
 0x44d   : > { %v5628_v18 = vpack.c.bf16 %v5496_v17, %v5496_v17  ;;  %v3668_v19 = vpop.f32.mrf.mxu2 }
 0x44e   : > { %v1654_v20 = vpop.f32.mrf.mxu0  ;;  %v3821_v21 = vadd.f32 %v3668_v19, %v2132_v16 }
 0x44f   : > { %v2136_v22 = vpop.f32.mrf.mxu1  ;;  %5761 = vst.msk [vmem:[%s7320_s6 + $0x1d4] sm:$0xf] %vm5643_vm5, %v5628_v18  ;;  %v2134_v27 = vadd.f32 %v2133_v12, %v1654_v20 }
 0x450   : > { %v5101_v23 = vadd.f32 %v4948_v14, %v3821_v21 }
 0x452   : > { %v4950_v24 = vpop.f32.mrf.mxu3  ;;  %vm5233_vm12 = vcmp.ge.f32.partialorder %v5101_v23, 0.0  ;;  %v5365_v25 = vmul.f32 0.2, %v5101_v23 }
 0x454   : > { %v5497_v26 = vsel %vm5233_vm12, %v5101_v23, %v5365_v25  ;;  %vm5777_vm12 = vmand %vm5643_vm5, %vm5776_vm10 }
 0x455   : > { %v5629_v28 = vpack.c.bf16 %v5497_v26, %v5497_v26  ;;  %v3670_v29 = vpop.f32.mrf.mxu2 }
 0x456   : > { %v1657_v30 = vpop.f32.mrf.mxu0  ;;  %v3822_v31 = vadd.f32 %v3670_v29, %v2134_v27 }
 0x457   : > { %v2138_v32 = vpop.f32.mrf.mxu1  ;;  %5762 = vst.msk [vmem:[%s7320_s6 + $0x1d8] sm:$0xf] %vm5643_vm5, %v5629_v28  ;;  %v2137_v36 = vadd.f32 %v2136_v22, %v1657_v30 }
 0x458   : > { %v5102_v33 = vadd.f32 %v4950_v24, %v3822_v31 }
 0x45a   : > { %v4953_v34 = vpop.f32.mrf.mxu3  ;;  %vm5234_vm13 = vcmp.ge.f32.partialorder %v5102_v33, 0.0  ;;  %v5366_v35 = vmul.f32 0.2, %v5102_v33 }
 0x45c   : > { %v5498_v37 = vsel %vm5234_vm13, %v5102_v33, %v5366_v35  ;;  %vm5781_vm13 = vcmask 60419  }
 0x45d   : > { %v5630_v38 = vpack.c.bf16 %v5498_v37, %v5498_v37  ;;  %v3673_v39 = vpop.f32.mrf.mxu2 }
 0x45e   : > { %v1659_v40 = vpop.f32.mrf.mxu0  ;;  %v3823_v41 = vadd.f32 %v3673_v39, %v2137_v36 }
 0x45f   : > { %v2141_v42 = vpop.f32.mrf.mxu1  ;;  %5763 = vst.msk [vmem:[%s7320_s6 + $0x1dc] sm:$0xf] %vm5643_vm5, %v5630_v38  ;;  %v2139_v47 = vadd.f32 %v2138_v32, %v1659_v40 }
 0x460   : > { %v5103_v43 = vadd.f32 %v4953_v34, %v3823_v41 }
 0x462   : > { %v4955_v44 = vpop.f32.mrf.mxu3  ;;  %vm5235_vm14 = vcmp.ge.f32.partialorder %v5103_v43, 0.0  ;;  %v5367_v45 = vmul.f32 0.2, %v5103_v43 }
 0x464   : > { %v5499_v46 = vsel %vm5235_vm14, %v5103_v43, %v5367_v45  ;;  %vm5782_vm14 = vsmask.f32 7950 }
 0x465   : > { %v5631_v48 = vpack.c.bf16 %v5499_v46, %v5499_v46  ;;  %v3675_v49 = vpop.f32.mrf.mxu2 }
 0x466   : > { %v1662_v50 = vpop.f32.mrf.mxu0  ;;  %v3824_v51 = vadd.f32 %v3675_v49, %v2139_v47 }
 0x467   : > { %v2143_v52 = vpop.f32.mrf.mxu1  ;;  %5764 = vst.msk [vmem:[%s7320_s6 + $0x1e0] sm:$0xf] %vm5643_vm5, %v5631_v48  ;;  %v2142_v56 = vadd.f32 %v2141_v42, %v1662_v50 }
 0x468   : > { %v5104_v53 = vadd.f32 %v4955_v44, %v3824_v51 }
 0x46a   : > { %v4958_v54 = vpop.f32.mrf.mxu3  ;;  %vm5236_vm15 = vcmp.ge.f32.partialorder %v5104_v53, 0.0  ;;  %v5368_v55 = vmul.f32 0.2, %v5104_v53 }
 0x46c   : > { %v5500_v57 = vsel %vm5236_vm15, %v5104_v53, %v5368_v55  ;;  %vm5783_vm15 = vmand %vm5781_vm13, %vm5782_vm14 }
 0x46d   : > { %v5632_v58 = vpack.c.bf16 %v5500_v57, %v5500_v57  ;;  %v3678_v59 = vpop.f32.mrf.mxu2 }
 0x46e   : > { %v1664_v60 = vpop.f32.mrf.mxu0  ;;  %v3825_v61 = vadd.f32 %v3678_v59, %v2142_v56 }
 0x46f   : > { %v2146_v62 = vpop.f32.mrf.mxu1  ;;  %5765 = vst.msk [vmem:[%s7320_s6 + $0x1e4] sm:$0xf] %vm5643_vm5, %v5632_v58  ;;  %v2144_v3 = vadd.f32 %v2143_v52, %v1664_v60 }
 0x470   : > { %v5105_v63 = vadd.f32 %v4958_v54, %v3825_v61 }
 0x472   : > { %v4960_v0 = vpop.f32.mrf.mxu3  ;;  %vm5237_vm0 = vcmp.ge.f32.partialorder %v5105_v63, 0.0  ;;  %v5369_v1 = vmul.f32 0.2, %v5105_v63 }
 0x474   : > { %v5501_v2 = vsel %vm5237_vm0, %v5105_v63, %v5369_v1 }
 0x475   : > { %v5633_v5 = vpack.c.bf16 %v5501_v2, %v5501_v2  ;;  %v3680_v6 = vpop.f32.mrf.mxu2 }
 0x476   : > { %v1667_v4 = vpop.f32.mrf.mxu0  ;;  %v3826_v7 = vadd.f32 %v3680_v6, %v2144_v3 }
 0x477   : > { %v2148_v8 = vpop.f32.mrf.mxu1  ;;  %5766 = vst.msk [vmem:[%s7320_s6 + $0x1e8] sm:$0xf] %vm5643_vm5, %v5633_v5  ;;  %v2147_v12 = vadd.f32 %v2146_v62, %v1667_v4 }
 0x478   : > { %v5106_v9 = vadd.f32 %v4960_v0, %v3826_v7 }
 0x47a   : > { %v4963_v10 = vpop.f32.mrf.mxu3  ;;  %vm5238_vm4 = vcmp.ge.f32.partialorder %v5106_v9, 0.0  ;;  %v5370_v11 = vmul.f32 0.2, %v5106_v9 }
 0x47c   : > { %v5502_v13 = vsel %vm5238_vm4, %v5106_v9, %v5370_v11 }
 0x47d   : > { %v5634_v14 = vpack.c.bf16 %v5502_v13, %v5502_v13  ;;  %v3683_v15 = vpop.f32.mrf.mxu2 }
 0x47e   : > { %v1669_v16 = vpop.f32.mrf.mxu0  ;;  %v3827_v17 = vadd.f32 %v3683_v15, %v2147_v12 }
 0x47f   : > { %5767 = vst.msk [vmem:[%s7320_s6 + $0x1ec] sm:$0xf] %vm5643_vm5, %v5634_v14  ;;  %v2151_v20 = vpop.f32.mrf.mxu1  ;;  %v2149_v23 = vadd.f32 %v2148_v8, %v1669_v16 }
 0x480   : > { %v5107_v18 = vadd.f32 %v4963_v10, %v3827_v17 }
 0x482   : > { %v4965_v19 = vpop.f32.mrf.mxu3  ;;  %vm5239_vm6 = vcmp.ge.f32.partialorder %v5107_v18, 0.0  ;;  %v5371_v21 = vmul.f32 0.2, %v5107_v18 }
 0x484   : > { %v5503_v22 = vsel %vm5239_vm6, %v5107_v18, %v5371_v21 }
 0x485   : > { %v5635_v24 = vpack.c.bf16 %v5503_v22, %v5503_v22  ;;  %v3685_v25 = vpop.f32.mrf.mxu2 }
 0x486   : > { %v1672_v26 = vpop.f32.mrf.mxu0  ;;  %v3828_v27 = vadd.f32 %v3685_v25, %v2149_v23  ;;  %v5778_v25 = vld [vmem:[%s7320_s6 + $0x20c] sm:$0xf] }
 0x487   : > { %5768 = vst.msk [vmem:[%s7320_s6 + $0x1f0] sm:$0xf] %vm5643_vm5, %v5635_v24  ;;  %v2152_v31 = vadd.f32 %v2151_v20, %v1672_v26  ;;  %v2153_v32 = vpop.f32.mrf.mxu1 }
 0x488   : > { %v5108_v28 = vadd.f32 %v4965_v19, %v3828_v27 }
 0x48a   : > { %v4968_v29 = vpop.f32.mrf.mxu3  ;;  %vm5240_vm7 = vcmp.ge.f32.partialorder %v5108_v28, 0.0  ;;  %v5372_v30 = vmul.f32 0.2, %v5108_v28 }
 0x48c   : > { %v5504_v33 = vsel %vm5240_vm7, %v5108_v28, %v5372_v30 }
 0x48d   : > { %v5636_v34 = vpack.c.bf16 %v5504_v33, %v5504_v33  ;;  %v3688_v35 = vpop.f32.mrf.mxu2 }
 0x48e   : > { %v1674_v36 = vpop.f32.mrf.mxu0  ;;  %v3829_v37 = vadd.f32 %v3688_v35, %v2152_v31 }
 0x48f   : > { %5769 = vst.msk [vmem:[%s7320_s6 + $0x1f4] sm:$0xf] %vm5643_vm5, %v5636_v34  ;;  %v2154_v42 = vadd.f32 %v2153_v32, %v1674_v36  ;;  %v2156_v43 = vpop.f32.mrf.mxu1 }
 0x490   : > { %v5109_v38 = vadd.f32 %v4968_v29, %v3829_v37 }
 0x492   : > { %v4970_v39 = vpop.f32.mrf.mxu3  ;;  %vm5241_vm8 = vcmp.ge.f32.partialorder %v5109_v38, 0.0  ;;  %v5373_v40 = vmul.f32 0.2, %v5109_v38 }
 0x494   : > { %v5505_v41 = vsel %vm5241_vm8, %v5109_v38, %v5373_v40 }
 0x495   : > { %v5637_v44 = vpack.c.bf16 %v5505_v41, %v5505_v41  ;;  %v3690_v45 = vpop.f32.mrf.mxu2 }
 0x496   : > { %v1677_v46 = vpop.f32.mrf.mxu0  ;;  %v3830_v47 = vadd.f32 %v3690_v45, %v2154_v42 }
 0x497   : > { %5770 = vst.msk [vmem:[%s7320_s6 + $0x1f8] sm:$0xf] %vm5643_vm5, %v5637_v44  ;;  %v2157_v51 = vadd.f32 %v2156_v43, %v1677_v46  ;;  %v2158_v57 = vpop.f32.mrf.mxu1 }
 0x498   : > { %v5110_v48 = vadd.f32 %v4970_v39, %v3830_v47 }
 0x49a   : > { %v4973_v49 = vpop.f32.mrf.mxu3  ;;  %vm5242_vm3 = vcmp.ge.f32.partialorder %v5110_v48, 0.0  ;;  %v5374_v50 = vmul.f32 0.2, %v5110_v48 }
 0x49c   : > { %v5506_v52 = vsel %vm5242_vm3, %v5110_v48, %v5374_v50 }
 0x49d   : > { %v5638_v53 = vpack.c.bf16 %v5506_v52, %v5506_v52  ;;  %v3693_v54 = vpop.f32.mrf.mxu2 }
 0x49e   : > { %v1679_v55 = vpop.f32.mrf.mxu0  ;;  %v3831_v56 = vadd.f32 %v3693_v54, %v2157_v51 }
 0x49f   : > { %5771 = vst.msk [vmem:[%s7320_s6 + $0x1fc] sm:$0xf] %vm5643_vm5, %v5638_v53  ;;  %v2159_v62 = vadd.f32 %v2158_v57, %v1679_v55  ;;  %v2161_v5 = vpop.f32.mrf.mxu1 }
 0x4a0   : > { %v5111_v58 = vadd.f32 %v4973_v49, %v3831_v56 }
 0x4a2   : > { %vm5243_vm2 = vcmp.ge.f32.partialorder %v5111_v58, 0.0  ;;  %v5375_v59 = vmul.f32 0.2, %v5111_v58  ;;  %v4975_v60 = vpop.f32.mrf.mxu3 }
 0x4a4   : > { %v5507_v61 = vsel %vm5243_vm2, %v5111_v58, %v5375_v59 }
 0x4a5   : > { %v5639_v63 = vpack.c.bf16 %v5507_v61, %v5507_v61  ;;  %v3695_v0 = vpop.f32.mrf.mxu2 }
 0x4a6   : > { %v3832_v1 = vadd.f32 %v3695_v0, %v2159_v62  ;;  %v1682_v2 = vpop.f32.mrf.mxu0 }
 0x4a7   : > { %5772 = vst.msk [vmem:[%s7320_s6 + $0x200] sm:$0xf] %vm5643_vm5, %v5639_v63  ;;  %v2162_v4 = vadd.f32 %v2161_v5, %v1682_v2  ;;  %v2163_v15 = vpop.f32.mrf.mxu1 }
 0x4a8   : > { %v5112_v3 = vadd.f32 %v4975_v60, %v3832_v1 }
 0x4aa   : > { %vm5244_vm9 = vcmp.ge.f32.partialorder %v5112_v3, 0.0  ;;  %v5376_v6 = vmul.f32 0.2, %v5112_v3  ;;  %v4978_v9 = vpop.f32.mrf.mxu3 }
 0x4ac   : > { %v5508_v7 = vsel %vm5244_vm9, %v5112_v3, %v5376_v6 }
 0x4ad   : > { %v5640_v8 = vpack.c.bf16 %v5508_v7, %v5508_v7  ;;  %v3698_v10 = vpop.f32.mrf.mxu2 }
 0x4ae   : > { %v3833_v11 = vadd.f32 %v3698_v10, %v2162_v4  ;;  %v1684_v13 = vpop.f32.mrf.mxu0 }
 0x4af   : > { %5773 = vst.msk [vmem:[%s7320_s6 + $0x204] sm:$0xf] %vm5643_vm5, %v5640_v8  ;;  %v2164_v17 = vadd.f32 %v2163_v15, %v1684_v13 }
 0x4b0   : > { %v5113_v12 = vadd.f32 %v4978_v9, %v3833_v11 }
 0x4b2   : > { %vm5245_vm1 = vcmp.ge.f32.partialorder %v5113_v12, 0.0  ;;  %v5377_v14 = vmul.f32 0.2, %v5113_v12  ;;  %v4980_v21 = vpop.f32.mrf.mxu3 }
 0x4b4   : > { %v5509_v16 = vsel %vm5245_vm1, %v5113_v12, %v5377_v14 }
 0x4b5   : > { %v5641_v18 = vpack.c.bf16 %v5509_v16, %v5509_v16  ;;  %v3700_v19 = vpop.f32.mrf.mxu2 }
 0x4b6   : > { %v3834_v20 = vadd.f32 %v3700_v19, %v2164_v17 }
 0x4b7   : > { %5774 = vst.msk [vmem:[%s7320_s6 + $0x208] sm:$0xf] %vm5643_vm5, %v5641_v18 }
 0x4b8   : > { %v5114_v22 = vadd.f32 %v4980_v21, %v3834_v20 }
 0x4ba   : > { %vm5246_vm11 = vcmp.ge.f32.partialorder %v5114_v22, 0.0  ;;  %v5378_v23 = vmul.f32 0.2, %v5114_v22 }
 0x4bc   : > { %v5510_v24 = vsel %vm5246_vm11, %v5114_v22, %v5378_v23 }
 0x4bd   : > { %v5642_v26 = vpack.c.bf16 %v5510_v24, %v5510_v24 }
 0x4bf   : > { %v5779_v27 = vsel %vm5777_vm12, %v5642_v26, %v5778_v25 }
 0x4c0   : > { %5780 = vst [vmem:[%s7320_s6 + $0x20c] sm:$0xf] %v5779_v27 }
 0x4c7   : > { %v5784_v28 = vld [vmem:[%s7320_s6 + $0x20c] sm:$0x8] }
 0x4c8   : > { %v5785_v29 = vsel %vm5783_vm15, 0, %v5784_v28 }
 0x4c9   : > { %5786 = vst [vmem:[%s7320_s6 + $0x20c] sm:$0x8] %v5785_v29 }
 0x4ca PF: > { %s12_s9 = sadd.s32 1, %s7147_s9  }
 0x4cb   : > { %p9_p4 = scmp.ge.s32.totalorder %s12_s9, 4  }
 0x4cd   :  { %11 = sbr.rel (!%p9_p4) target bundleno = 1 (0x1), region = 61 }

// kernel: discriminator_forward.5
= control target key start
LH: loop header
LB: loop body
LE: loop exit
PB: predicated region body
PF: predicated region fallthrough
CT: control target
= control target key end

     0   :  { %s3709_s15 = smov 0   ;;  %s5028_s0 = inlined_call_operand.vmem [shape: bf16[2,289,32], index: 0, kind: input, shape index: {}]   ;;  %s5029_s1 = inlined_call_operand.vmem [shape: bf16[2,2,32,16], index: 1, kind: input, shape index: {}]   ;;  %s5030_s2 = inlined_call_operand.vmem [shape: bf16[2,272,16], index: 2, kind: output, shape index: {0}]   ;;  %s5031_s3 = inlined_call_operand.vmem [shape: f32[2,1,16], index: 3, kind: output, shape index: {1}]   ;;  %s5032_s4 = inlined_call_operand.vmem [shape: f32[2,1,16], index: 4, kind: output, shape index: {2}]  }
   0x1 LB: > { %s3280_s16 = sadd.s32 4294967295, %s3681_s15   ;;  %p3284_p0 = scmp.ge.s32.totalorder %s3681_s15, 1  ;;  %s3681_s15 = sphi %s3709_s15, %s15_s15  }
   0x2   : > { %p167_p1 = scmp.lt.s32.totalorder %s3681_s15, 3 }
   0x4   : > { %p168_p2 = pnand %p3284_p0, %p167_p1 }
   0x5   : > { %p199_p3 = scmp.lt.s32.totalorder (!%p168_p2), %s3280_s16, 1 }
   0x6   : > { %171 = sbr.rel (%p168_p2) target bundleno = 484 (0x1e4), region = 28 }
   0xb   : > { %v3623_v0 = vld [vmem:[%s5029_s1 + $0x8] sm:$0xff]  ;;  %v3663_v1 = vld [vmem:[%s5029_s1 + $0x38] sm:$0xff]  ;;  %v3622_v4 = vld [vmem:[%s5029_s1] sm:$0xff]  ;;  %s5078_s16 = smov (!%p199_p3, %s3280_s16), 1  ;;  %vm492_vm0 = vcmask 261120   ;;  %vm1356_vm1 = vcmask 1046528  }
   0xc   : > { %v3625_v2 = vld [vmem:[%s5029_s1 + $0x18] sm:$0xff]  ;;  %v3644_v3 = vld [vmem:[%s5029_s1 + $0x28] sm:$0xff]  ;;  %690 = vmatpush.bf16.msra.mxu1 %v3623_v0  ;;  %1461 = vmatpush.bf16.msra.mxu3 %v3663_v1  ;;  %v3662_v5 = vld [vmem:[%s5029_s1 + $0x30] sm:$0xff]  ;;  %s3664_s7 = smul.u32 148, %s5078_s16  ;;  %vm344_vm2 = vsmask.f32 7424  ;;  %s211_s19 = scalar_lea.vmem %s5031_s3, %s5078_s16 }
   0xd   : > { %550 = vmatpush.bf16.msra.mxu0 %v3625_v2  ;;  %1106 = vmatpush.bf16.msra.mxu2 %v3644_v3  ;;  %v3624_v6 = vld [vmem:[%s5029_s1 + $0x10] sm:$0xff]  ;;  %v3643_v7 = vld [vmem:[%s5029_s1 + $0x20] sm:$0xff]  ;;  %s3665_s11 = smul.u32 136, %s5078_s16  ;;  %s214_s22 = scalar_lea.vmem %s5032_s4, %s5078_s16 }
   0xe   : > { %s3747_s10 = scalar_lea.vmem %s5028_s0, %s3664_s7 }
   0xf   : > { %v3605_v8 = vld [vmem:[%s3747_s10] sm:$0xff]  ;;  %v3512_v9 = vld [vmem:[%s3747_s10 + $0x8] sm:$0xe]  ;;  %v3645_v10 = vld [vmem:[%s3747_s10 + $0x8] sm:$0xf0]  ;;  %s4100_s14 = scalar_lea.vmem %s5030_s2, %s3665_s11 }
  0x10   : > { %691 = vmatpush.bf16.msra.mxu1 %v3622_v4  ;;  %1462 = vmatpush.bf16.msra.mxu3 %v3662_v5  ;;  %v3646_v11 = vld [vmem:[%s3747_s10 + $0x10] sm:$0xff]  ;;  %v3513_v12 = vor.u32 %v3645_v10, %v3512_v9  ;;  %v3606_v13 = vld [vmem:[%s3747_s10 + $0x8] sm:$0xff]  ;;  %v348_v15 = vshll.u32 %v3605_v8, 16  ;;  %v346_v16 = vshrl.u32 %v3605_v8, 16  ;;  %v3647_v34 = vld [vmem:[%s3747_s10 + $0x18] sm:$0xff] }
  0x11   : > { %551 = vmatpush.bf16.msra.mxu0 %v3624_v6  ;;  %1107 = vmatpush.bf16.msra.mxu2 %v3643_v7  ;;  %v3626_v14 = vld [vmem:[%s3747_s10 + $0x8] sm:$0xff]  ;;  %v3627_v17 = vld [vmem:[%s3747_s10 + $0x10] sm:$0xff]  ;;  %v1358_v19 = vrot.slane %v3646_v11, 1  ;;  %v353_v20 = vshll.u32 %v3606_v13, 16  ;;  %v3628_v35 = vld [vmem:[%s3747_s10 + $0x18] sm:$0xff]  ;;  %v357_v36 = vshrl.u32 %v3606_v13, 16 }
  0x12   : > { %v1357_v18 = vrot.slane %v3513_v12, 1  ;;  %v350_v21 = vrot.slane %v348_v15, 1  ;;  %v903_v22 = vshrl.u32 %v3626_v14, 16  ;;  %v905_v23 = vshll.u32 %v3626_v14, 16  ;;  %v3607_v33 = vld [vmem:[%s3747_s10 + $0x10] sm:$0xff]  ;;  %v3608_v48 = vld [vmem:[%s3747_s10 + $0x18] sm:$0xff] }
  0x13   : > { %3392 = vmatmul.msk.bf16.vlgmr.msra.gmra.mxu1 %vm492_vm0, %v3605_v8  ;;  %v910_v24 = vshll.u32 %v3627_v17, 16  ;;  %v355_v26 = vrot.slane %v353_v20, 1  ;;  %v361_v37 = vshll.u32 %v3607_v33, 16  ;;  %v1360_v38 = vrot.slane %v3647_v34, 1  ;;  %v3648_v49 = vld [vmem:[%s3747_s10 + $0x20] sm:$0xff]  ;;  %v3649_v0 = vld [vmem:[%s3747_s10 + $0x28] sm:$0xff] }
  0x14   : > { %v1359_v25 = vsel %vm1356_vm1, %v1357_v18, %v1358_v19  ;;  %v351_v27 = vor.u32 %v350_v21, %v346_v16  ;;  %v907_v28 = vrot.slane %v905_v23, 1  ;;  %v914_v39 = vshrl.u32 %v3627_v17, 16  ;;  %v3629_v50 = vld [vmem:[%s3747_s10 + $0x20] sm:$0xff]  ;;  %v3630_v1 = vld [vmem:[%s3747_s10 + $0x28] sm:$0xff]  ;;  %v3650_v15 = vld [vmem:[%s3747_s10 + $0x30] sm:$0xff] }
  0x15   : > { %3586 = vmatmul.msk.bf16.vlgmr.msra.gmra.mxu3 %vm492_vm0, %v1359_v25  ;;  %v912_v29 = vrot.slane %v910_v24, 1  ;;  %v918_v40 = vshll.u32 %v3628_v35, 16  ;;  %v359_v41 = vor.u32 %v357_v36, %v355_v26  ;;  %v363_v42 = vrot.slane %v361_v37, 1  ;;  %v3609_v63 = vld [vmem:[%s3747_s10 + $0x20] sm:$0xff]  ;;  %v3610_v14 = vld [vmem:[%s3747_s10 + $0x28] sm:$0xff]  ;;  %v3631_v16 = vld [vmem:[%s3747_s10 + $0x30] sm:$0xff] }
  0x16   : > { %v356_v30 = vsel %vm344_vm2, %v351_v27, %v355_v26  ;;  %v908_v31 = vor.u32 %v907_v28, %v903_v22  ;;  %v1361_v43 = vsel %vm1356_vm1, %v1358_v19, %v1360_v38  ;;  %v365_v51 = vshrl.u32 %v3607_v33, 16 }
  0x17   : > { %3367 = vmatmul.msk.bf16.vlgmr.msra.gmra.mxu0 %vm492_vm0, %v356_v30  ;;  %v916_v44 = vor.u32 %v914_v39, %v912_v29  ;;  %v920_v45 = vrot.slane %v918_v40, 1  ;;  %v364_v46 = vsel %vm344_vm2, %v359_v41, %v363_v42  ;;  %v369_v52 = vshll.u32 %v3608_v48, 16  ;;  %v3651_v30 = vld [vmem:[%s3747_s10 + $0x38] sm:$0xff] }
  0x18   : > { %v913_v32 = vsel %vm344_vm2, %v908_v31, %v912_v29  ;;  %v1362_v53 = vrot.slane %v3648_v49, 1  ;;  %v922_v54 = vshrl.u32 %v3628_v35, 16  ;;  %v926_v55 = vshll.u32 %v3629_v50, 16  ;;  %v3611_v29 = vld [vmem:[%s3747_s10 + $0x30] sm:$0xff]  ;;  %v3632_v31 = vld [vmem:[%s3747_s10 + $0x38] sm:$0xff] }
  0x19   : > { %3489 = vmatmul.msk.bf16.vlgmr.msra.gmra.mxu2 %vm492_vm0, %v913_v32  ;;  %v921_v47 = vsel %vm344_vm2, %v916_v44, %v920_v45  ;;  %v367_v56 = vor.u32 %v365_v51, %v363_v42  ;;  %v371_v57 = vrot.slane %v369_v52, 1  ;;  %v373_v2 = vshrl.u32 %v3608_v48, 16  ;;  %v3824_v51 = vld [vmem:[%s3747_s10 + $0x40] sm:$0xff] }
  0x1a   : > { %v1363_v58 = vsel %vm1356_vm1, %v1360_v38, %v1362_v53  ;;  %v924_v59 = vor.u32 %v922_v54, %v920_v45  ;;  %v928_v60 = vrot.slane %v926_v55, 1  ;;  %v377_v3 = vshll.u32 %v3609_v63, 16 }
  0x1b   : > { %v372_v61 = vsel %vm344_vm2, %v367_v56, %v371_v57  ;;  %v1364_v4 = vrot.slane %v3649_v0, 1  ;;  %v930_v5 = vshrl.u32 %v3629_v50, 16  ;;  %v934_v6 = vshll.u32 %v3630_v1, 16 }
  0x1c   : > { %v929_v62 = vsel %vm344_vm2, %v924_v59, %v928_v60  ;;  %v375_v7 = vor.u32 %v373_v2, %v371_v57  ;;  %v379_v8 = vrot.slane %v377_v3, 1  ;;  %v381_v17 = vshrl.u32 %v3609_v63, 16 }
  0x1d   : > { %v1365_v9 = vsel %vm1356_vm1, %v1362_v53, %v1364_v4  ;;  %v932_v10 = vor.u32 %v930_v5, %v928_v60  ;;  %v936_v11 = vrot.slane %v934_v6, 1  ;;  %v385_v18 = vshll.u32 %v3610_v14, 16 }
  0x1e   : > { %v380_v12 = vsel %vm344_vm2, %v375_v7, %v379_v8  ;;  %v1366_v19 = vrot.slane %v3650_v15, 1  ;;  %v938_v20 = vshrl.u32 %v3630_v1, 16  ;;  %v942_v21 = vshll.u32 %v3631_v16, 16  ;;  %v3837_v7 = vld [vmem:[%s3747_s10 + $0x40] sm:$0xff]  ;;  %v3842_v15 = vld [vmem:[%s3747_s10 + $0x48] sm:$0xff] }
  0x1f   : > { %v383_v22 = vor.u32 %v381_v17, %v379_v8  ;;  %v387_v23 = vrot.slane %v385_v18, 1  ;;  %v389_v32 = vshrl.u32 %v3610_v14, 16  ;;  %v1368_v34 = vrot.slane %v3651_v30, 1 }
  0x20   : > { %v1367_v24 = vsel %vm1356_vm1, %v1364_v4, %v1366_v19  ;;  %v940_v25 = vor.u32 %v938_v20, %v936_v11  ;;  %v944_v26 = vrot.slane %v942_v21, 1  ;;  %v946_v35 = vshrl.u32 %v3631_v16, 16  ;;  %v3848_v21 = vld [vmem:[%s3747_s10 + $0x48] sm:$0xff] }
  0x21   : > { %v388_v27 = vsel %vm344_vm2, %v383_v22, %v387_v23  ;;  %v950_v36 = vshll.u32 %v3632_v31, 16  ;;  %v391_v37 = vor.u32 %v389_v32, %v387_v23  ;;  %v1369_v39 = vsel %vm1356_vm1, %v1366_v19, %v1368_v34 }
  0x22   : > { %v945_v28 = vsel %vm344_vm2, %v940_v25, %v944_v26  ;;  %v948_v40 = vor.u32 %v946_v35, %v944_v26  ;;  %v1583_v42 = vlaneseq  ;;  %v397_v56 = vshrl.u32 %v3611_v29, 16 }
  0x23   : > { %3393 = vmatmul.msk.bf16.gmra.mxu1 %vm492_vm0, %v3606_v13  ;;  %v937_v13 = vsel %vm344_vm2, %v932_v10, %v936_v11  ;;  %v952_v41 = vrot.slane %v950_v36, 1  ;;  %v409_v22 = vshll.u32 %v3837_v7, 16  ;;  %v966_v32 = vshll.u32 %v3848_v21, 16 }
  0x24   : > { %v3810_v44 = vshrl.u32 %v1583_v42, 7 }
  0x25   : > { %3587 = vmatmul.msk.bf16.gmra.mxu3 %vm492_vm0, %v1361_v43  ;;  %v953_v45 = vsel %vm344_vm2, %v948_v40, %v952_v41  ;;  %v411_v36 = vrot.slane %v409_v22, 1 }
  0x26   : > { %v1622_v49 = vshrl.u32 %v3810_v44, 16  ;;  %v3831_v1 = vadd.s32 8, %v3810_v44 }
  0x27   : > { %3368 = vmatmul.msk.bf16.gmra.mxu0 %vm492_vm0, %v364_v46  ;;  %v1621_v46 = vand.u32 65535, %v3810_v44 }
  0x28   : > { %v1626_v53 = vmul.u32 61681, %v1622_v49  ;;  %v1627_v59 = vmul.u32 61680, %v1622_v49  ;;  %v1650_v5 = vand.u32 65535, %v3831_v1  ;;  %v1651_v10 = vshrl.u32 %v3831_v1, 16  ;;  %v3871_v49 = vld [vmem:[%s3747_s10 + $0x50] sm:$0xff] }
  0x29   : > { %3490 = vmatmul.msk.bf16.gmra.mxu2 %vm492_vm0, %v921_v47  ;;  %v3816_v47 = vld [vmem:[%s3747_s10 + $0x40] sm:$0xff]  ;;  %v1625_v50 = vmul.u32 61680, %v1621_v46  ;;  %v1624_v52 = vmul.u32 61681, %v1621_v46 }
  0x2a   : > { %v1370_v55 = vrot.slane %v3816_v47, 1  ;;  %v1630_v60 = vshll.u32 %v1626_v53, 16  ;;  %v1631_v16 = vshrl.u32 %v1626_v53, 16  ;;  %v1653_v17 = vmul.u32 61681, %v1650_v5 }
  0x2b   : > { %v1628_v54 = vshll.u32 %v1625_v50, 16  ;;  %v1629_v8 = vshrl.u32 %v1625_v50, 16  ;;  %v1655_v18 = vmul.u32 61681, %v1651_v10 }
  0x2c   : > { %v1371_v6 = vsel %vm1356_vm1, %v1368_v34, %v1370_v55  ;;  %v3858_v34 = vadd.s32 16, %v3810_v44 }
  0x2d   : > { %vm1632_vm3 = vc.u32 %v1624_v52, %v1628_v54  ;;  %v1634_v0 = vadd.s32 %v1628_v54, %v1624_v52  ;;  %v1660_v46 = vshrl.u32 %v1655_v18, 16 }
  0x2e   : > { %v1680_v42 = vshrl.u32 %v3858_v34, 16 }
  0x2f   : > { %vm1636_vm4 = vc.u32 %v1634_v0, %v1630_v60  ;;  %v970_v0 = vshrl.u32 %v3848_v21, 16 }
  0x30   : > { %v3873_v53 = vmul.u32 61681, %v1680_v42 }
  0x33   : > { %3394 = vmatmul.msk.bf16.gmra.mxu1 %vm492_vm0, %v3607_v33  ;;  %v393_v33 = vshll.u32 %v3611_v29, 16 }
  0x35   : > { %3588 = vmatmul.msk.bf16.gmra.mxu3 %vm492_vm0, %v1363_v58  ;;  %v395_v38 = vrot.slane %v393_v33, 1  ;;  %v954_v58 = vshrl.u32 %v3632_v31, 16  ;;  %v962_v31 = vshrl.u32 %v3824_v51, 16 }
  0x37   : > { %3369 = vmatmul.msk.bf16.gmra.mxu0 %vm492_vm0, %v372_v61  ;;  %v396_v43 = vsel %vm344_vm2, %v391_v37, %v395_v38  ;;  %v958_v61 = vshll.u32 %v3824_v51, 16  ;;  %v399_v3 = vor.u32 %v397_v56, %v395_v38  ;;  %v956_v11 = vor.u32 %v954_v58, %v952_v41  ;;  %v3654_v58 = vld [vmem:[%s3747_s10 + $0x50] sm:$0xff] }
  0x38   : > { %v1679_v41 = vand.u32 65535, %v3858_v34 }
  0x39   : > { %3491 = vmatmul.msk.bf16.gmra.mxu2 %vm492_vm0, %v929_v62  ;;  %v3683_v62 = vmov 0  }
  0x3a   : > { %v1682_v51 = vmul.u32 61681, %v1679_v41  ;;  %v1683_v52 = vmul.u32 61680, %v1679_v41 }
  0x43   : > { %3395 = vmatmul.msk.bf16.gmra.mxu1 %vm492_vm0, %v3608_v48  ;;  %v3819_v48 = vld [vmem:[%s3747_s10 + $0x38] sm:$0xff] }
  0x44   : > { %v401_v57 = vshll.u32 %v3819_v48, 16  ;;  %v405_v20 = vshrl.u32 %v3819_v48, 16 }
  0x45   : > { %3589 = vmatmul.msk.bf16.gmra.mxu3 %vm492_vm0, %v1365_v9  ;;  %v1637_v9 = vsel %vm1636_vm4, 1, %v3683_v62 }
  0x46   : > { %v403_v4 = vrot.slane %v401_v57, 1  ;;  %v968_v57 = vrot.slane %v966_v32, 1 }
  0x47   : > { %3370 = vmatmul.msk.bf16.gmra.mxu0 %vm492_vm0, %v380_v12  ;;  %v960_v12 = vrot.slane %v958_v61, 1 }
  0x48   : > { %v404_v19 = vsel %vm344_vm2, %v399_v3, %v403_v4  ;;  %v407_v35 = vor.u32 %v405_v20, %v403_v4  ;;  %v1688_v3 = vshll.u32 %v3873_v53, 16  ;;  %v3885_v4 = vadd.s32 24, %v3810_v44 }
  0x49   : > { %3492 = vmatmul.msk.bf16.gmra.mxu2 %vm492_vm0, %v937_v13  ;;  %v961_v26 = vsel %vm344_vm2, %v956_v11, %v960_v12  ;;  %v964_v56 = vor.u32 %v962_v31, %v960_v12  ;;  %v3892_v12 = vld [vmem:[%s3747_s10 + $0x58] sm:$0xff]  ;;  %v972_v20 = vor.u32 %v970_v0, %v968_v57 }
  0x4a   : > { %v412_v54 = vsel %vm344_vm2, %v407_v35, %v411_v36 }
  0x53   : > { %3396 = vmatmul.msk.bf16.gmra.mxu1 %vm492_vm0, %v3609_v63  ;;  %v1633_v63 = vsel %vm1632_vm3, 1, %v3683_v62 }
  0x54   : > { %v1635_v2 = vadd.s32 %v1633_v63, %v1627_v59  ;;  %v413_v59 = vshrl.u32 %v3837_v7, 16  ;;  %v1686_v63 = vshll.u32 %v1683_v52, 16 }
  0x55   : > { %3590 = vmatmul.msk.bf16.gmra.mxu3 %vm492_vm0, %v1367_v24  ;;  %v1656_v24 = vmul.u32 61680, %v1651_v10  ;;  %v1374_v10 = vrot.slane %v3654_v58, 1 }
  0x56   : > { %v1639_v13 = vadd.s32 %v1637_v9, %v1635_v2  ;;  %v1685_v2 = vmul.u32 61680, %v1680_v42  ;;  %vm1690_vm7 = vc.u32 %v1682_v51, %v1686_v63  ;;  %v969_v9 = vsel %vm344_vm2, %v964_v56, %v968_v57 }
  0x57   : > { %3371 = vmatmul.msk.bf16.gmra.mxu0 %vm492_vm0, %v388_v27  ;;  %v1659_v27 = vshll.u32 %v1655_v18, 16  ;;  %v415_v11 = vor.u32 %v413_v59, %v411_v36  ;;  %v1708_v18 = vand.u32 65535, %v3885_v4 }
  0x58   : > { %v1640_v23 = vadd.s32 %v1639_v13, %v1629_v8  ;;  %v1692_v8 = vadd.s32 %v1686_v63, %v1682_v51  ;;  %v1691_v13 = vsel %vm1690_vm7, 1, %v3683_v62 }
  0x59   : > { %3493 = vmatmul.msk.bf16.gmra.mxu2 %vm492_vm0, %v945_v28  ;;  %v1372_v28 = vrot.slane %v3842_v15, 1  ;;  %v978_v15 = vshrl.u32 %v3871_v49, 16  ;;  %v1711_v35 = vmul.u32 61681, %v1708_v18  ;;  %v1712_v36 = vmul.u32 61680, %v1708_v18 }
  0x5a   : > { %vm1694_vm10 = vc.u32 %v1692_v8, %v1688_v3 }
  0x5b   : > { %v1716_v0 = vshrl.u32 %v1712_v36, 16 }
  0x63   : > { %3397 = vmatmul.msk.bf16.gmra.mxu1 %vm492_vm0, %v3610_v14  ;;  %v1654_v14 = vmul.u32 61680, %v1650_v5  ;;  %v974_v5 = vshll.u32 %v3871_v49, 16 }
  0x65   : > { %3591 = vmatmul.msk.bf16.gmra.mxu3 %vm492_vm0, %v1369_v39  ;;  %v1657_v25 = vshll.u32 %v1654_v14, 16  ;;  %v3862_v39 = vld [vmem:[%s3747_s10 + $0x48] sm:$0xff]  ;;  %v1658_v40 = vshrl.u32 %v1654_v14, 16  ;;  %v976_v21 = vrot.slane %v974_v5, 1 }
  0x66   : > { %v421_v32 = vshrl.u32 %v3862_v39, 16 }
  0x67   : > { %3372 = vmatmul.msk.bf16.gmra.mxu0 %vm492_vm0, %v396_v43  ;;  %vm1661_vm5 = vc.u32 %v1653_v17, %v1657_v25  ;;  %v1663_v30 = vadd.s32 %v1657_v25, %v1653_v17  ;;  %v1373_v43 = vsel %vm1356_vm1, %v1370_v55, %v1372_v28  ;;  %v417_v55 = vshll.u32 %v3862_v39, 16 }
  0x68   : > { %v1662_v33 = vsel %vm1661_vm5, 1, %v3683_v62  ;;  %v1693_v17 = vadd.s32 %v1691_v13, %v1685_v2 }
  0x69   : > { %3494 = vmatmul.msk.bf16.gmra.mxu2 %vm492_vm0, %v953_v45  ;;  %v1664_v38 = vadd.s32 %v1662_v33, %v1656_v24  ;;  %vm1665_vm6 = vc.u32 %v1663_v30, %v1659_v27  ;;  %v419_v14 = vrot.slane %v417_v55, 1  ;;  %v3910_v24 = vsel %vm1356_vm1, %v1372_v28, %v1374_v10 }
  0x6a   : > { %v1666_v47 = vsel %vm1665_vm6, 1, %v3683_v62  ;;  %v1687_v27 = vshrl.u32 %v1683_v52, 16  ;;  %v1695_v30 = vsel %vm1694_vm10, 1, %v3683_v62  ;;  %v3946_v52 = vadd.s32 32, %v3810_v44 }
  0x6b   : > { %v1668_v50 = vadd.s32 %v1666_v47, %v1664_v38  ;;  %v1697_v28 = vadd.s32 %v1695_v30, %v1693_v17  ;;  %v3926_v38 = vsel %vm344_vm2, %v415_v11, %v419_v14  ;;  %v1715_v47 = vshll.u32 %v1712_v36, 16 }
  0x6c   : > { %v1737_v59 = vand.u32 65535, %v3946_v52  ;;  %v1738_v55 = vshrl.u32 %v3946_v52, 16  ;;  %vm3129_vm10 = vcmask 125952  }
  0x6d   : > { %v1669_v61 = vadd.s32 %v1668_v50, %v1658_v40  ;;  %v3929_v40 = vsel %vm344_vm2, %v972_v20, %v976_v21  ;;  %v423_v50 = vor.u32 %v421_v32, %v419_v14  ;;  %vm1719_vm12 = vc.u32 %v1711_v35, %v1715_v47 }
  0x6e   : > { %v1720_v57 = vsel %vm1719_vm12, 1, %v3683_v62  ;;  %v1721_v58 = vadd.s32 %v1715_v47, %v1711_v35  ;;  %v3955_v3 = vmul.u32 61680, %v1737_v59  ;;  %v3957_v5 = vmul.u32 61681, %v1738_v55 }
  0x6f   : > { %v1740_v13 = vmul.u32 61681, %v1737_v59 }
  0x70   : > { %v1744_v14 = vshll.u32 %v3955_v3, 16  ;;  %v1746_v30 = vshll.u32 %v3957_v5, 16  ;;  %v1745_v47 = vshrl.u32 %v3955_v3, 16 }
  0x72   : > { %vm4010_vm7 = vc.u32 %v1740_v13, %v1744_v14 }
  0x73   : > { %3398 = vmatmul.msk.bf16.gmra.mxu1 %vm492_vm0, %v3611_v29  ;;  %v1641_v29 = vadd.s32 %v1640_v23, %v1631_v16  ;;  %v3898_v16 = vld [vmem:[%s3747_s10 + $0x50] sm:$0xff]  ;;  %v1376_v23 = vrot.slane %v3892_v12, 1 }
  0x74   : > { %v425_v33 = vshll.u32 %v3898_v16, 16  ;;  %v429_v36 = vshrl.u32 %v3898_v16, 16 }
  0x75   : > { %3592 = vmatmul.msk.bf16.gmra.mxu3 %vm492_vm0, %v1371_v6  ;;  %v1642_v37 = vshrl.u32 %v1641_v29, 4  ;;  %v1670_v6 = vadd.s32 %v1669_v61, %v1660_v46  ;;  %v1689_v29 = vshrl.u32 %v3873_v53, 16  ;;  %v3938_v42 = vsel %vm1356_vm1, %v1374_v10, %v1376_v23 }
  0x76   : > { %v3948_v53 = vrot.slane %v425_v33, 1  ;;  %v4001_v33 = vld [vmem:[%s3747_s10 + $0x60] sm:$0xff] }
  0x77   : > { %3373 = vmatmul.msk.bf16.gmra.mxu0 %vm492_vm0, %v404_v19  ;;  %v1643_v45 = vmul.u32 17, %v1642_v37  ;;  %v1709_v19 = vshrl.u32 %v3885_v4, 16 }
  0x78   : > { %v3973_v17 = vsel %vm344_vm2, %v423_v50, %v3948_v53 }
  0x79   : > { %3495 = vmatmul.msk.bf16.gmra.mxu2 %vm492_vm0, %v961_v26  ;;  %v3880_v60 = vsub.s32 %v3810_v44, %v1643_v45  ;;  %v3917_v26 = vld [vmem:[%s3747_s10 + $0x58] sm:$0xff]  ;;  %v1713_v37 = vmul.u32 61681, %v1709_v19  ;;  %v1698_v45 = vadd.s32 %v1697_v28, %v1687_v27  ;;  %v1714_v46 = vmul.u32 61680, %v1709_v19 }
  0x7a   : > { %v3990_v27 = vld [vmem:[%s3747_s10 + $0x58] sm:$0xff] }
  0x7b   : > { %vm2604_vm8 = vcmp.ne.s32.totalorder %v3880_v60, 0  ;;  %vm2638_vm9 = vcmp.lt.s32.totalorder %v3880_v60, 0  ;;  %v3904_v22 = vadd.s32 17, %v3880_v60  ;;  %v1717_v51 = vshll.u32 %v1713_v37, 16 }
  0x7c   : > { %vm3912_vm11 = vmand %vm2638_vm9, %vm2604_vm8  ;;  %v1699_v56 = vadd.s32 %v1698_v45, %v1689_v29  ;;  %v1722_v2 = vadd.s32 %v1720_v57, %v1714_v46  ;;  %v1718_v10 = vshrl.u32 %v1713_v37, 16  ;;  %v1743_v29 = vmul.u32 61680, %v1738_v55 }
  0x7d   : > { %v2740_v41 = vsel %vm3912_vm11, %v3904_v22, %v3880_v60  ;;  %vm1723_vm13 = vc.u32 %v1721_v58, %v1717_v51  ;;  %v433_v46 = vshll.u32 %v3990_v27, 16  ;;  %v986_v57 = vshrl.u32 %v3917_v26, 16 }
  0x7e   : > { %v1700_v63 = vshrl.u32 %v1699_v56, 4  ;;  %vm4028_vm8 = vcmp.ne.s32.totalorder %v2740_v41, 16  ;;  %v990_v22 = vshll.u32 %v4001_v33, 16  ;;  %vm2910_vm9 = vcmask 130048  }
  0x7f   : > { %v431_v41 = vor.u32 %v429_v36, %v3948_v53  ;;  %v4055_v12 = vrot.slane %v433_v46, 1 }
  0x80   : > { %v1701_v8 = vmul.u32 17, %v1700_v63 }
  0x82   : > { %v3980_v19 = vsub.s32 %v3858_v34, %v1701_v8 }
  0x83   : > { %3399 = vmatmul.msk.bf16.gmra.mxu1 %vm492_vm0, %v3819_v48  ;;  %v1671_v48 = vshrl.u32 %v1670_v6, 4  ;;  %v3960_v6 = vadd.s32 40, %v3810_v44 }
  0x84   : > { %vm2606_vm4 = vcmp.ne.s32.totalorder %v3980_v19, 0  ;;  %vm2640_vm5 = vcmp.lt.s32.totalorder %v3980_v19, 0  ;;  %v3997_v34 = vadd.s32 17, %v3980_v19 }
  0x85   : > { %3593 = vmatmul.msk.bf16.gmra.mxu3 %vm492_vm0, %v1373_v43  ;;  %v1672_v31 = vmul.u32 17, %v1671_v48  ;;  %v982_v43 = vshll.u32 %v3917_v26, 16  ;;  %vm4005_vm6 = vmand %vm2640_vm5, %vm2606_vm4  ;;  %v1767_v50 = vshrl.u32 %v3960_v6, 16  ;;  %v1749_v26 = vsel %vm4010_vm7, 1, %v3683_v62 }
  0x86   : > { %v2742_v25 = vsel %vm4005_vm6, %v3997_v34, %v3980_v19  ;;  %v1751_v59 = vadd.s32 %v1749_v26, %v1743_v29 }
  0x87   : > { %3374 = vmatmul.msk.bf16.gmra.mxu0 %vm492_vm0, %v412_v54  ;;  %v3943_v49 = vsub.s32 %v3831_v1, %v1672_v31  ;;  %v980_v54 = vor.u32 %v978_v15, %v976_v21  ;;  %v3953_v1 = vrot.slane %v982_v43, 1  ;;  %v1766_v31 = vand.u32 65535, %v3960_v6 }
  0x88   : > { %v1750_v43 = vadd.s32 %v1744_v14, %v1740_v13  ;;  %v1772_v8 = vmul.u32 61680, %v1767_v50  ;;  %vm4144_vm5 = vcmp.ne.s32.totalorder %v2742_v25, 16 }
  0x89   : > { %3496 = vmatmul.msk.bf16.gmra.mxu2 %vm492_vm0, %v969_v9  ;;  %vm2605_vm14 = vcmp.ne.s32.totalorder %v3943_v49, 0  ;;  %vm2639_vm15 = vcmp.lt.s32.totalorder %v3943_v49, 0  ;;  %v1724_v9 = vsel %vm1723_vm13, 1, %v3683_v62  ;;  %v3969_v48 = vadd.s32 17, %v3943_v49 }
  0x8a   : > { %v1726_v11 = vadd.s32 %v1724_v9, %v1722_v2  ;;  %v3977_v18 = vsel %vm344_vm2, %v980_v54, %v3953_v1  ;;  %vm3985_vm3 = vmand %vm2639_vm15, %vm2605_vm14  ;;  %vm1752_vm11 = vc.u32 %v1750_v43, %v1746_v30  ;;  %v1769_v55 = vmul.u32 61681, %v1766_v31 }
  0x8b   : > { %v988_v3 = vor.u32 %v986_v57, %v3953_v1  ;;  %v4068_v9 = vadd.s32 48, %v3810_v44  ;;  %v4077_v1 = vsel %vm344_vm2, %v431_v41, %v4055_v12 }
  0x8c   : > { %v1727_v21 = vadd.s32 %v1726_v11, %v1716_v0  ;;  %v1747_v0 = vshrl.u32 %v3957_v5, 16 }
  0x8e   : > { %v1728_v35 = vadd.s32 %v1727_v21, %v1718_v10 }
  0x90   : > { %v693_v61 = vpop.f32.mrf.mxu1  ;;  %v1729_v56 = vshrl.u32 %v1728_v35, 4 }
  0x93   : > { %3400 = vmatmul.msk.bf16.gmra.mxu1 %vm492_vm0, %v3837_v7  ;;  %v3983_v7 = vld [vmem:[%s3747_s10 + $0x60] sm:$0xff] }
  0x94   : > { %v1378_v32 = vrot.slane %v3983_v7, 1  ;;  %v553_v15 = vpop.f32.mrf.mxu0 }
  0x95   : > { %3594 = vmatmul.msk.bf16.gmra.mxu3 %vm492_vm0, %v3910_v24  ;;  %v2741_v24 = vsel %vm3985_vm3, %v3969_v48, %v3943_v49  ;;  %v694_v51 = vadd.f32 %v693_v61, %v553_v15  ;;  %v4033_v49 = vmul.u32 61680, %v1766_v31  ;;  %v4058_v61 = vmul.u32 61681, %v1767_v50 }
  0x96   : > { %v4046_v60 = vsel %vm1356_vm1, %v1376_v23, %v1378_v32  ;;  %v1753_v23 = vsel %vm1752_vm11, 1, %v3683_v62  ;;  %vm4079_vm15 = vcmp.ne.s32.totalorder %v2741_v24, 16  ;;  %v1795_v31 = vand.u32 65535, %v4068_v9 }
  0x97   : > { %3375 = vmatmul.msk.bf16.gmra.mxu0 %vm492_vm0, %v3926_v38  ;;  %v1730_v38 = vmul.u32 17, %v1729_v56  ;;  %v1755_v2 = vadd.s32 %v1753_v23, %v1751_v59  ;;  %v1773_v53 = vshll.u32 %v4033_v49, 16  ;;  %v1774_v37 = vshrl.u32 %v4033_v49, 16  ;;  %v4113_v49 = vld [vmem:[%s3747_s10 + $0x68] sm:$0xff] }
  0x98   : > { %v4014_v45 = vpop.f32.mrf.mxu1  ;;  %v1464_v58 = vpop.f32.mrf.mxu3  ;;  %v4124_v41 = vmul.u32 61680, %v1795_v31 }
  0x99   : > { %3497 = vmatmul.msk.bf16.gmra.mxu2 %vm492_vm0, %v3929_v40  ;;  %v4061_v63 = vsub.s32 %v3885_v4, %v1730_v38  ;;  %v1775_v40 = vshll.u32 %v4058_v61, 16  ;;  %v4073_v4 = vrot.slane %v990_v22, 1  ;;  %v1756_v5 = vadd.s32 %v1755_v2, %v1745_v47  ;;  %v4122_v38 = vld [vmem:[%s3747_s10 + $0x60] sm:$0xff] }
  0x9a   : > { %vm1777_vm14 = vc.u32 %v1769_v55, %v1773_v53  ;;  %v1779_v48 = vadd.s32 %v1773_v53, %v1769_v55  ;;  %v1776_v47 = vshrl.u32 %v4058_v61, 16  ;;  %v1798_v55 = vmul.u32 61681, %v1795_v31 }
  0x9b   : > { %vm2607_vm12 = vcmp.ne.s32.totalorder %v4061_v63, 0  ;;  %vm2641_vm13 = vcmp.lt.s32.totalorder %v4061_v63, 0  ;;  %v4084_v21 = vadd.s32 17, %v4061_v63  ;;  %v1757_v29 = vadd.s32 %v1756_v5, %v1747_v0 }
  0x9c   : > { %v1109_v10 = vpop.f32.mrf.mxu2  ;;  %v555_v11 = vpop.f32.mrf.mxu0  ;;  %v1778_v30 = vsel %vm1777_vm14, 1, %v3683_v62  ;;  %vm4092_vm3 = vmand %vm2641_vm13, %vm2607_vm12  ;;  %vm1781_vm4 = vc.u32 %v1779_v48, %v1775_v40  ;;  %v4106_v24 = vsel %vm344_vm2, %v988_v3, %v4073_v4  ;;  %v1380_v2 = vrot.slane %v4113_v49, 1 }
  0x9d   : > { %v1194_v13 = vadd.f32 %v1109_v10, %v694_v51  ;;  %v1780_v43 = vadd.s32 %v1778_v30, %v1772_v8  ;;  %v1758_v46 = vshrl.u32 %v1757_v29, 4  ;;  %v1782_v50 = vsel %vm1781_vm4, 1, %v3683_v62 }
  0x9e   : > { %v2743_v22 = vsel %vm4092_vm3, %v4084_v21, %v4061_v63  ;;  %v437_v53 = vshrl.u32 %v3990_v27, 16  ;;  %v441_v3 = vshll.u32 %v4122_v38, 16  ;;  %v1802_v48 = vshll.u32 %v4124_v41, 16 }
  0x9f   : > { %v1549_v15 = vadd.f32 %v1464_v58, %v1194_v13  ;;  %v1784_v57 = vadd.s32 %v1782_v50, %v1780_v43  ;;  %v1796_v58 = vshrl.u32 %v4068_v9, 16  ;;  %v1759_v26 = vmul.u32 17, %v1758_v46  ;;  %v4154_v13 = vld [vmem:[%s3747_s10 + $0x68] sm:$0xff] }
  0xa0   : > { %v698_v14 = vpop.f32.mrf.mxu1  ;;  %v1466_v35 = vpop.f32.mrf.mxu3  ;;  %v439_v25 = vor.u32 %v437_v53, %v4055_v12  ;;  %v4164_v30 = vrot.slane %v441_v3, 1  ;;  %vm1806_vm11 = vc.u32 %v1798_v55, %v1802_v48  ;;  %vm4209_vm13 = vcmp.ne.s32.totalorder %v2743_v22, 16 }
  0xa1   : > { %v2876_v51 = vsel %vm4028_vm8, %v1549_v15, 0.0  ;;  %v3095_v56 = vpack.c.bf16 %v1549_v15, %v1549_v15  ;;  %v1785_v23 = vadd.s32 %v1784_v57, %v1774_v37  ;;  %v4132_v0 = vsub.s32 %v3946_v52, %v1759_v26 }
  0xa2   : > { %v2911_v54 = vsel %vm2910_vm9, %v2876_v51, 0.0  ;;  %v2987_v59 = vmul.f32 %v2876_v51, %v2876_v51  ;;  %v1801_v5 = vmul.u32 61680, %v1796_v58 }
  0xa3   : > { %3401 = vmatmul.msk.bf16.gmra.mxu1 %vm492_vm0, %v3862_v39  ;;  %v696_v39 = vadd.f32 %v4014_v45, %v555_v11  ;;  %3130 = vst.msk [vmem:[%s4100_s14] sm:$0xf] %vm3129_vm10, %v3095_v56  ;;  %v1786_v10 = vadd.s32 %v1785_v23, %v1776_v47  ;;  %v4137_v11 = vmul.u32 61681, %v1796_v58  ;;  %vm2608_vm7 = vcmp.ne.s32.totalorder %v4132_v0, 0 }
  0xa4   : > { %v1111_v61 = vpop.f32.mrf.mxu2  ;;  %v558_v45 = vpop.f32.mrf.mxu0  ;;  %vm2642_vm8 = vcmp.lt.s32.totalorder %v4132_v0, 0  ;;  %v4151_v52 = vadd.s32 17, %v4132_v0  ;;  %v3021_v31 = vsel %vm2910_vm9, %v2987_v59, 0.0  ;;  %v1808_v58 = vadd.s32 %v1802_v48, %v1798_v55 }
  0xa5   : > { %3595 = vmatmul.msk.bf16.gmra.mxu3 %vm492_vm0, %v3938_v42  ;;  %v1195_v8 = vadd.f32 %v1111_v61, %v696_v39  ;;  %vm4159_vm6 = vmand %vm2642_vm8, %vm2608_vm7  ;;  %v1787_v34 = vshrl.u32 %v1786_v10, 4  ;;  %v699_v15 = vadd.f32 %v698_v14, %v558_v45  ;;  %v1804_v50 = vshll.u32 %v4137_v11, 16 }
  0xa6   : > { %v2744_v12 = vsel %vm4159_vm6, %v4151_v52, %v4132_v0  ;;  %v4198_v39 = vadd.s32 56, %v3810_v44  ;;  %v1807_v61 = vsel %vm1806_vm11, 1, %v3683_v62  ;;  %v1805_v53 = vshrl.u32 %v4137_v11, 16 }
  0xa7   : > { %v1550_v29 = vadd.f32 %v1466_v35, %v1195_v8  ;;  %3376 = vmatmul.msk.bf16.gmra.mxu0 %vm492_vm0, %v3973_v17  ;;  %v4172_v35 = vsel %vm1356_vm1, %v1378_v32, %v1380_v2  ;;  %v994_v17 = vshrl.u32 %v4001_v33, 16  ;;  %v1788_v14 = vmul.u32 17, %v1787_v34 }
  0xa8   : > { %v700_v40 = vpop.f32.mrf.mxu1  ;;  %v1469_v28 = vpop.f32.mrf.mxu3  ;;  %v998_v32 = vshll.u32 %v4154_v13, 16  ;;  %v1803_v33 = vshrl.u32 %v4124_v41, 16  ;;  %v1809_v63 = vadd.s32 %v1807_v61, %v1801_v5  ;;  %vm1810_vm3 = vc.u32 %v1808_v58, %v1804_v50 }
  0xa9   : > { %v2877_v37 = vsel %vm4079_vm15, %v1550_v29, 0.0  ;;  %v3096_v43 = vpack.c.bf16 %v1550_v29, %v1550_v29  ;;  %3498 = vmatmul.msk.bf16.gmra.mxu2 %vm492_vm0, %v3977_v18  ;;  %v4189_v20 = vsub.s32 %v3960_v6, %v1788_v14  ;;  %v4193_v18 = vsel %vm344_vm2, %v439_v25, %v4164_v30 }
  0xaa   : > { %v2912_v7 = vsel %vm2910_vm9, %v2877_v37, 0.0  ;;  %v2988_v46 = vmul.f32 %v2877_v37, %v2877_v37  ;;  %v4202_v6 = vor.u32 %v994_v17, %v4073_v4  ;;  %v4217_v55 = vrot.slane %v998_v32, 1  ;;  %v4249_v32 = vld [vmem:[%s3747_s10 + $0x68] sm:$0xff] }
  0xab   : > { %v2913_v47 = vadd.f32 %v2912_v7, %v2911_v54  ;;  %3131 = vst.msk [vmem:[%s4100_s14 + $0x4] sm:$0xf] %vm3129_vm10, %v3096_v43  ;;  %vm2609_vm12 = vcmp.ne.s32.totalorder %v4189_v20, 0  ;;  %vm2643_vm14 = vcmp.lt.s32.totalorder %v4189_v20, 0  ;;  %v4215_v23 = vadd.s32 17, %v4189_v20 }
  0xac   : > { %v3022_v51 = vsel %vm2910_vm9, %v2988_v46, 0.0  ;;  %v1114_v56 = vpop.f32.mrf.mxu2  ;;  %v560_v57 = vpop.f32.mrf.mxu0  ;;  %vm4220_vm15 = vmand %vm2643_vm14, %vm2609_vm12  ;;  %v1824_v21 = vand.u32 65535, %v4198_v39  ;;  %v1811_v3 = vsel %vm1810_vm3, 1, %v3683_v62  ;;  %v1825_v8 = vshrl.u32 %v4198_v39, 16 }
  0xad   : > { %v3023_v26 = vadd.f32 %v3022_v51, %v3021_v31  ;;  %v1196_v41 = vadd.f32 %v1114_v56, %v699_v15  ;;  %v701_v22 = vadd.f32 %v700_v40, %v560_v57  ;;  %v2745_v5 = vsel %vm4220_vm15, %v4215_v23, %v4189_v20  ;;  %v4237_v40 = vld [vmem:[%s3747_s10 + $0x70] sm:$0xff] }
  0xae   : > { %v1813_v29 = vadd.s32 %v1811_v3, %v1809_v63  ;;  %v1828_v34 = vmul.u32 61680, %v1824_v21  ;;  %v1829_v31 = vmul.u32 61681, %v1825_v8  ;;  %v4243_v15 = vadd.s32 64, %v3810_v44 }
  0xaf   : > { %v1551_v4 = vadd.f32 %v1469_v28, %v1196_v41  ;;  %v1827_v28 = vmul.u32 61681, %v1824_v21  ;;  %v1830_v14 = vmul.u32 61680, %v1825_v8  ;;  %v1382_v56 = vrot.slane %v4237_v40, 1 }
  0xb0   : > { %v703_v54 = vpop.f32.mrf.mxu1  ;;  %v1471_v45 = vpop.f32.mrf.mxu3  ;;  %v1814_v42 = vadd.s32 %v1813_v29, %v1803_v33  ;;  %v1831_v7 = vshll.u32 %v1828_v34, 16  ;;  %v1832_v46 = vshrl.u32 %v1828_v34, 16  ;;  %vm4257_vm4 = vcmp.ne.s32.totalorder %v2744_v12, 16  ;;  %v4267_v12 = vld [vmem:[%s3747_s10 + $0x70] sm:$0xff] }
  0xb1   : > { %v2878_v10 = vsel %vm4144_vm5, %v1551_v4, 0.0  ;;  %v3097_v48 = vpack.c.bf16 %v1551_v4, %v1551_v4  ;;  %v1833_v58 = vshll.u32 %v1829_v31, 16  ;;  %v1834_v63 = vshrl.u32 %v1829_v31, 16 }
  0xb2   : > { %v2989_v11 = vmul.f32 %v2878_v10, %v2878_v10  ;;  %v1815_v33 = vadd.s32 %v1814_v42, %v1805_v53  ;;  %vm1835_vm5 = vc.u32 %v1827_v28, %v1831_v7  ;;  %v1837_v41 = vadd.s32 %v1831_v7, %v1827_v28 }
  0xb3   : > { %3402 = vmatmul.msk.bf16.gmra.mxu1 %vm492_vm0, %v3898_v16  ;;  %v2914_v16 = vsel %vm2910_vm9, %v2878_v10, 0.0  ;;  %3132 = vst.msk [vmem:[%s4100_s14 + $0x8] sm:$0xf] %vm3129_vm10, %v3097_v48  ;;  %v445_v0 = vshrl.u32 %v4122_v38, 16  ;;  %v449_v52 = vshll.u32 %v4249_v32, 16  ;;  %v1006_v42 = vshll.u32 %v4267_v12, 16 }
  0xb4   : > { %v2915_v25 = vadd.f32 %v2914_v16, %v2913_v47  ;;  %v3024_v17 = vsel %vm2910_vm9, %v2989_v11, 0.0  ;;  %v1116_v37 = vpop.f32.mrf.mxu2  ;;  %v563_v43 = vpop.f32.mrf.mxu0  ;;  %v1816_v4 = vshrl.u32 %v1815_v33, 4  ;;  %vm1839_vm7 = vc.u32 %v1837_v41, %v1833_v58 }
  0xb5   : > { %3596 = vmatmul.msk.bf16.gmra.mxu3 %vm492_vm0, %v4046_v60  ;;  %v3025_v47 = vadd.f32 %v3024_v17, %v3023_v26  ;;  %v1197_v50 = vadd.f32 %v1116_v37, %v701_v22  ;;  %v704_v57 = vadd.f32 %v703_v54, %v563_v43  ;;  %v1836_v54 = vsel %vm1835_vm5, 1, %v3683_v62 }
  0xb6   : > { %v1838_v19 = vadd.s32 %v1836_v54, %v1830_v14  ;;  %v1840_v22 = vsel %vm1839_vm7, 1, %v3683_v62  ;;  %v447_v10 = vor.u32 %v445_v0, %v4164_v30  ;;  %v4279_v59 = vrot.slane %v449_v52, 1 }
  0xb7   : > { %v1552_v26 = vadd.f32 %v1471_v45, %v1197_v50  ;;  %3377 = vmatmul.msk.bf16.gmra.mxu0 %vm492_vm0, %v4077_v1  ;;  %v1817_v1 = vmul.u32 17, %v1816_v4  ;;  %v1002_v16 = vshrl.u32 %v4154_v13, 16  ;;  %v1853_v31 = vand.u32 65535, %v4243_v15 }
  0xb8   : > { %v705_v51 = vpop.f32.mrf.mxu1  ;;  %v1474_v61 = vpop.f32.mrf.mxu3  ;;  %v1842_v8 = vadd.s32 %v1840_v22, %v1838_v19  ;;  %vm4295_vm6 = vcmp.ne.s32.totalorder %v2745_v5, 16  ;;  %v4311_v23 = vrot.slane %v1006_v42, 1  ;;  %v1854_v5 = vshrl.u32 %v4243_v15, 16 }
  0xb9   : > { %v2879_v45 = vsel %vm4209_vm13, %v1552_v26, 0.0  ;;  %v3098_v21 = vpack.c.bf16 %v1552_v26, %v1552_v26  ;;  %3499 = vmatmul.msk.bf16.gmra.mxu2 %vm492_vm0, %v4106_v24  ;;  %v1818_v29 = vsub.s32 %v4068_v9, %v1817_v1  ;;  %v4288_v9 = vsel %vm344_vm2, %v4202_v6, %v4217_v55 }
  0xba   : > { %v2916_v53 = vsel %vm2910_vm9, %v2879_v45, 0.0  ;;  %v2990_v3 = vmul.f32 %v2879_v45, %v2879_v45  ;;  %v1843_v34 = vadd.s32 %v1842_v8, %v1832_v46  ;;  %v4304_v6 = vsel %vm1356_vm1, %v1380_v2, %v1382_v56  ;;  %v4347_v8 = vld [vmem:[%s3747_s10 + $0x70] sm:$0xff] }
  0xbb   : > { %v2917_v48 = vadd.f32 %v2916_v53, %v2915_v25  ;;  %3133 = vst.msk [vmem:[%s4100_s14 + $0xc] sm:$0xf] %vm3129_vm10, %v3098_v21  ;;  %vm2610_vm8 = vcmp.ne.s32.totalorder %v1818_v29, 0  ;;  %vm2644_vm11 = vcmp.lt.s32.totalorder %v1818_v29, 0  ;;  %v2712_v37 = vadd.s32 17, %v1818_v29  ;;  %v4343_v21 = vld [vmem:[%s3747_s10 + $0x78] sm:$0xff] }
  0xbc   : > { %v3026_v24 = vsel %vm2910_vm9, %v2990_v3, 0.0  ;;  %v1119_v11 = vpop.f32.mrf.mxu2  ;;  %v565_v28 = vpop.f32.mrf.mxu0  ;;  %v1844_v43 = vadd.s32 %v1843_v34, %v1834_v63  ;;  %vm4306_vm12 = vmand %vm2644_vm11, %vm2610_vm8  ;;  %v1004_v20 = vor.u32 %v1002_v16, %v4217_v55  ;;  %v4318_v2 = vsel %vm344_vm2, %v447_v10, %v4279_v59 }
  0xbd   : > { %v3027_v17 = vadd.f32 %v3026_v24, %v3025_v47  ;;  %v1198_v30 = vadd.f32 %v1119_v11, %v704_v57  ;;  %v706_v46 = vadd.f32 %v705_v51, %v565_v28  ;;  %v4320_v47 = vmul.u32 61680, %v1853_v31 }
  0xbe   : > { %v1845_v49 = vshrl.u32 %v1844_v43, 4  ;;  %v2746_v33 = vsel %vm4306_vm12, %v2712_v37, %v1818_v29  ;;  %v1856_v57 = vmul.u32 61681, %v1853_v31  ;;  %v4327_v41 = vmul.u32 61681, %v1854_v5 }
  0xbf   : > { %v1553_v14 = vadd.f32 %v1474_v61, %v1198_v30  ;;  %v4333_v61 = vsel %vm344_vm2, %v1004_v20, %v4311_v23  ;;  %v1859_v60 = vmul.u32 61680, %v1854_v5  ;;  %v1860_v4 = vshll.u32 %v4320_v47, 16 }
  0xc0   : > { %v708_v25 = vpop.f32.mrf.mxu1  ;;  %v1476_v7 = vpop.f32.mrf.mxu3  ;;  %v1861_v52 = vshrl.u32 %v4320_v47, 16  ;;  %v1862_v45 = vshll.u32 %v4327_v41, 16  ;;  %v1863_v3 = vshrl.u32 %v4327_v41, 16  ;;  %vm4349_vm14 = vcmp.ne.s32.totalorder %v2746_v33, 16 }
  0xc1   : > { %v2880_v50 = vsel %vm4257_vm4, %v1553_v14, 0.0  ;;  %v3099_v55 = vpack.c.bf16 %v1553_v14, %v1553_v14  ;;  %vm1864_vm13 = vc.u32 %v1856_v57, %v1860_v4  ;;  %v1866_v24 = vadd.s32 %v1860_v4, %v1856_v57 }
  0xc2   : > { %v2918_v51 = vsel %vm2910_vm9, %v2880_v50, 0.0  ;;  %v2991_v58 = vmul.f32 %v2880_v50, %v2880_v50  ;;  %v4361_v28 = vadd.s32 72, %v3810_v44  ;;  %v1384_v31 = vrot.slane %v4343_v21, 1 }
  0xc3   : > { %3403 = vmatmul.msk.bf16.gmra.mxu1 %vm492_vm0, %v3990_v27  ;;  %v1846_v27 = vmul.u32 17, %v1845_v49  ;;  %v2919_v26 = vadd.f32 %v2918_v51, %v2917_v48  ;;  %3134 = vst.msk [vmem:[%s4100_s14 + $0x10] sm:$0xf] %vm3129_vm10, %v3099_v55  ;;  %vm1868_vm5 = vc.u32 %v1866_v24, %v1862_v45  ;;  %v457_v37 = vshll.u32 %v4347_v8, 16 }
  0xc4   : > { %v3028_v63 = vsel %vm2910_vm9, %v2991_v58, 0.0  ;;  %v1121_v54 = vpop.f32.mrf.mxu2  ;;  %v568_v19 = vpop.f32.mrf.mxu0  ;;  %v1869_v14 = vsel %vm1868_vm5, 1, %v3683_v62  ;;  %v1883_v13 = vshrl.u32 %v4361_v28, 16 }
  0xc5   : > { %3597 = vmatmul.msk.bf16.gmra.mxu3 %vm492_vm0, %v4172_v35  ;;  %v1847_v0 = vsub.s32 %v4198_v39, %v1846_v27  ;;  %v3029_v1 = vadd.f32 %v3028_v63, %v3027_v17  ;;  %v1199_v22 = vadd.f32 %v1121_v54, %v706_v46  ;;  %v1865_v39 = vsel %vm1864_vm13, 1, %v3683_v62 }
  0xc6   : > { %v1867_v11 = vadd.s32 %v1865_v39, %v1859_v60  ;;  %v709_v34 = vadd.f32 %v708_v25, %v568_v19  ;;  %v453_v17 = vshrl.u32 %v4249_v32, 16  ;;  %v1887_v40 = vmul.u32 61681, %v1883_v13 }
  0xc7   : > { %vm2611_vm15 = vcmp.ne.s32.totalorder %v1847_v0, 0  ;;  %vm2645_vm3 = vcmp.lt.s32.totalorder %v1847_v0, 0  ;;  %v2713_v35 = vadd.s32 17, %v1847_v0  ;;  %v1554_v48 = vadd.f32 %v1476_v7, %v1199_v22  ;;  %3378 = vmatmul.msk.bf16.gmra.mxu0 %vm492_vm0, %v4193_v18 }
  0xc8   : > { %v710_v53 = vpop.f32.mrf.mxu1  ;;  %v1479_v29 = vpop.f32.mrf.mxu3  ;;  %vm4356_vm4 = vmand %vm2645_vm3, %vm2611_vm15  ;;  %v1882_v7 = vand.u32 65535, %v4361_v28  ;;  %v1871_v20 = vadd.s32 %v1869_v14, %v1867_v11  ;;  %v455_v55 = vor.u32 %v453_v17, %v4279_v59  ;;  %v4391_v19 = vrot.slane %v457_v37, 1 }
  0xc9   : > { %v2747_v42 = vsel %vm4356_vm4, %v2713_v35, %v1847_v0  ;;  %v2881_v18 = vsel %vm4295_vm6, %v1554_v48, 0.0  ;;  %v3100_v30 = vpack.c.bf16 %v1554_v48, %v1554_v48  ;;  %3500 = vmatmul.msk.bf16.gmra.mxu2 %vm492_vm0, %v4288_v9  ;;  %v4383_v9 = vsel %vm1356_vm1, %v1382_v56, %v1384_v31 }
  0xca   : > { %v2920_v43 = vsel %vm2910_vm9, %v2881_v18, 0.0  ;;  %v2992_v25 = vmul.f32 %v2881_v18, %v2881_v18  ;;  %v1885_v47 = vmul.u32 61681, %v1882_v7  ;;  %v1886_v50 = vmul.u32 61680, %v1882_v7 }
  0xcb   : > { %v2921_v36 = vadd.f32 %v2920_v43, %v2919_v26  ;;  %3135 = vst.msk [vmem:[%s4100_s14 + $0x14] sm:$0xf] %vm3129_vm10, %v3100_v30  ;;  %v1872_v27 = vadd.s32 %v1871_v20, %v1861_v52  ;;  %vm4387_vm7 = vcmp.ne.s32.totalorder %v2747_v42, 16  ;;  %v1888_v56 = vmul.u32 61680, %v1883_v13 }
  0xcc   : > { %v3030_v5 = vsel %vm2910_vm9, %v2992_v25, 0.0  ;;  %v1124_v46 = vpop.f32.mrf.mxu2  ;;  %v570_v49 = vpop.f32.mrf.mxu0  ;;  %v1889_v26 = vshll.u32 %v1886_v50, 16  ;;  %v1890_v60 = vshrl.u32 %v1886_v50, 16  ;;  %v1010_v59 = vshrl.u32 %v4267_v12, 16 }
  0xcd   : > { %v3031_v33 = vadd.f32 %v3030_v5, %v3029_v1  ;;  %v1200_v57 = vadd.f32 %v1124_v46, %v709_v34  ;;  %v711_v51 = vadd.f32 %v710_v53, %v570_v49  ;;  %v1873_v54 = vadd.s32 %v1872_v27, %v1863_v3  ;;  %v4397_v1 = vld [vmem:[%s3747_s10 + $0x78] sm:$0xff] }
  0xce   : > { %v1891_v0 = vshll.u32 %v1887_v40, 16  ;;  %v1892_v52 = vshrl.u32 %v1887_v40, 16  ;;  %vm1893_vm8 = vc.u32 %v1885_v47, %v1889_v26  ;;  %v1895_v45 = vadd.s32 %v1889_v26, %v1885_v47 }
  0xcf   : > { %v1555_v4 = vadd.f32 %v1479_v29, %v1200_v57  ;;  %v1874_v35 = vshrl.u32 %v1873_v54, 4  ;;  %v1894_v3 = vsel %vm1893_vm8, 1, %v3683_v62  ;;  %v4408_v24 = vsel %vm344_vm2, %v455_v55, %v4391_v19 }
  0xd0   : > { %v713_v58 = vpop.f32.mrf.mxu1  ;;  %v1481_v63 = vpop.f32.mrf.mxu3  ;;  %v1896_v48 = vadd.s32 %v1894_v3, %v1888_v56  ;;  %vm1897_vm6 = vc.u32 %v1895_v45, %v1891_v0  ;;  %v1012_v17 = vor.u32 %v1010_v59, %v4311_v23  ;;  %v1014_v18 = vshll.u32 %v4397_v1, 16 }
  0xd1   : > { %v2882_v22 = vsel %vm4349_vm14, %v1555_v4, 0.0  ;;  %v3101_v53 = vpack.c.bf16 %v1555_v4, %v1555_v4  ;;  %v1898_v16 = vsel %vm1897_vm6, 1, %v3683_v62  ;;  %v4419_v20 = vadd.s32 80, %v3810_v44 }
  0xd2   : > { %v2922_v39 = vsel %vm2910_vm9, %v2882_v22, 0.0  ;;  %v2993_v12 = vmul.f32 %v2882_v22, %v2882_v22  ;;  %v1900_v42 = vadd.s32 %v1898_v16, %v1896_v48 }
  0xd3   : > { %3404 = vmatmul.msk.bf16.gmra.mxu1 %vm492_vm0, %v4122_v38  ;;  %v2923_v29 = vadd.f32 %v2922_v39, %v2921_v36  ;;  %3136 = vst.msk [vmem:[%s4100_s14 + $0x18] sm:$0xf] %vm3129_vm10, %v3101_v53  ;;  %v1875_v38 = vmul.u32 17, %v1874_v35  ;;  %v4416_v36 = vrot.slane %v1014_v18, 1  ;;  %v1911_v49 = vand.u32 65535, %v4419_v20 }
  0xd4   : > { %v3032_v10 = vsel %vm2910_vm9, %v2993_v12, 0.0  ;;  %v1126_v11 = vpop.f32.mrf.mxu2  ;;  %v573_v34 = vpop.f32.mrf.mxu0  ;;  %v1901_v7 = vadd.s32 %v1900_v42, %v1890_v60  ;;  %v1912_v47 = vshrl.u32 %v4419_v20, 16 }
  0xd5   : > { %3598 = vmatmul.msk.bf16.gmra.mxu3 %vm492_vm0, %v4304_v6  ;;  %v3033_v30 = vadd.f32 %v3032_v10, %v3031_v33  ;;  %v1201_v37 = vadd.f32 %v1126_v11, %v711_v51  ;;  %v714_v43 = vadd.f32 %v713_v58, %v573_v34  ;;  %v1876_v14 = vsub.s32 %v4243_v15, %v1875_v38  ;;  %v4451_v34 = vld [vmem:[%s3747_s10 + $0x80] sm:$0xff] }
  0xd6   : > { %v4422_v6 = vadd.s32 88, %v3810_v44  ;;  %v1902_v15 = vadd.s32 %v1901_v7, %v1892_v52  ;;  %v4428_v46 = vsel %vm344_vm2, %v1012_v17, %v4416_v36  ;;  %v1914_v41 = vmul.u32 61681, %v1911_v49 }
  0xd7   : > { %v1556_v13 = vadd.f32 %v1481_v63, %v1201_v37  ;;  %3379 = vmatmul.msk.bf16.gmra.mxu0 %vm492_vm0, %v4318_v2  ;;  %vm2612_vm11 = vcmp.ne.s32.totalorder %v1876_v14, 0  ;;  %vm2646_vm12 = vcmp.lt.s32.totalorder %v1876_v14, 0  ;;  %v2714_v23 = vadd.s32 17, %v1876_v14 }
  0xd8   : > { %v715_v25 = vpop.f32.mrf.mxu1  ;;  %v1484_v5 = vpop.f32.mrf.mxu3  ;;  %vm2680_vm13 = vmand %vm2646_vm12, %vm2612_vm11  ;;  %v1940_v33 = vand.u32 65535, %v4422_v6  ;;  %v1903_v27 = vshrl.u32 %v1902_v15, 4  ;;  %v1915_v56 = vmul.u32 61680, %v1911_v49  ;;  %v1916_v26 = vmul.u32 61681, %v1912_v47 }
  0xd9   : > { %v2883_v50 = vsel %vm4387_vm7, %v1556_v13, 0.0  ;;  %v3102_v55 = vpack.c.bf16 %v1556_v13, %v1556_v13  ;;  %3501 = vmatmul.msk.bf16.gmra.mxu2 %vm492_vm0, %v4333_v61  ;;  %v2748_v2 = vsel %vm2680_vm13, %v2714_v23, %v1876_v14  ;;  %v1917_v54 = vmul.u32 61680, %v1912_v47 }
  0xda   : > { %v2924_v57 = vsel %vm2910_vm9, %v2883_v50, 0.0  ;;  %v2994_v51 = vmul.f32 %v2883_v50, %v2883_v50  ;;  %vm4438_vm14 = vcmp.ne.s32.totalorder %v2748_v2, 16  ;;  %v1904_v63 = vmul.u32 17, %v1903_v27  ;;  %v4468_v50 = vld [vmem:[%s3747_s10 + $0x78] sm:$0xff] }
  0xdb   : > { %v2925_v40 = vadd.f32 %v2924_v57, %v2923_v29  ;;  %3137 = vst.msk [vmem:[%s4100_s14 + $0x1c] sm:$0xf] %vm3129_vm10, %v3102_v55  ;;  %v1941_v59 = vshrl.u32 %v4422_v6, 16  ;;  %v1918_v53 = vshll.u32 %v1915_v56, 16  ;;  %v1919_v3 = vshrl.u32 %v1915_v56, 16 }
  0xdc   : > { %v3034_v60 = vsel %vm2910_vm9, %v2994_v51, 0.0  ;;  %v1129_v61 = vpop.f32.mrf.mxu2  ;;  %v575_v4 = vpop.f32.mrf.mxu0  ;;  %v1905_v35 = vsub.s32 %v4361_v28, %v1904_v63  ;;  %v1920_v39 = vshll.u32 %v1916_v26, 16  ;;  %v1921_v12 = vshrl.u32 %v1916_v26, 16 }
  0xdd   : > { %v3035_v0 = vadd.f32 %v3034_v60, %v3033_v30  ;;  %v1202_v52 = vadd.f32 %v1129_v61, %v714_v43  ;;  %v716_v45 = vadd.f32 %v715_v25, %v575_v4  ;;  %vm1922_vm15 = vc.u32 %v1914_v41, %v1918_v53 }
  0xde   : > { %v1924_v38 = vadd.s32 %v1918_v53, %v1914_v41  ;;  %v1943_v16 = vmul.u32 61681, %v1940_v33  ;;  %vm2613_vm3 = vcmp.ne.s32.totalorder %v1905_v35, 0  ;;  %vm2647_vm4 = vcmp.lt.s32.totalorder %v1905_v35, 0 }
  0xdf   : > { %v1557_v48 = vadd.f32 %v1484_v5, %v1202_v52  ;;  %v2715_v10 = vadd.s32 17, %v1905_v35  ;;  %v1923_v11 = vsel %vm1922_vm15, 1, %v3683_v62  ;;  %vm2681_vm5 = vmand %vm2647_vm4, %vm2613_vm3  ;;  %v1944_v7 = vmul.u32 61680, %v1940_v33 }
  0xe0   : > { %v718_v22 = vpop.f32.mrf.mxu1  ;;  %v1486_v29 = vpop.f32.mrf.mxu3  ;;  %v1925_v17 = vadd.s32 %v1923_v11, %v1917_v54  ;;  %vm1926_vm7 = vc.u32 %v1924_v38, %v1920_v39  ;;  %v1945_v15 = vmul.u32 61681, %v1941_v59  ;;  %v1946_v49 = vmul.u32 61680, %v1941_v59 }
  0xe1   : > { %v2884_v28 = vsel %vm4438_vm14, %v1557_v48, 0.0  ;;  %v3103_v42 = vpack.c.bf16 %v1557_v48, %v1557_v48  ;;  %v2749_v37 = vsel %vm2681_vm5, %v2715_v10, %v1905_v35  ;;  %v1927_v43 = vsel %vm1926_vm7, 1, %v3683_v62 }
  0xe2   : > { %v2926_v18 = vsel %vm2910_vm9, %v2884_v28, 0.0  ;;  %v2995_v30 = vmul.f32 %v2884_v28, %v2884_v28  ;;  %vm4459_vm8 = vcmp.ne.s32.totalorder %v2749_v37, 16  ;;  %v1929_v14 = vadd.s32 %v1927_v43, %v1925_v17  ;;  %v4501_v17 = vld [vmem:[%s3747_s10 + $0x88] sm:$0xff] }
  0xe3   : > { %3405 = vmatmul.msk.bf16.gmra.mxu1 %vm492_vm0, %v4249_v32  ;;  %v2927_v25 = vadd.f32 %v2926_v18, %v2925_v40  ;;  %3138 = vst.msk [vmem:[%s4100_s14 + $0x20] sm:$0xf] %vm3129_vm10, %v3103_v42  ;;  %v1386_v47 = vrot.slane %v4451_v34, 1  ;;  %v1947_v27 = vshll.u32 %v1944_v7, 16  ;;  %v1948_v33 = vshrl.u32 %v1944_v7, 16 }
  0xe4   : > { %v3036_v13 = vsel %vm2910_vm9, %v2995_v30, 0.0  ;;  %v1131_v5 = vpop.f32.mrf.mxu2  ;;  %v578_v23 = vpop.f32.mrf.mxu0  ;;  %v1930_v58 = vadd.s32 %v1929_v14, %v1919_v3  ;;  %v1949_v40 = vshll.u32 %v1945_v15, 16  ;;  %v1950_v41 = vshrl.u32 %v1945_v15, 16 }
  0xe5   : > { %3599 = vmatmul.msk.bf16.gmra.mxu3 %vm492_vm0, %v4383_v9  ;;  %v3037_v55 = vadd.f32 %v3036_v13, %v3035_v0  ;;  %v1203_v2 = vadd.f32 %v1131_v5, %v716_v45  ;;  %v719_v57 = vadd.f32 %v718_v22, %v578_v23  ;;  %v4477_v60 = vsel %vm1356_vm1, %v1384_v31, %v1386_v47  ;;  %v4489_v22 = vld [vmem:[%s3747_s10 + $0x80] sm:$0xff] }
  0xe6   : > { %v1931_v9 = vadd.s32 %v1930_v58, %v1921_v12  ;;  %v461_v61 = vshrl.u32 %v4347_v8, 16  ;;  %vm1951_vm6 = vc.u32 %v1943_v16, %v1947_v27  ;;  %v1953_v4 = vadd.s32 %v1947_v27, %v1943_v16 }
  0xe7   : > { %v1558_v56 = vadd.f32 %v1486_v29, %v1203_v2  ;;  %3380 = vmatmul.msk.bf16.gmra.mxu0 %vm492_vm0, %v4408_v24  ;;  %v465_v63 = vshll.u32 %v4468_v50, 16  ;;  %v1018_v54 = vshrl.u32 %v4397_v1, 16  ;;  %v1952_v31 = vsel %vm1951_vm6, 1, %v3683_v62 }
  0xe8   : > { %v720_v51 = vpop.f32.mrf.mxu1  ;;  %v1489_v26 = vpop.f32.mrf.mxu3  ;;  %v1932_v21 = vshrl.u32 %v1931_v9, 4  ;;  %v1954_v45 = vadd.s32 %v1952_v31, %v1946_v49  ;;  %vm1955_vm11 = vc.u32 %v1953_v4, %v1949_v40  ;;  %v463_v3 = vor.u32 %v461_v61, %v4391_v19 }
  0xe9   : > { %v2885_v24 = vsel %vm4459_vm8, %v1558_v56, 0.0  ;;  %v3104_v59 = vpack.c.bf16 %v1558_v56, %v1558_v56  ;;  %3502 = vmatmul.msk.bf16.gmra.mxu2 %vm492_vm0, %v4428_v46  ;;  %v1956_v35 = vsel %vm1955_vm11, 1, %v3683_v62  ;;  %v4496_v29 = vrot.slane %v465_v63, 1 }
  0xea   : > { %v2928_v0 = vsel %vm2910_vm9, %v2885_v24, 0.0  ;;  %v2996_v52 = vmul.f32 %v2885_v24, %v2885_v24  ;;  %v1933_v1 = vmul.u32 17, %v1932_v21  ;;  %v1958_v48 = vadd.s32 %v1956_v35, %v1954_v45 }
  0xeb   : > { %v2929_v53 = vadd.f32 %v2928_v0, %v2927_v25  ;;  %3139 = vst.msk [vmem:[%s4100_s14 + $0x24] sm:$0xf] %vm3129_vm10, %v3104_v59  ;;  %v1020_v38 = vor.u32 %v1018_v54, %v4416_v36  ;;  %v468_v19 = vsel %vm344_vm2, %v463_v3, %v4496_v29  ;;  %v1022_v30 = vshll.u32 %v4489_v22, 16 }
  0xec   : > { %v3038_v46 = vsel %vm2910_vm9, %v2996_v52, 0.0  ;;  %v1134_v39 = vpop.f32.mrf.mxu2  ;;  %v580_v12 = vpop.f32.mrf.mxu0  ;;  %v1934_v11 = vsub.s32 %v4419_v20, %v1933_v1  ;;  %v1959_v18 = vadd.s32 %v1958_v48, %v1948_v33  ;;  %v4507_v37 = vadd.s32 96, %v3810_v44 }
  0xed   : > { %v3039_v16 = vadd.f32 %v3038_v46, %v3037_v55  ;;  %v1204_v10 = vadd.f32 %v1134_v39, %v719_v57  ;;  %v721_v28 = vadd.f32 %v720_v51, %v580_v12  ;;  %v4511_v32 = vrot.slane %v1022_v30, 1 }
  0xee   : > { %vm2614_vm12 = vcmp.ne.s32.totalorder %v1934_v11, 0  ;;  %vm2648_vm13 = vcmp.lt.s32.totalorder %v1934_v11, 0  ;;  %v2716_v36 = vadd.s32 17, %v1934_v11  ;;  %v1960_v20 = vadd.s32 %v1959_v18, %v1950_v41 }
  0xef   : > { %v1559_v43 = vadd.f32 %v1489_v26, %v1204_v10  ;;  %vm2682_vm14 = vmand %vm2648_vm13, %vm2614_vm12  ;;  %v1969_v14 = vand.u32 65535, %v4507_v37  ;;  %v1970_v7 = vshrl.u32 %v4507_v37, 16  ;;  %v4516_v23 = vadd.s32 104, %v3810_v44 }
  0xf0   : > { %v723_v42 = vpop.f32.mrf.mxu1  ;;  %v1491_v25 = vpop.f32.mrf.mxu3  ;;  %v2750_v13 = vsel %vm2682_vm14, %v2716_v36, %v1934_v11  ;;  %v1388_v15 = vrot.slane %v4501_v17, 1  ;;  %v1961_v49 = vshrl.u32 %v1960_v20, 4  ;;  %v1025_v55 = vsel %vm344_vm2, %v1020_v38, %v4511_v32  ;;  %v4553_v20 = vld [vmem:[%s3747_s10 + $0x80] sm:$0xff] }
  0xf1   : > { %v3105_v5 = vpack.c.bf16 %v1559_v43, %v1559_v43  ;;  %vm2784_vm15 = vcmp.ne.s32.totalorder %v2750_v13, 16  ;;  %v1972_v2 = vmul.u32 61681, %v1969_v14  ;;  %v4523_v57 = vmul.u32 61680, %v1969_v14 }
  0xf2   : > { %v4525_v51 = vmul.u32 61681, %v1970_v7  ;;  %v1975_v58 = vmul.u32 61680, %v1970_v7  ;;  %v1962_v41 = vmul.u32 17, %v1961_v49  ;;  %v1998_v26 = vand.u32 65535, %v4516_v23  ;;  %v4560_v49 = vld [vmem:[%s3747_s10 + $0x88] sm:$0xff] }
  0xf3   : > { %3406 = vmatmul.msk.bf16.gmra.mxu1 %vm492_vm0, %v4347_v8  ;;  %v2886_v8 = vsel %vm2784_vm15, %v1559_v43, 0.0  ;;  %3140 = vst.msk [vmem:[%s4100_s14 + $0x28] sm:$0xf] %vm3129_vm10, %v3105_v5  ;;  %v1976_v54 = vshll.u32 %v4523_v57, 16  ;;  %v1977_v21 = vshrl.u32 %v4523_v57, 16  ;;  %v1999_v46 = vshrl.u32 %v4516_v23, 16 }
  0xf4   : > { %v2930_v27 = vsel %vm2910_vm9, %v2886_v8, 0.0  ;;  %v2997_v33 = vmul.f32 %v2886_v8, %v2886_v8  ;;  %v1136_v40 = vpop.f32.mrf.mxu2  ;;  %v583_v56 = vpop.f32.mrf.mxu0  ;;  %v1963_v59 = vsub.s32 %v4422_v6, %v1962_v41  ;;  %v1978_v31 = vshll.u32 %v4525_v51, 16 }
  0xf5   : > { %3600 = vmatmul.msk.bf16.gmra.mxu3 %vm492_vm0, %v4477_v60  ;;  %v2931_v9 = vadd.f32 %v2930_v27, %v2929_v53  ;;  %v1205_v61 = vadd.f32 %v1136_v40, %v721_v28  ;;  %v724_v4 = vadd.f32 %v723_v42, %v583_v56  ;;  %v1979_v45 = vshrl.u32 %v4525_v51, 16 }
  0xf6   : > { %v3040_v24 = vsel %vm2910_vm9, %v2997_v33, 0.0  ;;  %vm1980_vm3 = vc.u32 %v1972_v2, %v1976_v54  ;;  %vm2615_vm4 = vcmp.ne.s32.totalorder %v1963_v59, 0  ;;  %vm2649_vm5 = vcmp.lt.s32.totalorder %v1963_v59, 0 }
  0xf7   : > { %v3041_v0 = vadd.f32 %v3040_v24, %v3039_v16  ;;  %v1560_v52 = vadd.f32 %v1491_v25, %v1205_v61  ;;  %3381 = vmatmul.msk.bf16.gmra.mxu0 %vm492_vm0, %v468_v19  ;;  %v2717_v53 = vadd.s32 17, %v1963_v59  ;;  %v1981_v1 = vsel %vm1980_vm3, 1, %v3683_v62  ;;  %vm2683_vm7 = vmand %vm2649_vm5, %vm2615_vm4 }
  0xf8   : > { %v725_v63 = vpop.f32.mrf.mxu1  ;;  %v1494_v60 = vpop.f32.mrf.mxu3  ;;  %v1982_v35 = vadd.s32 %v1976_v54, %v1972_v2  ;;  %v1983_v3 = vadd.s32 %v1981_v1, %v1975_v58  ;;  %v2001_v12 = vmul.u32 61681, %v1998_v26  ;;  %v2002_v48 = vmul.u32 61680, %v1998_v26 }
  0xf9   : > { %v3106_v6 = vpack.c.bf16 %v1560_v52, %v1560_v52  ;;  %3503 = vmatmul.msk.bf16.gmra.mxu2 %vm492_vm0, %v1025_v55  ;;  %v2751_v39 = vsel %vm2683_vm7, %v2717_v53, %v1963_v59  ;;  %v1389_v38 = vsel %vm1356_vm1, %v1386_v47, %v1388_v15  ;;  %v4548_v16 = vmul.u32 61681, %v1999_v46 }
  0xfa   : > { %vm2785_vm8 = vcmp.ne.s32.totalorder %v2751_v39, 16  ;;  %vm1984_vm6 = vc.u32 %v1982_v35, %v1978_v31  ;;  %v2004_v10 = vmul.u32 61680, %v1999_v46  ;;  %v2005_v19 = vshll.u32 %v2002_v48, 16 }
  0xfb   : > { %3141 = vst.msk [vmem:[%s4100_s14 + $0x2c] sm:$0xf] %vm3129_vm10, %v3106_v6  ;;  %v2887_v11 = vsel %vm2785_vm8, %v1560_v52, 0.0  ;;  %v1985_v42 = vsel %vm1984_vm6, 1, %v3683_v62  ;;  %v2006_v30 = vshrl.u32 %v2002_v48, 16  ;;  %v2007_v13 = vshll.u32 %v4548_v16, 16 }
  0xfc   : > { %v1139_v28 = vpop.f32.mrf.mxu2  ;;  %v585_v18 = vpop.f32.mrf.mxu0  ;;  %v2932_v34 = vsel %vm2910_vm9, %v2887_v11, 0.0  ;;  %v2998_v43 = vmul.f32 %v2887_v11, %v2887_v11  ;;  %v1987_v36 = vadd.s32 %v1985_v42, %v1983_v3  ;;  %v2008_v5 = vshrl.u32 %v4548_v16, 16 }
  0xfd   : > { %v1206_v47 = vadd.f32 %v1139_v28, %v724_v4  ;;  %v4555_v14 = vadd.f32 %v2932_v34, %v2931_v9  ;;  %v726_v7 = vadd.f32 %v725_v63, %v585_v18  ;;  %vm2009_vm11 = vc.u32 %v2001_v12, %v2005_v19 }
  0xfe   : > { %v3042_v55 = vsel %vm2910_vm9, %v2998_v43, 0.0  ;;  %v1988_v8 = vadd.s32 %v1987_v36, %v1977_v21  ;;  %v2010_v58 = vsel %vm2009_vm11, 1, %v3683_v62  ;;  %v2011_v27 = vadd.s32 %v2005_v19, %v2001_v12 }
  0xff   : > { %v4563_v2 = vadd.f32 %v1494_v60, %v1206_v47  ;;  %v4565_v51 = vadd.f32 %v3042_v55, %v3041_v0  ;;  %v469_v33 = vshrl.u32 %v4468_v50, 16  ;;  %v2012_v56 = vadd.s32 %v2010_v58, %v2004_v10 }
 0x100   : > { %v728_v25 = vpop.f32.mrf.mxu1  ;;  %v1496_v57 = vpop.f32.mrf.mxu3  ;;  %v1989_v40 = vadd.s32 %v1988_v8, %v1979_v45  ;;  %v473_v26 = vshll.u32 %v4553_v20, 16  ;;  %vm2013_vm12 = vc.u32 %v2011_v27, %v2007_v13  ;;  %v1026_v61 = vshrl.u32 %v4489_v22, 16 }
 0x101   : > { %v3107_v41 = vpack.c.bf16 %v4563_v2, %v4563_v2  ;;  %v471_v9 = vor.u32 %v469_v33, %v4496_v29  ;;  %v1030_v4 = vshll.u32 %v4560_v49, 16  ;;  %v2014_v54 = vsel %vm2013_vm12, 1, %v3683_v62 }
 0x102   : > { %v1990_v63 = vshrl.u32 %v1989_v40, 4  ;;  %v4583_v24 = vadd.s32 112, %v3810_v44  ;;  %v2016_v21 = vadd.s32 %v2014_v54, %v2012_v56  ;;  %v1028_v29 = vor.u32 %v1026_v61, %v4511_v32 }
 0x103   : > { %3407 = vmatmul.msk.bf16.gmra.mxu1 %vm492_vm0, %v4468_v50  ;;  %3142 = vst.msk [vmem:[%s4100_s14 + $0x30] sm:$0xf] %vm3129_vm10, %v3107_v41  ;;  %v4580_v50 = vrot.slane %v473_v26, 1  ;;  %v4587_v22 = vrot.slane %v1030_v4, 1  ;;  %v4590_v0 = vadd.s32 120, %v3810_v44 }
 0x104   : > { %v1141_v59 = vpop.f32.mrf.mxu2  ;;  %v588_v31 = vpop.f32.mrf.mxu0  ;;  %v1991_v52 = vmul.u32 17, %v1990_v63  ;;  %v2017_v6 = vadd.s32 %v2016_v21, %v2006_v30  ;;  %v2027_v3 = vand.u32 65535, %v4583_v24  ;;  %v2028_v32 = vshrl.u32 %v4583_v24, 16 }
 0x105   : > { %3601 = vmatmul.msk.bf16.gmra.mxu3 %vm492_vm0, %v1389_v38  ;;  %v1207_v60 = vadd.f32 %v1141_v59, %v726_v7  ;;  %v729_v45 = vadd.f32 %v728_v25, %v588_v31  ;;  %v476_v53 = vsel %vm344_vm2, %v471_v9, %v4580_v50  ;;  %v1033_v35 = vsel %vm344_vm2, %v1028_v29, %v4587_v22 }
 0x106   : > { %v1992_v46 = vsub.s32 %v4507_v37, %v1991_v52  ;;  %v2056_v48 = vand.u32 65535, %v4590_v0  ;;  %v2057_v38 = vshrl.u32 %v4590_v0, 16  ;;  %v2018_v16 = vadd.s32 %v2017_v6, %v2008_v5 }
 0x107   : > { %v4599_v39 = vadd.f32 %v1496_v57, %v1207_v60  ;;  %3382 = vmatmul.msk.bf16.gmra.mxu0 %vm492_vm0, %v476_v53  ;;  %v2030_v10 = vmul.u32 61681, %v2027_v3  ;;  %v2031_v11 = vmul.u32 61680, %v2027_v3  ;;  %v4604_v28 = vmul.u32 61681, %v2028_v32 }
 0x108   : > { %v730_v1 = vpop.f32.mrf.mxu1  ;;  %v1499_v12 = vpop.f32.mrf.mxu3  ;;  %vm2616_vm2 = vcmp.ne.s32.totalorder %v1992_v46, 0  ;;  %vm2650_vm13 = vcmp.lt.s32.totalorder %v1992_v46, 0  ;;  %v2718_v42 = vadd.s32 17, %v1992_v46  ;;  %v2019_v18 = vshrl.u32 %v2018_v16, 4 }
 0x109   : > { %v3108_v37 = vpack.c.bf16 %v4599_v39, %v4599_v39  ;;  %3504 = vmatmul.msk.bf16.gmra.mxu2 %vm492_vm0, %v1033_v35  ;;  %vm2684_vm14 = vmand %vm2650_vm13, %vm2616_vm2  ;;  %v2033_v19 = vmul.u32 61680, %v2028_v32  ;;  %v2034_v30 = vshll.u32 %v2031_v11, 16  ;;  %v2035_v34 = vshrl.u32 %v2031_v11, 16  ;;  %v1262_v32 = vld [vmem:[%s3747_s10 + $0x90] sm:$0x1] }
 0x10a   : > { %v2752_v43 = vsel %vm2684_vm14, %v2718_v42, %v1992_v46  ;;  %v2036_v47 = vshll.u32 %v4604_v28, 16  ;;  %v2037_v36 = vshrl.u32 %v4604_v28, 16  ;;  %v2059_v25 = vmul.u32 61681, %v2056_v48 }
 0x10b   : > { %3143 = vst.msk [vmem:[%s4100_s14 + $0x34] sm:$0xf] %vm3129_vm10, %v3108_v37  ;;  %vm2786_vm15 = vcmp.ne.s32.totalorder %v2752_v43, 16  ;;  %v2020_v7 = vmul.u32 17, %v2019_v18  ;;  %vm2038_vm3 = vc.u32 %v2030_v10, %v2034_v30  ;;  %v2040_v5 = vadd.s32 %v2034_v30, %v2030_v10 }
 0x10c   : > { %v1144_v13 = vpop.f32.mrf.mxu2  ;;  %v590_v55 = vpop.f32.mrf.mxu0  ;;  %v2888_v8 = vsel %vm2786_vm15, %v4563_v2, 0.0  ;;  %v2039_v58 = vsel %vm2038_vm3, 1, %v3683_v62  ;;  %v2060_v63 = vmul.u32 61680, %v2056_v48  ;;  %v2061_v21 = vmul.u32 61681, %v2057_v38 }
 0x10d   : > { %v1208_v57 = vadd.f32 %v1144_v13, %v729_v45  ;;  %v731_v27 = vadd.f32 %v730_v1, %v590_v55  ;;  %v2934_v40 = vsel %vm2910_vm9, %v2888_v8, 0.0  ;;  %v2999_v41 = vmul.f32 %v2888_v8, %v2888_v8 }
 0x10e   : > { %v2021_v56 = vsub.s32 %v4516_v23, %v2020_v7  ;;  %v2041_v26 = vadd.s32 %v2039_v58, %v2033_v19  ;;  %v2935_v9 = vadd.f32 %v2934_v40, %v4555_v14  ;;  %vm2042_vm4 = vc.u32 %v2040_v5, %v2036_v47 }
 0x10f   : > { %v4618_v61 = vadd.f32 %v1499_v12, %v1208_v57  ;;  %v3044_v2 = vsel %vm2910_vm9, %v2999_v41, 0.0  ;;  %v2043_v23 = vsel %vm2042_vm4, 1, %v3683_v62  ;;  %v2062_v52 = vmul.u32 61680, %v2057_v38 }
 0x110   : > { %v733_v33 = vpop.f32.mrf.mxu1  ;;  %v1501_v4 = vpop.f32.mrf.mxu3  ;;  %vm2617_vm5 = vcmp.ne.s32.totalorder %v2021_v56, 0  ;;  %vm2651_vm7 = vcmp.lt.s32.totalorder %v2021_v56, 0  ;;  %v2719_v54 = vadd.s32 17, %v2021_v56  ;;  %v3045_v59 = vadd.f32 %v3044_v2, %v4565_v51 }
 0x111   : > { %vm2685_vm8 = vmand %vm2651_vm7, %vm2617_vm5  ;;  %v3109_v14 = vpack.c.bf16 %v4618_v61, %v4618_v61  ;;  %v2045_v29 = vadd.s32 %v2043_v23, %v2041_v26  ;;  %v2063_v60 = vshll.u32 %v2060_v63, 16  ;;  %v2064_v45 = vshrl.u32 %v2060_v63, 16 }
 0x112   : > { %v2753_v31 = vsel %vm2685_vm8, %v2719_v54, %v2021_v56  ;;  %v2065_v53 = vshll.u32 %v2061_v21, 16  ;;  %v2066_v1 = vshrl.u32 %v2061_v21, 16  ;;  %v1337_v19 = vunpack.c.l.b16 %v1262_v32 }
 0x113   : > { %3408 = vmatmul.msk.bf16.gmra.mxu1 %vm492_vm0, %v4553_v20  ;;  %vm2787_vm6 = vcmp.ne.s32.totalorder %v2753_v31, 16  ;;  %3144 = vst.msk [vmem:[%s4100_s14 + $0x38] sm:$0xf] %vm3129_vm10, %v3109_v14  ;;  %v2046_v6 = vadd.s32 %v2045_v29, %v2035_v34  ;;  %vm2067_vm11 = vc.u32 %v2059_v25, %v2063_v60  ;;  %v2069_v3 = vadd.s32 %v2063_v60, %v2059_v25 }
 0x114   : > { %v2889_v51 = vsel %vm2787_vm6, %v4599_v39, 0.0  ;;  %v1146_v35 = vpop.f32.mrf.mxu2  ;;  %v593_v46 = vpop.f32.mrf.mxu0  ;;  %v2068_v38 = vsel %vm2067_vm11, 1, %v3683_v62  ;;  %v477_v13 = vshrl.u32 %v4553_v20, 16  ;;  %v1034_v5 = vshrl.u32 %v4560_v49, 16 }
 0x115   : > { %v2936_v12 = vsel %vm2910_vm9, %v2889_v51, 0.0  ;;  %v3000_v48 = vmul.f32 %v2889_v51, %v2889_v51  ;;  %v1209_v16 = vadd.f32 %v1146_v35, %v731_v27  ;;  %v2047_v28 = vadd.s32 %v2046_v6, %v2037_v36 }
 0x116   : > { %v4633_v11 = vadd.f32 %v2936_v12, %v2935_v9  ;;  %v2070_v42 = vadd.s32 %v2068_v38, %v2062_v52  ;;  %vm2071_vm12 = vc.u32 %v2069_v3, %v2065_v53  ;;  %v734_v25 = vadd.f32 %v733_v33, %v593_v46 }
 0x117   : > { %v3046_v39 = vsel %vm2910_vm9, %v3000_v48, 0.0  ;;  %v4636_v37 = vadd.f32 %v1501_v4, %v1209_v16  ;;  %v2072_v18 = vsel %vm2071_vm12, 1, %v3683_v62  ;;  %v2048_v43 = vshrl.u32 %v2047_v28, 4 }
 0x118   : > { %v735_v10 = vpop.f32.mrf.mxu1  ;;  %v1504_v30 = vpop.f32.mrf.mxu3  ;;  %v4639_v34 = vadd.f32 %v3046_v39, %v3045_v59  ;;  %v2074_v47 = vadd.s32 %v2072_v18, %v2070_v42  ;;  %v1355_v36 = vpack.c.b16 %v1337_v19, %v1337_v19  ;;  %v4646_v57 = vadd.s32 128, %v3810_v44 }
 0x119   : > { %v3110_v7 = vpack.c.bf16 %v4636_v37, %v4636_v37  ;;  %v2049_v55 = vmul.u32 17, %v2048_v43  ;;  %v4649_v58 = vadd.s32 136, %v3810_v44  ;;  %v479_v33 = vor.u32 %v477_v13, %v4580_v50 }
 0x11a   : > { %v2075_v8 = vadd.s32 %v2074_v47, %v2064_v45  ;;  %v1390_v27 = vrot.slane %v1355_v36, 1  ;;  %v1036_v40 = vor.u32 %v1034_v5, %v4587_v22  ;;  %v4656_v41 = vadd.s32 144, %v3810_v44 }
 0x11b   : > { %3145 = vst.msk [vmem:[%s4100_s14 + $0x3c] sm:$0xf] %vm3129_vm10, %v3110_v7  ;;  %v2050_v20 = vsub.s32 %v4583_v24, %v2049_v55  ;;  %v2085_v26 = vand.u32 65535, %v4646_v57  ;;  %v2086_v9 = vshrl.u32 %v4646_v57, 16  ;;  %3383 = vmatmul.msk.bf16.gmra.mxu0 %vm492_vm0, %v479_v33  ;;  %v2114_v2 = vand.u32 65535, %v4649_v58 }
 0x11c   : > { %v2076_v49 = vadd.s32 %v2075_v8, %v2066_v1  ;;  %v1149_v56 = vpop.f32.mrf.mxu2  ;;  %v595_v4 = vpop.f32.mrf.mxu0  ;;  %v1391_v63 = vsel %vm1356_vm1, %v1388_v15, %v1390_v27  ;;  %3505 = vmatmul.msk.bf16.gmra.mxu2 %vm492_vm0, %v1036_v40  ;;  %v2115_v60 = vshrl.u32 %v4649_v58, 16 }
 0x11d   : > { %v1210_v50 = vadd.f32 %v1149_v56, %v734_v25  ;;  %v736_v22 = vadd.f32 %v735_v10, %v595_v4  ;;  %vm2618_vm2 = vcmp.ne.s32.totalorder %v2050_v20, 0  ;;  %vm2652_vm13 = vcmp.lt.s32.totalorder %v2050_v20, 0  ;;  %3602 = vmatmul.msk.bf16.gmra.mxu3 %vm492_vm0, %v1391_v63 }
 0x11e   : > { %v2720_v24 = vadd.s32 17, %v2050_v20  ;;  %v2077_v54 = vshrl.u32 %v2076_v49, 4  ;;  %vm2686_vm14 = vmand %vm2652_vm13, %vm2618_vm2  ;;  %v2088_v17 = vmul.u32 61681, %v2085_v26  ;;  %v2089_v23 = vmul.u32 61680, %v2085_v26 }
 0x11f   : > { %v4668_v59 = vadd.f32 %v1504_v30, %v1210_v50  ;;  %v2090_v15 = vmul.u32 61681, %v2086_v9  ;;  %v2091_v52 = vmul.u32 61680, %v2086_v9  ;;  %v2117_v30 = vmul.u32 61681, %v2114_v2 }
 0x120   : > { %v1506_v14 = vpop.f32.mrf.mxu3  ;;  %v738_v21 = vpop.f32.mrf.mxu1  ;;  %v2754_v31 = vsel %vm2686_vm14, %v2720_v24, %v2050_v20  ;;  %v2078_v29 = vmul.u32 17, %v2077_v54  ;;  %v2092_v45 = vshll.u32 %v2089_v23, 16  ;;  %v2093_v53 = vshrl.u32 %v2089_v23, 16 }
 0x121   : > { %vm2788_vm1 = vcmp.ne.s32.totalorder %v2754_v31, 16  ;;  %v2094_v1 = vshll.u32 %v2090_v15, 16  ;;  %v2095_v35 = vshrl.u32 %v2090_v15, 16  ;;  %v3111_v3 = vpack.c.bf16 %v4668_v59, %v4668_v59 }
 0x122   : > { %v2890_v51 = vsel %vm2788_vm1, %v4618_v61, 0.0  ;;  %v2079_v6 = vsub.s32 %v4590_v0, %v2078_v29  ;;  %vm2096_vm0 = vc.u32 %v2088_v17, %v2092_v45  ;;  %v2098_v12 = vadd.s32 %v2092_v45, %v2088_v17 }
 0x123   : > { %v2938_v32 = vsel %vm2910_vm9, %v2890_v51, 0.0  ;;  %v3001_v46 = vmul.f32 %v2890_v51, %v2890_v51  ;;  %3146 = vst.msk [vmem:[%s4100_s14 + $0x40] sm:$0xf] %vm3129_vm10, %v3111_v3  ;;  %v2097_v10 = vsel %vm2096_vm0, 1, %v3683_v62  ;;  %v2118_v43 = vmul.u32 61680, %v2114_v2 }
 0x124   : > { %v2939_v48 = vadd.f32 %v2938_v32, %v4633_v11  ;;  %vm2619_vm15 = vcmp.ne.s32.totalorder %v2079_v6, 0  ;;  %vm2653_vm3 = vcmp.lt.s32.totalorder %v2079_v6, 0  ;;  %v2721_v16 = vadd.s32 17, %v2079_v6  ;;  %v1151_v38 = vpop.f32.mrf.mxu2  ;;  %v598_v61 = vpop.f32.mrf.mxu0 }
 0x125   : > { %v3048_v0 = vsel %vm2910_vm9, %v3001_v46, 0.0  ;;  %vm2687_vm4 = vmand %vm2653_vm3, %vm2619_vm15  ;;  %vm2100_vm5 = vc.u32 %v2098_v12, %v2094_v1  ;;  %v1211_v28 = vadd.f32 %v1151_v38, %v736_v22  ;;  %v2099_v18 = vadd.s32 %v2097_v10, %v2091_v52 }
 0x126   : > { %v3049_v42 = vadd.f32 %v3048_v0, %v4639_v34  ;;  %v2755_v39 = vsel %vm2687_vm4, %v2721_v16, %v2079_v6  ;;  %v2101_v11 = vsel %vm2100_vm5, 1, %v3683_v62  ;;  %v2119_v36 = vmul.u32 61681, %v2115_v60 }
 0x127   : > { %vm2789_vm7 = vcmp.ne.s32.totalorder %v2755_v39, 16  ;;  %v4683_v19 = vadd.f32 %v1506_v14, %v1211_v28  ;;  %v2103_v7 = vadd.s32 %v2101_v11, %v2099_v18  ;;  %v2120_v13 = vmul.u32 61680, %v2115_v60 }
 0x128   : > { %v1509_v47 = vpop.f32.mrf.mxu3  ;;  %v2891_v25 = vsel %vm2789_vm7, %v4636_v37, 0.0  ;;  %v2121_v8 = vshll.u32 %v2118_v43, 16  ;;  %v2122_v34 = vshrl.u32 %v2118_v43, 16  ;;  %v740_v27 = vpop.f32.mrf.mxu1  ;;  %v2123_v20 = vshll.u32 %v2119_v36, 16 }
 0x129   : > { %v2940_v5 = vsel %vm2910_vm9, %v2891_v25, 0.0  ;;  %v3002_v55 = vmul.f32 %v2891_v25, %v2891_v25  ;;  %v2104_v40 = vadd.s32 %v2103_v7, %v2093_v53  ;;  %v2124_v49 = vshrl.u32 %v2119_v36, 16 }
 0x12a   : > { %v4687_v33 = vadd.f32 %v2940_v5, %v2939_v48  ;;  %vm2125_vm8 = vc.u32 %v2117_v30, %v2121_v8  ;;  %v2127_v26 = vadd.s32 %v2121_v8, %v2117_v30  ;;  %v3112_v37 = vpack.c.bf16 %v4683_v19, %v4683_v19 }
 0x12b   : > { %v3050_v56 = vsel %vm2910_vm9, %v3002_v55, 0.0  ;;  %v2105_v4 = vadd.s32 %v2104_v40, %v2095_v35  ;;  %v2126_v63 = vsel %vm2125_vm8, 1, %v3683_v62  ;;  %v739_v50 = vadd.f32 %v738_v21, %v598_v61 }
 0x12c   : > { %v4692_v9 = vadd.f32 %v3050_v56, %v3049_v42  ;;  %v1154_v22 = vpop.f32.mrf.mxu2  ;;  %v600_v2 = vpop.f32.mrf.mxu0  ;;  %v2128_v24 = vadd.s32 %v2126_v63, %v2120_v13  ;;  %vm2129_vm6 = vc.u32 %v2127_v26, %v2123_v20  ;;  %3147 = vst.msk [vmem:[%s4100_s14 + $0x44] sm:$0xf] %vm3129_vm10, %v3112_v37  ;;  %v2143_v54 = vand.u32 65535, %v4656_v41 }
 0x12d   : > { %v2144_v17 = vshrl.u32 %v4656_v41, 16  ;;  %v2106_v23 = vshrl.u32 %v2105_v4, 4  ;;  %v2130_v15 = vsel %vm2129_vm6, 1, %v3683_v62  ;;  %v1212_v14 = vadd.f32 %v1154_v22, %v739_v50 }
 0x12e   : > { %v741_v31 = vadd.f32 %v740_v27, %v600_v2  ;;  %v2132_v29 = vadd.s32 %v2130_v15, %v2128_v24  ;;  %v2146_v52 = vmul.u32 61681, %v2143_v54  ;;  %v2147_v60 = vmul.u32 61680, %v2143_v54 }
 0x12f   : > { %v2148_v45 = vmul.u32 61681, %v2144_v17  ;;  %v2107_v53 = vmul.u32 17, %v2106_v23  ;;  %v4700_v1 = vadd.f32 %v1509_v47, %v1212_v14  ;;  %v2149_v51 = vmul.u32 61680, %v2144_v17 }
 0x130   : > { %v1511_v21 = vpop.f32.mrf.mxu3  ;;  %v4703_v6 = vadd.s32 152, %v3810_v44  ;;  %v2133_v35 = vadd.s32 %v2132_v29, %v2122_v34  ;;  %v2150_v3 = vshll.u32 %v2147_v60, 16  ;;  %v2151_v32 = vshrl.u32 %v2147_v60, 16  ;;  %v743_v10 = vpop.f32.mrf.mxu1 }
 0x131   : > { %v2152_v46 = vshll.u32 %v2148_v45, 16  ;;  %v2108_v12 = vsub.s32 %v4646_v57, %v2107_v53  ;;  %v2153_v48 = vshrl.u32 %v2148_v45, 16  ;;  %v3113_v16 = vpack.c.bf16 %v4700_v1, %v4700_v1 }
 0x132   : > { %v2172_v38 = vand.u32 65535, %v4703_v6  ;;  %v2134_v61 = vadd.s32 %v2133_v35, %v2124_v49  ;;  %vm2154_vm11 = vc.u32 %v2146_v52, %v2150_v3  ;;  %v2156_v0 = vadd.s32 %v2150_v3, %v2146_v52 }
 0x133   : > { %v2173_v28 = vshrl.u32 %v4703_v6, 16  ;;  %vm2620_vm12 = vcmp.ne.s32.totalorder %v2108_v12, 0  ;;  %vm2654_vm2 = vcmp.lt.s32.totalorder %v2108_v12, 0  ;;  %v2722_v42 = vadd.s32 17, %v2108_v12  ;;  %3148 = vst.msk [vmem:[%s4100_s14 + $0x48] sm:$0xf] %vm3129_vm10, %v3113_v16 }
 0x134   : > { %v2155_v39 = vsel %vm2154_vm11, 1, %v3683_v62  ;;  %v1156_v57 = vpop.f32.mrf.mxu2  ;;  %v603_v18 = vpop.f32.mrf.mxu0  ;;  %vm2688_vm13 = vmand %vm2654_vm2, %vm2620_vm12  ;;  %v2135_v11 = vshrl.u32 %v2134_v61, 4  ;;  %vm2158_vm14 = vc.u32 %v2156_v0, %v2152_v46  ;;  %v2175_v7 = vmul.u32 61681, %v2172_v38 }
 0x135   : > { %v2157_v30 = vadd.s32 %v2155_v39, %v2149_v51  ;;  %v1213_v43 = vadd.f32 %v1156_v57, %v741_v31  ;;  %v2756_v47 = vsel %vm2688_vm13, %v2722_v42, %v2108_v12  ;;  %v2159_v25 = vsel %vm2158_vm14, 1, %v3683_v62 }
 0x136   : > { %v2176_v36 = vmul.u32 61680, %v2172_v38  ;;  %vm2790_vm1 = vcmp.ne.s32.totalorder %v2756_v47, 16  ;;  %v2136_v13 = vmul.u32 17, %v2135_v11  ;;  %v2177_v34 = vmul.u32 61681, %v2173_v28 }
 0x137   : > { %v2161_v5 = vadd.s32 %v2159_v25, %v2157_v30  ;;  %v4714_v55 = vadd.f32 %v1511_v21, %v1213_v43  ;;  %v2892_v8 = vsel %vm2790_vm1, %v4668_v59, 0.0  ;;  %v2178_v27 = vmul.u32 61680, %v2173_v28 }
 0x138   : > { %v2179_v40 = vshll.u32 %v2176_v36, 16  ;;  %v2942_v20 = vsel %vm2910_vm9, %v2892_v8, 0.0  ;;  %v3003_v49 = vmul.f32 %v2892_v8, %v2892_v8  ;;  %v2137_v56 = vsub.s32 %v4649_v58, %v2136_v13  ;;  %v1514_v37 = vpop.f32.mrf.mxu3  ;;  %v745_v29 = vpop.f32.mrf.mxu1 }
 0x139   : > { %v2162_v26 = vadd.s32 %v2161_v5, %v2151_v32  ;;  %v2943_v4 = vadd.f32 %v2942_v20, %v4687_v33  ;;  %v2180_v63 = vshrl.u32 %v2176_v36, 16  ;;  %v2181_v50 = vshll.u32 %v2177_v34, 16 }
 0x13a   : > { %v2182_v22 = vshrl.u32 %v2177_v34, 16  ;;  %v3052_v2 = vsel %vm2910_vm9, %v3003_v49, 0.0  ;;  %vm2621_vm0 = vcmp.ne.s32.totalorder %v2137_v56, 0  ;;  %vm2655_vm15 = vcmp.lt.s32.totalorder %v2137_v56, 0 }
 0x13b   : > { %v2723_v59 = vadd.s32 17, %v2137_v56  ;;  %v3053_v24 = vadd.f32 %v3052_v2, %v4692_v9  ;;  %vm2689_vm3 = vmand %vm2655_vm15, %vm2621_vm0  ;;  %v2163_v54 = vadd.s32 %v2162_v26, %v2153_v48  ;;  %vm2183_vm4 = vc.u32 %v2175_v7, %v2179_v40 }
 0x13c   : > { %v2185_v17 = vadd.s32 %v2179_v40, %v2175_v7  ;;  %v1159_v58 = vpop.f32.mrf.mxu2  ;;  %v605_v23 = vpop.f32.mrf.mxu0  ;;  %v2184_v33 = vsel %vm2183_vm4, 1, %v3683_v62  ;;  %v3114_v14 = vpack.c.bf16 %v4714_v55, %v4714_v55  ;;  %v744_v31 = vadd.f32 %v743_v10, %v603_v18 }
 0x13d   : > { %v2757_v15 = vsel %vm2689_vm3, %v2723_v59, %v2137_v56  ;;  %v2164_v52 = vshrl.u32 %v2163_v54, 4  ;;  %v2186_v60 = vadd.s32 %v2184_v33, %v2178_v27  ;;  %v4730_v53 = vadd.s32 160, %v3810_v44 }
 0x13e   : > { %vm2791_vm5 = vcmp.ne.s32.totalorder %v2757_v15, 16  ;;  %vm2187_vm7 = vc.u32 %v2185_v17, %v2181_v50  ;;  %3149 = vst.msk [vmem:[%s4100_s14 + $0x4c] sm:$0xf] %vm3129_vm10, %v3114_v14  ;;  %v1214_v21 = vadd.f32 %v1159_v58, %v744_v31  ;;  %v746_v0 = vadd.f32 %v745_v29, %v605_v23 }
 0x13f   : > { %v2893_v9 = vsel %vm2791_vm5, %v4683_v19, 0.0  ;;  %v2188_v45 = vsel %vm2187_vm7, 1, %v3683_v62  ;;  %v2165_v3 = vmul.u32 17, %v2164_v52  ;;  %v2201_v48 = vand.u32 65535, %v4730_v53 }
 0x140   : > { %v2944_v51 = vsel %vm2910_vm9, %v2893_v9, 0.0  ;;  %v3004_v35 = vmul.f32 %v2893_v9, %v2893_v9  ;;  %v2190_v32 = vadd.s32 %v2188_v45, %v2186_v60  ;;  %v4733_v12 = vadd.f32 %v1514_v37, %v1214_v21  ;;  %v1516_v57 = vpop.f32.mrf.mxu3  ;;  %v748_v27 = vpop.f32.mrf.mxu1 }
 0x141   : > { %v2945_v46 = vadd.f32 %v2944_v51, %v2943_v4  ;;  %v2202_v19 = vshrl.u32 %v4730_v53, 16  ;;  %v2166_v38 = vsub.s32 %v4656_v41, %v2165_v3  ;;  %v2204_v28 = vmul.u32 61681, %v2201_v48 }
 0x142   : > { %v3054_v16 = vsel %vm2910_vm9, %v3004_v35, 0.0  ;;  %v2191_v61 = vadd.s32 %v2190_v32, %v2180_v63  ;;  %v2205_v42 = vmul.u32 61680, %v2201_v48  ;;  %v3115_v8 = vpack.c.bf16 %v4733_v12, %v4733_v12 }
 0x143   : > { %v3055_v10 = vadd.f32 %v3054_v16, %v3053_v24  ;;  %v2206_v39 = vmul.u32 61681, %v2202_v19  ;;  %vm2622_vm8 = vcmp.ne.s32.totalorder %v2166_v38, 0  ;;  %vm2656_vm6 = vcmp.lt.s32.totalorder %v2166_v38, 0 }
 0x144   : > { %v2724_v18 = vadd.s32 17, %v2166_v38  ;;  %v2192_v11 = vadd.s32 %v2191_v61, %v2182_v22  ;;  %v1161_v30 = vpop.f32.mrf.mxu2  ;;  %vm2690_vm11 = vmand %vm2656_vm6, %vm2622_vm8  ;;  %v2207_v43 = vmul.u32 61680, %v2202_v19  ;;  %v2208_v47 = vshll.u32 %v2205_v42, 16  ;;  %v608_v36 = vpop.f32.mrf.mxu0  ;;  %3150 = vst.msk [vmem:[%s4100_s14 + $0x50] sm:$0xf] %vm3129_vm10, %v3115_v8 }
 0x145   : > { %v2209_v25 = vshrl.u32 %v2205_v42, 16  ;;  %v2210_v7 = vshll.u32 %v2206_v39, 16  ;;  %v2211_v5 = vshrl.u32 %v2206_v39, 16  ;;  %v1215_v40 = vadd.f32 %v1161_v30, %v746_v0 }
 0x146   : > { %v2758_v41 = vsel %vm2690_vm11, %v2724_v18, %v2166_v38  ;;  %v2193_v13 = vshrl.u32 %v2192_v11, 4  ;;  %vm2212_vm2 = vc.u32 %v2204_v28, %v2208_v47  ;;  %v2214_v34 = vadd.s32 %v2208_v47, %v2204_v28 }
 0x147   : > { %vm2792_vm12 = vcmp.ne.s32.totalorder %v2758_v41, 16  ;;  %v2213_v56 = vsel %vm2212_vm2, 1, %v3683_v62  ;;  %v4746_v26 = vadd.s32 168, %v3810_v44  ;;  %v4751_v59 = vadd.f32 %v1516_v57, %v1215_v40 }
 0x148   : > { %v2894_v20 = vsel %vm2792_vm12, %v4700_v1, 0.0  ;;  %v2194_v49 = vmul.u32 17, %v2193_v13  ;;  %v2215_v63 = vadd.s32 %v2213_v56, %v2207_v43  ;;  %vm2216_vm13 = vc.u32 %v2214_v34, %v2210_v7  ;;  %v1519_v29 = vpop.f32.mrf.mxu3  ;;  %v750_v0 = vpop.f32.mrf.mxu1 }
 0x149   : > { %v2946_v37 = vsel %vm2910_vm9, %v2894_v20, 0.0  ;;  %v3005_v4 = vmul.f32 %v2894_v20, %v2894_v20  ;;  %v2217_v2 = vsel %vm2216_vm13, 1, %v3683_v62  ;;  %v2230_v54 = vand.u32 65535, %v4746_v26 }
 0x14a   : > { %v2947_v50 = vadd.f32 %v2946_v37, %v2945_v46  ;;  %v2195_v22 = vsub.s32 %v4703_v6, %v2194_v49  ;;  %v2219_v24 = vadd.s32 %v2217_v2, %v2215_v63  ;;  %v2231_v17 = vshrl.u32 %v4746_v26, 16 }
 0x14b   : > { %v3056_v1 = vsel %vm2910_vm9, %v3005_v4, 0.0  ;;  %v2233_v14 = vmul.u32 61681, %v2230_v54  ;;  %v2234_v6 = vmul.u32 61680, %v2230_v54  ;;  %v3116_v9 = vpack.c.bf16 %v4751_v59, %v4751_v59 }
 0x14c   : > { %v3057_v58 = vadd.f32 %v3056_v1, %v3055_v10  ;;  %vm2623_vm14 = vcmp.ne.s32.totalorder %v2195_v22, 0  ;;  %vm2657_vm1 = vcmp.lt.s32.totalorder %v2195_v22, 0  ;;  %v2725_v23 = vadd.s32 17, %v2195_v22  ;;  %v1164_v15 = vpop.f32.mrf.mxu2  ;;  %v610_v3 = vpop.f32.mrf.mxu0 }
 0x14d   : > { %vm2691_vm0 = vmand %vm2657_vm1, %vm2623_vm14  ;;  %v2220_v33 = vadd.s32 %v2219_v24, %v2209_v25  ;;  %v2235_v31 = vmul.u32 61681, %v2231_v17  ;;  %v2236_v60 = vmul.u32 61680, %v2231_v17  ;;  %v749_v45 = vadd.f32 %v748_v27, %v608_v36  ;;  %3151 = vst.msk [vmem:[%s4100_s14 + $0x54] sm:$0xf] %vm3129_vm10, %v3116_v9 }
 0x14e   : > { %v2759_v52 = vsel %vm2691_vm0, %v2725_v23, %v2195_v22  ;;  %v2237_v51 = vshll.u32 %v2234_v6, 16  ;;  %v2238_v35 = vshrl.u32 %v2234_v6, 16  ;;  %v4767_v11 = vadd.s32 176, %v3810_v44 }
 0x14f   : > { %vm2793_vm15 = vcmp.ne.s32.totalorder %v2759_v52, 16  ;;  %v2221_v21 = vadd.s32 %v2220_v33, %v2211_v5  ;;  %v2239_v46 = vshll.u32 %v2235_v31, 16  ;;  %v2240_v48 = vshrl.u32 %v2235_v31, 16 }
 0x150   : > { %v2895_v32 = vsel %vm2793_vm15, %v4714_v55, 0.0  ;;  %v1216_v19 = vadd.f32 %v1164_v15, %v749_v45  ;;  %vm2241_vm3 = vc.u32 %v2233_v14, %v2237_v51  ;;  %v2243_v42 = vadd.s32 %v2237_v51, %v2233_v14  ;;  %v1521_v20 = vpop.f32.mrf.mxu3  ;;  %v753_v33 = vpop.f32.mrf.mxu1 }
 0x151   : > { %v2948_v16 = vsel %vm2910_vm9, %v2895_v32, 0.0  ;;  %v3006_v38 = vmul.f32 %v2895_v32, %v2895_v32  ;;  %v2222_v61 = vshrl.u32 %v2221_v21, 4  ;;  %v2242_v28 = vsel %vm2241_vm3, 1, %v3683_v62 }
 0x152   : > { %v2949_v10 = vadd.f32 %v2948_v16, %v2947_v50  ;;  %v4763_v39 = vadd.f32 %v1519_v29, %v1216_v19  ;;  %v2244_v18 = vadd.s32 %v2242_v28, %v2236_v60  ;;  %vm2245_vm4 = vc.u32 %v2243_v42, %v2239_v46 }
 0x153   : > { %v3058_v55 = vsel %vm2910_vm9, %v3006_v38, 0.0  ;;  %v2223_v57 = vmul.u32 17, %v2222_v61  ;;  %v751_v47 = vadd.f32 %v750_v0, %v610_v3  ;;  %v2246_v36 = vsel %vm2245_vm4, 1, %v3683_v62 }
 0x154   : > { %v3059_v30 = vadd.f32 %v3058_v55, %v3057_v58  ;;  %v3117_v43 = vpack.c.bf16 %v4763_v39, %v4763_v39  ;;  %v1166_v25 = vpop.f32.mrf.mxu2  ;;  %v2259_v41 = vand.u32 65535, %v4767_v11  ;;  %v2260_v13 = vshrl.u32 %v4767_v11, 16  ;;  %v613_v1 = vpop.f32.mrf.mxu0 }
 0x155   : > { %v2224_v7 = vsub.s32 %v4730_v53, %v2223_v57  ;;  %v2248_v5 = vadd.s32 %v2246_v36, %v2244_v18  ;;  %v1217_v8 = vadd.f32 %v1166_v25, %v751_v47  ;;  %v4778_v34 = vadd.s32 184, %v3810_v44 }
 0x156   : > { %3152 = vst.msk [vmem:[%s4100_s14 + $0x58] sm:$0xf] %vm3129_vm10, %v3117_v43  ;;  %v4781_v27 = vadd.s32 192, %v3810_v44  ;;  %v2262_v53 = vmul.u32 61681, %v2259_v41  ;;  %v2263_v56 = vmul.u32 61680, %v2259_v41  ;;  %v2264_v37 = vmul.u32 61681, %v2260_v13 }
 0x157   : > { %vm2624_vm5 = vcmp.ne.s32.totalorder %v2224_v7, 0  ;;  %vm2658_vm7 = vcmp.lt.s32.totalorder %v2224_v7, 0  ;;  %v2726_v40 = vadd.s32 17, %v2224_v7  ;;  %v2249_v49 = vadd.s32 %v2248_v5, %v2238_v35 }
 0x158   : > { %vm2692_vm8 = vmand %vm2658_vm7, %vm2624_vm5  ;;  %v2265_v4 = vmul.u32 61680, %v2260_v13  ;;  %v4783_v50 = vadd.f32 %v1521_v20, %v1217_v8  ;;  %v2288_v22 = vand.u32 65535, %v4778_v34  ;;  %v2289_v2 = vshrl.u32 %v4778_v34, 16  ;;  %v1524_v42 = vpop.f32.mrf.mxu3  ;;  %v755_v5 = vpop.f32.mrf.mxu1 }
 0x159   : > { %v2760_v63 = vsel %vm2692_vm8, %v2726_v40, %v2224_v7  ;;  %v2250_v24 = vadd.s32 %v2249_v49, %v2240_v48  ;;  %v2266_v54 = vshll.u32 %v2263_v56, 16  ;;  %v2267_v17 = vshrl.u32 %v2263_v56, 16 }
 0x15a   : > { %vm2794_vm6 = vcmp.ne.s32.totalorder %v2760_v63, 16  ;;  %v2268_v23 = vshll.u32 %v2264_v37, 16  ;;  %v2269_v15 = vshrl.u32 %v2264_v37, 16  ;;  %v2291_v14 = vmul.u32 61681, %v2288_v22 }
 0x15b   : > { %v2896_v58 = vsel %vm2794_vm6, %v4733_v12, 0.0  ;;  %v2251_v29 = vshrl.u32 %v2250_v24, 4  ;;  %vm2270_vm11 = vc.u32 %v2262_v53, %v2266_v54  ;;  %v2272_v45 = vadd.s32 %v2266_v54, %v2262_v53 }
 0x15c   : > { %v2950_v6 = vsel %vm2910_vm9, %v2896_v58, 0.0  ;;  %v3007_v31 = vmul.f32 %v2896_v58, %v2896_v58  ;;  %v1169_v52 = vpop.f32.mrf.mxu2  ;;  %v2271_v9 = vsel %vm2270_vm11, 1, %v3683_v62  ;;  %v2292_v21 = vmul.u32 61680, %v2288_v22  ;;  %v615_v43 = vpop.f32.mrf.mxu0 }
 0x15d   : > { %v2951_v60 = vadd.f32 %v2950_v6, %v2949_v10  ;;  %v2252_v35 = vmul.u32 17, %v2251_v29  ;;  %v2273_v3 = vadd.s32 %v2271_v9, %v2265_v4  ;;  %v2293_v12 = vmul.u32 61681, %v2289_v2 }
 0x15e   : > { %v3060_v51 = vsel %vm2910_vm9, %v3007_v31, 0.0  ;;  %vm2274_vm12 = vc.u32 %v2272_v45, %v2268_v23  ;;  %v2294_v46 = vmul.u32 61680, %v2289_v2  ;;  %v2295_v48 = vshll.u32 %v2292_v21, 16 }
 0x15f   : > { %v3061_v32 = vadd.f32 %v3060_v51, %v3059_v30  ;;  %v2253_v19 = vsub.s32 %v4746_v26, %v2252_v35  ;;  %v2275_v16 = vsel %vm2274_vm12, 1, %v3683_v62  ;;  %v2296_v38 = vshrl.u32 %v2292_v21, 16 }
 0x160   : > { %v2297_v61 = vshll.u32 %v2293_v12, 16  ;;  %v2277_v0 = vadd.s32 %v2275_v16, %v2273_v3  ;;  %v2298_v10 = vshrl.u32 %v2293_v12, 16  ;;  %vm2299_vm2 = vc.u32 %v2291_v14, %v2295_v48 }
 0x161   : > { %v2301_v28 = vadd.s32 %v2295_v48, %v2291_v14  ;;  %vm2625_vm13 = vcmp.ne.s32.totalorder %v2253_v19, 0  ;;  %vm2659_vm14 = vcmp.lt.s32.totalorder %v2253_v19, 0  ;;  %v2727_v55 = vadd.s32 17, %v2253_v19 }
 0x162   : > { %v2300_v57 = vsel %vm2299_vm2, 1, %v3683_v62  ;;  %vm2693_vm1 = vmand %vm2659_vm14, %vm2625_vm13  ;;  %v2278_v18 = vadd.s32 %v2277_v0, %v2267_v17  ;;  %v3118_v26 = vpack.c.bf16 %v4783_v50, %v4783_v50  ;;  %v754_v7 = vadd.f32 %v753_v33, %v613_v1 }
 0x163   : > { %v2302_v30 = vadd.s32 %v2300_v57, %v2294_v46  ;;  %vm2303_vm0 = vc.u32 %v2301_v28, %v2297_v61  ;;  %v2761_v47 = vsel %vm2693_vm1, %v2727_v55, %v2253_v19  ;;  %v2317_v36 = vand.u32 65535, %v4781_v27 }
 0x164   : > { %v2304_v25 = vsel %vm2303_vm0, 1, %v3683_v62  ;;  %vm2795_vm15 = vcmp.ne.s32.totalorder %v2761_v47, 16  ;;  %v2279_v41 = vadd.s32 %v2278_v18, %v2269_v15  ;;  %3153 = vst.msk [vmem:[%s4100_s14 + $0x5c] sm:$0xf] %vm3129_vm10, %v3118_v26  ;;  %v2318_v8 = vshrl.u32 %v4781_v27, 16  ;;  %v1171_v40 = vpop.f32.mrf.mxu2  ;;  %v618_v12 = vpop.f32.mrf.mxu0 }
 0x165   : > { %v2306_v13 = vadd.s32 %v2304_v25, %v2302_v30  ;;  %v2897_v53 = vsel %vm2795_vm15, %v4751_v59, 0.0  ;;  %v1218_v20 = vadd.f32 %v1169_v52, %v754_v7  ;;  %v2320_v49 = vmul.u32 61681, %v2317_v36 }
 0x166   : > { %v2321_v56 = vmul.u32 61680, %v2317_v36  ;;  %v2952_v37 = vsel %vm2910_vm9, %v2897_v53, 0.0  ;;  %v3008_v4 = vmul.f32 %v2897_v53, %v2897_v53  ;;  %v2280_v63 = vshrl.u32 %v2279_v41, 4 }
 0x167   : > { %v2307_v22 = vadd.s32 %v2306_v13, %v2296_v38  ;;  %v2953_v2 = vadd.f32 %v2952_v37, %v2951_v60  ;;  %v4803_v1 = vadd.f32 %v1524_v42, %v1218_v20  ;;  %v2322_v24 = vmul.u32 61681, %v2318_v8  ;;  %v1526_v60 = vpop.f32.mrf.mxu3  ;;  %v758_v38 = vpop.f32.mrf.mxu1 }
 0x168   : > { %v2323_v54 = vmul.u32 61680, %v2318_v8  ;;  %v3062_v17 = vsel %vm2910_vm9, %v3008_v4, 0.0  ;;  %v2281_v58 = vmul.u32 17, %v2280_v63  ;;  %v2324_v15 = vshll.u32 %v2321_v56, 16 }
 0x169   : > { %v2308_v23 = vadd.s32 %v2307_v22, %v2298_v10  ;;  %v3063_v33 = vadd.f32 %v3062_v17, %v3061_v32  ;;  %v2325_v59 = vshrl.u32 %v2321_v56, 16  ;;  %v2326_v14 = vshll.u32 %v2322_v24, 16 }
 0x16a   : > { %v2327_v6 = vshrl.u32 %v2322_v24, 16  ;;  %v2282_v31 = vsub.s32 %v4767_v11, %v2281_v58  ;;  %vm2328_vm3 = vc.u32 %v2320_v49, %v2324_v15  ;;  %v2330_v52 = vadd.s32 %v2324_v15, %v2320_v49 }
 0x16b   : > { %v2309_v29 = vshrl.u32 %v2308_v23, 4  ;;  %v2329_v9 = vsel %vm2328_vm3, 1, %v3683_v62  ;;  %v3119_v45 = vpack.c.bf16 %v4803_v1, %v4803_v1  ;;  %v756_v21 = vadd.f32 %v755_v5, %v615_v43 }
 0x16c   : > { %v4811_v51 = vadd.s32 200, %v3810_v44  ;;  %vm2626_vm4 = vcmp.ne.s32.totalorder %v2282_v31, 0  ;;  %vm2660_vm5 = vcmp.lt.s32.totalorder %v2282_v31, 0  ;;  %v2728_v35 = vadd.s32 17, %v2282_v31  ;;  %v1174_v0 = vpop.f32.mrf.mxu2 }
 0x16d   : > { %v2310_v3 = vmul.u32 17, %v2309_v29  ;;  %vm2694_vm7 = vmand %vm2660_vm5, %vm2626_vm4  ;;  %v2331_v11 = vadd.s32 %v2329_v9, %v2323_v54  ;;  %vm2332_vm8 = vc.u32 %v2330_v52, %v2326_v14  ;;  %3154 = vst.msk [vmem:[%s4100_s14 + $0x60] sm:$0xf] %vm3129_vm10, %v3119_v45  ;;  %v1219_v32 = vadd.f32 %v1171_v40, %v756_v21 }
 0x16e   : > { %v2346_v46 = vand.u32 65535, %v4811_v51  ;;  %v2762_v48 = vsel %vm2694_vm7, %v2728_v35, %v2282_v31  ;;  %v2333_v16 = vsel %vm2332_vm8, 1, %v3683_v62  ;;  %v2347_v61 = vshrl.u32 %v4811_v51, 16 }
 0x16f   : > { %v2311_v19 = vsub.s32 %v4778_v34, %v2310_v3  ;;  %vm2796_vm6 = vcmp.ne.s32.totalorder %v2762_v48, 16  ;;  %v2335_v10 = vadd.s32 %v2333_v16, %v2331_v11  ;;  %v4819_v28 = vadd.f32 %v1526_v60, %v1219_v32  ;;  %v1529_v53 = vpop.f32.mrf.mxu3  ;;  %v760_v15 = vpop.f32.mrf.mxu1 }
 0x170   : > { %v2349_v42 = vmul.u32 61681, %v2346_v46  ;;  %v2898_v55 = vsel %vm2796_vm6, %v4763_v39, 0.0  ;;  %v2350_v26 = vmul.u32 61680, %v2346_v46  ;;  %v2351_v25 = vmul.u32 61681, %v2347_v61 }
 0x171   : > { %vm2627_vm11 = vcmp.ne.s32.totalorder %v2311_v19, 0  ;;  %vm2661_vm12 = vcmp.lt.s32.totalorder %v2311_v19, 0  ;;  %v2729_v57 = vadd.s32 17, %v2311_v19  ;;  %v2954_v18 = vsel %vm2910_vm9, %v2898_v55, 0.0 }
 0x172   : > { %v3009_v30 = vmul.f32 %v2898_v55, %v2898_v55  ;;  %vm2695_vm2 = vmand %vm2661_vm12, %vm2627_vm11  ;;  %v2336_v34 = vadd.s32 %v2335_v10, %v2325_v59  ;;  %v2955_v43 = vadd.f32 %v2954_v18, %v2953_v2  ;;  %v2352_v7 = vmul.u32 61680, %v2347_v61  ;;  %v620_v2 = vpop.f32.mrf.mxu0 }
 0x173   : > { %v2763_v47 = vsel %vm2695_vm2, %v2729_v57, %v2311_v19  ;;  %v2353_v13 = vshll.u32 %v2350_v26, 16  ;;  %v2354_v8 = vshrl.u32 %v2350_v26, 16  ;;  %v2355_v40 = vshll.u32 %v2351_v25, 16 }
 0x174   : > { %v3064_v36 = vsel %vm2910_vm9, %v3009_v30, 0.0  ;;  %vm2797_vm13 = vcmp.ne.s32.totalorder %v2763_v47, 16  ;;  %v2337_v41 = vadd.s32 %v2336_v34, %v2327_v6  ;;  %v2356_v37 = vshrl.u32 %v2351_v25, 16  ;;  %v1176_v59 = vpop.f32.mrf.mxu2 }
 0x175   : > { %v3065_v5 = vadd.f32 %v3064_v36, %v3063_v33  ;;  %v2899_v39 = vsel %vm2797_vm13, %v4783_v50, 0.0  ;;  %vm2357_vm14 = vc.u32 %v2349_v42, %v2353_v13  ;;  %v2359_v63 = vadd.s32 %v2353_v13, %v2349_v42 }
 0x176   : > { %v2956_v20 = vsel %vm2910_vm9, %v2899_v39, 0.0  ;;  %v3010_v49 = vmul.f32 %v2899_v39, %v2899_v39  ;;  %v2338_v56 = vshrl.u32 %v2337_v41, 4  ;;  %v3120_v22 = vpack.c.bf16 %v4819_v28, %v4819_v28 }
 0x177   : > { %v2957_v4 = vadd.f32 %v2956_v20, %v2955_v43  ;;  %v2358_v50 = vsel %vm2357_vm14, 1, %v3683_v62  ;;  %v759_v17 = vadd.f32 %v758_v38, %v618_v12  ;;  %vm2361_vm1 = vc.u32 %v2359_v63, %v2355_v40  ;;  %v763_v13 = vpop.f32.mrf.mxu1 }
 0x178   : > { %v3066_v24 = vsel %vm2910_vm9, %v3010_v49, 0.0  ;;  %v2339_v54 = vmul.u32 17, %v2338_v56  ;;  %v2360_v23 = vadd.s32 %v2358_v50, %v2352_v7  ;;  %3155 = vst.msk [vmem:[%s4100_s14 + $0x64] sm:$0xf] %vm3129_vm10, %v3120_v22  ;;  %v4833_v33 = vadd.s32 208, %v3810_v44 }
 0x179   : > { %v3067_v58 = vadd.f32 %v3066_v24, %v3065_v5  ;;  %v2362_v6 = vsel %vm2361_vm1, 1, %v3683_v62  ;;  %v1220_v31 = vadd.f32 %v1174_v0, %v759_v17  ;;  %v761_v29 = vadd.f32 %v760_v15, %v620_v2  ;;  %v1531_v0 = vpop.f32.mrf.mxu3 }
 0x17a   : > { %v2340_v14 = vsub.s32 %v4781_v27, %v2339_v54  ;;  %v2364_v52 = vadd.s32 %v2362_v6, %v2360_v23  ;;  %v2375_v60 = vand.u32 65535, %v4833_v33  ;;  %v2376_v9 = vshrl.u32 %v4833_v33, 16  ;;  %v623_v26 = vpop.f32.mrf.mxu0 }
 0x17b   : > { %v4840_v45 = vadd.s32 216, %v3810_v44  ;;  %v4842_v35 = vadd.f32 %v1529_v53, %v1220_v31  ;;  %v1221_v19 = vadd.f32 %v1176_v59, %v761_v29  ;;  %v764_v15 = vadd.f32 %v763_v13, %v623_v26 }
 0x17c   : > { %vm2628_vm0 = vcmp.ne.s32.totalorder %v2340_v14, 0  ;;  %vm2662_vm15 = vcmp.lt.s32.totalorder %v2340_v14, 0  ;;  %v2730_v21 = vadd.s32 17, %v2340_v14  ;;  %v2365_v3 = vadd.s32 %v2364_v52, %v2354_v8  ;;  %v1179_v39 = vpop.f32.mrf.mxu2 }
 0x17d   : > { %vm2696_vm3 = vmand %vm2662_vm15, %vm2628_vm0  ;;  %v2378_v27 = vmul.u32 61681, %v2375_v60  ;;  %v2379_v12 = vmul.u32 61680, %v2375_v60  ;;  %v2380_v11 = vmul.u32 61681, %v2376_v9  ;;  %v2381_v46 = vmul.u32 61680, %v2376_v9 }
 0x17e   : > { %v2764_v32 = vsel %vm2696_vm3, %v2730_v21, %v2340_v14  ;;  %v3121_v48 = vpack.c.bf16 %v4842_v35, %v4842_v35  ;;  %v2366_v16 = vadd.s32 %v2365_v3, %v2356_v37  ;;  %v4849_v57 = vadd.f32 %v1531_v0, %v1221_v19 }
 0x17f   : > { %vm2798_vm4 = vcmp.ne.s32.totalorder %v2764_v32, 16  ;;  %v2382_v38 = vshll.u32 %v2379_v12, 16  ;;  %v2383_v61 = vshrl.u32 %v2379_v12, 16  ;;  %v2384_v42 = vshll.u32 %v2380_v11, 16 }
 0x180   : > { %v2900_v10 = vsel %vm2798_vm4, %v4803_v1, 0.0  ;;  %v2385_v55 = vshrl.u32 %v2380_v11, 16  ;;  %3156 = vst.msk [vmem:[%s4100_s14 + $0x68] sm:$0xf] %vm3129_vm10, %v3121_v48  ;;  %v2367_v34 = vshrl.u32 %v2366_v16, 4  ;;  %v2404_v7 = vand.u32 65535, %v4840_v45 }
 0x181   : > { %v2958_v18 = vsel %vm2910_vm9, %v2900_v10, 0.0  ;;  %v3011_v30 = vmul.f32 %v2900_v10, %v2900_v10  ;;  %vm2386_vm5 = vc.u32 %v2378_v27, %v2382_v38  ;;  %v2388_v25 = vadd.s32 %v2382_v38, %v2378_v27  ;;  %v1534_v59 = vpop.f32.mrf.mxu3 }
 0x182   : > { %v2959_v43 = vadd.f32 %v2958_v18, %v2957_v4  ;;  %v2387_v47 = vsel %vm2386_vm5, 1, %v3683_v62  ;;  %v2368_v36 = vmul.u32 17, %v2367_v34  ;;  %v2405_v5 = vshrl.u32 %v4840_v45, 16  ;;  %v625_v21 = vpop.f32.mrf.mxu0 }
 0x183   : > { %v3068_v1 = vsel %vm2910_vm9, %v3011_v30, 0.0  ;;  %v2389_v41 = vadd.s32 %v2387_v47, %v2381_v46  ;;  %vm2390_vm7 = vc.u32 %v2388_v25, %v2384_v42  ;;  %v2407_v40 = vmul.u32 61681, %v2404_v7  ;;  %v765_v46 = vpop.f32.mrf.mxu1 }
 0x184   : > { %v3069_v8 = vadd.f32 %v3068_v1, %v3067_v58  ;;  %v2408_v53 = vmul.u32 61680, %v2404_v7  ;;  %v2369_v20 = vsub.s32 %v4811_v51, %v2368_v36  ;;  %v2391_v49 = vsel %vm2390_vm7, 1, %v3683_v62 }
 0x185   : > { %v2409_v56 = vmul.u32 61681, %v2405_v5  ;;  %v2410_v37 = vmul.u32 61680, %v2405_v5  ;;  %v2393_v4 = vadd.s32 %v2391_v49, %v2389_v41  ;;  %v3122_v2 = vpack.c.bf16 %v4849_v57, %v4849_v57 }
 0x186   : > { %v2411_v63 = vshll.u32 %v2408_v53, 16  ;;  %v2412_v22 = vshrl.u32 %v2408_v53, 16  ;;  %vm2629_vm8 = vcmp.ne.s32.totalorder %v2369_v20, 0  ;;  %vm2663_vm6 = vcmp.lt.s32.totalorder %v2369_v20, 0 }
 0x187   : > { %v2731_v24 = vadd.s32 17, %v2369_v20  ;;  %v2413_v54 = vshll.u32 %v2409_v56, 16  ;;  %vm2697_vm11 = vmand %vm2663_vm6, %vm2629_vm8  ;;  %v2394_v50 = vadd.s32 %v2393_v4, %v2383_v61  ;;  %v2414_v17 = vshrl.u32 %v2409_v56, 16  ;;  %3157 = vst.msk [vmem:[%s4100_s14 + $0x6c] sm:$0xf] %vm3129_vm10, %v3122_v2 }
 0x188   : > { %vm2415_vm12 = vc.u32 %v2407_v40, %v2411_v63  ;;  %v2417_v51 = vadd.s32 %v2411_v63, %v2407_v40  ;;  %v4864_v14 = vadd.s32 224, %v3810_v44  ;;  %v1222_v60 = vadd.f32 %v1179_v39, %v764_v15 }
 0x189   : > { %v2765_v58 = vsel %vm2697_vm11, %v2731_v24, %v2369_v20  ;;  %v2416_v23 = vsel %vm2415_vm12, 1, %v3683_v62  ;;  %v2395_v6 = vadd.s32 %v2394_v50, %v2385_v55  ;;  %v766_v1 = vadd.f32 %v765_v46, %v625_v21  ;;  %v1536_v39 = vpop.f32.mrf.mxu3 }
 0x18a   : > { %vm2799_vm2 = vcmp.ne.s32.totalorder %v2765_v58, 16  ;;  %v2418_v31 = vadd.s32 %v2416_v23, %v2410_v37  ;;  %vm2419_vm13 = vc.u32 %v2417_v51, %v2413_v54  ;;  %v2433_v9 = vand.u32 65535, %v4864_v14  ;;  %v628_v4 = vpop.f32.mrf.mxu0 }
 0x18b   : > { %v2901_v29 = vsel %vm2799_vm2, %v4819_v28, 0.0  ;;  %v2420_v52 = vsel %vm2419_vm13, 1, %v3683_v62  ;;  %v2396_v12 = vshrl.u32 %v2395_v6, 4  ;;  %v4870_v48 = vadd.f32 %v1534_v59, %v1222_v60  ;;  %v1181_v28 = vpop.f32.mrf.mxu2  ;;  %v768_v51 = vpop.f32.mrf.mxu1 }
 0x18c   : > { %v2960_v3 = vsel %vm2910_vm9, %v2901_v29, 0.0  ;;  %v3012_v27 = vmul.f32 %v2901_v29, %v2901_v29  ;;  %v2422_v11 = vadd.s32 %v2420_v52, %v2418_v31  ;;  %v2434_v19 = vshrl.u32 %v4864_v14, 16 }
 0x18d   : > { %v2961_v32 = vadd.f32 %v2960_v3, %v2959_v43  ;;  %v2436_v16 = vmul.u32 61681, %v2433_v9  ;;  %v2397_v61 = vmul.u32 17, %v2396_v12  ;;  %v2437_v10 = vmul.u32 61680, %v2433_v9 }
 0x18e   : > { %v3070_v38 = vsel %vm2910_vm9, %v3012_v27, 0.0  ;;  %v2423_v0 = vadd.s32 %v2422_v11, %v2412_v22  ;;  %v2438_v55 = vmul.u32 61681, %v2434_v19  ;;  %v2439_v18 = vmul.u32 61680, %v2434_v19 }
 0x18f   : > { %v3071_v42 = vadd.f32 %v3070_v38, %v3069_v8  ;;  %v3123_v30 = vpack.c.bf16 %v4870_v48, %v4870_v48  ;;  %v2398_v34 = vsub.s32 %v4833_v33, %v2397_v61  ;;  %v2440_v43 = vshll.u32 %v2437_v10, 16 }
 0x190   : > { %v2424_v26 = vadd.s32 %v2423_v0, %v2414_v17  ;;  %v2441_v47 = vshrl.u32 %v2437_v10, 16  ;;  %v2442_v25 = vshll.u32 %v2438_v55, 16  ;;  %v2443_v7 = vshrl.u32 %v2438_v55, 16 }
 0x191   : > { %3158 = vst.msk [vmem:[%s4100_s14 + $0x70] sm:$0xf] %vm3129_vm10, %v3123_v30  ;;  %v4880_v36 = vadd.s32 232, %v3810_v44  ;;  %vm2630_vm14 = vcmp.ne.s32.totalorder %v2398_v34, 0  ;;  %vm2664_vm1 = vcmp.lt.s32.totalorder %v2398_v34, 0  ;;  %v2732_v41 = vadd.s32 17, %v2398_v34 }
 0x192   : > { %v2425_v13 = vshrl.u32 %v2424_v26, 4  ;;  %vm2698_vm0 = vmand %vm2664_vm1, %vm2630_vm14  ;;  %vm2444_vm15 = vc.u32 %v2436_v16, %v2440_v43  ;;  %v2446_v5 = vadd.s32 %v2440_v43, %v2436_v16  ;;  %v1223_v33 = vadd.f32 %v1181_v28, %v766_v1  ;;  %v1539_v28 = vpop.f32.mrf.mxu3 }
 0x193   : > { %v2462_v8 = vand.u32 65535, %v4880_v36  ;;  %v2766_v40 = vsel %vm2698_vm0, %v2732_v41, %v2398_v34  ;;  %v2445_v20 = vsel %vm2444_vm15, 1, %v3683_v62  ;;  %v2463_v49 = vshrl.u32 %v4880_v36, 16  ;;  %v1184_v23 = vpop.f32.mrf.mxu2 }
 0x194   : > { %v2426_v53 = vmul.u32 17, %v2425_v13  ;;  %vm2800_vm3 = vcmp.ne.s32.totalorder %v2766_v40, 16  ;;  %v2447_v56 = vadd.s32 %v2445_v20, %v2439_v18  ;;  %vm2448_vm4 = vc.u32 %v2446_v5, %v2442_v25  ;;  %v630_v18 = vpop.f32.mrf.mxu0  ;;  %v770_v25 = vpop.f32.mrf.mxu1 }
 0x195   : > { %v4885_v37 = vadd.f32 %v1536_v39, %v1223_v33  ;;  %v2902_v63 = vsel %vm2800_vm3, %v4842_v35, 0.0  ;;  %v2449_v2 = vsel %vm2448_vm4, 1, %v3683_v62  ;;  %v2465_v24 = vmul.u32 61681, %v2462_v8 }
 0x196   : > { %v2427_v22 = vsub.s32 %v4840_v45, %v2426_v53  ;;  %v2962_v54 = vsel %vm2910_vm9, %v2902_v63, 0.0  ;;  %v3013_v50 = vmul.f32 %v2902_v63, %v2902_v63  ;;  %v2451_v17 = vadd.s32 %v2449_v2, %v2447_v56 }
 0x197   : > { %v2466_v58 = vmul.u32 61680, %v2462_v8  ;;  %v2963_v15 = vadd.f32 %v2962_v54, %v2961_v32  ;;  %v2467_v31 = vmul.u32 61681, %v2463_v49  ;;  %v2468_v52 = vmul.u32 61680, %v2463_v49 }
 0x198   : > { %vm2631_vm5 = vcmp.ne.s32.totalorder %v2427_v22, 0  ;;  %vm2665_vm7 = vcmp.lt.s32.totalorder %v2427_v22, 0  ;;  %v2733_v59 = vadd.s32 17, %v2427_v22  ;;  %v3072_v6 = vsel %vm2910_vm9, %v3013_v50, 0.0 }
 0x199   : > { %vm2699_vm8 = vmand %vm2665_vm7, %vm2631_vm5  ;;  %v2452_v35 = vadd.s32 %v2451_v17, %v2441_v47  ;;  %v3073_v45 = vadd.f32 %v3072_v6, %v3071_v42  ;;  %v2469_v60 = vshll.u32 %v2466_v58, 16  ;;  %v2470_v21 = vshrl.u32 %v2466_v58, 16 }
 0x19a   : > { %v2767_v29 = vsel %vm2699_vm8, %v2733_v59, %v2427_v22  ;;  %v2471_v3 = vshll.u32 %v2467_v31, 16  ;;  %v3124_v11 = vpack.c.bf16 %v4885_v37, %v4885_v37  ;;  %v769_v0 = vadd.f32 %v768_v51, %v628_v4  ;;  %v1541_v50 = vpop.f32.mrf.mxu3 }
 0x19b   : > { %vm2801_vm6 = vcmp.ne.s32.totalorder %v2767_v29, 16  ;;  %v2453_v9 = vadd.s32 %v2452_v35, %v2443_v7  ;;  %vm2473_vm11 = vc.u32 %v2465_v24, %v2469_v60  ;;  %v2475_v12 = vadd.s32 %v2469_v60, %v2465_v24  ;;  %v1186_v41 = vpop.f32.mrf.mxu2 }
 0x19c   : > { %v2903_v27 = vsel %vm2801_vm6, %v4849_v57, 0.0  ;;  %v2474_v16 = vsel %vm2473_vm11, 1, %v3683_v62  ;;  %3159 = vst.msk [vmem:[%s4100_s14 + $0x74] sm:$0xf] %vm3129_vm10, %v3124_v11  ;;  %v4904_v55 = vadd.s32 240, %v3810_v44  ;;  %v2472_v34 = vshrl.u32 %v2467_v31, 16  ;;  %v773_v29 = vpop.f32.mrf.mxu1 }
 0x19d   : > { %v2964_v32 = vsel %vm2910_vm9, %v2903_v27, 0.0  ;;  %v3014_v46 = vmul.f32 %v2903_v27, %v2903_v27  ;;  %v2454_v19 = vshrl.u32 %v2453_v9, 4  ;;  %v2476_v61 = vadd.s32 %v2474_v16, %v2468_v52 }
 0x19e   : > { %v4897_v38 = vadd.f32 %v2964_v32, %v2963_v15  ;;  %vm2477_vm12 = vc.u32 %v2475_v12, %v2471_v3  ;;  %v1224_v43 = vadd.f32 %v1184_v23, %v769_v0  ;;  %v2491_v7 = vand.u32 65535, %v4904_v55  ;;  %v633_v15 = vpop.f32.mrf.mxu0 }
 0x19f   : > { %v3074_v57 = vsel %vm2910_vm9, %v3014_v46, 0.0  ;;  %v2455_v10 = vmul.u32 17, %v2454_v19  ;;  %v2478_v42 = vsel %vm2477_vm12, 1, %v3683_v62  ;;  %v2492_v1 = vshrl.u32 %v4904_v55, 16 }
 0x1a0   : > { %v4906_v30 = vadd.f32 %v3074_v57, %v3073_v45  ;;  %v2480_v26 = vadd.s32 %v2478_v42, %v2476_v61  ;;  %v4911_v5 = vadd.f32 %v1539_v28, %v1224_v43  ;;  %v4914_v39 = vadd.s32 248, %v3810_v44 }
 0x1a1   : > { %v2456_v47 = vsub.s32 %v4864_v14, %v2455_v10  ;;  %v771_v33 = vadd.f32 %v770_v25, %v630_v18  ;;  %v2494_v40 = vmul.u32 61681, %v2491_v7  ;;  %v2495_v53 = vmul.u32 61680, %v2491_v7 }
 0x1a2   : > { %v2481_v13 = vadd.s32 %v2480_v26, %v2470_v21  ;;  %v2496_v14 = vmul.u32 61681, %v2492_v1  ;;  %v3125_v49 = vpack.c.bf16 %v4911_v5, %v4911_v5  ;;  %v2497_v4 = vmul.u32 61680, %v2492_v1  ;;  %v1544_v43 = vpop.f32.mrf.mxu3 }
 0x1a3   : > { %vm2632_vm2 = vcmp.ne.s32.totalorder %v2456_v47, 0  ;;  %vm2666_vm13 = vcmp.lt.s32.totalorder %v2456_v47, 0  ;;  %v2734_v20 = vadd.s32 17, %v2456_v47  ;;  %v2498_v63 = vshll.u32 %v2495_v53, 16  ;;  %v1189_v9 = vpop.f32.mrf.mxu2 }
 0x1a4   : > { %v2482_v8 = vadd.s32 %v2481_v13, %v2472_v34  ;;  %vm4918_vm14 = vmand %vm2666_vm13, %vm2632_vm2  ;;  %v1225_v22 = vadd.f32 %v1186_v41, %v771_v33  ;;  %v2520_v2 = vand.u32 65535, %v4914_v39  ;;  %v2500_v54 = vshll.u32 %v2496_v14, 16  ;;  %3160 = vst.msk [vmem:[%s4100_s14 + $0x78] sm:$0xf] %vm3129_vm10, %v3125_v49 }
 0x1a5   : > { %v2521_v17 = vshrl.u32 %v4914_v39, 16  ;;  %vm2502_vm1 = vc.u32 %v2494_v40, %v2498_v63  ;;  %v2768_v51 = vsel %vm4918_vm14, %v2734_v20, %v2456_v47  ;;  %v2504_v23 = vadd.s32 %v2498_v63, %v2494_v40 }
 0x1a6   : > { %v2483_v24 = vshrl.u32 %v2482_v8, 4  ;;  %v2503_v58 = vsel %vm2502_vm1, 1, %v3683_v62  ;;  %v2499_v59 = vshrl.u32 %v2495_v53, 16  ;;  %v4929_v35 = vadd.f32 %v1541_v50, %v1225_v22  ;;  %v635_v13 = vpop.f32.mrf.mxu0 }
 0x1a7   : > { %v2505_v6 = vadd.s32 %v2503_v58, %v2497_v4  ;;  %v2524_v31 = vmul.u32 61680, %v2520_v2  ;;  %vm2506_vm0 = vc.u32 %v2504_v23, %v2500_v54  ;;  %v2523_v52 = vmul.u32 61681, %v2520_v2 }
 0x1a8   : > { %v2484_v45 = vmul.u32 17, %v2483_v24  ;;  %v2525_v60 = vmul.u32 61681, %v2521_v17  ;;  %v2507_v21 = vsel %vm2506_vm0, 1, %v3683_v62  ;;  %v4933_v3 = vadd.s32 256, %v3810_v44 }
 0x1a9   : > { %v2501_v27 = vshrl.u32 %v2496_v14, 16  ;;  %v2509_v12 = vadd.s32 %v2507_v21, %v2505_v6  ;;  %v2526_v11 = vmul.u32 61680, %v2521_v17  ;;  %v2527_v32 = vshll.u32 %v2524_v31, 16  ;;  %v775_v14 = vpop.f32.mrf.mxu1 }
 0x1aa   : > { %vm2802_vm15 = vcmp.ne.s32.totalorder %v2768_v51, 16  ;;  %v2529_v46 = vshll.u32 %v2525_v60, 16  ;;  %v3126_v19 = vpack.c.bf16 %v4929_v35, %v4929_v35  ;;  %v774_v16 = vadd.f32 %v773_v29, %v633_v15 }
 0x1ab   : > { %v4938_v28 = vsub.s32 %v4880_v36, %v2484_v45  ;;  %v2510_v61 = vadd.s32 %v2509_v12, %v2499_v59  ;;  %vm2531_vm3 = vc.u32 %v2523_v52, %v2527_v32  ;;  %v2533_v0 = vadd.s32 %v2527_v32, %v2523_v52  ;;  %v1191_v56 = vpop.f32.mrf.mxu2 }
 0x1ac   : > { %v2532_v57 = vsel %vm2531_vm3, 1, %v3683_v62  ;;  %3161 = vst.msk [vmem:[%s4100_s14 + $0x7c] sm:$0xf] %vm3129_vm10, %v3126_v19  ;;  %v1226_v10 = vadd.f32 %v1189_v9, %v774_v16  ;;  %v2549_v42 = vand.u32 65535, %v4933_v3  ;;  %v4945_v18 = vsel %vm2802_vm15, %v4870_v48, 0.0 }
 0x1ad   : > { %v2511_v34 = vadd.s32 %v2510_v61, %v2501_v27  ;;  %v2534_v26 = vadd.s32 %v2532_v57, %v2526_v11  ;;  %v2528_v47 = vshrl.u32 %v2524_v31, 16  ;;  %vm2535_vm4 = vc.u32 %v2533_v0, %v2529_v46  ;;  %v1546_v11 = vpop.f32.mrf.mxu3 }
 0x1ae   : > { %v4947_v36 = vadd.f32 %v1544_v43, %v1226_v10  ;;  %v2550_v25 = vshrl.u32 %v4933_v3, 16  ;;  %vm2633_vm5 = vcmp.ne.s32.totalorder %v4938_v28, 0  ;;  %v2530_v1 = vshrl.u32 %v2525_v60, 16 }
 0x1af   : > { %v2512_v7 = vshrl.u32 %v2511_v34, 4  ;;  %v2536_v41 = vsel %vm2535_vm4, 1, %v3683_v62  ;;  %v2552_v8 = vmul.u32 61681, %v2549_v42  ;;  %v2553_v48 = vmul.u32 61680, %v2549_v42 }
 0x1b0   : > { %v2538_v33 = vadd.s32 %v2536_v41, %v2534_v26  ;;  %v2554_v40 = vmul.u32 61681, %v2550_v25  ;;  %vm2667_vm7 = vcmp.lt.s32.totalorder %v4938_v28, 0  ;;  %v2555_v20 = vmul.u32 61680, %v2550_v25 }
 0x1b1   : > { %v2513_v53 = vmul.u32 17, %v2512_v7  ;;  %v3127_v49 = vpack.c.bf16 %v4947_v36, %v4947_v36  ;;  %v2556_v63 = vshll.u32 %v2553_v48, 16  ;;  %v776_v2 = vadd.f32 %v775_v14, %v635_v13  ;;  %vm4968_vm8 = vmand %vm2667_vm7, %vm2633_vm5 }
 0x1b2   : > { %v2539_v4 = vadd.s32 %v2538_v33, %v2528_v47  ;;  %v2558_v22 = vshll.u32 %v2554_v40, 16  ;;  %v3015_v24 = vmul.f32 %v4945_v18, %v4945_v18  ;;  %v2735_v54 = vadd.s32 17, %v4938_v28 }
 0x1b3   : > { %v2514_v50 = vsub.s32 %v4904_v55, %v2513_v53  ;;  %3162 = vst.msk [vmem:[%s4100_s14 + $0x80] sm:$0xf] %vm3129_vm10, %v3127_v49  ;;  %v4962_v17 = vadd.s32 264, %v3810_v44  ;;  %vm2560_vm6 = vc.u32 %v2552_v8, %v2556_v63  ;;  %v2562_v23 = vadd.s32 %v2556_v63, %v2552_v8 }
 0x1b4   : > { %v2540_v58 = vadd.s32 %v2539_v4, %v2530_v1  ;;  %v1227_v15 = vadd.f32 %v1191_v56, %v776_v2  ;;  %v2561_v59 = vsel %vm2560_vm6, 1, %v3683_v62  ;;  %v2557_v31 = vshrl.u32 %v2553_v48, 16 }
 0x1b5   : > { %vm2634_vm11 = vcmp.ne.s32.totalorder %v2514_v50, 0  ;;  %vm2668_vm12 = vcmp.lt.s32.totalorder %v2514_v50, 0  ;;  %v2736_v55 = vadd.s32 17, %v2514_v50  ;;  %v2563_v45 = vadd.s32 %v2561_v59, %v2555_v20 }
 0x1b6   : > { %vm4973_vm2 = vmand %vm2668_vm12, %vm2634_vm11  ;;  %v2541_v6 = vshrl.u32 %v2540_v58, 4  ;;  %vm2564_vm13 = vc.u32 %v2562_v23, %v2558_v22  ;;  %v2769_v29 = vsel %vm4968_vm8, %v2735_v54, %v4938_v28  ;;  %v2578_v60 = vand.u32 65535, %v4962_v17 }
 0x1b7   : > { %v2565_v52 = vsel %vm2564_vm13, 1, %v3683_v62  ;;  %v2579_v9 = vshrl.u32 %v4962_v17, 16  ;;  %v2770_v21 = vsel %vm4973_vm2, %v2736_v55, %v2514_v50  ;;  %v2559_v32 = vshrl.u32 %v2554_v40, 16 }
 0x1b8   : > { %v2542_v27 = vmul.u32 17, %v2541_v6  ;;  %v2567_v12 = vadd.s32 %v2565_v52, %v2563_v45  ;;  %v4985_v46 = vadd.f32 %v1546_v11, %v1227_v15  ;;  %v2582_v19 = vmul.u32 61680, %v2578_v60 }
 0x1b9   : > { %v2583_v16 = vmul.u32 61681, %v2579_v9  ;;  %vm2803_vm14 = vcmp.ne.s32.totalorder %v2769_v29, 16  ;;  %v2581_v0 = vmul.u32 61681, %v2578_v60  ;;  %v3076_v57 = vsel %vm2910_vm9, %v3015_v24, 0.0 }
 0x1ba   : > { %v2543_v28 = vsub.s32 %v4914_v39, %v2542_v27  ;;  %v2568_v61 = vadd.s32 %v2567_v12, %v2557_v31  ;;  %vm2804_vm1 = vcmp.ne.s32.totalorder %v2770_v21, 16  ;;  %v2585_v10 = vshll.u32 %v2582_v19, 16 }
 0x1bb   : > { %v2584_v34 = vmul.u32 61680, %v2579_v9  ;;  %v2905_v26 = vsel %vm2803_vm14, %v4885_v37, 0.0  ;;  %v2587_v47 = vshll.u32 %v2583_v16, 16  ;;  %v3128_v25 = vpack.c.bf16 %v4985_v46, %v4985_v46  ;;  %v3166_v37 = vld [vmem:[%s4100_s14 + $0x84] sm:$0xf] }
 0x1bc   : > { %vm2635_vm0 = vcmp.ne.s32.totalorder %v2543_v28, 0  ;;  %vm2669_vm15 = vcmp.lt.s32.totalorder %v2543_v28, 0  ;;  %v2737_v42 = vadd.s32 17, %v2543_v28  ;;  %v2569_v43 = vadd.s32 %v2568_v61, %v2559_v32 }
 0x1bd   : > { %vm2703_vm3 = vmand %vm2669_vm15, %vm2635_vm0  ;;  %vm2589_vm4 = vc.u32 %v2581_v0, %v2585_v10  ;;  %v2591_v7 = vadd.s32 %v2585_v10, %v2581_v0  ;;  %vm3164_vm5 = vsmask.f32 3328  ;;  %v2906_v1 = vsel %vm2804_vm1, %v4911_v5, 0.0 }
 0x1be   : > { %v2771_v39 = vsel %vm2703_vm3, %v2737_v42, %v2543_v28  ;;  %v2570_v41 = vshrl.u32 %v2569_v43, 4  ;;  %v2590_v13 = vsel %vm2589_vm4, 1, %v3683_v62  ;;  %vm3165_vm8 = vmand %vm3129_vm10, %vm3164_vm5  ;;  %v3016_v33 = vmul.f32 %v2905_v26, %v2905_v26 }
 0x1bf   : > { %vm2805_vm7 = vcmp.ne.s32.totalorder %v2771_v39, 16  ;;  %v2586_v8 = vshrl.u32 %v2582_v19, 16  ;;  %v2592_v48 = vadd.s32 %v2590_v13, %v2584_v34  ;;  %vm2593_vm6 = vc.u32 %v2591_v7, %v2587_v47 }
 0x1c0   : > { %v2907_v40 = vsel %vm2805_vm7, %v4929_v35, 0.0  ;;  %v2571_v53 = vmul.u32 17, %v2570_v41  ;;  %v2594_v14 = vsel %vm2593_vm6, 1, %v3683_v62  ;;  %v3017_v20 = vmul.f32 %v2906_v1, %v2906_v1 }
 0x1c1   : > { %v2588_v49 = vshrl.u32 %v2583_v16, 16  ;;  %v2596_v5 = vadd.s32 %v2594_v14, %v2592_v48  ;;  %v3167_v56 = vsel %vm3165_vm8, %v3128_v25, %v3166_v37  ;;  %v3077_v4 = vadd.f32 %v3076_v57, %v4906_v30 }
 0x1c2   : > { %v2572_v63 = vsub.s32 %v4933_v3, %v2571_v53  ;;  %3168 = vst [vmem:[%s4100_s14 + $0x84] sm:$0xf] %v3167_v56  ;;  %v3078_v22 = vsel %vm2910_vm9, %v3016_v33, 0.0  ;;  %v3018_v2 = vmul.f32 %v2907_v40, %v2907_v40  ;;  %vm3169_vm10 = vcmask 125955  }
 0x1c3   : > { %v2597_v24 = vadd.s32 %v2596_v5, %v2586_v8  ;;  %vm3170_vm2 = vsmask.f32 7950  ;;  %v3080_v62 = vsel %vm2910_vm9, %v3017_v20, 0.0  ;;  %v2966_v30 = vsel %vm2910_vm9, %v4945_v18, 0.0 }
 0x1c4   : > { %vm2636_vm11 = vcmp.ne.s32.totalorder %v2572_v63, 0  ;;  %vm2670_vm12 = vcmp.lt.s32.totalorder %v2572_v63, 0  ;;  %v2738_v35 = vadd.s32 17, %v2572_v63  ;;  %v3079_v50 = vadd.f32 %v3078_v22, %v3077_v4  ;;  %vm3171_vm1 = vmand %vm3169_vm10, %vm3170_vm2 }
 0x1c5   : > { %vm2704_vm13 = vmand %vm2670_vm12, %vm2636_vm11  ;;  %v2598_v54 = vadd.s32 %v2597_v24, %v2588_v49  ;;  %v3082_v51 = vsel %vm2910_vm9, %v3018_v2, 0.0  ;;  %v2968_v23 = vsel %vm2910_vm9, %v2905_v26, 0.0  ;;  %v2967_v59 = vadd.f32 %v2966_v30, %v4897_v38 }
 0x1c6   : > { %v2772_v3 = vsel %vm2704_vm13, %v2738_v35, %v2572_v63  ;;  %v3081_v15 = vadd.f32 %v3080_v62, %v3079_v50  ;;  %v2970_v18 = vsel %vm2910_vm9, %v2906_v1, 0.0  ;;  %v2972_v21 = vsel %vm2910_vm9, %v2907_v40, 0.0 }
 0x1c7   : > { %vm2806_vm14 = vcmp.ne.s32.totalorder %v2772_v3, 16  ;;  %v2599_v58 = vshrl.u32 %v2598_v54, 4  ;;  %v2969_v52 = vadd.f32 %v2968_v23, %v2967_v59  ;;  %vm2976_vm4 = vcmask 129024  }
 0x1c8   : > { %v2908_v55 = vsel %vm2806_vm14, %v4947_v36, 0.0  ;;  %v3083_v45 = vadd.f32 %v3082_v51, %v3081_v15 }
 0x1c9   : > { %v3019_v44 = vmul.f32 %v2908_v55, %v2908_v55  ;;  %v2600_v6 = vmul.u32 17, %v2599_v58  ;;  %v3172_v31 = vld [vmem:[%s4100_s14 + $0x84] sm:$0x8]  ;;  %v2971_v12 = vadd.f32 %v2970_v18, %v2969_v52  ;;  %v2974_v36 = vsel %vm2910_vm9, %v2908_v55, 0.0 }
 0x1ca   : > { %v3173_v29 = vsel %vm3171_vm1, 0, %v3172_v31 }
 0x1cb   : > { %v3084_v60 = vsel %vm2910_vm9, %v3019_v44, 0.0  ;;  %v2601_v9 = vsub.s32 %v4962_v17, %v2600_v6  ;;  %3174 = vst [vmem:[%s4100_s14 + $0x84] sm:$0x8] %v3173_v29  ;;  %v2973_v11 = vadd.f32 %v2972_v21, %v2971_v12  ;;  %vm2985_vm9 = vcmask 122880  }
 0x1cc   : > { %v3085_v27 = vadd.f32 %v3084_v60, %v3083_v45 }
 0x1cd   : > { %vm2637_vm0 = vcmp.ne.s32.totalorder %v2601_v9, 0  ;;  %vm2671_vm15 = vcmp.lt.s32.totalorder %v2601_v9, 0  ;;  %v2739_v38 = vadd.s32 17, %v2601_v9  ;;  %v2975_v19 = vadd.f32 %v2974_v36, %v2973_v11 }
 0x1ce   : > { %vm2705_vm3 = vmand %vm2671_vm15, %vm2637_vm0 }
 0x1cf   : > { %v2773_v32 = vsel %vm2705_vm3, %v2739_v38, %v2601_v9 }
 0x1d0   : > { %vm2807_vm5 = vcmp.ne.s32.totalorder %v2773_v32, 16 }
 0x1d1   : > { %v2909_v16 = vsel %vm2807_vm5, %v4985_v46, 0.0 }
 0x1d2   : > { %v2977_v17 = vsel %vm2976_vm4, %v2909_v16, 0.0  ;;  %v3020_v28 = vmul.f32 %v2909_v16, %v2909_v16 }
 0x1d3   : > { %v2978_v61 = vadd.f32 %v2977_v17, %v2975_v19 }
 0x1d4   : > { %v3086_v0 = vsel %vm2976_vm4, %v3020_v28, 0.0 }
 0x1d5   : > { %v2979_v57 = vrot.slane %v2978_v61, 4  ;;  %v3087_v10 = vadd.f32 %v3086_v0, %v3085_v27 }
 0x1d7   : > { %v2980_v42 = vadd.f32 %v2979_v57, %v2978_v61  ;;  %v3088_v34 = vrot.slane %v3087_v10, 4 }
 0x1d9   : > { %v2981_v26 = vrot.slane %v2980_v42, 2  ;;  %v3089_v43 = vadd.f32 %v3088_v34, %v3087_v10 }
 0x1db   : > { %v2982_v47 = vadd.f32 %v2981_v26, %v2980_v42  ;;  %v3090_v25 = vrot.slane %v3089_v43, 2 }
 0x1dd   : > { %v2983_v39 = vrot.slane %v2982_v47, 1  ;;  %v3091_v7 = vadd.f32 %v3090_v25, %v3089_v43 }
 0x1df   : > { %v2984_v46 = vadd.f32 %v2983_v39, %v2982_v47  ;;  %v3092_v1 = vrot.slane %v3091_v7, 1 }
 0x1e1   : > { %2986 = vst.msk [vmem:[%s211_s19] sm:$0x1] %vm2985_vm9, %v2984_v46  ;;  %v3093_v41 = vadd.f32 %v3092_v1, %v3091_v7 }
 0x1e3   : > { %3094 = vst.msk [vmem:[%s214_s22] sm:$0x1] %vm2985_vm9, %v3093_v41 }
 0x1e4 PF: > { %s15_s15 = sadd.s32 1, %s3681_s15  }
 0x1e5   : > { %p12_p4 = scmp.ge.s32.totalorder %s15_s15, 4  }
 0x1e7   :  { %14 = sbr.rel (!%p12_p4) target bundleno = 1 (0x1), region = 85 }

// kernel: tile.23
= control target key start
LH: loop header
LB: loop body
LE: loop exit
PB: predicated region body
PF: predicated region fallthrough
CT: control target
= control target key end

     0   :  { %s22_s0 = inlined_call_operand.vmem [shape: f32[16], index: 0, kind: input, shape index: {}]   ;;  %s23_s1 = inlined_call_operand.vmem [shape: f32[4,16], index: 1, kind: output, shape index: {}]  }
   0x1   :  { %v4_v0 = vld [vmem:[%s22_s0] ss:$0 sm:$0xff] }
   0x2   :  { %5 = vst [vmem:[%s23_s1] sm:$0xf] %v4_v0 }

// kernel: tile.24
= control target key start
LH: loop header
LB: loop body
LE: loop exit
PB: predicated region body
PF: predicated region fallthrough
CT: control target
= control target key end

     0   :  { %s37_s8 = smov 16   ;;  %s38_s9 = smov 32   ;;  %vm7_vm0 = vcmask 130048   ;;  %vm13_vm1 = vcmask 523648   ;;  %vm19_vm2 = vcmask 392448   ;;  %vm25_vm3 = vcmask 261248   ;;  %s55_s0 = inlined_call_operand.vmem [shape: f32[4,16], index: 0, kind: input, shape index: {}]   ;;  %s56_s1 = inlined_call_operand.vmem [shape: f32[1,64], index: 1, kind: output, shape index: {}]  }
   0x1   :  { %v4_v0 = vld [vmem:[%s55_s0] sm:$0xf]  ;;  %s36_s0 = smov 48  }
   0x2   :  { %5 = vst [vmem:[#allocation1] sm:$0xf] %v4_v0 }
   0x9   :  { %v10_v1 = vld [vmem:[#allocation1 + $0x3] sm:$0x1]   ;;  %v22_v2 = vld [vmem:[#allocation1 + $0x1] sm:$0x1]   ;;  %v16_v3 = vld [vmem:[#allocation1 + $0x2] sm:$0x1]  }
   0xa   :  { %11 = vrot.lane.b32.xlu0 %v10_v1, %s36_s0  ;;  %23 = vrot.lane.b32.xlu1 %v22_v2, %s37_s8  ;;  %v6_v4 = vld [vmem:[#allocation1] sm:$0x1]  }
   0xb   :  { %8 = vst.msk [vmem:[#allocation0] sm:$0x1] %vm7_vm0, %v6_v4  }
  0x12   :  { %17 = vrot.lane.b32.xlu0 %v16_v3, %s38_s9 }
  0x7c   :  { %v12_v5 = vpop.permute.xlu0 %11   ;;  %v24_v6 = vpop.permute.xlu1 %23  }
  0x7d   :  { %14 = vst.msk [vmem:[#allocation0] sm:$0x1] %vm13_vm1, %v12_v5  }
  0x84   :  { %v18_v7 = vpop.permute.xlu0 %17  }
  0x85   :  { %20 = vst.msk [vmem:[#allocation0] sm:$0x1] %vm19_vm2, %v18_v7  }
  0x86   :  { %26 = vst.msk [vmem:[#allocation0] sm:$0x1] %vm25_vm3, %v24_v6  }
  0x8d   :  { %v29_v8 = vld [vmem:[#allocation0] sm:$0x1] }
  0x8e   :  { %32 = vst [vmem:[%s56_s1] sm:$0x1] %v29_v8 }

// kernel: tile.33
= control target key start
LH: loop header
LB: loop body
LE: loop exit
PB: predicated region body
PF: predicated region fallthrough
CT: control target
= control target key end

     0   :  { %s22_s0 = inlined_call_operand.vmem [shape: f32[32], index: 0, kind: input, shape index: {}]   ;;  %s23_s1 = inlined_call_operand.vmem [shape: f32[4,32], index: 1, kind: output, shape index: {}]  }
   0x1   :  { %v4_v0 = vld [vmem:[%s22_s0] ss:$0 sm:$0xff] }
   0x2   :  { %5 = vst [vmem:[%s23_s1] sm:$0xf] %v4_v0 }

// kernel: tile.34
= control target key start
LH: loop header
LB: loop body
LE: loop exit
PB: predicated region body
PF: predicated region fallthrough
CT: control target
= control target key end

     0   :  { %s37_s8 = smov 32   ;;  %s38_s9 = smov 64   ;;  %vm7_vm0 = vcmask 261120   ;;  %vm13_vm1 = vcmask 1048320   ;;  %vm19_vm2 = vcmask 785920   ;;  %vm25_vm3 = vcmask 523520   ;;  %s55_s0 = inlined_call_operand.vmem [shape: f32[4,32], index: 0, kind: input, shape index: {}]   ;;  %s56_s1 = inlined_call_operand.vmem [shape: f32[1,128], index: 1, kind: output, shape index: {}]  }
   0x1   :  { %v4_v0 = vld [vmem:[%s55_s0] sm:$0xf]  ;;  %s36_s0 = smov 96  }
   0x2   :  { %5 = vst [vmem:[#allocation1] sm:$0xf] %v4_v0 }
   0x9   :  { %v10_v1 = vld [vmem:[#allocation1 + $0x3] sm:$0x1]   ;;  %v22_v2 = vld [vmem:[#allocation1 + $0x1] sm:$0x1]   ;;  %v16_v3 = vld [vmem:[#allocation1 + $0x2] sm:$0x1]  }
   0xa   :  { %11 = vrot.lane.b32.xlu0 %v10_v1, %s36_s0  ;;  %23 = vrot.lane.b32.xlu1 %v22_v2, %s37_s8  ;;  %v6_v4 = vld [vmem:[#allocation1] sm:$0x1]  }
   0xb   :  { %8 = vst.msk [vmem:[#allocation0] sm:$0x1] %vm7_vm0, %v6_v4  }
  0x12   :  { %17 = vrot.lane.b32.xlu0 %v16_v3, %s38_s9 }
  0x7c   :  { %v12_v5 = vpop.permute.xlu0 %11   ;;  %v24_v6 = vpop.permute.xlu1 %23  }
  0x7d   :  { %14 = vst.msk [vmem:[#allocation0] sm:$0x1] %vm13_vm1, %v12_v5  }
  0x84   :  { %v18_v7 = vpop.permute.xlu0 %17  }
  0x85   :  { %20 = vst.msk [vmem:[#allocation0] sm:$0x1] %vm19_vm2, %v18_v7  }
  0x86   :  { %26 = vst.msk [vmem:[#allocation0] sm:$0x1] %vm25_vm3, %v24_v6  }
  0x8d   :  { %v29_v8 = vld [vmem:[#allocation0] sm:$0x1] }
  0x8e   :  { %32 = vst [vmem:[%s56_s1] sm:$0x1] %v29_v8 }

// kernel: discriminator_forward.6
= control target key start
LH: loop header
LB: loop body
LE: loop exit
PB: predicated region body
PF: predicated region fallthrough
CT: control target
= control target key end

     0   :  { %s1716_s21 = smov 0   ;;  %s2259_s0 = inlined_call_operand.vmem [shape: bf16[2,81,64], index: 0, kind: input, shape index: {}]   ;;  %s2260_s1 = inlined_call_operand.vmem [shape: bf16[2,2,64,32], index: 1, kind: input, shape index: {}]   ;;  %s2261_s2 = inlined_call_operand.vmem [shape: f32[1,64], index: 2, kind: input, shape index: {}]   ;;  %s2262_s3 = inlined_call_operand.vmem [shape: f32[1,64], index: 3, kind: input, shape index: {}]   ;;  %s2263_s4 = inlined_call_operand.vmem [shape: bf16[2,72,32], index: 4, kind: output, shape index: {0}]   ;;  %s2264_s5 = inlined_call_operand.vmem [shape: f32[2,1,32], index: 5, kind: output, shape index: {1}]   ;;  %s2265_s6 = inlined_call_operand.vmem [shape: f32[2,1,32], index: 6, kind: output, shape index: {2}]  }
   0x1 LB: > { %s1467_s22 = sadd.s32 4294967295, %s1678_s21   ;;  %p1471_p0 = scmp.ge.s32.totalorder %s1678_s21, 1  ;;  %s1678_s21 = sphi %s1716_s21, %s17_s21  }
   0x2   : > { %p217_p1 = scmp.lt.s32.totalorder %s1678_s21, 3 }
   0x4   : > { %p218_p2 = pnand %p1471_p0, %p217_p1 }
   0x5   : > { %p253_p3 = scmp.lt.s32.totalorder (!%p218_p2), %s1467_s22, 1 }
   0x6   : > { %221 = sbr.rel (%p218_p2) target bundleno = 261 (0x105), region = 36 }
   0xb   : > { %v1587_v0 = vld [vmem:[%s2260_s1 + $0x18] sm:$0xff]  ;;  %v1586_v4 = vld [vmem:[%s2260_s1 + $0x10] sm:$0xff]  ;;  %s2295_s22 = smov (!%p253_p3, %s1467_s22), 1  ;;  %v1585_v8 = vld [vmem:[%s2260_s1 + $0x8] sm:$0xff]  ;;  %vm427_vm0 = vcmask 523264   ;;  %vm829_vm1 = vcmask 1046528  }
   0xc   : > { %v1599_v1 = vld [vmem:[%s2260_s1 + $0x78] sm:$0xff]  ;;  %514 = vmatpush.bf16.msra.mxu1 %v1587_v0  ;;  %v1598_v5 = vld [vmem:[%s2260_s1 + $0x70] sm:$0xff]  ;;  %s1659_s17 = smul.u32 44, %s2295_s22  ;;  %v1597_v9 = vld [vmem:[%s2260_s1 + $0x68] sm:$0xff]  ;;  %vm363_vm8 = vsmask.f32 7424  ;;  %s265_s25 = scalar_lea.vmem %s2264_s5, %s2295_s22 }
   0xd   : > { %v1591_v2 = vld [vmem:[%s2260_s1 + $0x38] sm:$0xff]  ;;  %882 = vmatpush.bf16.msra.mxu3 %v1599_v1  ;;  %v1590_v6 = vld [vmem:[%s2260_s1 + $0x30] sm:$0xff]  ;;  %v1589_v10 = vld [vmem:[%s2260_s1 + $0x28] sm:$0xff] }
   0xe   : > { %v1595_v3 = vld [vmem:[%s2260_s1 + $0x58] sm:$0xff]  ;;  %447 = vmatpush.bf16.msra.mxu0 %v1591_v2  ;;  %v1594_v7 = vld [vmem:[%s2260_s1 + $0x50] sm:$0xff]  ;;  %v1593_v11 = vld [vmem:[%s2260_s1 + $0x48] sm:$0xff]  ;;  %s1766_s28 = scalar_lea.vmem %s2259_s0, %s1659_s17  ;;  %s1660_s17 = smul.u32 36, %s2295_s22 }
   0xf   : > { %702 = vmatpush.bf16.msra.mxu2 %v1595_v3  ;;  %v1771_v12 = vld [vmem:[%s2261_s2] ss:$0 sm:$0xff]  ;;  %v740_v15 = vld [vmem:[%s1766_s28 + $0x4] sm:$0xe]  ;;  %v1655_v16 = vld [vmem:[%s1766_s28 + $0x8] sm:$0xff]  }
  0x10   : > { %515 = vmatpush.bf16.msra.mxu1 %v1586_v4  ;;  %v1776_v13 = vld [vmem:[%s2262_s3] ss:$0 sm:$0xff]  ;;  %v1634_v19 = vunpack.c.l.bf16 %v1655_v16  ;;  %v1635_v20 = vunpack.c.h.bf16 %v1655_v16  ;;  %v1656_v21 = vld [vmem:[%s1766_s28 + $0x10] sm:$0xff]   ;;  %v543_v22 = vld [vmem:[%s1766_s28 + $0x4] sm:$0xf]  ;;  %v750_v25 = vunpack.c.l.bf16 %v740_v15  ;;  %s1957_s20 = scalar_lea.vmem %s2263_s4, %s1660_s17 }
  0x11   : > { %883 = vmatpush.bf16.msra.mxu3 %v1598_v5  ;;  %v1601_v14 = vld [vmem:[%s1766_s28] sm:$0xff]   ;;  %v1784_v23 = vld [vmem:[%s1766_s28 + $0x18] sm:$0xff]   ;;  %v1638_v24 = vunpack.c.l.bf16 %v1656_v21  ;;  %v552_v26 = vunpack.c.l.bf16 %v543_v22  ;;  %v1639_v32 = vunpack.c.h.bf16 %v1656_v21 }
  0x12   : > { %448 = vmatpush.bf16.msra.mxu0 %v1590_v6  ;;  %v1602_v17 = vunpack.c.l.bf16 %v1601_v14  ;;  %v1603_v18 = vunpack.c.h.bf16 %v1601_v14  ;;  %v1584_v27 = vld [vmem:[%s2260_s1] sm:$0xff]  ;;  %v761_v31 = vmul.f32 %v1771_v12, %v1634_v19  ;;  %v760_v33 = vmul.f32 %v1771_v12, %v750_v25 }
  0x13   : > { %703 = vmatpush.bf16.msra.mxu2 %v1594_v7  ;;  %v1596_v28 = vld [vmem:[%s2260_s1 + $0x60] sm:$0xff]  ;;  %v762_v34 = vmul.f32 %v1771_v12, %v1635_v20  ;;  %v763_v35 = vmul.f32 %v1771_v12, %v1638_v24  ;;  %v1642_v38 = vunpack.c.l.bf16 %v1784_v23  ;;  %v561_v0 = vmul.f32 %v1771_v12, %v552_v26 }
  0x14   : > { %516 = vmatpush.bf16.msra.mxu1 %v1585_v8  ;;  %v292_v29 = vmul.f32 %v1771_v12, %v1602_v17  ;;  %v293_v30 = vmul.f32 %v1771_v12, %v1603_v18  ;;  %v1588_v36 = vld [vmem:[%s2260_s1 + $0x20] sm:$0xff]  ;;  %v771_v41 = vadd.f32 %v1776_v13, %v761_v31  ;;  %v770_v42 = vadd.f32 %v1776_v13, %v760_v33 }
  0x15   : > { %884 = vmatpush.bf16.msra.mxu3 %v1597_v9  ;;  %v1592_v37 = vld [vmem:[%s2260_s1 + $0x40] sm:$0xff]  ;;  %v772_v43 = vadd.f32 %v1776_v13, %v762_v34  ;;  %v773_v44 = vadd.f32 %v1776_v13, %v763_v35  ;;  %v764_v1 = vmul.f32 %v1771_v12, %v1639_v32  ;;  %v765_v3 = vmul.f32 %v1771_v12, %v1642_v38 }
  0x16   : > { %449 = vmatpush.bf16.msra.mxu0 %v1589_v10  ;;  %v305_v39 = vadd.f32 %v1776_v13, %v292_v29  ;;  %v306_v40 = vadd.f32 %v1776_v13, %v293_v30  ;;  %vm780_vm4 = vcmp.ge.f32.partialorder %v770_v42, 0.0  ;;  %vm781_vm5 = vcmp.ge.f32.partialorder %v771_v41, 0.0 }
  0x17   : > { %704 = vmatpush.bf16.msra.mxu2 %v1593_v11  ;;  %vm782_vm6 = vcmp.ge.f32.partialorder %v772_v43, 0.0  ;;  %vm783_vm7 = vcmp.ge.f32.partialorder %v773_v44, 0.0  ;;  %v790_v49 = vmul.f32 0.2, %v770_v42  ;;  %v791_v50 = vmul.f32 0.2, %v771_v41 }
  0x18   : > { %517 = vmatpush.bf16.msra.mxu1 %v1584_v27  ;;  %vm314_vm2 = vcmp.ge.f32.partialorder %v305_v39, 0.0  ;;  %vm315_vm3 = vcmp.ge.f32.partialorder %v306_v40, 0.0  ;;  %v323_v45 = vmul.f32 0.2, %v305_v39  ;;  %v324_v46 = vmul.f32 0.2, %v306_v40 }
  0x19   : > { %885 = vmatpush.bf16.msra.mxu3 %v1596_v28  ;;  %v792_v52 = vmul.f32 0.2, %v772_v43  ;;  %v793_v53 = vmul.f32 0.2, %v773_v44  ;;  %v800_v54 = vsel %vm780_vm4, %v770_v42, %v790_v49  ;;  %v801_v55 = vsel %vm781_vm5, %v771_v41, %v791_v50  ;;  %v1658_v27 = vld [vmem:[%s1766_s28 + $0x20] sm:$0xff]  }
  0x1a   : > { %450 = vmatpush.bf16.msra.mxu0 %v1588_v36  ;;  %v332_v47 = vsel %vm314_vm2, %v305_v39, %v323_v45  ;;  %v333_v48 = vsel %vm315_vm3, %v306_v40, %v324_v46  ;;  %v810_v59 = vpack.c.bf16 %v801_v55, %v800_v54  ;;  %v570_v5 = vadd.f32 %v1776_v13, %v561_v0  ;;  %v749_v46 = vld [vmem:[%s1766_s28 + $0x28] sm:$0x1] }
  0x1b   : > { %705 = vmatpush.bf16.msra.mxu2 %v1592_v37  ;;  %v341_v51 = vpack.c.bf16 %v333_v48, %v332_v47  ;;  %v802_v57 = vsel %vm782_vm6, %v772_v43, %v792_v52  ;;  %v803_v58 = vsel %vm783_vm7, %v773_v44, %v793_v53  ;;  %v774_v7 = vadd.f32 %v1776_v13, %v764_v1  ;;  %v278_v47 = vld [vmem:[%s1766_s28 + $0x20] sm:$0xf]  ;;  %s268_s28 = scalar_lea.vmem %s2265_s6, %s2295_s22 }
  0x1c   : > { %v1812_v60 = vpack.c.bf16 %v803_v58, %v802_v57  ;;  %v830_v62 = vrot.slane %v810_v59, 1  ;;  %v342_v4 = vpack.c.bf16 %v802_v57, %v801_v55  ;;  %v775_v10 = vadd.f32 %v1776_v13, %v765_v3 }
  0x1d   : > { %v367_v56 = vshll.u32 %v341_v51, 16  ;;  %1519 = vmatmul.msk.bf16.vlgmr.msra.gmra.mxu1 %vm427_vm0, %v341_v51  ;;  %v365_v61 = vshrl.u32 %v341_v51, 16  ;;  %vm579_vm9 = vcmp.ge.f32.partialorder %v570_v5, 0.0  ;;  %v588_v14 = vmul.f32 0.2, %v570_v5 }
  0x1e   : > { %v831_v2 = vrot.slane %v1812_v60, 1  ;;  %v628_v6 = vshll.u32 %v1812_v60, 16  ;;  %v372_v11 = vshll.u32 %v342_v4, 16  ;;  %vm784_vm10 = vcmp.ge.f32.partialorder %v774_v7, 0.0 }
  0x1f   : > { %v369_v63 = vrot.slane %v367_v56, 1  ;;  %vm785_vm11 = vcmp.ge.f32.partialorder %v775_v10, 0.0  ;;  %v794_v15 = vmul.f32 0.2, %v774_v7  ;;  %v795_v16 = vmul.f32 0.2, %v775_v10 }
  0x20   : > { %v832_v8 = vsel %vm829_vm1, %v830_v62, %v831_v2  ;;  %v374_v17 = vrot.slane %v372_v11, 1  ;;  %v597_v18 = vsel %vm579_vm9, %v570_v5, %v588_v14  ;;  %v1643_v28 = vunpack.c.h.bf16 %v1784_v23 }
  0x21   : > { %v370_v9 = vor.u32 %v369_v63, %v365_v61  ;;  %1577 = vmatmul.msk.bf16.vlgmr.msra.gmra.mxu3 %vm427_vm0, %v832_v8  ;;  %v606_v19 = vpack.c.bf16 %v801_v55, %v597_v18  ;;  %v804_v20 = vsel %vm784_vm10, %v774_v7, %v794_v15  ;;  %v805_v21 = vsel %vm785_vm11, %v775_v10, %v795_v16 }
  0x22   : > { %v1826_v26 = vpack.c.bf16 %v805_v21, %v804_v20  ;;  %v630_v30 = vrot.slane %v628_v6, 1  ;;  %v343_v31 = vpack.c.bf16 %v804_v20, %v803_v58  ;;  %v1646_v32 = vunpack.c.l.bf16 %v1658_v27 }
  0x23   : > { %v375_v22 = vsel %vm363_vm8, %v370_v9, %v374_v17  ;;  %v621_v24 = vshrl.u32 %v606_v19, 16  ;;  %v623_v25 = vshll.u32 %v606_v19, 16  ;;  %v766_v33 = vmul.f32 %v1771_v12, %v1643_v28 }
  0x24   : > { %1498 = vmatmul.msk.bf16.vlgmr.msra.gmra.mxu0 %vm427_vm0, %v375_v22  ;;  %v833_v35 = vrot.slane %v1826_v26, 1  ;;  %v376_v36 = vshrl.u32 %v342_v4, 16  ;;  %v380_v37 = vshll.u32 %v343_v31, 16  ;;  %v767_v38 = vmul.f32 %v1771_v12, %v1646_v32 }
  0x25   : > { %v625_v29 = vrot.slane %v623_v25, 1  ;;  %v776_v39 = vadd.f32 %v1776_v13, %v766_v33  ;;  %v632_v49 = vshrl.u32 %v1812_v60, 16  ;;  %v636_v50 = vshll.u32 %v1826_v26, 16 }
  0x26   : > { %v777_v40 = vadd.f32 %v1776_v13, %v767_v38  ;;  %v834_v41 = vsel %vm829_vm1, %v831_v2, %v833_v35  ;;  %v378_v42 = vor.u32 %v376_v36, %v374_v17  ;;  %v382_v43 = vrot.slane %v380_v37, 1 }
  0x27   : > { %v626_v34 = vor.u32 %v625_v29, %v621_v24  ;;  %v796_v44 = vmul.f32 0.2, %v776_v39  ;;  %vm786_vm12 = vcmp.ge.f32.partialorder %v776_v39, 0.0  ;;  %v1647_v53 = vunpack.c.h.bf16 %v1658_v27 }
  0x28   : > { %v797_v45 = vmul.f32 0.2, %v777_v40  ;;  %vm787_vm13 = vcmp.ge.f32.partialorder %v777_v40, 0.0  ;;  %v383_v48 = vsel %vm363_vm8, %v378_v42, %v382_v43  ;;  %v759_v54 = vunpack.c.l.bf16 %v749_v46 }
  0x29   : > { %v631_v23 = vsel %vm363_vm8, %v626_v34, %v630_v30  ;;  %v806_v51 = vsel %vm786_vm12, %v776_v39, %v796_v44  ;;  %v287_v55 = vunpack.c.l.bf16 %v278_v47  ;;  %v634_v56 = vor.u32 %v632_v49, %v630_v30 }
  0x2a   : > { %1548 = vmatmul.msk.bf16.vlgmr.msra.gmra.mxu2 %vm427_vm0, %v631_v23  ;;  %v807_v52 = vsel %vm787_vm13, %v777_v40, %v797_v45  ;;  %v638_v57 = vrot.slane %v636_v50, 1  ;;  %v344_v59 = vpack.c.bf16 %v806_v51, %v805_v21  ;;  %v768_v61 = vmul.f32 %v1771_v12, %v1647_v53 }
  0x2b   : > { %v813_v58 = vpack.c.bf16 %v807_v52, %v806_v51  ;;  %v769_v62 = vmul.f32 %v1771_v12, %v759_v54  ;;  %v300_v63 = vmul.f32 %v1771_v12, %v287_v55  ;;  %v384_v1 = vshrl.u32 %v343_v31, 16 }
  0x2c   : > { %v639_v60 = vsel %vm363_vm8, %v634_v56, %v638_v57  ;;  %v388_v2 = vshll.u32 %v344_v59, 16  ;;  %v778_v3 = vadd.f32 %v1776_v13, %v768_v61  ;;  %v640_v11 = vshrl.u32 %v1826_v26, 16 }
  0x2d   : > { %1520 = vmatmul.msk.bf16.gmra.mxu1 %vm427_vm0, %v342_v4  ;;  %v835_v0 = vrot.slane %v813_v58, 1  ;;  %v779_v4 = vadd.f32 %v1776_v13, %v769_v62  ;;  %v313_v5 = vadd.f32 %v1776_v13, %v300_v63  ;;  %v386_v7 = vor.u32 %v384_v1, %v382_v43 }
  0x2e   : > { %v390_v8 = vrot.slane %v388_v2, 1  ;;  %v798_v12 = vmul.f32 0.2, %v778_v3  ;;  %vm788_vm14 = vcmp.ge.f32.partialorder %v778_v3, 0.0  ;;  %v644_v14 = vshll.u32 %v813_v58, 16 }
  0x2f   : > { %v836_v6 = vsel %vm829_vm1, %v833_v35, %v835_v0  ;;  %v799_v9 = vmul.f32 0.2, %v779_v4  ;;  %vm789_vm15 = vcmp.ge.f32.partialorder %v779_v4, 0.0  ;;  %v331_v10 = vmul.f32 0.2, %v313_v5 }
  0x30   : > { %vm322_vm2 = vcmp.ge.f32.partialorder %v313_v5, 0.0  ;;  %v391_v15 = vsel %vm363_vm8, %v386_v7, %v390_v8  ;;  %v808_v13 = vsel %vm788_vm14, %v778_v3, %v798_v12  ;;  %v642_v18 = vor.u32 %v640_v11, %v638_v57 }
  0x31   : > { %1578 = vmatmul.msk.bf16.gmra.mxu3 %vm427_vm0, %v834_v41  ;;  %v809_v16 = vsel %vm789_vm15, %v779_v4, %v799_v9  ;;  %v340_v17 = vsel %vm322_vm2, %v313_v5, %v331_v10  ;;  %v646_v19 = vrot.slane %v644_v14, 1  ;;  %v392_v25 = vshrl.u32 %v344_v59, 16 }
  0x32   : > { %v814_v20 = vpack.c.bf16 %v809_v16, %v808_v13  ;;  %v345_v21 = vpack.c.bf16 %v340_v17, %v340_v17  ;;  %v610_v28 = vpack.c.bf16 %v808_v13, %v808_v13  ;;  %v920_v40 = vlaneseq }
  0x33   : > { %v647_v22 = vsel %vm363_vm8, %v642_v18, %v646_v19  ;;  %v394_v29 = vor.u32 %v392_v25, %v390_v8  ;;  %v1680_v54 = vmov 0   ;;  %vm1341_vm9 = vcmask 257024  }
  0x34   : > { %1499 = vmatmul.msk.bf16.gmra.mxu0 %vm427_vm0, %v383_v48  ;;  %v837_v24 = vrot.slane %v814_v20, 1  ;;  %v396_v27 = vshll.u32 %v345_v21, 16  ;;  %v652_v32 = vshll.u32 %v610_v28, 16  ;;  %v400_v37 = vshrl.u32 %v345_v21, 16 }
  0x35   : > { %v656_v39 = vshrl.u32 %v610_v28, 16  ;;  %v1873_v41 = vshrl.u32 %v920_v40, 7 }
  0x36   : > { %v838_v26 = vsel %vm829_vm1, %v835_v0, %v837_v24  ;;  %v398_v30 = vrot.slane %v396_v27, 1  ;;  %v654_v35 = vrot.slane %v652_v32, 1 }
  0x37   : > { %v933_v42 = vand.u32 65535, %v1873_v41  ;;  %v934_v43 = vshrl.u32 %v1873_v41, 16  ;;  %v1878_v48 = vadd.s32 8, %v1873_v41  ;;  %v1882_v52 = vadd.s32 16, %v1873_v41 }
  0x38   : > { %v399_v33 = vsel %vm363_vm8, %v394_v29, %v398_v30  ;;  %v402_v38 = vor.u32 %v400_v37, %v398_v30  ;;  %v658_v23 = vor.u32 %v656_v39, %v654_v35  ;;  %v1892_v7 = vadd.s32 24, %v1873_v41 }
  0x39   : > { %v937_v44 = vmul.u32 58254, %v933_v42  ;;  %v938_v45 = vmul.u32 14564, %v934_v43  ;;  %v936_v46 = vmul.u32 14564, %v933_v42  ;;  %v962_v51 = vand.u32 65535, %v1878_v48 }
  0x3a   : > { %1549 = vmatmul.msk.bf16.gmra.mxu2 %vm427_vm0, %v639_v60  ;;  %v939_v53 = vmul.u32 58254, %v934_v43  ;;  %v963_v56 = vshrl.u32 %v1878_v48, 16  ;;  %v992_v1 = vshrl.u32 %v1882_v52, 16  ;;  %v1020_v16 = vand.u32 65535, %v1892_v7 }
  0x3b   : > { %v940_v47 = vshll.u32 %v937_v44, 16  ;;  %v942_v49 = vshll.u32 %v938_v45, 16  ;;  %v966_v57 = vmul.u32 58254, %v962_v51  ;;  %v965_v63 = vmul.u32 14564, %v962_v51 }
  0x3c   : > { %v967_v60 = vmul.u32 14564, %v963_v56  ;;  %v941_v3 = vshrl.u32 %v937_v44, 16  ;;  %v1894_v12 = vmul.u32 14564, %v992_v1  ;;  %v943_v10 = vshrl.u32 %v938_v45, 16 }
  0x3d   : > { %1521 = vmatmul.msk.bf16.gmra.mxu1 %vm427_vm0, %v343_v31  ;;  %v648_v31 = vshrl.u32 %v813_v58, 16  ;;  %vm944_vm1 = vc.u32 %v936_v46, %v940_v47  ;;  %v946_v50 = vadd.s32 %v940_v47, %v936_v46  ;;  %v991_v58 = vand.u32 65535, %v1882_v52 }
  0x3e   : > { %v945_v55 = vsel %vm944_vm1, 1, %v1680_v54  ;;  %v969_v0 = vshll.u32 %v966_v57, 16  ;;  %v971_v5 = vshll.u32 %v967_v60, 16  ;;  %v968_v14 = vmul.u32 58254, %v963_v56 }
  0x3f   : > { %v650_v34 = vor.u32 %v648_v31, %v646_v19  ;;  %v1889_v2 = vmul.u32 58254, %v991_v58  ;;  %v994_v8 = vmul.u32 14564, %v991_v58  ;;  %v1000_v17 = vshll.u32 %v1894_v12, 16 }
  0x40   : > { %vm973_vm3 = vc.u32 %v965_v63, %v969_v0  ;;  %v997_v25 = vmul.u32 58254, %v992_v1  ;;  %v1021_v27 = vshrl.u32 %v1892_v7, 16  ;;  %v1905_v28 = vmul.u32 58254, %v1020_v16 }
  0x41   : > { %1579 = vmatmul.msk.bf16.gmra.mxu3 %vm427_vm0, %v836_v6  ;;  %v655_v36 = vsel %vm363_vm8, %v650_v34, %v654_v35  ;;  %v975_v6 = vadd.s32 %v969_v0, %v965_v63  ;;  %v998_v9 = vshll.u32 %v1889_v2, 16  ;;  %v974_v13 = vsel %vm973_vm3, 1, %v1680_v54 }
  0x42   : > { %v1908_v29 = vadd.s32 32, %v1873_v41  ;;  %v970_v31 = vshrl.u32 %v966_v57, 16  ;;  %v1912_v35 = vmul.u32 14564, %v1021_v27  ;;  %v1027_v39 = vshll.u32 %v1905_v28, 16 }
  0x43   : > { %vm977_vm4 = vc.u32 %v975_v6, %v971_v5  ;;  %vm1002_vm5 = vc.u32 %v994_v8, %v998_v9  ;;  %v1004_v18 = vadd.s32 %v998_v9, %v994_v8  ;;  %v972_v43 = vshrl.u32 %v967_v60, 16 }
  0x44   : > { %1500 = vmatmul.msk.bf16.gmra.mxu0 %vm427_vm0, %v391_v15  ;;  %v999_v46 = vshrl.u32 %v1889_v2, 16  ;;  %v1050_v56 = vshrl.u32 %v1908_v29, 16  ;;  %v1945_v5 = vadd.s32 56, %v1873_v41 }
  0x45   : > { %vm1006_vm6 = vc.u32 %v1004_v18, %v1000_v17 }
  0x46   : > { %v1007_v37 = vsel %vm1006_vm6, 1, %v1680_v54  ;;  %v1947_v8 = vmul.u32 14564, %v1050_v56 }
  0x4a   : > { %1550 = vmatmul.msk.bf16.gmra.mxu2 %vm427_vm0, %v647_v22 }
  0x4d   : > { %1522 = vmatmul.msk.bf16.gmra.mxu1 %vm427_vm0, %v344_v59  ;;  %v947_v59 = vadd.s32 %v945_v55, %v939_v53  ;;  %v1926_v55 = vadd.s32 48, %v1873_v41 }
  0x51   : > { %1580 = vmatmul.msk.bf16.gmra.mxu3 %vm427_vm0, %v838_v26  ;;  %v1003_v26 = vsel %vm1002_vm5, 1, %v1680_v54 }
  0x52   : > { %v1005_v34 = vadd.s32 %v1003_v26, %v997_v25  ;;  %v1136_v25 = vand.u32 65535, %v1945_v5  ;;  %v1058_v26 = vshll.u32 %v1947_v8, 16 }
  0x54   : > { %1501 = vmatmul.msk.bf16.gmra.mxu0 %vm427_vm0, %v399_v33  ;;  %v1009_v47 = vadd.s32 %v1007_v37, %v1005_v34  ;;  %v1030_v34 = vshrl.u32 %v1912_v35, 16 }
  0x56   : > { %v1010_v0 = vadd.s32 %v1009_v47, %v999_v46 }
  0x5a   : > { %1551 = vmatmul.msk.bf16.gmra.mxu2 %vm427_vm0, %v655_v36  ;;  %v1915_v36 = vadd.s32 40, %v1873_v41 }
  0x5d   : > { %1523 = vmatmul.msk.bf16.gmra.mxu1 %vm427_vm0, %v345_v21  ;;  %v976_v21 = vadd.s32 %v974_v13, %v968_v14 }
  0x61   : > { %1581 = vmatmul.msk.bf16.gmra.mxu3 %vm427_vm0, %v837_v24  ;;  %v978_v24 = vsel %vm977_vm4, 1, %v1680_v54 }
  0x62   : > { %v980_v32 = vadd.s32 %v978_v24, %v976_v21 }
  0x64   : > { %1502 = vmatmul.msk.bf16.gmra.mxu0 %vm427_vm0, %v402_v38  ;;  %v1023_v38 = vmul.u32 14564, %v1020_v16  ;;  %v981_v44 = vadd.s32 %v980_v32, %v970_v31 }
  0x66   : > { %vm1031_vm7 = vc.u32 %v1023_v38, %v1027_v39  ;;  %v1033_v53 = vadd.s32 %v1027_v39, %v1023_v38 }
  0x67   : > { %v1032_v1 = vsel %vm1031_vm7, 1, %v1680_v54 }
  0x6a   : > { %1552 = vmatmul.msk.bf16.gmra.mxu2 %vm427_vm0, %v658_v23  ;;  %vm948_vm0 = vc.u32 %v946_v50, %v942_v49  ;;  %v1049_v23 = vand.u32 65535, %v1908_v29  ;;  %v1029_v49 = vshll.u32 %v1912_v35, 16  ;;  %v1078_v50 = vand.u32 65535, %v1915_v36 }
  0x6b   : > { %v949_v62 = vsel %vm948_vm0, 1, %v1680_v54 }
  0x6c   : > { %v951_v4 = vadd.s32 %v949_v62, %v947_v59  ;;  %v1929_v57 = vmul.u32 58254, %v1049_v23  ;;  %v1934_v59 = vadd.s32 %v981_v44, %v972_v43  ;;  %v1026_v62 = vmul.u32 58254, %v1021_v27 }
  0x6d   : > { %v1941_v2 = vmul.u32 58254, %v1078_v50  ;;  %vm1035_vm8 = vc.u32 %v1033_v53, %v1029_v49  ;;  %v1052_v6 = vmul.u32 14564, %v1049_v23  ;;  %v1081_v18 = vmul.u32 14564, %v1078_v50 }
  0x6e   : > { %v952_v11 = vadd.s32 %v951_v4, %v941_v3  ;;  %v1107_v4 = vand.u32 65535, %v1926_v55  ;;  %v1056_v9 = vshll.u32 %v1929_v57, 16  ;;  %v1034_v13 = vadd.s32 %v1032_v1, %v1026_v62 }
  0x6f   : > { %v1036_v17 = vsel %vm1035_vm8, 1, %v1680_v54  ;;  %v1028_v27 = vshrl.u32 %v1905_v28, 16  ;;  %v1055_v23 = vmul.u32 58254, %v1050_v56  ;;  %v1137_v43 = vshrl.u32 %v1945_v5, 16 }
  0x70   : > { %v953_v20 = vadd.s32 %v952_v11, %v943_v10  ;;  %v1079_v10 = vshrl.u32 %v1915_v36, 16  ;;  %v983_v11 = vshrl.u32 %v1934_v59, 3  ;;  %v1968_v24 = vmul.u32 58254, %v1107_v4 }
  0x71   : > { %v1038_v37 = vadd.s32 %v1036_v17, %v1034_v13  ;;  %vm1060_vm10 = vc.u32 %v1052_v6, %v1056_v9  ;;  %v1110_v46 = vmul.u32 14564, %v1107_v4 }
  0x72   : > { %v954_v30 = vshrl.u32 %v953_v20, 3  ;;  %v1108_v20 = vshrl.u32 %v1926_v55, 16  ;;  %v1973_v31 = vmul.u32 14564, %v1079_v10  ;;  %v1061_v47 = vsel %vm1060_vm10, 1, %v1680_v54 }
  0x73   : > { %v1084_v62 = vmul.u32 58254, %v1079_v10  ;;  %v1039_v13 = vadd.s32 %v1038_v37, %v1028_v27  ;;  %v1063_v17 = vadd.s32 %v1061_v47, %v1055_v23  ;;  %v1086_v23 = vshrl.u32 %v1941_v2, 16 }
  0x74   : > { %v955_v40 = vmul.u32 9, %v954_v30  ;;  %v1062_v30 = vadd.s32 %v1056_v9, %v1052_v6  ;;  %v1985_v28 = vmul.u32 14564, %v1108_v20  ;;  %v1087_v50 = vshll.u32 %v1973_v31, 16 }
  0x75   : > { %v2010_v6 = vadd.s32 64, %v1873_v41  ;;  %v1040_v59 = vadd.s32 %v1039_v13, %v1030_v34 }
  0x76   : > { %v1932_v58 = vsub.s32 %v1873_v41, %v955_v40  ;;  %vm1992_vm12 = vc.u32 %v1062_v30, %v1058_v26 }
  0x77   : > { %v1165_v30 = vand.u32 65535, %v2010_v6 }
  0x78   : > { %vm1191_vm4 = vcmp.ne.s32.totalorder %v1932_v58, 0  ;;  %vm1200_vm5 = vcmp.lt.s32.totalorder %v1932_v58, 0 }
  0x79   : > { %v2033_v47 = vmul.u32 58254, %v1165_v30 }
  0x9a   : > { %v519_v61 = vpop.f32.mrf.mxu1 }
  0xa1   : > { %v452_v19 = vpop.f32.mrf.mxu0 }
  0xa2   : > { %v1897_v15 = vpop.f32.mrf.mxu1  ;;  %v520_v51 = vadd.f32 %v519_v61, %v452_v19  ;;  %v1001_v61 = vshrl.u32 %v1894_v12, 16  ;;  %v1085_v19 = vshll.u32 %v1941_v2, 16 }
  0xa4   : > { %v887_v22 = vpop.f32.mrf.mxu3  ;;  %vm1981_vm11 = vc.u32 %v1081_v18, %v1085_v19 }
  0xa5   : > { %v1090_v1 = vsel %vm1981_vm11, 1, %v1680_v54  ;;  %vm2088_vm11 = vmand %vm1200_vm5, %vm1191_vm4 }
  0xa9   : > { %v454_v42 = vpop.f32.mrf.mxu0 }
  0xaa   : > { %v1910_v33 = vpop.f32.mrf.mxu1  ;;  %v522_v32 = vadd.f32 %v1897_v15, %v454_v42  ;;  %v1114_v15 = vshll.u32 %v1968_v24, 16  ;;  %v1989_v42 = vmul.u32 58254, %v1136_v25 }
  0xac   : > { %v1920_v45 = vpop.f32.mrf.mxu3  ;;  %v1143_v4 = vshll.u32 %v1989_v42, 16  ;;  %vm1118_vm13 = vc.u32 %v1110_v46, %v1114_v15  ;;  %v1120_v10 = vadd.s32 %v1114_v15, %v1110_v46 }
  0xad   : > { %v707_v63 = vpop.f32.mrf.mxu2  ;;  %v1119_v27 = vsel %vm1118_vm13, 1, %v1680_v54 }
  0xae   : > { %v731_v3 = vadd.f32 %v707_v63, %v520_v51  ;;  %v1091_v51 = vadd.s32 %v1085_v19, %v1081_v18  ;;  %v1139_v63 = vmul.u32 14564, %v1136_v25  ;;  %v1065_v18 = vsel %vm1992_vm12, 1, %v1680_v54 }
  0xaf   : > { %v1113_v19 = vmul.u32 58254, %v1108_v20  ;;  %v1067_v20 = vadd.s32 %v1065_v18, %v1063_v17 }
  0xb0   : > { %v1951_v12 = vadd.f32 %v887_v22, %v731_v3  ;;  %v1966_v22 = vadd.s32 %v1010_v0, %v1001_v61  ;;  %v2000_v61 = vmul.u32 14564, %v1137_v43  ;;  %v1116_v3 = vshll.u32 %v1985_v28, 16 }
  0xb1   : > { %v457_v14 = vpop.f32.mrf.mxu0  ;;  %vm1093_vm14 = vc.u32 %v1091_v51, %v1087_v50  ;;  %vm1147_vm15 = vc.u32 %v1139_v63, %v1143_v4  ;;  %v1121_v15 = vadd.s32 %v1119_v27, %v1113_v19  ;;  %v1168_v51 = vmul.u32 14564, %v1165_v30 }
  0xb2   : > { %v1937_v60 = vpop.f32.mrf.mxu1  ;;  %v1332_v21 = vpack.c.bf16 %v1951_v12, %v1951_v12  ;;  %v525_v9 = vadd.f32 %v1910_v33, %v457_v14  ;;  %v1145_v41 = vshll.u32 %v2000_v61, 16  ;;  %v1057_v33 = vshrl.u32 %v1929_v57, 16 }
  0xb3   : > { %v1092_v14 = vadd.s32 %v1090_v1, %v1084_v62  ;;  %v1094_v37 = vsel %vm1093_vm14, 1, %v1680_v54  ;;  %vm1122_vm2 = vc.u32 %v1120_v10, %v1116_v3  ;;  %v1148_v40 = vsel %vm1147_vm15, 1, %v1680_v54 }
  0xb4   : > { %v1959_v16 = vpop.f32.mrf.mxu3  ;;  %1342 = vst.msk [vmem:[%s1957_s20] sm:$0xf] %vm1341_vm9, %v1332_v21  ;;  %v1149_v21 = vadd.s32 %v1143_v4, %v1139_v63  ;;  %v984_v62 = vmul.u32 9, %v983_v11  ;;  %v1172_v1 = vshll.u32 %v2033_v47, 16  ;;  %v1012_v3 = vshrl.u32 %v1966_v22, 3 }
  0xb5   : > { %v709_v38 = vpop.f32.mrf.mxu2  ;;  %v1096_v50 = vadd.s32 %v1094_v37, %v1092_v14  ;;  %v1059_v4 = vshrl.u32 %v1947_v8, 16  ;;  %v1115_v11 = vshrl.u32 %v1968_v24, 16  ;;  %v1088_v22 = vshrl.u32 %v1973_v31, 16 }
  0xb6   : > { %v732_v44 = vadd.f32 %v709_v38, %v522_v32  ;;  %v1142_v38 = vmul.u32 58254, %v1137_v43  ;;  %vm1151_vm1 = vc.u32 %v1149_v21, %v1145_v41  ;;  %v1123_v43 = vsel %vm1122_vm2, 1, %v1680_v54 }
  0xb7   : > { %v1125_v17 = vadd.s32 %v1123_v43, %v1121_v15  ;;  %v1097_v41 = vadd.s32 %v1096_v50, %v1086_v23  ;;  %vm1176_vm0 = vc.u32 %v1168_v51, %v1172_v1  ;;  %v1178_v24 = vadd.s32 %v1172_v1, %v1168_v51 }
  0xb8   : > { %v1998_v53 = vadd.f32 %v1920_v45, %v732_v44  ;;  %v1166_v44 = vshrl.u32 %v2010_v6, 16  ;;  %v1150_v63 = vadd.s32 %v1148_v40, %v1142_v38  ;;  %v1177_v34 = vsel %vm1176_vm0, 1, %v1680_v54 }
  0xb9   : > { %v459_v56 = vpop.f32.mrf.mxu0  ;;  %v2061_v13 = vsub.s32 %v1878_v48, %v984_v62  ;;  %v1117_v27 = vshrl.u32 %v1985_v28, 16  ;;  %v1126_v30 = vadd.s32 %v1125_v17, %v1115_v11  ;;  %v1098_v37 = vadd.s32 %v1097_v41, %v1088_v22 }
  0xba   : > { %v1979_v39 = vpop.f32.mrf.mxu1  ;;  %v1333_v45 = vpack.c.bf16 %v1998_v53, %v1998_v53  ;;  %v2038_v2 = vmul.u32 14564, %v1166_v44  ;;  %v527_v10 = vadd.f32 %v1937_v60, %v459_v56  ;;  %v1171_v60 = vmul.u32 58254, %v1166_v44 }
  0xbb   : > { %v1013_v56 = vmul.u32 9, %v1012_v3  ;;  %v1146_v38 = vshrl.u32 %v2000_v61, 16  ;;  %v1127_v61 = vadd.s32 %v1126_v30, %v1117_v27  ;;  %vm1192_vm6 = vcmp.ne.s32.totalorder %v2061_v13, 0 }
  0xbc   : > { %v2002_v0 = vpop.f32.mrf.mxu3  ;;  %1343 = vst.msk [vmem:[%s1957_s20 + $0x4] sm:$0xf] %vm1341_vm9, %v1333_v45  ;;  %v1068_v45 = vadd.s32 %v1067_v20, %v1057_v33  ;;  %v1174_v8 = vshll.u32 %v2038_v2, 16  ;;  %vm1201_vm7 = vcmp.lt.s32.totalorder %v2061_v13, 0  ;;  %v1175_v22 = vshrl.u32 %v2038_v2, 16 }
  0xbd   : > { %v712_v25 = vpop.f32.mrf.mxu2  ;;  %v1014_v40 = vsub.s32 %v1882_v52, %v1013_v56  ;;  %vm2100_vm12 = vmand %vm1201_vm7, %vm1192_vm6 }
  0xbe   : > { %v733_v32 = vadd.f32 %v712_v25, %v525_v9  ;;  %v1152_v9 = vsel %vm1151_vm1, 1, %v1680_v54  ;;  %v1144_v25 = vshrl.u32 %v1989_v42, 16  ;;  %v1069_v35 = vadd.s32 %v1068_v45, %v1059_v4 }
  0xbf   : > { %v1154_v33 = vadd.s32 %v1152_v9, %v1150_v63  ;;  %vm1180_vm3 = vc.u32 %v1178_v24, %v1174_v8  ;;  %vm1193_vm8 = vcmp.ne.s32.totalorder %v1014_v40, 0  ;;  %vm1202_vm10 = vcmp.lt.s32.totalorder %v1014_v40, 0 }
  0xc0   : > { %v2031_v46 = vadd.f32 %v1959_v16, %v733_v32  ;;  %v1041_v32 = vshrl.u32 %v1040_v59, 3  ;;  %v1070_v44 = vshrl.u32 %v1069_v35, 3  ;;  %v1181_v28 = vsel %vm1180_vm3, 1, %v1680_v54  ;;  %vm2108_vm13 = vmand %vm1202_vm10, %vm1193_vm8 }
  0xc1   : > { %v462_v57 = vpop.f32.mrf.mxu0  ;;  %v1155_v23 = vadd.s32 %v1154_v33, %v1144_v25  ;;  %v1173_v54 = vshrl.u32 %v2033_v47, 16  ;;  %v1218_v63 = vadd.s32 9, %v1932_v58  ;;  %v1128_v47 = vshrl.u32 %v1127_v61, 3 }
  0xc2   : > { %v2021_v26 = vpop.f32.mrf.mxu1  ;;  %v1334_v16 = vpack.c.bf16 %v2031_v46, %v2031_v46  ;;  %v530_v48 = vadd.f32 %v1979_v39, %v462_v57  ;;  %v1042_v15 = vmul.u32 9, %v1041_v32  ;;  %v1099_v57 = vshrl.u32 %v1098_v37, 3 }
  0xc3   : > { %v1156_v43 = vadd.s32 %v1155_v23, %v1146_v38  ;;  %v1071_v62 = vmul.u32 9, %v1070_v44  ;;  %v1219_v45 = vadd.s32 9, %v2061_v13  ;;  %v1220_v9 = vadd.s32 9, %v1014_v40 }
  0xc4   : > { %v2035_v49 = vpop.f32.mrf.mxu3  ;;  %1344 = vst.msk [vmem:[%s1957_s20 + $0x8] sm:$0xf] %vm1341_vm9, %v1334_v16  ;;  %v1100_v59 = vmul.u32 9, %v1099_v57  ;;  %v1129_v25 = vmul.u32 9, %v1128_v47  ;;  %vm1272_vm10 = vcmask 261120  }
  0xc5   : > { %v714_v18 = vpop.f32.mrf.mxu2  ;;  %v2116_v8 = vsub.s32 %v1908_v29, %v1071_v62  ;;  %v1228_v33 = vsel %vm2100_vm12, %v1219_v45, %v2061_v13  ;;  %v1229_v2 = vsel %vm2108_vm13, %v1220_v9, %v1014_v40 }
  0xc6   : > { %v734_v21 = vadd.f32 %v714_v18, %v527_v10  ;;  %v1043_v10 = vsub.s32 %v1892_v7, %v1042_v15  ;;  %v1157_v18 = vshrl.u32 %v1156_v43, 3  ;;  %v1227_v7 = vsel %vm2088_vm11, %v1218_v63, %v1932_v58 }
  0xc7   : > { %v2130_v29 = vsub.s32 %v1915_v36, %v1100_v59  ;;  %vm2134_vm2 = vcmp.ne.s32.totalorder %v1227_v7, 8  ;;  %vm1195_vm1 = vcmp.ne.s32.totalorder %v2116_v8, 0  ;;  %vm1204_vm0 = vcmp.lt.s32.totalorder %v2116_v8, 0 }
  0xc8   : > { %v2064_v14 = vadd.f32 %v2002_v0, %v734_v21  ;;  %v1179_v0 = vadd.s32 %v1177_v34, %v1171_v60  ;;  %vm1194_vm14 = vcmp.ne.s32.totalorder %v1043_v10, 0  ;;  %vm1203_vm15 = vcmp.lt.s32.totalorder %v1043_v10, 0  ;;  %vm2162_vm8 = vmand %vm1204_vm0, %vm1195_vm1 }
  0xc9   : > { %v464_v31 = vpop.f32.mrf.mxu0  ;;  %v1158_v35 = vmul.u32 9, %v1157_v18  ;;  %vm2140_vm3 = vcmp.ne.s32.totalorder %v1228_v33, 8  ;;  %v1221_v36 = vadd.s32 9, %v1043_v10  ;;  %vm2148_vm4 = vcmp.ne.s32.totalorder %v1229_v2, 8  ;;  %vm2153_vm5 = vmand %vm1203_vm15, %vm1194_vm14 }
  0xca   : > { %v2054_v19 = vpop.f32.mrf.mxu1  ;;  %v1335_v20 = vpack.c.bf16 %v2064_v14, %v2064_v14  ;;  %v1183_v51 = vadd.s32 %v1181_v28, %v1179_v0  ;;  %v532_v21 = vadd.f32 %v2021_v26, %v464_v31  ;;  %v1130_v31 = vsub.s32 %v1926_v55, %v1129_v25 }
  0xcb   : > { %v1222_v37 = vadd.s32 9, %v2116_v8  ;;  %vm1196_vm6 = vcmp.ne.s32.totalorder %v2130_v29, 0  ;;  %vm1205_vm7 = vcmp.lt.s32.totalorder %v2130_v29, 0  ;;  %v1223_v0 = vadd.s32 9, %v2130_v29 }
  0xcc   : > { %v2067_v42 = vpop.f32.mrf.mxu3  ;;  %1345 = vst.msk [vmem:[%s1957_s20 + $0xc] sm:$0xf] %vm1341_vm9, %v1335_v20  ;;  %v1184_v41 = vadd.s32 %v1183_v51, %v1173_v54  ;;  %v1263_v40 = vsel %vm2134_vm2, %v1951_v12, 0.0  ;;  %v1230_v44 = vsel %vm2153_vm5, %v1221_v36, %v1043_v10  ;;  %vm2176_vm11 = vmand %vm1205_vm7, %vm1196_vm6  ;;  %vm1197_vm12 = vcmp.ne.s32.totalorder %v1130_v31, 0 }
  0xcd   : > { %v717_v39 = vpop.f32.mrf.mxu2  ;;  %vm1206_vm13 = vcmp.lt.s32.totalorder %v1130_v31, 0  ;;  %v1231_v12 = vsel %vm2162_vm8, %v1222_v37, %v2116_v8  ;;  %v1224_v15 = vadd.s32 9, %v1130_v31  ;;  %v1299_v43 = vmul.f32 %v1263_v40, %v1263_v40 }
  0xce   : > { %v735_v52 = vadd.f32 %v717_v39, %v530_v48  ;;  %v1185_v34 = vadd.s32 %v1184_v41, %v1175_v22  ;;  %v1159_v48 = vsub.s32 %v1945_v5, %v1158_v35  ;;  %v1264_v5 = vsel %vm2140_vm3, %v1998_v53, 0.0  ;;  %vm2195_vm1 = vmand %vm1206_vm13, %vm1197_vm12 }
  0xcf   : > { %vm1239_vm2 = vcmp.ne.s32.totalorder %v1230_v44, 8  ;;  %v1232_v53 = vsel %vm2176_vm11, %v1223_v0, %v2130_v29  ;;  %v1274_v54 = vsel %vm1272_vm10, %v1264_v5, 0.0  ;;  %v1300_v51 = vmul.f32 %v1264_v5, %v1264_v5 }
  0xd0   : > { %v2094_v1 = vadd.f32 %v2035_v49, %v735_v52  ;;  %v1186_v23 = vshrl.u32 %v1185_v34, 3  ;;  %vm1198_vm14 = vcmp.ne.s32.totalorder %v1159_v48, 0  ;;  %vm1207_vm15 = vcmp.lt.s32.totalorder %v1159_v48, 0 }
  0xd1   : > { %v467_v3 = vpop.f32.mrf.mxu0  ;;  %v1225_v16 = vadd.s32 9, %v1159_v48  ;;  %vm1240_vm0 = vcmp.ne.s32.totalorder %v1231_v12, 8  ;;  %vm2203_vm3 = vmand %vm1207_vm15, %vm1198_vm14  ;;  %v1266_v9 = vsel %vm1239_vm2, %v2064_v14, 0.0  ;;  %v1233_v10 = vsel %vm2195_vm1, %v1224_v15, %v1130_v31 }
  0xd2   : > { %v2081_v50 = vpop.f32.mrf.mxu1  ;;  %v1336_v17 = vpack.c.bf16 %v2094_v1, %v2094_v1  ;;  %v535_v20 = vadd.f32 %v2054_v19, %v467_v3  ;;  %v1265_v19 = vsel %vm2148_vm4, %v2031_v46, 0.0  ;;  %v1187_v52 = vmul.u32 9, %v1186_v23 }
  0xd3   : > { %v1273_v3 = vsel %vm1272_vm10, %v1263_v40, 0.0  ;;  %v1301_v47 = vmul.f32 %v1265_v19, %v1265_v19  ;;  %v1308_v49 = vsel %vm1272_vm10, %v1299_v43, 0.0  ;;  %vm1241_vm4 = vcmp.ne.s32.totalorder %v1232_v53, 8  ;;  %v1353_v53 = vld [vmem:[%s1957_s20 + $0x20] sm:$0xf] }
  0xd4   : > { %v2106_v11 = vpop.f32.mrf.mxu3  ;;  %1346 = vst.msk [vmem:[%s1957_s20 + $0x10] sm:$0xf] %vm1341_vm9, %v1336_v17  ;;  %v1275_v17 = vadd.f32 %v1274_v54, %v1273_v3  ;;  %v1309_v18 = vsel %vm1272_vm10, %v1300_v51, 0.0  ;;  %v1267_v22 = vsel %vm1240_vm0, %v2094_v1, 0.0  ;;  %v1234_v14 = vsel %vm2203_vm3, %v1225_v16, %v1159_v48 }
  0xd5   : > { %v719_v60 = vpop.f32.mrf.mxu2  ;;  %v1276_v8 = vsel %vm1272_vm10, %v1265_v19, 0.0  ;;  %v1311_v7 = vsel %vm1272_vm10, %v1301_v47, 0.0  ;;  %vm1242_vm5 = vcmp.ne.s32.totalorder %v1233_v10, 8  ;;  %v1310_v1 = vadd.f32 %v1309_v18, %v1308_v49 }
  0xd6   : > { %v736_v58 = vadd.f32 %v719_v60, %v532_v21  ;;  %v1278_v2 = vsel %vm1272_vm10, %v1266_v9, 0.0  ;;  %v1303_v60 = vmul.f32 %v1267_v22, %v1267_v22  ;;  %vm1243_vm8 = vcmp.ne.s32.totalorder %v1234_v14, 8 }
  0xd7   : > { %v1312_v26 = vadd.f32 %v1311_v7, %v1310_v1  ;;  %v1280_v36 = vsel %vm1272_vm10, %v1267_v22, 0.0  ;;  %vm1351_vm12 = vsmask.f32 3328  ;;  %vm1288_vm14 = vcmask 260096  }
  0xd8   : > { %v2145_v13 = vadd.f32 %v2067_v42, %v736_v58  ;;  %v1315_v55 = vsel %vm1272_vm10, %v1303_v60, 0.0  ;;  %vm1352_vm15 = vmand %vm1341_vm9, %vm1351_vm12  ;;  %vm1297_vm1 = vcmask 253952  }
  0xd9   : > { %v469_v27 = vpop.f32.mrf.mxu0 }
  0xda   : > { %v2132_v56 = vpop.f32.mrf.mxu1  ;;  %v1337_v38 = vpack.c.bf16 %v2145_v13, %v2145_v13  ;;  %v537_v41 = vadd.f32 %v2081_v50, %v469_v27  ;;  %v1268_v25 = vsel %vm1241_vm4, %v2145_v13, 0.0  ;;  %v1277_v50 = vadd.f32 %v1276_v8, %v1275_v17 }
  0xdb   : > { %v1304_v13 = vmul.f32 %v1268_v25, %v1268_v25 }
  0xdc   : > { %v2160_v42 = vpop.f32.mrf.mxu3  ;;  %1347 = vst.msk [vmem:[%s1957_s20 + $0x14] sm:$0xf] %vm1341_vm9, %v1337_v38  ;;  %v1279_v30 = vadd.f32 %v1278_v2, %v1277_v50  ;;  %v1282_v38 = vsel %vm1272_vm10, %v1268_v25, 0.0 }
  0xdd   : > { %v722_v61 = vpop.f32.mrf.mxu2  ;;  %v1317_v40 = vsel %vm1272_vm10, %v1304_v13, 0.0 }
  0xde   : > { %v737_v57 = vadd.f32 %v722_v61, %v535_v20  ;;  %v1281_v23 = vadd.f32 %v1280_v36, %v1279_v30 }
  0xe0   : > { %v917_v62 = vadd.f32 %v2106_v11, %v737_v57  ;;  %v1188_v11 = vsub.s32 %v2010_v6, %v1187_v52  ;;  %v1302_v6 = vmul.f32 %v1266_v9, %v1266_v9  ;;  %v1283_v19 = vadd.f32 %v1282_v38, %v1281_v23 }
  0xe1   : > { %v472_v63 = vpop.f32.mrf.mxu0 }
  0xe2   : > { %v541_v39 = vpop.f32.mrf.mxu1  ;;  %v1338_v59 = vpack.c.bf16 %v917_v62, %v917_v62  ;;  %vm1199_vm6 = vcmp.ne.s32.totalorder %v1188_v11, 0  ;;  %vm1208_vm7 = vcmp.lt.s32.totalorder %v1188_v11, 0  ;;  %v1269_v29 = vsel %vm1242_vm5, %v917_v62, 0.0 }
  0xe3   : > { %v1226_v35 = vadd.s32 9, %v1188_v11  ;;  %v1313_v24 = vsel %vm1272_vm10, %v1302_v6, 0.0  ;;  %vm2227_vm11 = vmand %vm1208_vm7, %vm1199_vm6  ;;  %v1305_v20 = vmul.f32 %v1269_v29, %v1269_v29  ;;  %v1284_v44 = vsel %vm1272_vm10, %v1269_v29, 0.0 }
  0xe4   : > { %v907_v45 = vpop.f32.mrf.mxu3  ;;  %1348 = vst.msk [vmem:[%s1957_s20 + $0x18] sm:$0xf] %vm1341_vm9, %v1338_v59  ;;  %v1314_v48 = vadd.f32 %v1313_v24, %v1312_v26  ;;  %v1285_v57 = vadd.f32 %v1284_v44, %v1283_v19 }
  0xe5   : > { %v724_v21 = vpop.f32.mrf.mxu2  ;;  %v1235_v0 = vsel %vm2227_vm11, %v1226_v35, %v1188_v11  ;;  %v1319_v61 = vsel %vm1272_vm10, %v1305_v20, 0.0 }
  0xe6   : > { %v738_v33 = vadd.f32 %v724_v21, %v537_v41  ;;  %vm1244_vm13 = vcmp.ne.s32.totalorder %v1235_v0, 8 }
  0xe8   : > { %v918_v58 = vadd.f32 %v2160_v42, %v738_v33  ;;  %v540_v42 = vadd.f32 %v2132_v56, %v472_v63  ;;  %v1316_v56 = vadd.f32 %v1315_v55, %v1314_v48 }
  0xe9   : > { %v474_v34 = vpop.f32.mrf.mxu0 }
  0xea   : > { %v1270_v32 = vsel %vm1243_vm8, %v918_v58, 0.0  ;;  %v1339_v37 = vpack.c.bf16 %v918_v58, %v918_v58  ;;  %v1318_v39 = vadd.f32 %v1317_v40, %v1316_v56 }
  0xeb   : > { %v1306_v28 = vmul.f32 %v1270_v32, %v1270_v32  ;;  %v1286_v15 = vsel %vm1272_vm10, %v1270_v32, 0.0 }
  0xec   : > { %v909_v27 = vpop.f32.mrf.mxu3  ;;  %1349 = vst.msk [vmem:[%s1957_s20 + $0x1c] sm:$0xf] %vm1341_vm9, %v1339_v37  ;;  %v1320_v46 = vadd.f32 %v1319_v61, %v1318_v39  ;;  %v1287_v54 = vadd.f32 %v1286_v15, %v1285_v57  ;;  %vm1357_vm9 = vsmask.f32 7950 }
  0xed   : > { %v727_v5 = vpop.f32.mrf.mxu2  ;;  %v1321_v43 = vsel %vm1272_vm10, %v1306_v28, 0.0  ;;  %vm1356_vm10 = vcmask 257027  }
  0xee   : > { %v739_v12 = vadd.f32 %v727_v5, %v540_v42  ;;  %v1322_v3 = vadd.f32 %v1321_v43, %v1320_v46  ;;  %vm1358_vm2 = vmand %vm1356_vm10, %vm1357_vm9 }
  0xf0   : > { %v919_v52 = vadd.f32 %v907_v45, %v739_v12 }
  0xf2   : > { %v1271_v51 = vsel %vm1244_vm13, %v919_v52, 0.0  ;;  %v1340_v62 = vpack.c.bf16 %v919_v52, %v919_v52 }
  0xf3   : > { %v1289_v16 = vsel %vm1288_vm14, %v1271_v51, 0.0  ;;  %v1307_v63 = vmul.f32 %v1271_v51, %v1271_v51 }
  0xf4   : > { %v1290_v47 = vadd.f32 %v1289_v16, %v1287_v54  ;;  %v1354_v4 = vsel %vm1352_vm15, %v1340_v62, %v1353_v53 }
  0xf5   : > { %v1323_v9 = vsel %vm1288_vm14, %v1307_v63, 0.0  ;;  %1355 = vst [vmem:[%s1957_s20 + $0x20] sm:$0xf] %v1354_v4  ;;  %v729_v10 = vpop.f32.mrf.mxu2 }
  0xf6   : > { %v1291_v45 = vrot.slane %v1290_v47, 4  ;;  %v1324_v59 = vadd.f32 %v1323_v9, %v1322_v3 }
  0xf8   : > { %v1292_v11 = vadd.f32 %v1291_v45, %v1290_v47  ;;  %v1325_v49 = vrot.slane %v1324_v59, 4 }
  0xfa   : > { %v1293_v17 = vrot.slane %v1292_v11, 2  ;;  %v1326_v18 = vadd.f32 %v1325_v49, %v1324_v59 }
  0xfc   : > { %v1294_v22 = vadd.f32 %v1293_v17, %v1292_v11  ;;  %v1327_v41 = vrot.slane %v1326_v18, 2  ;;  %v1359_v14 = vld [vmem:[%s1957_s20 + $0x20] sm:$0x8] }
  0xfd   : > { %v1360_v8 = vsel %vm1358_vm2, 0, %v1359_v14 }
  0xfe   : > { %v1295_v7 = vrot.slane %v1294_v22, 1  ;;  %v1328_v6 = vadd.f32 %v1327_v41, %v1326_v18  ;;  %1361 = vst [vmem:[%s1957_s20 + $0x20] sm:$0x8] %v1360_v8 }
 0x100   : > { %v1296_v21 = vadd.f32 %v1295_v7, %v1294_v22  ;;  %v1329_v25 = vrot.slane %v1328_v6, 1 }
 0x102   : > { %1298 = vst.msk [vmem:[%s265_s25] sm:$0x1] %vm1297_vm1, %v1296_v21  ;;  %v1330_v33 = vadd.f32 %v1329_v25, %v1328_v6 }
 0x104   : > { %1331 = vst.msk [vmem:[%s268_s28] sm:$0x1] %vm1297_vm1, %v1330_v33 }
 0x105 PF: > { %s17_s21 = sadd.s32 1, %s1678_s21  }
 0x106   : > { %p14_p4 = scmp.ge.s32.totalorder %s17_s21, 4  }
 0x108   :  { %16 = sbr.rel (!%p14_p4) target bundleno = 1 (0x1), region = 93 }

// kernel: discriminator_forward.7
= control target key start
LH: loop header
LB: loop body
LE: loop exit
PB: predicated region body
PF: predicated region fallthrough
CT: control target
= control target key end

     0   :  { %s1280_s21 = smov 0   ;;  %s1495_s0 = inlined_call_operand.vmem [shape: bf16[2,25,128], index: 0, kind: input, shape index: {}]   ;;  %s1496_s1 = inlined_call_operand.vmem [shape: bf16[2,2,128,64], index: 1, kind: input, shape index: {}]   ;;  %s1497_s2 = inlined_call_operand.vmem [shape: f32[1,128], index: 2, kind: input, shape index: {}]   ;;  %s1498_s3 = inlined_call_operand.vmem [shape: f32[1,128], index: 3, kind: input, shape index: {}]   ;;  %s1499_s4 = inlined_call_operand.vmem [shape: bf16[2,20,64], index: 4, kind: output, shape index: {0}]   ;;  %s1500_s5 = inlined_call_operand.vmem [shape: f32[2,1,64], index: 5, kind: output, shape index: {1}]   ;;  %s1501_s6 = inlined_call_operand.vmem [shape: f32[2,1,64], index: 6, kind: output, shape index: {2}]  }
   0x1 LB: > { %s1001_s22 = sadd.s32 4294967295, %s1242_s21   ;;  %p1005_p0 = scmp.ge.s32.totalorder %s1242_s21, 1  ;;  %s1242_s21 = sphi %s1280_s21, %s17_s21  }
   0x2   : > { %p217_p1 = scmp.lt.s32.totalorder %s1242_s21, 3 }
   0x4   : > { %p218_p2 = pnand %p1005_p0, %p217_p1 }
   0x5   : > { %p253_p3 = scmp.lt.s32.totalorder (!%p218_p2), %s1001_s22, 1 }
   0x6   : > { %221 = sbr.rel (%p218_p2) target bundleno = 216 (0xd8), region = 36 }
   0xb   : > { %v1203_v0 = vld [vmem:[%s1496_s1 + $0x78] sm:$0xff]  ;;  %v1202_v4 = vld [vmem:[%s1496_s1 + $0x70] sm:$0xff]  ;;  %s1507_s22 = smov (!%p253_p3, %s1001_s22), 1  ;;  %v1201_v8 = vld [vmem:[%s1496_s1 + $0x68] sm:$0xff]  ;;  %vm334_vm5 = vsmask.f32 7424 }
   0xc   : > { %v1195_v1 = vld [vmem:[%s1496_s1 + $0x38] sm:$0xff]  ;;  %400 = vmatpush.bf16.msra.mxu0 %v1203_v0  ;;  %v1194_v5 = vld [vmem:[%s1496_s1 + $0x30] sm:$0xff]  ;;  %s1187_s15 = sshll.u32 %s1507_s22, 4  ;;  %v1193_v9 = vld [vmem:[%s1496_s1 + $0x28] sm:$0xff]  ;;  %vm517_vm10 = vsmask.f32 5376  ;;  %s265_s11 = scalar_lea.vmem %s1500_s5, %s1507_s22 }
   0xd   : > { %v1211_v2 = vld [vmem:[%s1496_s1 + $0xb8] sm:$0xff]  ;;  %466 = vmatpush.bf16.msra.mxu1 %v1195_v1  ;;  %v1210_v6 = vld [vmem:[%s1496_s1 + $0xb0] sm:$0xff]  ;;  %v1209_v10 = vld [vmem:[%s1496_s1 + $0xa8] sm:$0xff]  ;;  %s257_s28 = scalar_lea.vmem %s1495_s0, %s1187_s15  ;;  %vm655_vm11 = vcmask 1044480   ;;  %s1224_s29 = smul.u32 12, %s1507_s22 }
   0xe   : > { %v1219_v3 = vld [vmem:[%s1496_s1 + $0xf8] sm:$0xff]  ;;  %585 = vmatpush.bf16.msra.mxu2 %v1211_v2  ;;  %v1218_v7 = vld [vmem:[%s1496_s1 + $0xf0] sm:$0xff]  ;;  %v1217_v11 = vld [vmem:[%s1496_s1 + $0xe8] sm:$0xff]  ;;  %s268_s14 = scalar_lea.vmem %s1501_s6, %s1507_s22 }
   0xf   : > { %709 = vmatpush.bf16.msra.mxu3 %v1219_v3  ;;  %v1200_v12 = vld [vmem:[%s1496_s1 + $0x60] sm:$0xff]  ;;  %v272_v19 = vld [vmem:[%s257_s28 + $0x8] sm:$0x3]  ;;  %v1199_v30 = vld [vmem:[%s1496_s1 + $0x58] sm:$0xff]  ;;  %s1457_s8 = scalar_lea.vmem %s1499_s4, %s1224_s29 }
  0x10   : > { %401 = vmatpush.bf16.msra.mxu0 %v1202_v4  ;;  %v1192_v13 = vld [vmem:[%s1496_s1 + $0x20] sm:$0xff]  ;;  %v275_v21 = vunpack.c.l.bf16 %v272_v19  ;;  %v608_v29 = vld [vmem:[%s257_s28 + $0x8] sm:$0xf]  ;;  %v1191_v31 = vld [vmem:[%s1496_s1 + $0x18] sm:$0xff] }
  0x11   : > { %467 = vmatpush.bf16.msra.mxu1 %v1194_v5  ;;  %v1208_v14 = vld [vmem:[%s1496_s1 + $0xa0] sm:$0xff]  ;;  %v609_v34 = vld [vmem:[%s257_s28 + $0xc] sm:$0x1]  ;;  %v1207_v37 = vld [vmem:[%s1496_s1 + $0x98] sm:$0xff]  ;;  %v612_v42 = vunpack.c.l.bf16 %v608_v29 }
  0x12   : > { %586 = vmatpush.bf16.msra.mxu2 %v1210_v6  ;;  %v1216_v15 = vld [vmem:[%s1496_s1 + $0xe0] sm:$0xff]  ;;  %v1215_v38 = vld [vmem:[%s1496_s1 + $0xd8] sm:$0xff]  ;;  %v613_v45 = vunpack.c.l.bf16 %v609_v34  ;;  %v1198_v49 = vld [vmem:[%s1496_s1 + $0x50] sm:$0xff] }
  0x13   : > { %710 = vmatpush.bf16.msra.mxu3 %v1218_v7  ;;  %v1221_v16 = vld [vmem:[%s257_s28] sm:$0xff]   ;;  %v1190_v50 = vld [vmem:[%s1496_s1 + $0x10] sm:$0xff]  ;;  %v1197_v1 = vld [vmem:[%s1496_s1 + $0x48] sm:$0xff] }
  0x14   : > { %402 = vmatpush.bf16.msra.mxu0 %v1201_v8  ;;  %v1222_v17 = vunpack.c.l.bf16 %v1221_v16  ;;  %v1223_v18 = vunpack.c.h.bf16 %v1221_v16  ;;  %v1345_v20 = vld [vmem:[%s1497_s2] ss:$0 sm:$0xff]  ;;  %v484_v23 = vld [vmem:[%s257_s28] sm:$0xc]  ;;  %v485_v26 = vld [vmem:[%s257_s28 + $0x4] sm:$0xff]  }
  0x15   : > { %468 = vmatpush.bf16.msra.mxu1 %v1193_v9  ;;  %v1350_v22 = vld [vmem:[%s1498_s3] ss:$0 sm:$0xff]  ;;  %v486_v27 = vunpack.c.l.bf16 %v484_v23  ;;  %v606_v28 = vld [vmem:[%s257_s28] sm:$0x8]  ;;  %v282_v32 = vmul.f32 %v1345_v20, %v275_v21  ;;  %v487_v33 = vunpack.c.h.bf16 %v485_v26  ;;  %v611_v36 = vunpack.c.l.bf16 %v485_v26  ;;  %v1206_v54 = vld [vmem:[%s1496_s1 + $0x90] sm:$0xff] }
  0x16   : > { %587 = vmatpush.bf16.msra.mxu2 %v1209_v10  ;;  %v280_v24 = vmul.f32 %v1345_v20, %v1222_v17  ;;  %v281_v25 = vmul.f32 %v1345_v20, %v1223_v18  ;;  %v610_v35 = vunpack.c.l.bf16 %v606_v28  ;;  %v1214_v55 = vld [vmem:[%s1496_s1 + $0xd0] sm:$0xff]  ;;  %v616_v0 = vmul.f32 %v1345_v20, %v612_v42  ;;  %v1189_v2 = vld [vmem:[%s1496_s1 + $0x8] sm:$0xff]  ;;  %v1196_v19 = vld [vmem:[%s1496_s1 + $0x40] sm:$0xff] }
  0x17   : > { %711 = vmatpush.bf16.msra.mxu3 %v1217_v11  ;;  %v488_v41 = vmul.f32 %v1345_v20, %v486_v27  ;;  %v289_v43 = vadd.f32 %v1350_v22, %v282_v32  ;;  %v489_v44 = vmul.f32 %v1345_v20, %v487_v33  ;;  %v615_v58 = vmul.f32 %v1345_v20, %v611_v36  ;;  %v1205_v7 = vld [vmem:[%s1496_s1 + $0x88] sm:$0xff]  ;;  %v1204_v21 = vld [vmem:[%s1496_s1 + $0x80] sm:$0xff] }
  0x18   : > { %403 = vmatpush.bf16.msra.mxu0 %v1200_v12  ;;  %v287_v39 = vadd.f32 %v1350_v22, %v280_v24  ;;  %v288_v40 = vadd.f32 %v1350_v22, %v281_v25  ;;  %v614_v46 = vmul.f32 %v1345_v20, %v610_v35  ;;  %v617_v5 = vmul.f32 %v1345_v20, %v613_v45  ;;  %v1213_v8 = vld [vmem:[%s1496_s1 + $0xc8] sm:$0xff]  ;;  %v1188_v20 = vld [vmem:[%s1496_s1] sm:$0xff] }
  0x19   : > { %469 = vmatpush.bf16.msra.mxu1 %v1192_v13  ;;  %vm292_vm2 = vcmp.ge.f32.partialorder %v289_v43, 0.0  ;;  %v295_v51 = vmul.f32 0.2, %v289_v43  ;;  %v490_v52 = vadd.f32 %v1350_v22, %v488_v41  ;;  %v491_v53 = vadd.f32 %v1350_v22, %v489_v44 }
  0x1a   : > { %588 = vmatpush.bf16.msra.mxu2 %v1208_v14  ;;  %vm290_vm0 = vcmp.ge.f32.partialorder %v287_v39, 0.0  ;;  %vm291_vm1 = vcmp.ge.f32.partialorder %v288_v40, 0.0  ;;  %v293_v47 = vmul.f32 0.2, %v287_v39  ;;  %v294_v48 = vmul.f32 0.2, %v288_v40 }
  0x1b   : > { %712 = vmatpush.bf16.msra.mxu3 %v1216_v15  ;;  %v298_v59 = vsel %vm292_vm2, %v289_v43, %v295_v51  ;;  %vm492_vm3 = vcmp.ge.f32.partialorder %v490_v52, 0.0  ;;  %vm493_vm4 = vcmp.ge.f32.partialorder %v491_v53, 0.0  ;;  %v494_v62 = vmul.f32 0.2, %v490_v52 }
  0x1c   : > { %404 = vmatpush.bf16.msra.mxu0 %v1199_v30  ;;  %v296_v56 = vsel %vm290_vm0, %v287_v39, %v293_v47  ;;  %v297_v57 = vsel %vm291_vm1, %v288_v40, %v294_v48  ;;  %v1392_v61 = vpack.c.bf16 %v298_v59, %v298_v59  ;;  %v495_v63 = vmul.f32 0.2, %v491_v53 }
  0x1d   : > { %470 = vmatpush.bf16.msra.mxu1 %v1191_v31  ;;  %v1390_v60 = vpack.c.bf16 %v297_v57, %v296_v56  ;;  %v618_v6 = vadd.f32 %v1350_v22, %v614_v46  ;;  %v496_v10 = vsel %vm492_vm3, %v490_v52, %v494_v62  ;;  %v619_v12 = vadd.f32 %v1350_v22, %v615_v58 }
  0x1e   : > { %589 = vmatpush.bf16.msra.mxu2 %v1207_v37  ;;  %v343_v9 = vshll.u32 %v1392_v61, 16  ;;  %v497_v11 = vsel %vm493_vm4, %v491_v53, %v495_v63  ;;  %v498_v14 = vpack.c.bf16 %v297_v57, %v496_v10  ;;  %v620_v16 = vadd.f32 %v1350_v22, %v616_v0 }
  0x1f   : > { %713 = vmatpush.bf16.msra.mxu3 %v1215_v38  ;;  %v336_v3 = vshrl.u32 %v1390_v60, 16  ;;  %v338_v4 = vshll.u32 %v1390_v60, 16  ;;  %v499_v15 = vpack.c.bf16 %v497_v11, %v497_v11  ;;  %v621_v18 = vadd.f32 %v1350_v22, %v617_v5  ;;  %v1212_v22 = vld [vmem:[%s1496_s1 + $0xc0] sm:$0xff] }
  0x20   : > { %405 = vmatpush.bf16.msra.mxu0 %v1198_v49  ;;  %v345_v17 = vrot.slane %v343_v9, 1  ;;  %vm622_vm6 = vcmp.ge.f32.partialorder %v618_v6, 0.0  ;;  %v519_v24 = vshrl.u32 %v498_v14, 16  ;;  %v522_v25 = vshll.u32 %v498_v14, 16 }
  0x21   : > { %471 = vmatpush.bf16.msra.mxu1 %v1190_v50  ;;  %v340_v13 = vrot.slane %v338_v4, 1  ;;  %v527_v26 = vshrl.u32 %v499_v15, 16  ;;  %v530_v27 = vshll.u32 %v499_v15, 16  ;;  %vm623_vm7 = vcmp.ge.f32.partialorder %v619_v12, 0.0 }
  0x22   : > { %590 = vmatpush.bf16.msra.mxu2 %v1206_v54  ;;  %vm624_vm8 = vcmp.ge.f32.partialorder %v620_v16, 0.0  ;;  %v626_v28 = vmul.f32 0.2, %v618_v6  ;;  %v521_v29 = vrot.slane %v519_v24, 2  ;;  %v524_v30 = vrot.slane %v522_v25, 3 }
  0x23   : > { %714 = vmatpush.bf16.msra.mxu3 %v1214_v55  ;;  %v341_v23 = vor.u32 %v340_v13, %v336_v3  ;;  %v529_v31 = vrot.slane %v527_v26, 2  ;;  %vm625_vm9 = vcmp.ge.f32.partialorder %v621_v18, 0.0  ;;  %v532_v32 = vrot.slane %v530_v27, 3 }
  0x24   : > { %406 = vmatpush.bf16.msra.mxu0 %v1197_v1  ;;  %v627_v33 = vmul.f32 0.2, %v619_v12  ;;  %v628_v34 = vmul.f32 0.2, %v620_v16  ;;  %v630_v35 = vsel %vm622_vm6, %v618_v6, %v626_v28  ;;  %v525_v37 = vor.u32 %v524_v30, %v521_v29 }
  0x25   : > { %472 = vmatpush.bf16.msra.mxu1 %v1189_v2  ;;  %v346_v36 = vsel %vm334_vm5, %v341_v23, %v345_v17  ;;  %v629_v38 = vmul.f32 0.2, %v621_v18  ;;  %v533_v39 = vor.u32 %v532_v32, %v529_v31  ;;  %v347_v49 = vshrl.u32 %v1392_v61, 16 }
  0x26   : > { %591 = vmatpush.bf16.msra.mxu2 %v1205_v7  ;;  %v631_v40 = vsel %vm623_vm7, %v619_v12, %v627_v33  ;;  %v632_v41 = vsel %vm624_vm8, %v620_v16, %v628_v34  ;;  %v730_v51 = vlaneseq  ;;  %v1244_v12 = vmov 0  }
  0x27   : > { %715 = vmatpush.bf16.msra.mxu3 %v1213_v8  ;;  %v633_v42 = vsel %vm625_vm9, %v621_v18, %v629_v38  ;;  %v634_v43 = vpack.c.bf16 %v631_v40, %v630_v35  ;;  %v534_v44 = vsel %vm517_vm10, %v525_v37, %v533_v39  ;;  %v349_v50 = vor.u32 %v347_v49, %v345_v17 }
  0x28   : > { %407 = vmatpush.bf16.msra.mxu0 %v1196_v19  ;;  %v635_v45 = vpack.c.bf16 %v633_v42, %v632_v41  ;;  %v1437_v52 = vshrl.u32 %v730_v51, 7  ;;  %vm881_vm6 = vcmask 519168  }
  0x29   : > { %473 = vmatpush.bf16.msra.mxu1 %v1188_v20  ;;  %v656_v46 = vrot.slane %v634_v43, 3 }
  0x2a   : > { %592 = vmatpush.bf16.msra.mxu2 %v1204_v21  ;;  %v657_v47 = vrot.slane %v635_v45, 3  ;;  %v1440_v53 = vadd.s32 8, %v1437_v52  ;;  %v737_v54 = vand.u32 65535, %v1437_v52  ;;  %v738_v57 = vshrl.u32 %v1437_v52, 16 }
  0x2b   : > { %716 = vmatpush.bf16.msra.mxu3 %v1212_v22  ;;  %408 = vmatmul.bf16.vlgmr.msra.gmra.mxu0 %v346_v36  ;;  %v1447_v63 = vadd.s32 16, %v1437_v52 }
  0x2c   : > { %474 = vmatmul.bf16.vlgmr.msra.gmra.mxu1 %v1390_v60  ;;  %v658_v48 = vsel %vm655_vm11, %v656_v46, %v657_v47  ;;  %v766_v55 = vand.u32 65535, %v1440_v53  ;;  %v767_v56 = vshrl.u32 %v1440_v53, 16  ;;  %v741_v59 = vmul.u32 52428, %v737_v54 }
  0x2d   : > { %593 = vmatmul.bf16.vlgmr.msra.gmra.mxu2 %v534_v44  ;;  %v742_v0 = vmul.u32 52429, %v738_v57  ;;  %v740_v1 = vmul.u32 52429, %v737_v54  ;;  %v795_v3 = vand.u32 65535, %v1447_v63  ;;  %v796_v6 = vshrl.u32 %v1447_v63, 16 }
  0x2e   : > { %717 = vmatmul.bf16.vlgmr.msra.gmra.mxu3 %v658_v48  ;;  %v770_v58 = vmul.u32 52428, %v766_v55  ;;  %v771_v60 = vmul.u32 52429, %v767_v56  ;;  %v744_v2 = vshll.u32 %v741_v59, 16  ;;  %v772_v10 = vmul.u32 52428, %v767_v56 }
  0x2f   : > { %v799_v7 = vmul.u32 52428, %v795_v3  ;;  %v746_v8 = vshll.u32 %v742_v0, 16  ;;  %v743_v11 = vmul.u32 52428, %v738_v57  ;;  %v798_v14 = vmul.u32 52429, %v795_v3 }
  0x30   : > { %v773_v62 = vshll.u32 %v770_v58, 16  ;;  %v775_v4 = vshll.u32 %v771_v60, 16  ;;  %vm748_vm13 = vc.u32 %v740_v1, %v744_v2  ;;  %v750_v9 = vadd.s32 %v744_v2, %v740_v1 }
  0x31   : > { %v800_v15 = vmul.u32 52429, %v796_v6  ;;  %v802_v16 = vshll.u32 %v799_v7, 16  ;;  %v749_v17 = vsel %vm748_vm13, 1, %v1244_v12  ;;  %v774_v25 = vshrl.u32 %v770_v58, 16 }
  0x32   : > { %vm752_vm15 = vc.u32 %v750_v9, %v746_v8  ;;  %v751_v20 = vadd.s32 %v749_v17, %v743_v11  ;;  %v801_v22 = vmul.u32 52428, %v796_v6  ;;  %v745_v28 = vshrl.u32 %v741_v59, 16 }
  0x33   : > { %v804_v21 = vshll.u32 %v800_v15, 16  ;;  %vm806_vm0 = vc.u32 %v798_v14, %v802_v16  ;;  %v808_v23 = vadd.s32 %v802_v16, %v798_v14  ;;  %v753_v24 = vsel %vm752_vm15, 1, %v1244_v12 }
  0x34   : > { %v807_v27 = vsel %vm806_vm0, 1, %v1244_v12  ;;  %v755_v29 = vadd.s32 %v753_v24, %v751_v20  ;;  %v776_v30 = vshrl.u32 %v771_v60, 16  ;;  %v747_v34 = vshrl.u32 %v742_v0, 16 }
  0x35   : > { %vm810_vm1 = vc.u32 %v808_v23, %v804_v21  ;;  %v809_v32 = vadd.s32 %v807_v27, %v801_v22  ;;  %v803_v37 = vshrl.u32 %v799_v7, 16  ;;  %v805_v41 = vshrl.u32 %v800_v15, 16 }
  0x36   : > { %v811_v33 = vsel %vm810_vm1, 1, %v1244_v12  ;;  %v756_v35 = vadd.s32 %v755_v29, %v745_v28  ;;  %vm884_vm15 = vcmask 517120   ;;  %vm885_vm0 = vsmask.f32 1280  ;;  %v887_v28 = vld [vmem:[%s1457_s8 + $0x8] sm:$0x3] }
  0x37   : > { %v813_v38 = vadd.s32 %v811_v33, %v809_v32 }
  0x39   : > { %v814_v42 = vadd.s32 %v813_v38, %v803_v37 }
  0x3b   : > { %413 = vmatmul.bf16.gmra.mxu0 %v349_v50 }
  0x3c   : > { %479 = vmatmul.bf16.gmra.mxu1 %v1392_v61  ;;  %v769_v61 = vmul.u32 52429, %v766_v55 }
  0x3d   : > { %598 = vmatmul.bf16.gmra.mxu2 %v533_v39  ;;  %v757_v39 = vadd.s32 %v756_v35, %v747_v34 }
  0x3e   : > { %722 = vmatmul.bf16.gmra.mxu3 %v657_v47  ;;  %vm777_vm12 = vc.u32 %v769_v61, %v773_v62  ;;  %v779_v5 = vadd.s32 %v773_v62, %v769_v61  ;;  %v815_v47 = vadd.s32 %v814_v42, %v805_v41 }
  0x3f   : > { %v778_v13 = vsel %vm777_vm12, 1, %v1244_v12  ;;  %v758_v45 = vshrl.u32 %v757_v39, 2 }
  0x40   : > { %vm781_vm14 = vc.u32 %v779_v5, %v775_v4  ;;  %v780_v18 = vadd.s32 %v778_v13, %v772_v10  ;;  %v816_v51 = vshrl.u32 %v815_v47, 2 }
  0x41   : > { %v782_v19 = vsel %vm781_vm14, 1, %v1244_v12  ;;  %v759_v49 = vmul.u32 5, %v758_v45  ;;  %vm848_vm14 = vcmask 523264  }
  0x42   : > { %v784_v26 = vadd.s32 %v782_v19, %v780_v18  ;;  %v817_v59 = vmul.u32 5, %v816_v51 }
  0x43   : > { %v760_v56 = vsub.s32 %v1437_v52, %v759_v49 }
  0x44   : > { %v785_v31 = vadd.s32 %v784_v26, %v774_v25  ;;  %v818_v2 = vsub.s32 %v1447_v63, %v817_v59 }
  0x45   : > { %vm821_vm4 = vcmp.ne.s32.totalorder %v760_v56, 0  ;;  %vm824_vm5 = vcmp.lt.s32.totalorder %v760_v56, 0 }
  0x46   : > { %v786_v36 = vadd.s32 %v785_v31, %v776_v30  ;;  %vm827_vm8 = vmand %vm824_vm5, %vm821_vm4  ;;  %vm823_vm9 = vcmp.ne.s32.totalorder %v818_v2, 0  ;;  %vm826_vm10 = vcmp.lt.s32.totalorder %v818_v2, 0  ;;  %v832_v12 = vadd.s32 5, %v818_v2 }
  0x47   : > { %vm1468_vm13 = vmand %vm826_vm10, %vm823_vm9  ;;  %vm890_vm4 = vcmask 517121   ;;  %vm891_vm5 = vsmask.f32 7942 }
  0x48   : > { %v787_v40 = vshrl.u32 %v786_v36, 2  ;;  %v835_v18 = vsel %vm1468_vm13, %v832_v12, %v818_v2 }
  0x49   : > { %vm838_vm1 = vcmp.ne.s32.totalorder %v835_v18, 4 }
  0x4a   : > { %v788_v46 = vmul.u32 5, %v787_v40 }
  0x4c   : > { %v789_v50 = vsub.s32 %v1440_v53, %v788_v46  ;;  %v830_v53 = vadd.s32 5, %v760_v56 }
  0x4e   : > { %vm822_vm2 = vcmp.ne.s32.totalorder %v789_v50, 0  ;;  %vm825_vm3 = vcmp.lt.s32.totalorder %v789_v50, 0  ;;  %v831_v62 = vadd.s32 5, %v789_v50  ;;  %v833_v8 = vsel %vm827_vm8, %v830_v53, %v760_v56 }
  0x4f   : > { %vm1459_vm7 = vmand %vm825_vm3, %vm822_vm2  ;;  %vm836_vm12 = vcmp.ne.s32.totalorder %v833_v8, 4  ;;  %vm852_vm2 = vcmask 518144  }
  0x50   : > { %v834_v5 = vsel %vm1459_vm7, %v831_v62, %v789_v50  ;;  %vm886_vm3 = vmand %vm884_vm15, %vm885_vm0  ;;  %vm861_vm7 = vcmask 516096  }
  0x51   : > { %vm837_vm11 = vcmp.ne.s32.totalorder %v834_v5, 4 }
  0xa8   : > { %v409_v43 = vpop.f32.mrf.mxu0 }
  0xa9   : > { %v475_v44 = vpop.f32.mrf.mxu1 }
  0xaa   : > { %v476_v48 = vadd.f32 %v475_v44, %v409_v43 }
  0xb0   : > { %v594_v54 = vpop.f32.mrf.mxu2  ;;  %v411_v57 = vpop.f32.mrf.mxu0 }
  0xb1   : > { %v603_v55 = vadd.f32 %v594_v54, %v476_v48  ;;  %v477_v58 = vpop.f32.mrf.mxu1  ;;  %v718_v60 = vpop.f32.mrf.mxu3 }
  0xb2   : > { %v478_v1 = vadd.f32 %v477_v58, %v411_v57 }
  0xb3   : > { %v727_v61 = vadd.f32 %v718_v60, %v603_v55 }
  0xb5   : > { %v878_v0 = vpack.c.bf16 %v727_v61, %v727_v61  ;;  %v845_v16 = vsel %vm836_vm12, %v727_v61, 0.0 }
  0xb6   : > { %v863_v23 = vmul.f32 %v845_v16, %v845_v16  ;;  %v849_v22 = vsel %vm848_vm14, %v845_v16, 0.0 }
  0xb7   : > { %882 = vst.msk [vmem:[%s1457_s8] sm:$0xf] %vm881_vm6, %v878_v0 }
  0xb8   : > { %v596_v3 = vpop.f32.mrf.mxu2  ;;  %v414_v6 = vpop.f32.mrf.mxu0  ;;  %v866_v32 = vsel %vm848_vm14, %v863_v23, 0.0 }
  0xb9   : > { %v604_v4 = vadd.f32 %v596_v3, %v478_v1  ;;  %v480_v7 = vpop.f32.mrf.mxu1  ;;  %v720_v9 = vpop.f32.mrf.mxu3 }
  0xba   : > { %v481_v11 = vadd.f32 %v480_v7, %v414_v6 }
  0xbb   : > { %v728_v10 = vadd.f32 %v720_v9, %v604_v4 }
  0xbd   : > { %v846_v13 = vsel %vm837_vm11, %v728_v10, 0.0  ;;  %v879_v14 = vpack.c.bf16 %v728_v10, %v728_v10 }
  0xbe   : > { %v864_v21 = vmul.f32 %v846_v13, %v846_v13  ;;  %v850_v24 = vsel %vm848_vm14, %v846_v13, 0.0 }
  0xbf   : > { %883 = vst.msk [vmem:[%s1457_s8 + $0x4] sm:$0xf] %vm881_vm6, %v879_v14  ;;  %v851_v29 = vadd.f32 %v850_v24, %v849_v22  ;;  %vm892_vm6 = vmand %vm890_vm4, %vm891_vm5 }
  0xc0   : > { %v599_v15 = vpop.f32.mrf.mxu2  ;;  %v416_v19 = vpop.f32.mrf.mxu0  ;;  %v867_v27 = vsel %vm848_vm14, %v864_v21, 0.0 }
  0xc1   : > { %v605_v17 = vadd.f32 %v599_v15, %v481_v11  ;;  %v482_v20 = vpop.f32.mrf.mxu1  ;;  %v723_v25 = vpop.f32.mrf.mxu3  ;;  %v868_v36 = vadd.f32 %v867_v27, %v866_v32 }
  0xc3   : > { %v729_v26 = vadd.f32 %v723_v25, %v605_v17 }
  0xc5   : > { %v847_v30 = vsel %vm838_vm1, %v729_v26, 0.0  ;;  %v880_v31 = vpack.c.bf16 %v729_v26, %v729_v26 }
  0xc6   : > { %v853_v33 = vsel %vm852_vm2, %v847_v30, 0.0  ;;  %v865_v34 = vmul.f32 %v847_v30, %v847_v30 }
  0xc7   : > { %v854_v37 = vadd.f32 %v853_v33, %v851_v29  ;;  %v888_v38 = vsel %vm886_vm3, %v880_v31, %v887_v28 }
  0xc8   : > { %v601_v35 = vpop.f32.mrf.mxu2  ;;  %v869_v39 = vsel %vm852_vm2, %v865_v34, 0.0  ;;  %889 = vst [vmem:[%s1457_s8 + $0x8] sm:$0x3] %v888_v38 }
  0xc9   : > { %v855_v40 = vrot.slane %v854_v37, 4  ;;  %v870_v41 = vadd.f32 %v869_v39, %v868_v36  ;;  %v725_v42 = vpop.f32.mrf.mxu3 }
  0xcb   : > { %v856_v43 = vadd.f32 %v855_v40, %v854_v37  ;;  %v871_v44 = vrot.slane %v870_v41, 4 }
  0xcd   : > { %v857_v45 = vrot.slane %v856_v43, 2  ;;  %v872_v46 = vadd.f32 %v871_v44, %v870_v41 }
  0xcf   : > { %v858_v47 = vadd.f32 %v857_v45, %v856_v43  ;;  %v873_v48 = vrot.slane %v872_v46, 2  ;;  %v893_v49 = vld [vmem:[%s1457_s8 + $0x8] sm:$0x2] }
  0xd0   : > { %v894_v50 = vsel %vm892_vm6, 0, %v893_v49 }
  0xd1   : > { %v859_v51 = vrot.slane %v858_v47, 1  ;;  %v874_v54 = vadd.f32 %v873_v48, %v872_v46  ;;  %895 = vst [vmem:[%s1457_s8 + $0x8] sm:$0x2] %v894_v50 }
  0xd3   : > { %v860_v55 = vadd.f32 %v859_v51, %v858_v47  ;;  %v875_v56 = vrot.slane %v874_v54, 1 }
  0xd5   : > { %862 = vst.msk [vmem:[%s265_s11] sm:$0x1] %vm861_vm7, %v860_v55  ;;  %v876_v57 = vadd.f32 %v875_v56, %v874_v54 }
  0xd7   : > { %877 = vst.msk [vmem:[%s268_s14] sm:$0x1] %vm861_vm7, %v876_v57 }
  0xd8 PF: > { %s17_s21 = sadd.s32 1, %s1242_s21  }
  0xd9   : > { %p14_p4 = scmp.ge.s32.totalorder %s17_s21, 4  }
  0xdb   :  { %16 = sbr.rel (!%p14_p4) target bundleno = 1 (0x1), region = 93 }

</bundles_post_ra>
